<compile_context>
chip_gen: v6e
topology: v6e:2x2x1
jax: 0.10.0
libtpu: 0.0.40
codegen_flags: <defaults>
</compile_context>

<pallas_src>
import functools
import math

import jax
import jax.numpy as jnp
from jax.experimental import pallas as pl
from jax.experimental.pallas import tpu as pltpu


# -----------------------------------------------------------------------------
# Pallas kernel: one (batch, q-tile) step of the decoder layer.
# -----------------------------------------------------------------------------
def _decoder_layer_kernel(
    x_ref,       # (1, tq, D)  f32   q-tile rows of the input
    sa_w_ref,    # (1, D)      f32   RMSNorm scale (pre-attention)
    wqkv_ref,    # (D, 3D)     bf16  fused q|k|v projection (1/sqrt(hd) in q)
    wo_ref,      # (D, D)      bf16  output projection
    mlp_w_ref,   # (1, D)      f32   RMSNorm scale (pre-MLP)
    w13_ref,     # (D, 2H)     bf16  fused gate|up projection
    w2_ref,      # (H, D)      bf16  down projection
    cos_ref,     # (tq, hd)    f32   RoPE cos rows for this q-tile
    sin_ref,     # (tq, hd)    f32   RoPE sin rows (rotation sign folded in)
    o_ref,       # (1, tq, D)
    k_sc,        # (n_q, nH, tq, hd) bf16  persistent per-batch K cache
    v_sc,        # (n_q, nH, tq, hd) bf16  persistent per-batch V cache
    *,
    num_heads: int,
    head_dim: int,
    mlp_hidden: int,
):
    q_idx = pl.program_id(1)
    nH, hd, H = num_heads, head_dim, mlp_hidden
    x = x_ref[0]                               # [tq, D] f32
    tq, D = x.shape
    eps = 1e-6

    def rmsnorm(v, w):                         # stats in f32
        ms = jnp.mean(v * v, axis=-1, keepdims=True)
        return v * jax.lax.rsqrt(ms + eps) * w

    # ---- pre-attention norm + fused QKV projection (bf16 MXU, f32 acc) ------
    xn = rmsnorm(x, sa_w_ref[0]).astype(jnp.bfloat16)
    qkv = jnp.dot(xn, wqkv_ref[...], preferred_element_type=jnp.float32)  # [tq,3D]

    cos = cos_ref[...][None]                   # [1, tq, hd]
    sin = sin_ref[...][None]                   # [1, tq, hd] (sign folded in)

    def heads(mat):                            # [tq, D] -> [nH, tq, hd], once
        return jnp.transpose(mat.reshape(tq, nH, hd), (1, 0, 2))

    def rope(t):                               # [nH, tq, hd] f32 -> bf16
        rolled = pltpu.roll(t, shift=hd // 2, axis=2)       # XLU rotate-half
        return (t * cos + rolled * sin).astype(jnp.bfloat16)

    qh = rope(heads(qkv[:, :D]))                            # [nH, tq, hd]
    kh = rope(heads(qkv[:, D:2 * D]))
    vh = heads(qkv[:, 2 * D:]).astype(jnp.bfloat16)

    # Append this tile's K/V to the running per-batch cache. The q-tile grid
    # axis runs in order, so tiles 0..q_idx are always present when read below.
    k_sc[q_idx] = kh
    v_sc[q_idx] = vh

    # ---- flash attention over KV tiles 0..q_idx (online softmax, f32) -------
    # Causal mask without any [S,S] bias array:
    #   global_q >= global_k  <=>  (row - col) >= (t - q_idx) * tq
    rel = (jax.lax.broadcasted_iota(jnp.int32, (tq, tq), 0)
           - jax.lax.broadcasted_iota(jnp.int32, (tq, tq), 1))

    m0 = jnp.full((nH, tq, 1), -jnp.inf, dtype=jnp.float32)
    l0 = jnp.zeros((nH, tq, 1), dtype=jnp.float32)
    a0 = jnp.zeros((nH, tq, hd), dtype=jnp.float32)

    def kv_step(t, carry):
        m, l, acc = carry
        kt = k_sc[t]                                        # [nH, tq, hd] bf16
        vt = v_sc[t]
        s = jnp.einsum("hqd,hkd->hqk", qh, kt,
                       preferred_element_type=jnp.float32)  # [nH, tq, tq] f32
        allow = rel >= (t - q_idx) * tq
        s = jnp.where(allow[None], s, -1e30)
        m_new = jnp.maximum(m, jnp.max(s, axis=-1, keepdims=True))
        alpha = jnp.exp(m - m_new)
        p = jnp.exp(s - m_new)
        l_new = alpha * l + jnp.sum(p, axis=-1, keepdims=True)
        acc_new = alpha * acc + jnp.einsum(
            "hqk,hkd->hqd", p.astype(jnp.bfloat16), vt,
            preferred_element_type=jnp.float32)
        return m_new, l_new, acc_new

    # Tiles above the diagonal are fully masked -> skipped by the loop bound.
    m, l, acc = jax.lax.fori_loop(0, q_idx + 1, kv_step, (m0, l0, a0))

    attn = acc * pl.reciprocal(l, approx=True)              # [nH, tq, hd] f32
    attn = jnp.transpose(attn, (1, 0, 2)).reshape(tq, D).astype(jnp.bfloat16)
    attn_out = jnp.dot(attn, wo_ref[...], preferred_element_type=jnp.float32)

    # ---- first residual (f32) ------------------------------------------------
    h = x + attn_out                                        # [tq, D]

    # ---- pre-MLP norm + SwiGLU (fused gate|up) -------------------------------
    hn = rmsnorm(h, mlp_w_ref[0]).astype(jnp.bfloat16)
    gu = jnp.dot(hn, w13_ref[...], preferred_element_type=jnp.float32)   # [tq,2H]
    g = gu[:, :H]
    u = gu[:, H:]
    silu = g * pl.reciprocal(1.0 + jnp.exp(-g), approx=True)            # SiLU
    mlp_out = jnp.dot((silu * u).astype(jnp.bfloat16), w2_ref[...],
                      preferred_element_type=jnp.float32)

    # ---- second residual ------------------------------------------------------
    o_ref[0] = (h + mlp_out).astype(o_ref.dtype)


# -----------------------------------------------------------------------------
# Wrapper: builds RoPE tables, fuses + casts weights, sets up grid / specs.
# -----------------------------------------------------------------------------
def decoder_layer(x, params, *, num_heads, q_tile=256):
    B, S, D = x.shape
    assert D % num_heads == 0
    hd = D // num_heads
    assert hd % 2 == 0
    H = params["w1"].shape[0]                  # MLP hidden dim (torch [out, in])
    tq = min(q_tile, S)
    assert S % tq == 0 and tq % 8 == 0, "S must be a multiple of the q tile"
    n_q = S // tq
    scale = 1.0 / math.sqrt(hd)

    # RoPE tables (rotate-half layout), positions 0..S-1, base 10000. The sign
    # of the rotated half is folded into sin so the kernel only needs a roll.
    inv_freq = 1.0 / (10000.0 ** (jnp.arange(0, hd, 2, dtype=jnp.float32) / hd))
    pos = jnp.arange(S, dtype=jnp.float32)
    ang = pos[:, None] * inv_freq[None, :]                           # [S, hd/2]
    cos = jnp.concatenate([jnp.cos(ang), jnp.cos(ang)], axis=-1)     # [S, hd]
    sin_signed = jnp.concatenate([-jnp.sin(ang), jnp.sin(ang)], axis=-1)

    # nn.Linear does y = x @ W.T ; pre-transpose to [in, out], fuse, cast bf16.
    # The 1/sqrt(hd) attention scale is folded into wq (RoPE is linear, so
    # pre-scaling q is equivalent to scaling the scores).
    wq = params["wq"].T * scale
    wqkv = jnp.concatenate([wq, params["wk"].T, params["wv"].T],
                           axis=1).astype(jnp.bfloat16)              # [D, 3D]
    wo = params["wo"].T.astype(jnp.bfloat16)                         # [D, D]
    w13 = jnp.concatenate([params["w1"].T, params["w3"].T],
                          axis=1).astype(jnp.bfloat16)               # [D, 2H]
    w2 = params["w2"].T.astype(jnp.bfloat16)                         # [H, D]
    sa_w = params["sa_norm"].reshape(1, D).astype(jnp.float32)
    mlp_w = params["mlp_norm"].reshape(1, D).astype(jnp.float32)

    # Constant-index weight blocks: single-buffered (never change across steps).
    # TODO(synk): switch to memory_space=pl.ANY + pltpu.emit_pipeline streaming
    #             when resident bf16 weights approach the VMEM budget (v7x).
    def wspec(shape):
        return pl.BlockSpec(shape, lambda b, q: (0,) * len(shape),
                            pipeline_mode=pl.Buffered(buffer_count=1))

    # Scoped-VMEM budget per generation: ~40 MiB on 64-MiB v7x, ~100 MiB on
    # 128-MiB v5e/v6e (keep weights resident; avoid re-streaming per step).
    try:
        vmem_cap = pltpu.get_tpu_info().vmem_capacity_bytes
    except Exception:
        vmem_cap = 128 * 1024 * 1024
    vmem_limit = (40 if vmem_cap <= 64 * 1024 * 1024 else 100) * 1024 * 1024

    kernel = functools.partial(_decoder_layer_kernel, num_heads=num_heads,
                               head_dim=hd, mlp_hidden=H)

    return pl.pallas_call(
        kernel,
        out_shape=jax.ShapeDtypeStruct((B, S, D), x.dtype),
        grid_spec=pltpu.PrefetchScalarGridSpec(
            num_scalar_prefetch=0,
            grid=(B, n_q),                       # batch parallel, q-tiles ordered
            in_specs=[
                pl.BlockSpec((1, tq, D), lambda b, q: (b, q, 0)),   # x q-tile
                wspec((1, D)),                                      # sa_norm
                wspec((D, 3 * D)),                                  # fused QKV
                wspec((D, D)),                                      # wo
                wspec((1, D)),                                      # mlp_norm
                wspec((D, 2 * H)),                                  # fused gate|up
                wspec((H, D)),                                      # down proj
                pl.BlockSpec((tq, hd), lambda b, q: (q, 0)),        # cos rows
                pl.BlockSpec((tq, hd), lambda b, q: (q, 0)),        # sin rows
            ],
            out_specs=pl.BlockSpec((1, tq, D), lambda b, q: (b, q, 0)),
            scratch_shapes=[
                pltpu.VMEM((n_q, num_heads, tq, hd), jnp.bfloat16),  # K cache
                pltpu.VMEM((n_q, num_heads, tq, hd), jnp.bfloat16),  # V cache
            ],
        ),
        compiler_params=pltpu.CompilerParams(
            # q-tile axis is "arbitrary": it carries the in-VMEM KV cache.
            dimension_semantics=("parallel", "arbitrary"),
            vmem_limit_bytes=vmem_limit,
        ),
    )(x, sa_w, wqkv, wo, mlp_w, w13, w2, cos, sin_signed)


# -----------------------------------------------------------------------------
# Pure-JAX f32 reference (mirrors the PyTorch forward) for a correctness check.
# -----------------------------------------------------------------------------
def decoder_layer_ref(x, params, *, num_heads):
    B, S, D = x.shape
    hd = D // num_heads
    eps = 1e-6

    def rmsnorm(v, w):
        return v * jax.lax.rsqrt(jnp.mean(v * v, -1, keepdims=True) + eps) * w

    inv_freq = 1.0 / (10000.0 ** (jnp.arange(0, hd, 2, dtype=jnp.float32) / hd))
    ang = jnp.arange(S, dtype=jnp.float32)[:, None] * inv_freq[None, :]
    cos = jnp.concatenate([jnp.cos(ang), jnp.cos(ang)], -1)
    sin = jnp.concatenate([jnp.sin(ang), jnp.sin(ang)], -1)

    def rope(t):  # [B, S, nH, hd]
        t1, t2 = t[..., : hd // 2], t[..., hd // 2:]
        rot = jnp.concatenate([-t2, t1], -1)
        return t * cos[None, :, None, :] + rot * sin[None, :, None, :]

    xn = rmsnorm(x, params["sa_norm"])
    q = (xn @ params["wq"].T).reshape(B, S, num_heads, hd)
    k = (xn @ params["wk"].T).reshape(B, S, num_heads, hd)
    v = (xn @ params["wv"].T).reshape(B, S, num_heads, hd)
    q, k = rope(q), rope(k)
    s = jnp.einsum("bqhd,bkhd->bhqk", q, k) / math.sqrt(hd)
    causal = jnp.tril(jnp.ones((S, S), bool))
    s = jnp.where(causal[None, None], s, -1e30)
    p = jax.nn.softmax(s, -1)
    attn = jnp.einsum("bhqk,bkhd->bqhd", p, v).reshape(B, S, D)
    h = x + attn @ params["wo"].T
    hn = rmsnorm(h, params["mlp_norm"])
    mlp = (jax.nn.silu(hn @ params["w1"].T) * (hn @ params["w3"].T)) @ params["w2"].T
    return h + mlp


# -----------------------------------------------------------------------------
if __name__ == "__main__":
    # Small but representative shapes: lane-aligned head dim (hd=128), multiple
    # q-tiles and KV tiles so the flash loop / causal-tile logic is exercised.
    B, S, D = 2, 256, 256
    num_heads = 2           # hd = 128
    H = 512                 # MLP hidden dim
    q_tile = 128            # 2 q-tiles per sequence, grid = (2, 2)

    key = jax.random.PRNGKey(0)
    ks = jax.random.split(key, 10)
    init = lambda k, shape: (0.05 * jax.random.normal(k, shape)).astype(jnp.float32)

    # Weights in PyTorch nn.Linear layout [out_features, in_features].
    params = {
        "sa_norm": jnp.ones((D,), jnp.float32) + init(ks[0], (D,)),
        "mlp_norm": jnp.ones((D,), jnp.float32) + init(ks[1], (D,)),
        "wq": init(ks[2], (D, D)),
        "wk": init(ks[3], (D, D)),
        "wv": init(ks[4], (D, D)),
        "wo": init(ks[5], (D, D)),
        "w1": init(ks[6], (H, D)),   # gate_proj
        "w3": init(ks[7], (H, D)),   # up_proj
        "w2": init(ks[8], (D, H)),   # down_proj
    }
    x = jax.random.normal(ks[9], (B, S, D), dtype=jnp.float32)

    out = decoder_layer(x, params, num_heads=num_heads, q_tile=q_tile)
    out = jax.block_until_ready(out)

    ref = decoder_layer_ref(x, params, num_heads=num_heads)
    assert out.shape == (B, S, D)
    # Tolerance covers bf16 matmul inputs (f32 accumulation) + EUP approx
    # reciprocals versus the pure-f32 reference.
    max_err = float(jnp.max(jnp.abs(out - ref)))
    assert jnp.allclose(out, ref, atol=3e-2, rtol=3e-2), (
        f"mismatch vs reference (max abs err {max_err})")

    print("KERNEL_OK")
</pallas_src>

<mosaic_0001>
module attributes {stable_mosaic.version = 11 : i64} {
  func.func @_decoder_layer_kernel(%arg0: i32, %arg1: i32, %arg2: memref<1x128x256xf32, #tpu.memory_space<vmem>>, %arg3: memref<1x256xf32, #tpu.memory_space<vmem>>, %arg4: memref<256x768xbf16, #tpu.memory_space<vmem>>, %arg5: memref<256x256xbf16, #tpu.memory_space<vmem>>, %arg6: memref<1x256xf32, #tpu.memory_space<vmem>>, %arg7: memref<256x1024xbf16, #tpu.memory_space<vmem>>, %arg8: memref<512x256xbf16, #tpu.memory_space<vmem>>, %arg9: memref<128x128xf32, #tpu.memory_space<vmem>>, %arg10: memref<128x128xf32, #tpu.memory_space<vmem>>, %arg11: memref<1x128x256xf32, #tpu.memory_space<vmem>>, %arg12: memref<2x2x128x128xbf16, #tpu.memory_space<vmem>>, %arg13: memref<2x2x128x128xbf16, #tpu.memory_space<vmem>>) attributes {dimension_semantics = [#tpu.dimension_semantics<parallel>, #tpu.dimension_semantics<arbitrary>], iteration_bounds = array<i64: 2, 2>, scalar_prefetch = 0 : i64, scratch_operands = 2 : i64, tpu.core_type = #tpu.core_type<tc>, window_params = [{transform_indices = @transform_0, window_bounds = array<i64: 1, 128, 256>}, {pipeline_mode = #tpu.pipeline_mode<synchronous>, transform_indices = @transform_1, window_bounds = array<i64: 1, 256>}, {pipeline_mode = #tpu.pipeline_mode<synchronous>, transform_indices = @transform_2, window_bounds = array<i64: 256, 768>}, {pipeline_mode = #tpu.pipeline_mode<synchronous>, transform_indices = @transform_3, window_bounds = array<i64: 256, 256>}, {pipeline_mode = #tpu.pipeline_mode<synchronous>, transform_indices = @transform_4, window_bounds = array<i64: 1, 256>}, {pipeline_mode = #tpu.pipeline_mode<synchronous>, transform_indices = @transform_5, window_bounds = array<i64: 256, 1024>}, {pipeline_mode = #tpu.pipeline_mode<synchronous>, transform_indices = @transform_6, window_bounds = array<i64: 512, 256>}, {transform_indices = @transform_7, window_bounds = array<i64: 128, 128>}, {transform_indices = @transform_8, window_bounds = array<i64: 128, 128>}, {transform_indices = @transform_9, window_bounds = array<i64: 1, 128, 256>}]} {
    %c0 = arith.constant 0 : index
    %c0_0 = arith.constant 0 : index
    %c0_1 = arith.constant 0 : index
    %0 = vector.load %arg2[%c0, %c0_0, %c0_1] : memref<1x128x256xf32, #tpu.memory_space<vmem>>, vector<1x128x256xf32>
    %1 = vector.shape_cast %0 : vector<1x128x256xf32> to vector<128x256xf32>
    %c0_2 = arith.constant 0 : index
    %c0_3 = arith.constant 0 : index
    %2 = vector.load %arg3[%c0_2, %c0_3] : memref<1x256xf32, #tpu.memory_space<vmem>>, vector<1x256xf32>
    %3 = vector.shape_cast %2 : vector<1x256xf32> to vector<256xf32>
    %4 = arith.mulf %1, %1 : vector<128x256xf32>
    %cst = arith.constant dense<0.000000e+00> : vector<128xf32>
    %5 = vector.multi_reduction <add>, %4, %cst [1] : vector<128x256xf32> to vector<128xf32>
    %6 = vector.shape_cast %5 : vector<128xf32> to vector<128x1xf32>
    %cst_4 = arith.constant 2.560000e+02 : f32
    %7 = vector.broadcast %cst_4 : f32 to vector<128x1xf32>
    %8 = arith.divf %6, %7 : vector<128x1xf32>
    %cst_5 = arith.constant 9.99999997E-7 : f32
    %9 = vector.broadcast %cst_5 : f32 to vector<128x1xf32>
    %10 = arith.addf %8, %9 : vector<128x1xf32>
    %11 = math.rsqrt %10 : vector<128x1xf32>
    %12 = vector.broadcast %11 : vector<128x1xf32> to vector<128x256xf32>
    %13 = arith.mulf %1, %12 : vector<128x256xf32>
    %14 = vector.shape_cast %3 : vector<256xf32> to vector<1x256xf32>
    %15 = vector.broadcast %14 : vector<1x256xf32> to vector<128x256xf32>
    %16 = arith.mulf %13, %15 : vector<128x256xf32>
    %17 = arith.truncf %16 : vector<128x256xf32> to vector<128x256xbf16>
    %c0_6 = arith.constant 0 : index
    %c0_7 = arith.constant 0 : index
    %18 = vector.load %arg4[%c0_6, %c0_7] : memref<256x768xbf16, #tpu.memory_space<vmem>>, vector<256x768xbf16>
    %cst_8 = arith.constant dense<0.000000e+00> : vector<128x768xf32>
    %19 = tpu.matmul %17, %18, %cst_8 {dimension_numbers = #tpu.dot_dimension_numbers<[1], [0], [0], [1], [0, 0, 1, 1], [], []>} : vector<128x256xbf16>, vector<256x768xbf16>, vector<128x768xf32> -> vector<128x768xf32>
    %c0_9 = arith.constant 0 : index
    %c0_10 = arith.constant 0 : index
    %20 = vector.load %arg9[%c0_9, %c0_10] : memref<128x128xf32, #tpu.memory_space<vmem>>, vector<128x128xf32>
    %21 = vector.shape_cast %20 : vector<128x128xf32> to vector<1x128x128xf32>
    %c0_11 = arith.constant 0 : index
    %c0_12 = arith.constant 0 : index
    %22 = vector.load %arg10[%c0_11, %c0_12] : memref<128x128xf32, #tpu.memory_space<vmem>>, vector<128x128xf32>
    %23 = vector.shape_cast %22 : vector<128x128xf32> to vector<1x128x128xf32>
    %24 = vector.extract_strided_slice %19 {offsets = [0, 0], sizes = [128, 256], strides = [1, 1]} : vector<128x768xf32> to vector<128x256xf32>
    %25 = vector.shape_cast %24 : vector<128x256xf32> to vector<128x2x128xf32>
    %26 = tpu.transpose %25, [1, 0, 2] : vector<128x2x128xf32> -> vector<2x128x128xf32>
    %c64_i32 = arith.constant 64 : i32
    %27 = tpu.dynamic_rotate %26 by %c64_i32 dim 2 : vector<2x128x128xf32>, i32 -> vector<2x128x128xf32>
    %28 = vector.broadcast %21 : vector<1x128x128xf32> to vector<2x128x128xf32>
    %29 = arith.mulf %26, %28 : vector<2x128x128xf32>
    %30 = vector.broadcast %23 : vector<1x128x128xf32> to vector<2x128x128xf32>
    %31 = arith.mulf %27, %30 : vector<2x128x128xf32>
    %32 = arith.addf %29, %31 : vector<2x128x128xf32>
    %33 = arith.truncf %32 : vector<2x128x128xf32> to vector<2x128x128xbf16>
    %34 = vector.extract_strided_slice %19 {offsets = [0, 256], sizes = [128, 256], strides = [1, 1]} : vector<128x768xf32> to vector<128x256xf32>
    %35 = vector.shape_cast %34 : vector<128x256xf32> to vector<128x2x128xf32>
    %36 = tpu.transpose %35, [1, 0, 2] : vector<128x2x128xf32> -> vector<2x128x128xf32>
    %c64_i32_13 = arith.constant 64 : i32
    %37 = tpu.dynamic_rotate %36 by %c64_i32_13 dim 2 : vector<2x128x128xf32>, i32 -> vector<2x128x128xf32>
    %38 = vector.broadcast %21 : vector<1x128x128xf32> to vector<2x128x128xf32>
    %39 = arith.mulf %36, %38 : vector<2x128x128xf32>
    %40 = vector.broadcast %23 : vector<1x128x128xf32> to vector<2x128x128xf32>
    %41 = arith.mulf %37, %40 : vector<2x128x128xf32>
    %42 = arith.addf %39, %41 : vector<2x128x128xf32>
    %43 = arith.truncf %42 : vector<2x128x128xf32> to vector<2x128x128xbf16>
    %44 = vector.extract_strided_slice %19 {offsets = [0, 512], sizes = [128, 256], strides = [1, 1]} : vector<128x768xf32> to vector<128x256xf32>
    %45 = vector.shape_cast %44 : vector<128x256xf32> to vector<128x2x128xf32>
    %46 = tpu.transpose %45, [1, 0, 2] : vector<128x2x128xf32> -> vector<2x128x128xf32>
    %47 = arith.truncf %46 : vector<2x128x128xf32> to vector<2x128x128xbf16>
    %48 = arith.index_cast %arg1 : i32 to index
    %c0_14 = arith.constant 0 : index
    %c0_15 = arith.constant 0 : index
    %c0_16 = arith.constant 0 : index
    %49 = vector.load %arg12[%48, %c0_14, %c0_15, %c0_16] : memref<2x2x128x128xbf16, #tpu.memory_space<vmem>>, vector<1x2x128x128xbf16>
    %50 = vector.shape_cast %49 : vector<1x2x128x128xbf16> to vector<2x128x128xbf16>
    %51 = vector.shape_cast %43 : vector<2x128x128xbf16> to vector<1x2x128x128xbf16>
    tpu.vector_store %arg12[%48, %c0_14, %c0_15, %c0_16], %51 {strides = array<i32>} : memref<2x2x128x128xbf16, #tpu.memory_space<vmem>>, vector<1x2x128x128xbf16>,
    %52 = arith.index_cast %arg1 : i32 to index
    %c0_17 = arith.constant 0 : index
    %c0_18 = arith.constant 0 : index
    %c0_19 = arith.constant 0 : index
    %53 = vector.load %arg13[%52, %c0_17, %c0_18, %c0_19] : memref<2x2x128x128xbf16, #tpu.memory_space<vmem>>, vector<1x2x128x128xbf16>
    %54 = vector.shape_cast %53 : vector<1x2x128x128xbf16> to vector<2x128x128xbf16>
    %55 = vector.shape_cast %47 : vector<2x128x128xbf16> to vector<1x2x128x128xbf16>
    tpu.vector_store %arg13[%52, %c0_17, %c0_18, %c0_19], %55 {strides = array<i32>} : memref<2x2x128x128xbf16, #tpu.memory_space<vmem>>, vector<1x2x128x128xbf16>,
    %56 = tpu.iota {dimensions = array<i32: 0>} : vector<128x128xi32>
    %57 = tpu.iota {dimensions = array<i32: 1>} : vector<128x128xi32>
    %58 = arith.subi %56, %57 : vector<128x128xi32>
    %cst_20 = arith.constant 0xFF800000 : f32
    %59 = vector.broadcast %cst_20 : f32 to vector<2x128x1xf32>
    %cst_21 = arith.constant 0.000000e+00 : f32
    %60 = vector.broadcast %cst_21 : f32 to vector<2x128x1xf32>
    %cst_22 = arith.constant 0.000000e+00 : f32
    %61 = vector.broadcast %cst_22 : f32 to vector<2x128x128xf32>
    %c1_i32 = arith.constant 1 : i32
    %62 = arith.addi %arg1, %c1_i32 : i32
    %c0_i32 = arith.constant 0 : i32
    %63 = arith.subi %62, %c0_i32 : i32
    %64 = arith.addi %c0_i32, %63 : i32
    %c1_i32_23 = arith.constant 1 : i32
    %65:3 = scf.for %arg14 = %c0_i32 to %64 step %c1_i32_23 iter_args(%arg15 = %59, %arg16 = %60, %arg17 = %61) -> (vector<2x128x1xf32>, vector<2x128x1xf32>, vector<2x128x128xf32>)  : i32 {
      %110 = arith.index_cast %arg14 : i32 to index
      %c0_43 = arith.constant 0 : index
      %c0_44 = arith.constant 0 : index
      %c0_45 = arith.constant 0 : index
      %111 = vector.load %arg12[%110, %c0_43, %c0_44, %c0_45] : memref<2x2x128x128xbf16, #tpu.memory_space<vmem>>, vector<1x2x128x128xbf16>
      %112 = vector.shape_cast %111 : vector<1x2x128x128xbf16> to vector<2x128x128xbf16>
      %113 = arith.index_cast %arg14 : i32 to index
      %c0_46 = arith.constant 0 : index
      %c0_47 = arith.constant 0 : index
      %c0_48 = arith.constant 0 : index
      %114 = vector.load %arg13[%113, %c0_46, %c0_47, %c0_48] : memref<2x2x128x128xbf16, #tpu.memory_space<vmem>>, vector<1x2x128x128xbf16>
      %115 = vector.shape_cast %114 : vector<1x2x128x128xbf16> to vector<2x128x128xbf16>
      "tpu.trace_start"() <{level = 10 : i32, message = "hqd,hkd->hqk"}> : () -> ()
      %cst_49 = arith.constant dense<0.000000e+00> : vector<2x128x128xf32>
      %116 = tpu.matmul %33, %112, %cst_49 {dimension_numbers = #tpu.dot_dimension_numbers<[2], [2], [1], [1], [0, 0, 0, 1, 1, 1], [0], [0]>} : vector<2x128x128xbf16>, vector<2x128x128xbf16>, vector<2x128x128xf32> -> vector<2x128x128xf32>
      "tpu.trace_stop"() : () -> ()
      %117 = arith.subi %arg14, %arg1 : i32
      %c128_i32 = arith.constant 128 : i32
      %118 = arith.muli %117, %c128_i32 : i32
      %119 = vector.broadcast %118 : i32 to vector<128x128xi32>
      %120 = arith.cmpi sge, %58, %119 : vector<128x128xi32>
      %121 = vector.shape_cast %120 : vector<128x128xi1> to vector<1x128x128xi1>
      %cst_50 = arith.constant -1.000000e+30 : f32
      %122 = vector.shape_cast %121 : vector<1x128x128xi1> to vector<1x128x128xi1>
      %123 = vector.broadcast %122 : vector<1x128x128xi1> to vector<2x128x128xi1>
      %124 = vector.broadcast %cst_50 : f32 to vector<2x128x128xf32>
      %125 = arith.select %123, %116, %124 : vector<2x128x128xi1>, vector<2x128x128xf32>
      %cst_51 = arith.constant dense<0xFF800000> : vector<2x128xf32>
      %126 = vector.multi_reduction <maximumf>, %125, %cst_51 [2] : vector<2x128x128xf32> to vector<2x128xf32>
      %127 = vector.shape_cast %126 : vector<2x128xf32> to vector<2x128x1xf32>
      %128 = arith.maximumf %arg15, %127 : vector<2x128x1xf32>
      %129 = arith.subf %arg15, %128 : vector<2x128x1xf32>
      %130 = math.exp %129 : vector<2x128x1xf32>
      %131 = vector.broadcast %128 : vector<2x128x1xf32> to vector<2x128x128xf32>
      %132 = arith.subf %125, %131 : vector<2x128x128xf32>
      %133 = math.exp %132 : vector<2x128x128xf32>
      %134 = arith.mulf %130, %arg16 : vector<2x128x1xf32>
      %cst_52 = arith.constant dense<0.000000e+00> : vector<2x128xf32>
      %135 = vector.multi_reduction <add>, %133, %cst_52 [2] : vector<2x128x128xf32> to vector<2x128xf32>
      %136 = vector.shape_cast %135 : vector<2x128xf32> to vector<2x128x1xf32>
      %137 = arith.addf %134, %136 : vector<2x128x1xf32>
      %138 = vector.broadcast %130 : vector<2x128x1xf32> to vector<2x128x128xf32>
      %139 = arith.mulf %138, %arg17 : vector<2x128x128xf32>
      %140 = arith.truncf %133 : vector<2x128x128xf32> to vector<2x128x128xbf16>
      "tpu.trace_start"() <{level = 10 : i32, message = "hqk,hkd->hqd"}> : () -> ()
      %cst_53 = arith.constant dense<0.000000e+00> : vector<2x128x128xf32>
      %141 = tpu.matmul %140, %115, %cst_53 {dimension_numbers = #tpu.dot_dimension_numbers<[2], [1], [1], [2], [0, 0, 0, 1, 1, 2], [0], [0]>} : vector<2x128x128xbf16>, vector<2x128x128xbf16>, vector<2x128x128xf32> -> vector<2x128x128xf32>
      "tpu.trace_stop"() : () -> ()
      %142 = arith.addf %139, %141 : vector<2x128x128xf32>
      scf.yield %128, %137, %142 : vector<2x128x1xf32>, vector<2x128x1xf32>, vector<2x128x128xf32>
    }
    %66 = tpu.reciprocal %65#1 {approx = true} : vector<2x128x1xf32> -> vector<2x128x1xf32>
    %67 = vector.broadcast %66 : vector<2x128x1xf32> to vector<2x128x128xf32>
    %68 = arith.mulf %65#2, %67 : vector<2x128x128xf32>
    %69 = tpu.transpose %68, [1, 0, 2] : vector<2x128x128xf32> -> vector<128x2x128xf32>
    %70 = vector.shape_cast %69 : vector<128x2x128xf32> to vector<128x256xf32>
    %71 = arith.truncf %70 : vector<128x256xf32> to vector<128x256xbf16>
    %c0_24 = arith.constant 0 : index
    %c0_25 = arith.constant 0 : index
    %72 = vector.load %arg5[%c0_24, %c0_25] : memref<256x256xbf16, #tpu.memory_space<vmem>>, vector<256x256xbf16>
    %cst_26 = arith.constant dense<0.000000e+00> : vector<128x256xf32>
    %73 = tpu.matmul %71, %72, %cst_26 {dimension_numbers = #tpu.dot_dimension_numbers<[1], [0], [0], [1], [0, 0, 1, 1], [], []>} : vector<128x256xbf16>, vector<256x256xbf16>, vector<128x256xf32> -> vector<128x256xf32>
    %74 = arith.addf %1, %73 : vector<128x256xf32>
    %c0_27 = arith.constant 0 : index
    %c0_28 = arith.constant 0 : index
    %75 = vector.load %arg6[%c0_27, %c0_28] : memref<1x256xf32, #tpu.memory_space<vmem>>, vector<1x256xf32>
    %76 = vector.shape_cast %75 : vector<1x256xf32> to vector<256xf32>
    %77 = arith.mulf %74, %74 : vector<128x256xf32>
    %cst_29 = arith.constant dense<0.000000e+00> : vector<128xf32>
    %78 = vector.multi_reduction <add>, %77, %cst_29 [1] : vector<128x256xf32> to vector<128xf32>
    %79 = vector.shape_cast %78 : vector<128xf32> to vector<128x1xf32>
    %cst_30 = arith.constant 2.560000e+02 : f32
    %80 = vector.broadcast %cst_30 : f32 to vector<128x1xf32>
    %81 = arith.divf %79, %80 : vector<128x1xf32>
    %cst_31 = arith.constant 9.99999997E-7 : f32
    %82 = vector.broadcast %cst_31 : f32 to vector<128x1xf32>
    %83 = arith.addf %81, %82 : vector<128x1xf32>
    %84 = math.rsqrt %83 : vector<128x1xf32>
    %85 = vector.broadcast %84 : vector<128x1xf32> to vector<128x256xf32>
    %86 = arith.mulf %74, %85 : vector<128x256xf32>
    %87 = vector.shape_cast %76 : vector<256xf32> to vector<1x256xf32>
    %88 = vector.broadcast %87 : vector<1x256xf32> to vector<128x256xf32>
    %89 = arith.mulf %86, %88 : vector<128x256xf32>
    %90 = arith.truncf %89 : vector<128x256xf32> to vector<128x256xbf16>
    %c0_32 = arith.constant 0 : index
    %c0_33 = arith.constant 0 : index
    %91 = vector.load %arg7[%c0_32, %c0_33] : memref<256x1024xbf16, #tpu.memory_space<vmem>>, vector<256x1024xbf16>
    %cst_34 = arith.constant dense<0.000000e+00> : vector<128x1024xf32>
    %92 = tpu.matmul %90, %91, %cst_34 {dimension_numbers = #tpu.dot_dimension_numbers<[1], [0], [0], [1], [0, 0, 1, 1], [], []>} : vector<128x256xbf16>, vector<256x1024xbf16>, vector<128x1024xf32> -> vector<128x1024xf32>
    %93 = vector.extract_strided_slice %92 {offsets = [0, 0], sizes = [128, 512], strides = [1, 1]} : vector<128x1024xf32> to vector<128x512xf32>
    %94 = vector.extract_strided_slice %92 {offsets = [0, 512], sizes = [128, 512], strides = [1, 1]} : vector<128x1024xf32> to vector<128x512xf32>
    %cst_35 = arith.constant 0.000000e+00 : f32
    %95 = vector.broadcast %cst_35 : f32 to vector<128x512xf32>
    %96 = arith.subf %95, %93 : vector<128x512xf32>
    %97 = math.exp %96 : vector<128x512xf32>
    %cst_36 = arith.constant 1.000000e+00 : f32
    %98 = vector.broadcast %cst_36 : f32 to vector<128x512xf32>
    %99 = arith.addf %98, %97 : vector<128x512xf32>
    %100 = tpu.reciprocal %99 {approx = true} : vector<128x512xf32> -> vector<128x512xf32>
    %101 = arith.mulf %93, %100 : vector<128x512xf32>
    %102 = arith.mulf %101, %94 : vector<128x512xf32>
    %103 = arith.truncf %102 : vector<128x512xf32> to vector<128x512xbf16>
    %c0_37 = arith.constant 0 : index
    %c0_38 = arith.constant 0 : index
    %104 = vector.load %arg8[%c0_37, %c0_38] : memref<512x256xbf16, #tpu.memory_space<vmem>>, vector<512x256xbf16>
    %cst_39 = arith.constant dense<0.000000e+00> : vector<128x256xf32>
    %105 = tpu.matmul %103, %104, %cst_39 {dimension_numbers = #tpu.dot_dimension_numbers<[1], [0], [0], [1], [0, 0, 1, 1], [], []>} : vector<128x512xbf16>, vector<512x256xbf16>, vector<128x256xf32> -> vector<128x256xf32>
    %106 = arith.addf %74, %105 : vector<128x256xf32>
    %c0_40 = arith.constant 0 : index
    %c0_41 = arith.constant 0 : index
    %c0_42 = arith.constant 0 : index
    %107 = vector.load %arg11[%c0_40, %c0_41, %c0_42] : memref<1x128x256xf32, #tpu.memory_space<vmem>>, vector<1x128x256xf32>
    %108 = vector.shape_cast %107 : vector<1x128x256xf32> to vector<128x256xf32>
    %109 = vector.shape_cast %106 : vector<128x256xf32> to vector<1x128x256xf32>
    tpu.vector_store %arg11[%c0_40, %c0_41, %c0_42], %109 {strides = array<i32>} : memref<1x128x256xf32, #tpu.memory_space<vmem>>, vector<1x128x256xf32>,
    return
  }
  func.func @transform_0(%arg0: i32, %arg1: i32) -> (i32, i32, i32) {
    %c0_i32 = arith.constant 0 : i32
    %c0_i32_0 = arith.constant 0 : i32
    return %arg0, %arg1, %c0_i32 : i32, i32, i32
  }
  func.func @transform_1(%arg0: i32, %arg1: i32) -> (i32, i32) {
    %c0_i32 = arith.constant 0 : i32
    %c0_i32_0 = arith.constant 0 : i32
    %c0_i32_1 = arith.constant 0 : i32
    return %c0_i32, %c0_i32_0 : i32, i32
  }
  func.func @transform_2(%arg0: i32, %arg1: i32) -> (i32, i32) {
    %c0_i32 = arith.constant 0 : i32
    %c0_i32_0 = arith.constant 0 : i32
    %c0_i32_1 = arith.constant 0 : i32
    return %c0_i32, %c0_i32_0 : i32, i32
  }
  func.func @transform_3(%arg0: i32, %arg1: i32) -> (i32, i32) {
    %c0_i32 = arith.constant 0 : i32
    %c0_i32_0 = arith.constant 0 : i32
    %c0_i32_1 = arith.constant 0 : i32
    return %c0_i32, %c0_i32_0 : i32, i32
  }
  func.func @transform_4(%arg0: i32, %arg1: i32) -> (i32, i32) {
    %c0_i32 = arith.constant 0 : i32
    %c0_i32_0 = arith.constant 0 : i32
    %c0_i32_1 = arith.constant 0 : i32
    return %c0_i32, %c0_i32_0 : i32, i32
  }
  func.func @transform_5(%arg0: i32, %arg1: i32) -> (i32, i32) {
    %c0_i32 = arith.constant 0 : i32
    %c0_i32_0 = arith.constant 0 : i32
    %c0_i32_1 = arith.constant 0 : i32
    return %c0_i32, %c0_i32_0 : i32, i32
  }
  func.func @transform_6(%arg0: i32, %arg1: i32) -> (i32, i32) {
    %c0_i32 = arith.constant 0 : i32
    %c0_i32_0 = arith.constant 0 : i32
    %c0_i32_1 = arith.constant 0 : i32
    return %c0_i32, %c0_i32_0 : i32, i32
  }
  func.func @transform_7(%arg0: i32, %arg1: i32) -> (i32, i32) {
    %c0_i32 = arith.constant 0 : i32
    %c0_i32_0 = arith.constant 0 : i32
    return %arg1, %c0_i32 : i32, i32
  }
  func.func @transform_8(%arg0: i32, %arg1: i32) -> (i32, i32) {
    %c0_i32 = arith.constant 0 : i32
    %c0_i32_0 = arith.constant 0 : i32
    return %arg1, %c0_i32 : i32, i32
  }
  func.func @transform_9(%arg0: i32, %arg1: i32) -> (i32, i32, i32) {
    %c0_i32 = arith.constant 0 : i32
    %c0_i32_0 = arith.constant 0 : i32
    return %arg0, %arg1, %c0_i32 : i32, i32, i32
  }
}

</mosaic_0001>

<bundles_post_ra>
// kernel: tpu_custom_call.1
= control target key start
LH: loop header
LB: loop body
LE: loop exit
PB: predicated region body
PF: predicated region fallthrough
CT: control target
= control target key end

     0   :  { %s26296_s0 = inlined_call_operand.hbm [shape: f32[2,256,256], index: 0, kind: input, shape index: {}]   ;;  %s26297_s1 = inlined_call_operand.hbm [shape: f32[1,256], index: 1, kind: input, shape index: {}]   ;;  %s26298_s2 = inlined_call_operand.hbm [shape: bf16[256,768], index: 2, kind: input, shape index: {}]   ;;  %s26299_s3 = inlined_call_operand.hbm [shape: bf16[256,256], index: 3, kind: input, shape index: {}]   ;;  %s26300_s4 = inlined_call_operand.vmem [shape: f32[1,256], index: 4, kind: input, shape index: {}]   ;;  %s26301_s5 = inlined_call_operand.hbm [shape: bf16[256,1024], index: 5, kind: input, shape index: {}]   ;;  %s26302_s6 = inlined_call_operand.hbm [shape: bf16[512,256], index: 6, kind: input, shape index: {}]   ;;  %s26303_s7 = inlined_call_operand.hbm [shape: f32[256,128], index: 7, kind: input, shape index: {}]   ;;  %s26304_s8 = inlined_call_operand.hbm [shape: f32[256,128], index: 8, kind: input, shape index: {}]   ;;  %s26305_s9 = inlined_call_operand.hbm [shape: f32[2,256,256], index: 9, kind: output, shape index: {}]  }
   0x1   :  { %26644 = sst [smem:[#allocation304_spill]] %s26296_s0 }
   0x2   :  { %26645 = sst [smem:[#allocation305_spill]] %s26297_s1 }
   0x3   :  { %26646 = sst [smem:[#allocation306_spill]] %s26298_s2 }
   0x4   :  { %26647 = sst [smem:[#allocation307_spill]] %s26299_s3 }
   0x5   :  { %26648 = sst [smem:[#allocation308_spill]] %s26300_s4 }
   0x6   :  { %26649 = sst [smem:[#allocation309_spill]] %s26302_s6 }
   0x7   :  { %26650 = sst [smem:[#allocation310_spill]] %s26304_s8 }
   0x8   :  { %26651 = sst [smem:[#allocation311_spill]] %s26305_s9 }
   0x9   :  { %14 = vsyncpa [#allocation5], 0 }
   0xa   :  { %16 = vsyncpa [#allocation5 + $0x1], 0 }
   0xb   :  { %17 = vsyncpa [#allocation8], 0 }
   0xc   :  { %18 = vsyncpa [#allocation11], 0 }
   0xd   :  { %19 = vsyncpa [#allocation14], 0 }
   0xe   :  { %20 = vsyncpa [#allocation6], 0 }
   0xf   :  { %22 = vsyncpa [#allocation6 + $0x1], 0  ;;  %s19826_s30 = smov 0   ;;  %s19828_s10 = smov 0  }
  0x10   :  { %s19830_s11 = smov 0   ;;  %s19832_s12 = smov 0  }
  0x11   :  { %s19834_s13 = smov 0   ;;  %s19836_s14 = smov 0  }
  0x12   :  { %s19838_s15 = smov 0   ;;  %s19840_s16 = smov 0  }
  0x13   :  { %s19842_s17 = smov 0   ;;  %s19844_s18 = smov 0  }
  0x14   :  { %s19846_s19 = smov 0  }
  0x15 LB: > { %26652 = sst [smem:[#allocation24_spill]] %s19079_s12  ;;  %s19882_s20 = sadd.s32 4294967295, %s19107_s19   ;;  %s19107_s19 = sphi %s19846_s19, %s28_s19   ;;  %s19103_s18 = sphi %s19844_s18, %s28106_s18   ;;  %s19099_s17 = sphi %s19842_s17, %s28105_s17   ;;  %s19095_s16 = sphi %s19840_s16, %s28104_s16   ;;  %s19091_s15 = sphi %s19838_s15, %s28103_s15   ;;  %s19087_s14 = sphi %s19836_s14, %s28102_s14   ;;  %s19083_s13 = sphi %s19834_s13, %s28101_s13   ;;  %s19079_s12 = sphi %s19832_s12, %s28094_s12   ;;  %s19075_s11 = sphi %s19830_s11, %s28100_s11   ;;  %s19071_s10 = sphi %s19828_s10, %s28099_s10   ;;  %s19067_s30 = sphi %s19826_s30, %s28098_s30  }
  0x16   : > { %26653 = sst [smem:[#allocation25_spill]] %s19083_s13  ;;  %s14679_s21 = sadd.s32 4294967294, %s19107_s19  }
  0x17   : > { %26654 = sst [smem:[#allocation26_spill]] %s19091_s15  ;;  %s37_s22 = sadd.s32 1, %s19099_s17 }
  0x18   : > { %26655 = sst [smem:[#allocation27_spill]] %s19095_s16  ;;  %s40_s23 = sadd.s32 1, %s19103_s18 }
  0x19   : > { %p38_p0 = scmp.ge.s32.totalorder %s37_s22, 2  ;;  %s49_s24 = sadd.s32 1, %s19087_s14 }
  0x1a   : > { %p56_p1 = scmp.ne.s32.totalorder %s19087_s14, %s19083_s13  ;;  %p26318_p2 = scmp.eq.s32.totalorder %s19107_s19, 0 }
  0x1b   : > { %s28108_s22 = smov (%p38_p0, %s37_s22), 0  ;;  %s28110_s23 = smov (!%p38_p0, %s40_s23), %s19103_s18 }
  0x1c   : > { %26656 = sst [smem:[#allocation28_spill]] %s28108_s22  ;;  %s19896_s25 = ssub.s32 %s19099_s17, %s28108_s22 }
  0x1d   : > { %p19903_p3 = por %p26318_p2, %p56_p1  ;;  %p42_p4 = scmp.ge.s32.totalorder %s28110_s23, 2 }
  0x1e   : > { %p62_p5 = scmp.ne.s32.totalorder %s19083_s13, %s19079_s12  ;;  %p26320_p6 = scmp.eq.s32.totalorder %s19882_s20, 0 }
  0x1f   : > { %s28112_s23 = smov (%p42_p4, %s28110_s23), 0  ;;  %p266_p9 = scmp.eq.s32.totalorder %s19882_s20, 3 }
  0x20   : > { %26658 = sst [smem:[#allocation29_spill]] %s28112_s23  ;;  %p19915_p8 = por %p26320_p6, %p62_p5 }
  0x21   : > { %s44_s28 = ssub.s32 %s19103_s18, %s28112_s23  ;;  %p272_p10 = scmp.eq.s32.totalorder %s14679_s21, 3 }
  0x22   : > { %s26659_s27 = scalar_select %p19915_p8, 1, 0 }
  0x23   : > { %s46_s29 = sor.u32 %s19896_s25, %s44_s28  ;;  %p19926_p11 = por %p266_p9, %p56_p1 }
  0x24   : > { %26660 = sst [smem:[#allocation30_spill]] %s26659_s27  ;;  %p47_p12 = scmp.eq.s32.totalorder %s46_s29, 0 }
  0x25   : > { %s26661_s22 = scalar_select %p19926_p11, 1, 0 }
  0x26   : > { %p19930_p13 = por %p272_p10, %p62_p5  ;;  %p26319_p0 = scmp.lt.s32.totalorder %s19107_s19, 4 }
  0x27   : > { %26662 = sst [smem:[#allocation31_spill]] %s26661_s22  ;;  %s358_s16 = sand.u32 1, %s19107_s19  }
  0x28   : > { %s26663_s12 = scalar_select %p19930_p13, 1, 0 }
  0x29   : > { %s19935_s9 = scalar_select %p47_p12, %s19087_s14, %s49_s24  }
  0x2a   : > { %s360_s4 = sand.u32 1, %s19087_s14   ;;  %s15267_s21 = sshll.u32 %s19099_s17, 5 }
  0x2b   : > { %26664 = sst [smem:[#allocation32_spill]] %s19935_s9  ;;  %s14687_s23 = sshll.u32 %s360_s4, 8 }
  0x2c   : > { %s14690_s28 = sshll.u32 %s19103_s18, 6  ;;  %s362_s27 = scalar_lea.vmem [#allocation4], %s14687_s23 }
  0x2d   : > { %s369_s15 = sadd.s32 %s15267_s21, %s14690_s28  ;;  %s372_s13 = sshll.u32 %s362_s27, 4  ;;  %s373_s13 = int_to_ptr.vmem [resolvable:$true] %s372_s13 }
  0x2e   : > { %s14691_s6 = sshll.u32 %s369_s15, 7  ;;  %s26665_s0 = sld [smem:[#allocation304_spill]] }
  0x2f   : > { %p19949_p1 = pnand %p26319_p0, %p19903_p3  ;;  %s19953_s9 = scalar_lea.sflag [#allocation5], %s358_s16 }
  0x30   : > { %s18126_s4 = scalar_lea.vmem %s373_s13, 4096  ;;  %s19753_s15 = smov [#allocation4]  }
  0x31   : > { %p18115_p4 = pneg %p19949_p1  ;;  %p18127_p5 = scmp.ne.s32.totalorder %s373_s13, %s18126_s4 }
  0x32   : > { %s18131_s23 = sshll.u32 %s19753_s15, 4  ;;  %s18132_s23 = int_to_ptr.vmem [resolvable:$false] %s18131_s23 }
  0x33   : > { %p18129_p9 = pnand %p18127_p5, %p18115_p4  ;;  %s18133_s8 = scalar_lea.vmem %s18132_s23, 8192 }
  0x34   : > { %s371_s29 = scalar_lea.hbm %s26665_s0, %s14691_s6  ;;  %p18134_p12 = scmp.lt.s32.totalorder %s373_s13, %s18132_s23 }
  0x35   : > { %p18130_p10 = pneg %p18129_p9  ;;  %p18135_p2 = scmp.lt.s32.totalorder %s18133_s8, %s18126_s4 }
  0x37   : > { %p18136_p7 = por %p18135_p2, %p18134_p12 }
  0x39   : > { %p18137_p3 = pnand %p18136_p7, %p18130_p10 }
  0x3b   : > { %18140 = shalt.err (!%p18137_p3)
}
  0x3c   : > { %s19754_s6 = smov 256   ;;  %s19755_s16 = smov 16  }
  0x3d   : > { %15832 = dma.hbm_to_vmem [thread:$0]  (!%p19949_p1), %s371_s29, 4096, %s373_s13, %s19953_s9, %s19754_s6, %s19754_s6, %s19755_s16  }
  0x3e   : > { %p14680_p4 = scmp.ge.s32.totalorder %s19107_s19, 1  ;;  %p279_p5 = scmp.lt.s32.totalorder %s19107_s19, 5 }
  0x3f   : > { %s19756_s22 = smov [#allocation7]   ;;  %s19757_s21 = smov [#allocation10]  }
  0x40   : > { %s292_s26 = sshll.u32 %s19756_s22, 4  ;;  %p19962_p9 = pnand %p14680_p4, %p279_p5  ;;  %s293_s26 = int_to_ptr.vmem [resolvable:$true] %s292_s26 }
  0x41   : > { %s315_s28 = sshll.u32 %s19757_s21, 4  ;;  %s18152_s29 = scalar_lea.vmem %s293_s26, 32  ;;  %s316_s28 = int_to_ptr.vmem [resolvable:$true] %s315_s28 }
  0x42   : > { %s26667_s27 = scalar_select %p19962_p9, 1, 0 }
  0x43   : > { %p15813_p2 = pneg %p19962_p9  ;;  %p18153_p10 = scmp.ne.s32.totalorder %s293_s26, %s18152_s29 }
  0x44   : > { %p18160_p4 = scmp.lt.s32.totalorder %s293_s26, %s293_s26  ;;  %p18161_p5 = scmp.lt.s32.totalorder %s18152_s29, %s18152_s29 }
  0x45   : > { %p19970_p7 = pnand %p15813_p2, %p26320_p6 }
  0x46   : > { %p18162_p0 = por %p18161_p5, %p18160_p4 }
  0x47   : > { %p19976_p1 = pneg %p19970_p7 }
  0x49   : > { %p18155_p12 = pnand %p18153_p10, %p19976_p1 }
  0x4b   : > { %p18156_p3 = pneg %p18155_p12 }
  0x4d   : > { %p18163_p13 = pnand %p18162_p0, %p18156_p3 }
  0x4f   : > { %18166 = shalt.err (!%p18163_p13)
}
  0x50   : > { %s26670_s1 = sld [smem:[#allocation305_spill]]  ;;  %s18178_s23 = scalar_lea.vmem %s316_s28, 4096 }
  0x51   : > { %p18179_p2 = scmp.ne.s32.totalorder %s316_s28, %s18178_s23  ;;  %p18186_p8 = scmp.lt.s32.totalorder %s316_s28, %s316_s28 }
  0x52   : > { %p18187_p10 = scmp.lt.s32.totalorder %s18178_s23, %s18178_s23 }
  0x53   : > { %p18181_p6 = pnand %p18179_p2, %p19976_p1 }
  0x54   : > { %p18188_p12 = por %p18187_p10, %p18186_p8 }
  0x55   : > { %p18182_p11 = pneg %p18181_p6 }
  0x56   : > { %15816 = dma.hbm_to_vmem [thread:$0]  (!%p19970_p7), %s26670_s1, 32, %s293_s26, [#allocation8]  }
  0x57   : > { %p18189_p9 = pnand %p18188_p12, %p18182_p11 }
  0x59   : > { %18192 = shalt.err (!%p18189_p9)
}
  0x5a   : > { %s26325_s8 = smov 128   ;;  %s26327_s6 = smov 8  }
  0x5b   : > { %s26671_s3 = sld [smem:[#allocation307_spill]]  ;;  %s201_s26 = sadd.s32 1, %s19075_s11 }
  0x5c   : > { %p26672_p6 = scmp.eq.s32.totalorder %s19896_s25, 0  ;;  %p208_p8 = scmp.ne.s32.totalorder %s19075_s11, %s19071_s10 }
  0x5d   : > { %p214_p11 = scmp.ne.s32.totalorder %s19071_s10, %s19067_s30  ;;  %s384_s29 = sand.u32 1, %s19075_s11  }
  0x5e   : > { %s20001_s21 = scalar_select %p26672_p6, %s19075_s11, %s201_s26  }
  0x5f   : > { %s26324_s24 = sshll.u32 %s19099_s17, 11  ;;  %p26673_p13 = scmp.eq.s32.totalorder %s19107_s19, 0 }
  0x60   : > { %p26674_p9 = scmp.eq.s32.totalorder %s19882_s20, 0  ;;  %s20017_s23 = sshll.u32 %s384_s29, 7 }
  0x61   : > { %15822 = dma.hbm_to_vmem [thread:$0]  (!%p19970_p7), %s26671_s3, 4096, %s316_s28, [#allocation11], %s26325_s8, %s26325_s8, %s26327_s6  }
  0x62   : > { %p210_p0 = por %p208_p8, %p26673_p13  ;;  %p20013_p3 = por %p214_p11, %p26674_p9 }
  0x63   : > { %s392_s25 = scalar_lea.hbm %s26303_s7, %s26324_s24  ;;  %p26676_p4 = scmp.lt.s32.totalorder %s19107_s19, 4 }
  0x64   : > { %s386_s22 = scalar_lea.vmem [#allocation15], %s20017_s23  ;;  %s19760_s16 = smov [#allocation15]  }
  0x65   : > { %p20026_p5 = pnand %p26676_p4, %p210_p0  ;;  %s393_s26 = sshll.u32 %s386_s22, 4  ;;  %s394_s26 = int_to_ptr.vmem [resolvable:$true] %s393_s26 }
  0x66   : > { %s18206_s29 = scalar_lea.vmem %s394_s26, 2048  ;;  %s18211_s28 = sshll.u32 %s19760_s16, 4  ;;  %s18212_s28 = int_to_ptr.vmem [resolvable:$false] %s18211_s28 }
  0x67   : > { %p18195_p2 = pneg %p20026_p5  ;;  %p18207_p10 = scmp.ne.s32.totalorder %s394_s26, %s18206_s29 }
  0x68   : > { %s18213_s24 = scalar_lea.vmem %s18212_s28, 4096  ;;  %p18214_p8 = scmp.lt.s32.totalorder %s394_s26, %s18212_s28 }
  0x69   : > { %p18209_p12 = pnand %p18207_p10, %p18195_p2  ;;  %p18215_p11 = scmp.lt.s32.totalorder %s18213_s24, %s18206_s29 }
  0x6b   : > { %p18210_p6 = pneg %p18209_p12  ;;  %p18216_p13 = por %p18215_p11, %p18214_p8 }
  0x6d   : > { %p18217_p0 = pnand %p18216_p13, %p18210_p6 }
  0x6f   : > { %18220 = shalt.err (!%p18217_p0)
}
  0x70   : > { %15835 = dma.hbm_to_vmem [thread:$0]  (!%p20026_p5), %s392_s25, 2048, %s394_s26, %s19953_s9, %s26325_s8, %s26325_s8, %s26327_s6  }
  0x71   : > { %s19761_s22 = smov [#allocation9]  }
  0x72   : > { %s302_s0 = sshll.u32 %s19761_s22, 4  ;;  %s303_s0 = int_to_ptr.vmem [resolvable:$true] %s302_s0 }
  0x73   : > { %s18232_s1 = scalar_lea.vmem %s303_s0, 12288  ;;  %p18240_p12 = scmp.lt.s32.totalorder %s303_s0, %s303_s0 }
  0x74   : > { %p18233_p9 = scmp.ne.s32.totalorder %s303_s0, %s18232_s1  ;;  %p18241_p8 = scmp.lt.s32.totalorder %s18232_s1, %s18232_s1 }
  0x76   : > { %p18235_p4 = pnand %p18233_p9, %p19976_p1  ;;  %p18242_p6 = por %p18241_p8, %p18240_p12 }
  0x78   : > { %p18236_p10 = pneg %p18235_p4 }
  0x7a   : > { %p18243_p11 = pnand %p18242_p6, %p18236_p10 }
  0x7c   : > { %18246 = shalt.err (!%p18243_p11)
}
  0x7d   : > { %s19762_s24 = smov 384   ;;  %s19763_s29 = smov 24  }
  0x7e   : > { %s26678_s2 = sld [smem:[#allocation306_spill]]  ;;  %s19764_s26 = smov [#allocation12]  }
  0x7f   : > { %s331_s28 = sshll.u32 %s19764_s26, 4  ;;  %s332_s28 = int_to_ptr.vmem [resolvable:$true] %s331_s28 }
  0x80   : > { %s18258_s22 = scalar_lea.vmem %s332_s28, 16384  ;;  %p18266_p4 = scmp.lt.s32.totalorder %s332_s28, %s332_s28 }
  0x81   : > { %p18259_p13 = scmp.ne.s32.totalorder %s332_s28, %s18258_s22  ;;  %p18267_p10 = scmp.lt.s32.totalorder %s18258_s22, %s18258_s22 }
  0x83   : > { %p18261_p0 = pnand %p18259_p13, %p19976_p1  ;;  %p18268_p12 = por %p18267_p10, %p18266_p4 }
  0x84   : > { %15819 = dma.hbm_to_vmem [thread:$0]  (!%p19970_p7), %s26678_s2, 12288, %s303_s0, [#allocation8], %s19762_s24, %s19762_s24, %s19763_s29  }
  0x85   : > { %p18262_p9 = pneg %p18261_p0 }
  0x87   : > { %p18269_p8 = pnand %p18268_p12, %p18262_p9 }
  0x89   : > { %18272 = shalt.err (!%p18269_p8)
}
  0x8a   : > { %s19765_s1 = smov 512   ;;  %s19766_s8 = smov 32  }
  0x8b   : > { %15825 = dma.hbm_to_vmem [thread:$0]  (!%p19970_p7), %s26301_s5, 16384, %s332_s28, [#allocation11], %s19765_s1, %s19765_s1, %s19766_s8  }
  0x8c   : > { %s19767_s29 = smov [#allocation13]   ;;  %s26679_s25 = sshll.u32 %s19099_s17, 11 }
  0x8d   : > { %s344_s16 = sshll.u32 %s19767_s29, 4  ;;  %s26680_s22 = sld [smem:[#allocation310_spill]]  ;;  %s345_s16 = int_to_ptr.vmem [resolvable:$true] %s344_s16 }
  0x8e   : > { %s18284_s3 = scalar_lea.vmem %s345_s16, 8192  ;;  %p18292_p0 = scmp.lt.s32.totalorder %s345_s16, %s345_s16 }
  0x8f   : > { %p18285_p6 = scmp.ne.s32.totalorder %s345_s16, %s18284_s3  ;;  %p18293_p9 = scmp.lt.s32.totalorder %s18284_s3, %s18284_s3 }
  0x91   : > { %p18287_p11 = pnand %p18285_p6, %p19976_p1  ;;  %p18294_p4 = por %p18293_p9, %p18292_p0 }
  0x93   : > { %s20061_s2 = scalar_lea.hbm %s26680_s22, %s26679_s25  ;;  %p18288_p13 = pneg %p18287_p11 }
  0x95   : > { %p18295_p10 = pnand %p18294_p4, %p18288_p13 }
  0x97   : > { %18298 = shalt.err (!%p18295_p10)
}
  0x98   : > { %s26681_s8 = smov 8   ;;  %s26682_s28 = smov 128  }
  0x99   : > { %s26683_s6 = sld [smem:[#allocation309_spill]]  ;;  %s407_s24 = scalar_lea.vmem [#allocation16], %s20017_s23 }
  0x9a   : > { %s414_s13 = sshll.u32 %s407_s24, 4  ;;  %s19768_s3 = smov [#allocation16]   ;;  %s415_s13 = int_to_ptr.vmem [resolvable:$true] %s414_s13 }
  0x9b   : > { %s18312_s29 = scalar_lea.vmem %s415_s13, 2048  ;;  %s18317_s4 = sshll.u32 %s19768_s3, 4  ;;  %s18318_s4 = int_to_ptr.vmem [resolvable:$false] %s18317_s4 }
  0x9c   : > { %p18313_p1 = scmp.ne.s32.totalorder %s415_s13, %s18312_s29  ;;  %s18319_s25 = scalar_lea.vmem %s18318_s4, 4096 }
  0x9d   : > { %p18320_p6 = scmp.lt.s32.totalorder %s415_s13, %s18318_s4  ;;  %p18321_p11 = scmp.lt.s32.totalorder %s18319_s25, %s18312_s29 }
  0x9e   : > { %p18315_p12 = pnand %p18313_p1, %p18195_p2 }
  0x9f   : > { %15828 = dma.hbm_to_vmem [thread:$0]  (!%p19970_p7), %s26683_s6, 8192, %s345_s16, [#allocation14], %s26682_s28, %s26682_s28, %s26681_s8  }
  0xa0   : > { %p18316_p8 = pneg %p18315_p12  ;;  %p18322_p13 = por %p18321_p11, %p18320_p6 }
  0xa2   : > { %p18323_p0 = pnand %p18322_p13, %p18316_p8 }
  0xa4   : > { %18326 = shalt.err (!%p18323_p0)
}
  0xa5   : > { %15838 = dma.hbm_to_vmem [thread:$0]  (!%p20026_p5), %s20061_s2, 2048, %s415_s13, %s19953_s9, %s26682_s28, %s26682_s28, %s26681_s8  }
  0xa6   : > { %p26684_p7 = scmp.ne.s32.totalorder %s26667_s27, 0 }
  0xa8   : > { %426 = sbr.rel (%p26684_p7) target bundleno = 2870 (0xb36), region = 56 }
  0xad   : > { %s26685_s23 = sld [smem:[#allocation25_spill]]  ;;  %s428_s26 = sand.u32 1, %s19882_s20  }
  0xae   : > { %s26686_s16 = sld [smem:[#allocation30_spill]]  ;;  %s429_s30 = scalar_lea.sflag [#allocation5], %s428_s26 }
  0xb3   : > { %s430_s22 = sand.u32 1, %s26685_s23  }
  0xb4   : > { %s20090_s1 = sshll.u32 %s430_s22, 8  ;;  %p26687_p2 = scmp.ne.s32.totalorder %s26686_s16, 0 }
  0xb5   : > { %s20093_s0 = scalar_lea.vmem [#allocation4], %s20090_s1 }
  0xb6   : > { %19042 = dma.done.wait (%p26687_p2), %s429_s30, 4096  }
  0xb7   : > { %19044 = vsyncadd (%p26687_p2), %s429_s30, 4294963200  ;;  %p26688_p5 = scmp.eq.s32.totalorder %s19882_s20, 0 }
  0xb9   : > { %19046 = dma.done.wait (%p26688_p5), [#allocation8], 12320   ;;  %p26689_p9 = pmov %p26688_p5 }
  0xba   : > { %p26690_p4 = pmov %p26688_p5 }
  0xbb   : > { %19048 = vsyncadd (%p26689_p9), [#allocation8], 4294954976 }
  0xbc   : > { %19050 = dma.done.wait (%p26690_p4), [#allocation11], 20480   ;;  %p26691_p10 = pmov %p26690_p4 }
  0xbd   : > { %p26692_p1 = pmov %p26690_p4 }
  0xbe   : > { %19052 = vsyncadd (%p26691_p10), [#allocation11], 4294946816 }
  0xbf   : > { %19054 = dma.done.wait (%p26692_p1), [#allocation14], 8192   ;;  %p26693_p12 = pmov %p26692_p1 }
  0xc0   : > { %s459_s2 = sand.u32 1, %s19071_s10  }
  0xc1   : > { %19056 = vsyncadd (%p26693_p12), [#allocation14], 4294959104  ;;  %s20112_s9 = sshll.u32 %s459_s2, 7 }
  0xc2   : > { %s20115_s27 = scalar_lea.vmem [#allocation15], %s20112_s9 }
  0xc3   : > { %19058 = dma.done.wait (%p20013_p3), %s429_s30, 4096  }
  0xc4   : > { %19060 = vsyncadd (%p20013_p3), %s429_s30, 4294963200  ;;  %v20122_v0 = vld [vmem:[%s20093_s0] sm:$0xff]  ;;  %v20125_v1 = vld [vmem:[%s20093_s0 + $0x8] sm:$0xff]  ;;  %s19772_s20 = smov 64   ;;  %s26852_s15 = sld [smem:[#allocation26_spill]] }
  0xc5   : > { %26694 = vst [vmem:[#allocation33_spill] sm:$0xff] %v20122_v0  ;;  %26695 = vst [vmem:[#allocation34_spill] sm:$0xff] %v20125_v1  ;;  %v20128_v2 = vld [vmem:[%s20093_s0 + $0x10] sm:$0xff]  ;;  %v553_v3 = vmul.f32 %v20122_v0, %v20122_v0  ;;  %v554_v4 = vmul.f32 %v20125_v1, %v20125_v1  ;;  %v20135_v5 = vld [vmem:[%s20093_s0 + $0x18] sm:$0xff]  ;;  %s22221_s6 = scalar_lea.vmem [#allocation16], %s20112_s9  ;;  %s22589_s29 = scalar_lea.vmem [#allocation17], %s20090_s1 }
  0xc6   : > { %26696 = vst [vmem:[#allocation35_spill] sm:$0xff] %v20128_v2  ;;  %26697 = vst [vmem:[#allocation36_spill] sm:$0xff] %v20135_v5  ;;  %v555_v6 = vmul.f32 %v20128_v2, %v20128_v2  ;;  %v20140_v7 = vld [vmem:[%s20093_s0 + $0x20] sm:$0xff]  ;;  %v20143_v8 = vld [vmem:[%s20093_s0 + $0x28] sm:$0xff]  ;;  %v556_v9 = vmul.f32 %v20135_v5, %v20135_v5 }
  0xc7   : > { %26698 = vst [vmem:[#allocation37_spill] sm:$0xff] %v20140_v7  ;;  %26699 = vst [vmem:[#allocation38_spill] sm:$0xff] %v20143_v8  ;;  %v557_v10 = vmul.f32 %v20140_v7, %v20140_v7  ;;  %v558_v11 = vmul.f32 %v20143_v8, %v20143_v8  ;;  %v20152_v12 = vld [vmem:[%s20093_s0 + $0x30] sm:$0xff]  ;;  %v20155_v13 = vld [vmem:[%s20093_s0 + $0x38] sm:$0xff]  ;;  %v585_v15 = vadd.f32 %v554_v4, %v553_v3 }
  0xc8   : > { %26700 = vst [vmem:[#allocation39_spill] sm:$0xff] %v20152_v12  ;;  %26701 = vst [vmem:[#allocation40_spill] sm:$0xff] %v20155_v13  ;;  %v20158_v14 = vld [vmem:[%s20093_s0 + $0x50] sm:$0xff]  ;;  %v559_v16 = vmul.f32 %v20152_v12, %v20152_v12  ;;  %v560_v17 = vmul.f32 %v20155_v13, %v20155_v13  ;;  %v20165_v18 = vld [vmem:[%s20093_s0 + $0x58] sm:$0xff]  ;;  %v588_v22 = vadd.f32 %v556_v9, %v555_v6 }
  0xc9   : > { %26702 = vst [vmem:[#allocation41_spill] sm:$0xff] %v20158_v14  ;;  %26703 = vst [vmem:[#allocation42_spill] sm:$0xff] %v20165_v18  ;;  %v20168_v19 = vld [vmem:[%s20093_s0 + $0x40] sm:$0xff]  ;;  %v20171_v20 = vld [vmem:[%s20093_s0 + $0x48] sm:$0xff]  ;;  %v591_v21 = vadd.f32 %v558_v11, %v557_v10  ;;  %586 = vadd.xlane.f32.xlu0 %v585_v15  ;;  %v563_v26 = vmul.f32 %v20158_v14, %v20158_v14  ;;  %v564_v27 = vmul.f32 %v20165_v18, %v20165_v18 }
  0xca   : > { %26704 = vst [vmem:[#allocation43_spill] sm:$0xff] %v20168_v19  ;;  %26705 = vst [vmem:[#allocation44_spill] sm:$0xff] %v20171_v20  ;;  %v561_v23 = vmul.f32 %v20168_v19, %v20168_v19  ;;  %v562_v24 = vmul.f32 %v20171_v20, %v20171_v20  ;;  %v594_v25 = vadd.f32 %v560_v17, %v559_v16  ;;  %v20182_v28 = vld [vmem:[%s20093_s0 + $0x60] sm:$0xff]  ;;  %v20185_v29 = vld [vmem:[%s20093_s0 + $0x68] sm:$0xff]  ;;  %s15302_s8 = sshll.u32 %s26852_s15, 7  ;;  %s7984_s13 = sadd.s32 1, %s26852_s15 }
  0xcb   : > { %592 = vadd.xlane.f32.xlu1 %v591_v21  ;;  %26706 = vst [vmem:[#allocation45_spill] sm:$0xff] %v20182_v28  ;;  %26707 = vst [vmem:[#allocation46_spill] sm:$0xff] %v20185_v29  ;;  %v20188_v30 = vld [vmem:[%s20093_s0 + $0x70] sm:$0xff]  ;;  %v20191_v31 = vld [vmem:[%s20093_s0 + $0x78] sm:$0xff]  ;;  %v565_v33 = vmul.f32 %v20182_v28, %v20182_v28  ;;  %v566_v34 = vmul.f32 %v20185_v29, %v20185_v29  ;;  %v600_v37 = vadd.f32 %v564_v27, %v563_v26  ;;  %s21650_s28 = scalar_lea.vmem [#allocation3], %s15302_s8  ;;  %s22371_s24 = scalar_lea.vmem [#allocation2], %s15302_s8 }
  0xcc   : > { %26708 = vst [vmem:[#allocation47_spill] sm:$0xff] %v20188_v30  ;;  %26709 = vst [vmem:[#allocation48_spill] sm:$0xff] %v20191_v31  ;;  %v597_v32 = vadd.f32 %v562_v24, %v561_v23  ;;  %v20198_v35 = vld [vmem:[%s20093_s0 + $0x90] sm:$0xff]  ;;  %v20201_v36 = vld [vmem:[%s20093_s0 + $0x98] sm:$0xff]  ;;  %v567_v38 = vmul.f32 %v20188_v30, %v20188_v30  ;;  %v568_v39 = vmul.f32 %v20191_v31, %v20191_v31  ;;  %p22593_p3 = scmp.le.s32.totalorder %s7984_s13, 0 }
  0xcd   : > { %589 = vadd.xlane.f32.xlu0 %v588_v22  ;;  %26710 = vst [vmem:[#allocation49_spill] sm:$0xff] %v20198_v35  ;;  %26711 = vst [vmem:[#allocation50_spill] sm:$0xff] %v20201_v36  ;;  %v20208_v40 = vld [vmem:[%s20093_s0 + $0x80] sm:$0xff]  ;;  %v20211_v41 = vld [vmem:[%s20093_s0 + $0x88] sm:$0xff]  ;;  %v603_v47 = vadd.f32 %v566_v34, %v565_v33  ;;  %v571_v54 = vmul.f32 %v20198_v35, %v20198_v35  ;;  %v572_v55 = vmul.f32 %v20201_v36, %v20201_v36 }
  0xce   : > { %26712 = vst [vmem:[#allocation51_spill] sm:$0xff] %v20208_v40  ;;  %26713 = vst [vmem:[#allocation52_spill] sm:$0xff] %v20211_v41  ;;  %v17250_v42 = vld [vmem:[#allocation9 + $0x154] ss:$24 sps:$4 sm:$0xff]   ;;  %v20214_v43 = vld [vmem:[%s20093_s0 + $0xa0] sm:$0xff]  ;;  %v569_v48 = vmul.f32 %v20208_v40, %v20208_v40  ;;  %v570_v49 = vmul.f32 %v20211_v41, %v20211_v41  ;;  %v606_v53 = vadd.f32 %v568_v39, %v567_v38 }
  0xcf   : > { %595 = vadd.xlane.f32.xlu1 %v594_v25  ;;  %26714 = vst [vmem:[#allocation53_spill] sm:$0xff] %v20214_v43  ;;  %v20217_v44 = vld [vmem:[%s20093_s0 + $0xa8] sm:$0xff]  ;;  %v17252_v45 = vld [vmem:[#allocation9 + $0x15c] ss:$24 sps:$4 sm:$0xff]   ;;  %1349 = vmatprep.subr.bf16.mxu0 %v17250_v42  ;;  %v17255_v52 = vld [vmem:[#allocation9 + $0x158] ss:$24 sps:$4 sm:$0xff]   ;;  %v573_v63 = vmul.f32 %v20214_v43, %v20214_v43  ;;  %v612_v10 = vadd.f32 %v572_v55, %v571_v54 }
  0xd0   : > { %26715 = vst [vmem:[#allocation54_spill] sm:$0xff] %v20217_v44  ;;  %v17254_v46 = vld [vmem:[#allocation9 + $0x150] ss:$24 sps:$4 sm:$0xff]   ;;  %v20227_v51 = vld [vmem:[%s20093_s0 + $0xb8] sm:$0xff]  ;;  %1462 = vmatprep.subr.bf16.mxu1 %v17252_v45  ;;  %v17258_v57 = vld [vmem:[#allocation9 + $0x12c] ss:$24 sps:$4 sm:$0xff]   ;;  %v609_v62 = vadd.f32 %v570_v49, %v569_v48  ;;  %v574_v3 = vmul.f32 %v20217_v44, %v20217_v44 }
  0xd1   : > { %598 = vadd.xlane.f32.xlu0 %v597_v32  ;;  %v20224_v50 = vld [vmem:[%s20093_s0 + $0xb0] sm:$0xff]  ;;  %26717 = vst [vmem:[#allocation56_spill] sm:$0xff] %v20227_v51  ;;  %v17256_v56 = vld [vmem:[#allocation9 + $0x124] ss:$24 sps:$4 sm:$0xff]   ;;  %1350 = vmatpush1.bf16.msra.mxu0 %v17254_v46  ;;  %v17260_v58 = vld [vmem:[#allocation9 + $0x120] ss:$24 sps:$4 sm:$0xff]   ;;  %v576_v15 = vmul.f32 %v20227_v51, %v20227_v51 }
  0xd2   : > { %26716 = vst [vmem:[#allocation55_spill] sm:$0xff] %v20224_v50  ;;  %1463 = vmatpush1.bf16.msra.mxu1 %v17255_v52  ;;  %v17261_v59 = vld [vmem:[#allocation9 + $0x128] ss:$24 sps:$4 sm:$0xff]   ;;  %1351 = vmatprep.subr.bf16.mxu0 %v17256_v56  ;;  %v17262_v61 = vld [vmem:[#allocation9 + $0xf4] ss:$24 sps:$4 sm:$0xff]   ;;  %v575_v11 = vmul.f32 %v20224_v50, %v20224_v50  ;;  %v615_v24 = vadd.f32 %v574_v3, %v573_v63 }
  0xd3   : > { %601 = vadd.xlane.f32.xlu1 %v600_v37  ;;  %v20234_v60 = vld [vmem:[%s20093_s0 + $0xc0] sm:$0xff]  ;;  %v20241_v4 = vld [vmem:[%s20093_s0 + $0xd0] sm:$0xff]  ;;  %v20244_v6 = vld [vmem:[%s20093_s0 + $0xd8] sm:$0xff]  ;;  %1464 = vmatprep.subr.bf16.mxu1 %v17258_v57 }
  0xd4   : > { %26718 = vst [vmem:[#allocation57_spill] sm:$0xff] %v20234_v60  ;;  %26719 = vst [vmem:[#allocation58_spill] sm:$0xff] %v20241_v4  ;;  %v17264_v9 = vld [vmem:[#allocation9 + $0xfc] ss:$24 sps:$4 sm:$0xff]   ;;  %v20251_v16 = vld [vmem:[%s20093_s0 + $0xc8] sm:$0xff]  ;;  %v577_v25 = vmul.f32 %v20234_v60, %v20234_v60  ;;  %v618_v34 = vadd.f32 %v576_v15, %v575_v11  ;;  %v579_v37 = vmul.f32 %v20241_v4, %v20241_v4 }
  0xd5   : > { %604 = vadd.xlane.f32.xlu0 %v603_v47  ;;  %26720 = vst [vmem:[#allocation59_spill] sm:$0xff] %v20244_v6  ;;  %26721 = vst [vmem:[#allocation60_spill] sm:$0xff] %v20251_v16  ;;  %v17266_v17 = vld [vmem:[#allocation9 + $0xf0] ss:$24 sps:$4 sm:$0xff]   ;;  %1352 = vmatpush1.bf16.msra.mxu0 %v17260_v58  ;;  %v17268_v22 = vld [vmem:[#allocation9 + $0xc4] ss:$24 sps:$4 sm:$0xff]   ;;  %v578_v26 = vmul.f32 %v20251_v16, %v20251_v16  ;;  %v580_v38 = vmul.f32 %v20244_v6, %v20244_v6 }
  0xd6   : > { %1465 = vmatpush1.bf16.msra.mxu1 %v17261_v59  ;;  %v17267_v21 = vld [vmem:[#allocation9 + $0xf8] ss:$24 sps:$4 sm:$0xff]   ;;  %1353 = vmatprep.subr.bf16.mxu0 %v17262_v61  ;;  %v17270_v23 = vld [vmem:[#allocation9 + $0xcc] ss:$24 sps:$4 sm:$0xff]   ;;  %v17273_v45 = vld [vmem:[#allocation9 + $0xc8] ss:$24 sps:$4 sm:$0xff]  }
  0xd7   : > { %607 = vadd.xlane.f32.xlu1 %v606_v53  ;;  %1466 = vmatprep.subr.bf16.mxu1 %v17264_v9  ;;  %v20258_v27 = vld [vmem:[%s20093_s0 + $0xf0] sm:$0xff]  ;;  %v20261_v32 = vld [vmem:[%s20093_s0 + $0xf8] sm:$0xff]  ;;  %v20264_v33 = vld [vmem:[%s20093_s0 + $0xe0] sm:$0xff]  ;;  %v621_v48 = vadd.f32 %v578_v26, %v577_v25  ;;  %v624_v53 = vadd.f32 %v580_v38, %v579_v37 }
  0xd8   : > { %26722 = vst [vmem:[#allocation61_spill] sm:$0xff] %v20258_v27  ;;  %26723 = vst [vmem:[#allocation62_spill] sm:$0xff] %v20261_v32  ;;  %v20271_v39 = vld [vmem:[%s20093_s0 + $0xe8] sm:$0xff]  ;;  %v17272_v42 = vld [vmem:[#allocation9 + $0xc0] ss:$24 sps:$4 sm:$0xff]   ;;  %v581_v49 = vmul.f32 %v20264_v33, %v20264_v33  ;;  %v583_v54 = vmul.f32 %v20258_v27, %v20258_v27  ;;  %v584_v55 = vmul.f32 %v20261_v32, %v20261_v32 }
  0xd9   : > { %610 = vadd.xlane.f32.xlu0 %v609_v62  ;;  %26724 = vst [vmem:[#allocation63_spill] sm:$0xff] %v20264_v33  ;;  %26725 = vst [vmem:[#allocation64_spill] sm:$0xff] %v20271_v39  ;;  %1354 = vmatpush1.bf16.msra.mxu0 %v17266_v17  ;;  %v17274_v46 = vld [vmem:[#allocation9 + $0x94] ss:$24 sps:$4 sm:$0xff]   ;;  %v582_v52 = vmul.f32 %v20271_v39, %v20271_v39  ;;  %v17278_v56 = vld [vmem:[#allocation9 + $0x90] ss:$24 sps:$4 sm:$0xff]  }
  0xda   : > { %1467 = vmatpush1.bf16.msra.mxu1 %v17267_v21  ;;  %1355 = vmatprep.subr.bf16.mxu0 %v17268_v22  ;;  %v17276_v47 = vld [vmem:[#allocation9 + $0x9c] ss:$24 sps:$4 sm:$0xff]   ;;  %v17279_v57 = vld [vmem:[#allocation9 + $0x98] ss:$24 sps:$4 sm:$0xff]   ;;  %v17282_v59 = vld [vmem:[#allocation9 + $0x6c] ss:$24 sps:$4 sm:$0xff]   ;;  %v630_v62 = vadd.f32 %v584_v55, %v583_v54 }
  0xdb   : > { %613 = vadd.xlane.f32.xlu1 %v612_v10  ;;  %1468 = vmatprep.subr.bf16.mxu1 %v17270_v23  ;;  %v17280_v58 = vld [vmem:[#allocation9 + $0x64] ss:$24 sps:$4 sm:$0xff]   ;;  %v627_v61 = vadd.f32 %v582_v52, %v581_v49  ;;  %v17284_v63 = vld [vmem:[#allocation9 + $0x60] ss:$24 sps:$4 sm:$0xff]   ;;  %v17286_v9 = vld [vmem:[#allocation9 + $0x34] ss:$24 sps:$4 sm:$0xff]  }
  0xdc   : > { %v17285_v3 = vld [vmem:[#allocation9 + $0x68] ss:$24 sps:$4 sm:$0xff]   ;;  %v17288_v10 = vld [vmem:[#allocation9 + $0x3c] ss:$24 sps:$4 sm:$0xff]   ;;  %v17291_v15 = vld [vmem:[#allocation9 + $0x38] ss:$24 sps:$4 sm:$0xff]  }
  0xdd   : > { %616 = vadd.xlane.f32.xlu0 %v615_v24  ;;  %1356 = vmatpush1.bf16.msra.mxu0 %v17272_v42  ;;  %v17290_v11 = vld [vmem:[#allocation9 + $0x30] ss:$24 sps:$4 sm:$0xff]   ;;  %v17292_v17 = vld [vmem:[#allocation9 + $0x4] ss:$24 sps:$4 sm:$0xff]   ;;  %v17296_v22 = vld [vmem:[#allocation9] ss:$24 sps:$4 sm:$0xff]   ;;  %v715_v42 = vlaneseq }
  0xde   : > { %1469 = vmatpush1.bf16.msra.mxu1 %v17273_v45  ;;  %1357 = vmatprep.subr.bf16.mxu0 %v17274_v46  ;;  %v17294_v21 = vld [vmem:[#allocation9 + $0xc] ss:$24 sps:$4 sm:$0xff]   ;;  %v17297_v23 = vld [vmem:[#allocation9 + $0x8] ss:$24 sps:$4 sm:$0xff]   ;;  %v17300_v25 = vld [vmem:[#allocation9 + $0x2dc] ss:$24 sps:$4 sm:$0xff]  }
  0xdf   : > { %619 = vadd.xlane.f32.xlu1 %v618_v34  ;;  %1470 = vmatprep.subr.bf16.mxu1 %v17276_v47  ;;  %v17298_v24 = vld [vmem:[#allocation9 + $0x2d4] ss:$24 sps:$4 sm:$0xff]   ;;  %v17302_v26 = vld [vmem:[#allocation9 + $0x2d0] ss:$24 sps:$4 sm:$0xff]   ;;  %v17304_v37 = vld [vmem:[#allocation9 + $0x2a4] ss:$24 sps:$4 sm:$0xff]  }
  0xe0   : > { %v17303_v34 = vld [vmem:[#allocation9 + $0x2d8] ss:$24 sps:$4 sm:$0xff]   ;;  %v17306_v38 = vld [vmem:[#allocation9 + $0x2ac] ss:$24 sps:$4 sm:$0xff]   ;;  %v17309_v46 = vld [vmem:[#allocation9 + $0x2a8] ss:$24 sps:$4 sm:$0xff]  }
  0xe1   : > { %622 = vadd.xlane.f32.xlu0 %v621_v48  ;;  %1358 = vmatpush1.bf16.msra.mxu0 %v17278_v56  ;;  %v17308_v45 = vld [vmem:[#allocation9 + $0x2a0] ss:$24 sps:$4 sm:$0xff]   ;;  %v17310_v47 = vld [vmem:[#allocation9 + $0x274] ss:$24 sps:$4 sm:$0xff]   ;;  %v17314_v49 = vld [vmem:[#allocation9 + $0x270] ss:$24 sps:$4 sm:$0xff]  }
  0xe2   : > { %1471 = vmatpush1.bf16.msra.mxu1 %v17279_v57  ;;  %1359 = vmatprep.subr.bf16.mxu0 %v17280_v58  ;;  %v17312_v48 = vld [vmem:[#allocation9 + $0x27c] ss:$24 sps:$4 sm:$0xff]   ;;  %v17315_v52 = vld [vmem:[#allocation9 + $0x278] ss:$24 sps:$4 sm:$0xff]   ;;  %v20281_v54 = vshrl.u32 %v715_v42, 7 }
  0xe3   : > { %625 = vadd.xlane.f32.xlu1 %v624_v53  ;;  %1472 = vmatprep.subr.bf16.mxu1 %v17282_v59  ;;  %v17316_v53 = vld [vmem:[#allocation9 + $0x244] ss:$24 sps:$4 sm:$0xff]  }
  0xe4   : > { %26726 = vst [vmem:[#allocation65_spill] sm:$0xff] %v20281_v54  ;;  %v17318_v55 = vld [vmem:[#allocation9 + $0x24c] ss:$24 sps:$4 sm:$0xff]   ;;  %v20284_v56 = vadd.s32 8, %v20281_v54  ;;  %v20287_v57 = vadd.s32 16, %v20281_v54  ;;  %v20290_v58 = vadd.s32 24, %v20281_v54 }
  0xe5   : > { %628 = vadd.xlane.f32.xlu0 %v627_v61  ;;  %1360 = vmatpush1.bf16.msra.mxu0 %v17284_v63  ;;  %v20293_v59 = vadd.s32 32, %v20281_v54  ;;  %v17320_v61 = vld [vmem:[#allocation9 + $0x240] ss:$24 sps:$4 sm:$0xff]   ;;  %v20296_v63 = vadd.s32 40, %v20281_v54 }
  0xe6   : > { %1473 = vmatpush1.bf16.msra.mxu1 %v17285_v3  ;;  %1361 = vmatprep.subr.bf16.mxu0 %v17286_v9  ;;  %26727 = vst [vmem:[#allocation66_spill] sm:$0xff] %v20284_v56  ;;  %26728 = vst [vmem:[#allocation67_spill] sm:$0xff] %v20287_v57  ;;  %v20299_v3 = vadd.s32 48, %v20281_v54  ;;  %v20302_v9 = vadd.s32 56, %v20281_v54 }
  0xe7   : > { %631 = vadd.xlane.f32.xlu1 %v630_v62  ;;  %1474 = vmatprep.subr.bf16.mxu1 %v17288_v10  ;;  %26729 = vst [vmem:[#allocation68_spill] sm:$0xff] %v20290_v58  ;;  %26730 = vst [vmem:[#allocation69_spill] sm:$0xff] %v20293_v59  ;;  %v17321_v62 = vld [vmem:[#allocation9 + $0x248] ss:$24 sps:$4 sm:$0xff]   ;;  %v20305_v10 = vadd.s32 64, %v20281_v54 }
  0xe8   : > { %26731 = vst [vmem:[#allocation70_spill] sm:$0xff] %v20296_v63  ;;  %26732 = vst [vmem:[#allocation71_spill] sm:$0xff] %v20299_v3 }
  0xe9   : > { %1362 = vmatpush1.bf16.msra.mxu0 %v17290_v11  ;;  %26733 = vst [vmem:[#allocation72_spill] sm:$0xff] %v20302_v9  ;;  %26734 = vst [vmem:[#allocation73_spill] sm:$0xff] %v20305_v10  ;;  %v20308_v11 = vadd.s32 72, %v20281_v54 }
  0xea   : > { %1475 = vmatpush1.bf16.msra.mxu1 %v17291_v15  ;;  %1363 = vmatprep.subr.bf16.mxu0 %v17292_v17  ;;  %v20311_v15 = vadd.s32 80, %v20281_v54  ;;  %v20313_v17 = vand.u32 127, %v715_v42  ;;  %v17348_v42 = vld [vmem:[#allocation9 + $0x164] ss:$24 sps:$4 sm:$0xff]  }
  0xeb   : > { %1476 = vmatprep.subr.bf16.mxu1 %v17294_v21  ;;  %26735 = vst [vmem:[#allocation74_spill] sm:$0xff] %v20308_v11  ;;  %v20316_v21 = vadd.s32 88, %v20281_v54 }
  0xec   : > { %26736 = vst [vmem:[#allocation75_spill] sm:$0xff] %v20311_v15  ;;  %26737 = vst [vmem:[#allocation76_spill] sm:$0xff] %v20313_v17 }
  0xed   : > { %1364 = vmatpush1.bf16.msra.mxu0 %v17296_v22  ;;  %26738 = vst [vmem:[#allocation77_spill] sm:$0xff] %v20316_v21  ;;  %v20319_v22 = vadd.s32 96, %v20281_v54 }
  0xee   : > { %1477 = vmatpush1.bf16.msra.mxu1 %v17297_v23  ;;  %1365 = vmatprep.subr.bf16.mxu0 %v17298_v24  ;;  %v20322_v23 = vadd.s32 104, %v20281_v54  ;;  %v20325_v24 = vadd.s32 112, %v20281_v54 }
  0xef   : > { %1478 = vmatprep.subr.bf16.mxu1 %v17300_v25  ;;  %26739 = vst [vmem:[#allocation78_spill] sm:$0xff] %v20319_v22  ;;  %v17322_v25 = vld [vmem:[#allocation9 + $0x214] ss:$24 sps:$4 sm:$0xff]  }
  0xf0   : > { %26740 = vst [vmem:[#allocation79_spill] sm:$0xff] %v20322_v23  ;;  %26741 = vst [vmem:[#allocation80_spill] sm:$0xff] %v20325_v24 }
  0xf1   : > { %1366 = vmatpush2.bf16.msra.mxu0 %v17302_v26  ;;  %v17324_v26 = vld [vmem:[#allocation9 + $0x21c] ss:$24 sps:$4 sm:$0xff]  }
  0xf2   : > { %1479 = vmatpush2.bf16.msra.mxu1 %v17303_v34  ;;  %1367 = vmatprep.subr.bf16.mxu0 %v17304_v37  ;;  %v20328_v34 = vadd.s32 120, %v20281_v54  ;;  %v17334_v37 = vld [vmem:[#allocation9 + $0x1b4] ss:$24 sps:$4 sm:$0xff]  }
  0xf3   : > { %1480 = vmatprep.subr.bf16.mxu1 %v17306_v38  ;;  %v17333_v38 = vld [vmem:[#allocation9 + $0x1e8] ss:$24 sps:$4 sm:$0xff]  }
  0xf4   : > { %26742 = vst [vmem:[#allocation81_spill] sm:$0xff] %v20328_v34 }
  0xf5   : > { %1368 = vmatpush2.bf16.msra.mxu0 %v17308_v45  ;;  %v17330_v45 = vld [vmem:[#allocation9 + $0x1ec] ss:$24 sps:$4 sm:$0xff]  }
  0xf6   : > { %1481 = vmatpush2.bf16.msra.mxu1 %v17309_v46  ;;  %1369 = vmatprep.subr.bf16.mxu0 %v17310_v47  ;;  %v17327_v46 = vld [vmem:[#allocation9 + $0x218] ss:$24 sps:$4 sm:$0xff]   ;;  %v17336_v47 = vld [vmem:[#allocation9 + $0x1bc] ss:$24 sps:$4 sm:$0xff]  }
  0xf7   : > { %1482 = vmatprep.subr.bf16.mxu1 %v17312_v48  ;;  %v17338_v48 = vld [vmem:[#allocation9 + $0x1b0] ss:$24 sps:$4 sm:$0xff]  }
  0xf9   : > { %1370 = vmatpush2.bf16.msra.mxu0 %v17314_v49  ;;  %v17326_v49 = vld [vmem:[#allocation9 + $0x210] ss:$24 sps:$4 sm:$0xff]  }
  0xfa   : > { %1483 = vmatpush2.bf16.msra.mxu1 %v17315_v52  ;;  %1371 = vmatprep.subr.bf16.mxu0 %v17316_v53  ;;  %v17328_v53 = vld [vmem:[#allocation9 + $0x1e4] ss:$24 sps:$4 sm:$0xff]   ;;  %v17339_v52 = vld [vmem:[#allocation9 + $0x1b8] ss:$24 sps:$4 sm:$0xff]  }
  0xfb   : > { %1484 = vmatprep.subr.bf16.mxu1 %v17318_v55  ;;  %v17344_v55 = vld [vmem:[#allocation9 + $0x180] ss:$24 sps:$4 sm:$0xff]  }
  0xfd   : > { %1372 = vmatpush2.bf16.msra.mxu0 %v17320_v61  ;;  %v17345_v61 = vld [vmem:[#allocation9 + $0x188] ss:$24 sps:$4 sm:$0xff]  }
  0xfe   : > { %1485 = vmatpush2.bf16.msra.mxu1 %v17321_v62  ;;  %1373 = vmatprep.subr.bf16.mxu0 %v17322_v25  ;;  %v17332_v62 = vld [vmem:[#allocation9 + $0x1e0] ss:$24 sps:$4 sm:$0xff]   ;;  %v17340_v25 = vld [vmem:[#allocation9 + $0x184] ss:$24 sps:$4 sm:$0xff]  }
  0xff   : > { %1486 = vmatprep.subr.bf16.mxu1 %v17324_v26  ;;  %v17342_v26 = vld [vmem:[#allocation9 + $0x18c] ss:$24 sps:$4 sm:$0xff]  }
 0x101   : > { %1374 = vmatpush2.bf16.msra.mxu0 %v17326_v49 }
 0x102   : > { %1487 = vmatpush2.bf16.msra.mxu1 %v17327_v46  ;;  %1375 = vmatprep.subr.bf16.mxu0 %v17328_v53 }
 0x103   : > { %1488 = vmatprep.subr.bf16.mxu1 %v17330_v45 }
 0x105   : > { %1376 = vmatpush2.bf16.msra.mxu0 %v17332_v62 }
 0x106   : > { %1489 = vmatpush2.bf16.msra.mxu1 %v17333_v38  ;;  %1377 = vmatprep.subr.bf16.mxu0 %v17334_v37 }
 0x107   : > { %1490 = vmatprep.subr.bf16.mxu1 %v17336_v47 }
 0x109   : > { %1378 = vmatpush2.bf16.msra.mxu0 %v17338_v48 }
 0x10a   : > { %1491 = vmatpush2.bf16.msra.mxu1 %v17339_v52  ;;  %1379 = vmatprep.subr.bf16.mxu0 %v17340_v25 }
 0x10b   : > { %1492 = vmatprep.subr.bf16.mxu1 %v17342_v26 }
 0x10d   : > { %1380 = vmatpush2.bf16.msra.mxu0 %v17344_v55 }
 0x10e   : > { %1493 = vmatpush2.bf16.msra.mxu1 %v17345_v61  ;;  %1575 = vmatprep.subr.bf16.mxu0 %v17348_v42 }
 0x10f   : > { %15721 = vmatprep.subr.bf16.mxu1 %v17348_v42 }
 0x152   : > { %v587_v45 = vpop.xlane.xlu0 %586 }
 0x153   : > { %v634_v46 = vmul.f32 0.00390625, %v587_v45 }
 0x154   : > { %v593_v49 = vpop.xlane.xlu1 %592 }
 0x155   : > { %v636_v53 = vmul.f32 0.00390625, %v593_v49  ;;  %v650_v62 = vadd.f32 1e-06, %v634_v46 }
 0x156   : > { %v590_v38 = vpop.xlane.xlu0 %589 }
 0x157   : > { %v652_v23 = vadd.f32 1e-06, %v636_v53  ;;  %17394 = vrsqrt.f32 %v650_v62  ;;  %v635_v37 = vmul.f32 0.00390625, %v590_v38 }
 0x158   : > { %v596_v47 = vpop.xlane.xlu1 %595 }
 0x159   : > { %17396 = vrsqrt.f32 %v652_v23  ;;  %v637_v48 = vmul.f32 0.00390625, %v596_v47  ;;  %v651_v52 = vadd.f32 1e-06, %v635_v37  ;;  %v26333_v23 = vsub.s32 1, %v20281_v54  ;;  %v552_v47 = vld [vmem:[#allocation7] sm:$0x3] }
 0x15a   : > { %v599_v26 = vpop.xlane.xlu0 %598 }
 0x15b   : > { %v653_v25 = vadd.f32 1e-06, %v637_v48  ;;  %17398 = vrsqrt.f32 %v651_v52  ;;  %v638_v61 = vmul.f32 0.00390625, %v599_v26  ;;  %v26335_v48 = vsub.s32 0, %v20281_v54 }
 0x15c   : > { %v602_v55 = vpop.xlane.xlu1 %601 }
 0x15d   : > { %17400 = vrsqrt.f32 %v653_v25  ;;  %v639_v42 = vmul.f32 0.00390625, %v602_v55  ;;  %v654_v22 = vadd.f32 1e-06, %v638_v61 }
 0x15e   : > { %v605_v34 = vpop.xlane.xlu0 %604 }
 0x15f   : > { %v655_v45 = vadd.f32 1e-06, %v639_v42  ;;  %17402 = vrsqrt.f32 %v654_v22  ;;  %v640_v49 = vmul.f32 0.00390625, %v605_v34  ;;  %v20367_v22 = vrot.slane %v552_v47, %v26333_v23 }
 0x160   : > { %v608_v46 = vpop.xlane.xlu1 %607 }
 0x161   : > { %17404 = vrsqrt.f32 %v655_v45  ;;  %v641_v53 = vmul.f32 0.00390625, %v608_v46  ;;  %v656_v62 = vadd.f32 1e-06, %v640_v49  ;;  %v20372_v45 = vrot.slane %v552_v47, %v26335_v48 }
 0x162   : > { %v611_v38 = vpop.xlane.xlu0 %610 }
 0x163   : > { %v657_v37 = vadd.f32 1e-06, %v641_v53  ;;  %v642_v55 = vmul.f32 0.00390625, %v611_v38  ;;  %17406 = vrsqrt.f32 %v656_v62 }
 0x164   : > { %v614_v52 = vpop.xlane.xlu1 %613  ;;  %v17395_v26 = vpop.eup %17394 }
 0x165   : > { %v683_v61 = vmul.f32 %v17395_v26, %v20125_v1  ;;  %v643_v34 = vmul.f32 0.00390625, %v614_v52  ;;  %17408 = vrsqrt.f32 %v657_v37  ;;  %v682_v42 = vmul.f32 %v17395_v26, %v20122_v0 }
 0x166   : > { %v17397_v25 = vpop.eup %17396  ;;  %v658_v1 = vadd.f32 1e-06, %v642_v55 }
 0x167   : > { %v687_v46 = vmul.f32 %v17397_v25, %v20143_v8  ;;  %v726_v23 = vmul.f32 %v20367_v22, %v683_v61  ;;  %v659_v24 = vadd.f32 1e-06, %v643_v34  ;;  %v725_v26 = vmul.f32 %v20372_v45, %v682_v42  ;;  %v617_v8 = vpop.xlane.xlu0 %616  ;;  %v17351_v42 = vld [vmem:[#allocation9 + $0x134] ss:$24 sps:$4 sm:$0xff]  }
 0x168   : > { %v17399_v49 = vpop.eup %17398  ;;  %v620_v61 = vpop.xlane.xlu1 %619  ;;  %17410 = vrsqrt.f32 %v658_v1 }
 0x169   : > { %v685_v62 = vmul.f32 %v17399_v49, %v20135_v5  ;;  %v684_v38 = vmul.f32 %v17399_v49, %v20128_v2  ;;  %v730_v48 = vmul.f32 %v20367_v22, %v687_v46  ;;  %v686_v49 = vmul.f32 %v17397_v25, %v20140_v7 }
 0x16a   : > { %v17401_v53 = vpop.eup %17400  ;;  %17412 = vrsqrt.f32 %v659_v24  ;;  %v645_v25 = vmul.f32 0.00390625, %v620_v61 }
 0x16b   : > { %v689_v37 = vmul.f32 %v17401_v53, %v20155_v13  ;;  %v728_v52 = vmul.f32 %v20367_v22, %v685_v62  ;;  %v727_v47 = vmul.f32 %v20372_v45, %v684_v38  ;;  %v688_v55 = vmul.f32 %v17401_v53, %v20152_v12  ;;  %v17346_v62 = vld [vmem:[#allocation9 + $0x160] ss:$24 sps:$4 sm:$0xff]   ;;  %v623_v61 = vpop.xlane.xlu0 %622 }
 0x16c   : > { %v17403_v0 = vpop.eup %17402  ;;  %v644_v38 = vmul.f32 0.00390625, %v617_v8  ;;  %v729_v1 = vmul.f32 %v20372_v45, %v686_v49  ;;  %v17349_v8 = vld [vmem:[#allocation9 + $0x130] ss:$24 sps:$4 sm:$0xff]   ;;  %v626_v49 = vpop.xlane.xlu1 %625 }
 0x16d   : > { %v732_v5 = vmul.f32 %v20367_v22, %v689_v37  ;;  %v20386_v2 = vpack.c.bf16 %v728_v52, %v726_v23  ;;  %v20388_v13 = vpack.c.bf16 %v727_v47, %v725_v26  ;;  %v691_v53 = vmul.f32 %v17403_v0, %v20171_v20  ;;  %v17357_v20 = vld [vmem:[#allocation9 + $0xd4] ss:$24 sps:$4 sm:$0xff]  }
 0x16e   : > { %v17405_v34 = vpop.eup %17404  ;;  %v731_v24 = vmul.f32 %v20372_v45, %v688_v55  ;;  %v660_v23 = vadd.f32 1e-06, %v644_v38  ;;  %v661_v52 = vadd.f32 1e-06, %v645_v25  ;;  %v17352_v38 = vld [vmem:[#allocation9 + $0x100] ss:$24 sps:$4 sm:$0xff]  }
 0x16f   : > { %1381 = vmatprep.mubr.bf16.mxu0 %v20386_v2  ;;  %1494 = vmatprep.mubr.bf16.mxu1 %v20386_v2  ;;  %v20392_v46 = vpack.c.bf16 %v732_v5, %v730_v48  ;;  %v693_v37 = vmul.f32 %v17405_v34, %v20165_v18  ;;  %v17354_v5 = vld [vmem:[#allocation9 + $0x104] ss:$24 sps:$4 sm:$0xff]   ;;  %v734_v26 = vmul.f32 %v20367_v22, %v691_v53  ;;  %v647_v25 = vmul.f32 0.00390625, %v626_v49 }
 0x170   : > { %1382 = vmatmul.mubr.bf16.vlgmr.msra.gmra.mxu0 %v20388_v13  ;;  %1495 = vmatmul.mubr.bf16.vlgmr.msra.gmra.mxu1 %v20388_v13  ;;  %v17407_v48 = vpop.eup %17406  ;;  %v20404_v18 = vpack.c.bf16 %v731_v24, %v729_v1  ;;  %17414 = vrsqrt.f32 %v660_v23  ;;  %v646_v53 = vmul.f32 0.00390625, %v623_v61  ;;  %v17355_v24 = vld [vmem:[#allocation9 + $0xd0] ss:$24 sps:$4 sm:$0xff]   ;;  %v632_v61 = vpop.xlane.xlu1 %631 }
 0x171   : > { %1576 = vmatpush1.bf16.msra.mxu0 %v17346_v62  ;;  %15737 = vmatpush1.bf16.msra.mxu1 %v17346_v62  ;;  %v736_v47 = vmul.f32 %v20367_v22, %v693_v37  ;;  %v690_v62 = vmul.f32 %v17403_v0, %v20168_v19  ;;  %17416 = vrsqrt.f32 %v661_v52  ;;  %v695_v12 = vmul.f32 %v17407_v48, %v20185_v29 }
 0x172   : > { %1577 = vmatprep.subr.bf16.mxu0 %v17351_v42  ;;  %15722 = vmatprep.subr.bf16.mxu1 %v17351_v42  ;;  %v17409_v55 = vpop.eup %17408  ;;  %v692_v42 = vmul.f32 %v17405_v34, %v20158_v14  ;;  %v663_v23 = vadd.f32 1e-06, %v647_v25  ;;  %v17358_v25 = vld [vmem:[#allocation9 + $0xa0] ss:$24 sps:$4 sm:$0xff]  }
 0x173   : > { %1391 = vmatprep.mubr.bf16.mxu0 %v20392_v46  ;;  %1504 = vmatprep.mubr.bf16.mxu1 %v20392_v46  ;;  %v20408_v37 = vpack.c.bf16 %v736_v47, %v734_v26  ;;  %v697_v1 = vmul.f32 %v17409_v55, %v20191_v31  ;;  %v733_v0 = vmul.f32 %v20372_v45, %v690_v62  ;;  %v662_v26 = vadd.f32 1e-06, %v646_v53  ;;  %v629_v62 = vpop.xlane.xlu0 %628  ;;  %v17363_v31 = vld [vmem:[#allocation9 + $0x74] ss:$24 sps:$4 sm:$0xff]  }
 0x174   : > { %v735_v34 = vmul.f32 %v20372_v45, %v692_v42  ;;  %v738_v47 = vmul.f32 %v20367_v22, %v695_v12  ;;  %17418 = vrsqrt.f32 %v663_v23  ;;  %v649_v53 = vmul.f32 0.00390625, %v632_v61 }
 0x175   : > { %1578 = vmatpush1.bf16.msra.mxu0 %v17349_v8  ;;  %15738 = vmatpush1.bf16.msra.mxu1 %v17349_v8  ;;  %v17411_v8 = vpop.eup %17410  ;;  %v740_v49 = vmul.f32 %v20367_v22, %v697_v1  ;;  %v648_v29 = vmul.f32 0.00390625, %v629_v62  ;;  %17420 = vrsqrt.f32 %v662_v26 }
 0x176   : > { %1579 = vmatprep.subr.bf16.mxu0 %v17354_v5  ;;  %15723 = vmatprep.subr.bf16.mxu1 %v17354_v5  ;;  %v17360_v5 = vld [vmem:[#allocation9 + $0xa4] ss:$24 sps:$4 sm:$0xff]   ;;  %v20420_v42 = vpack.c.bf16 %v735_v34, %v733_v0  ;;  %v699_v1 = vmul.f32 %v17411_v8, %v20211_v41  ;;  %v17361_v34 = vld [vmem:[#allocation9 + $0x70] ss:$24 sps:$4 sm:$0xff]  }
 0x177   : > { %v17413_v52 = vpop.eup %17412  ;;  %v20424_v12 = vpack.c.bf16 %v740_v49, %v738_v47  ;;  %v664_v26 = vadd.f32 1e-06, %v648_v29 }
 0x178   : > { %1392 = vmatmul.mubr.bf16.gmra.mxu0 %v20404_v18  ;;  %1505 = vmatmul.mubr.bf16.gmra.mxu1 %v20404_v18  ;;  %v701_v0 = vmul.f32 %v17413_v52, %v20201_v36  ;;  %v742_v47 = vmul.f32 %v20367_v22, %v699_v1 }
 0x179   : > { %1580 = vmatpush1.bf16.msra.mxu0 %v17352_v38  ;;  %15739 = vmatpush1.bf16.msra.mxu1 %v17352_v38  ;;  %v694_v38 = vmul.f32 %v17407_v48, %v20182_v28 }
 0x17a   : > { %1581 = vmatprep.subr.bf16.mxu0 %v17357_v20  ;;  %15724 = vmatprep.subr.bf16.mxu1 %v17357_v20  ;;  %v696_v20 = vmul.f32 %v17409_v55, %v20188_v30  ;;  %v744_v49 = vmul.f32 %v20367_v22, %v701_v0  ;;  %v17367_v0 = vld [vmem:[#allocation9 + $0x10] ss:$24 sps:$4 sm:$0xff]  }
 0x17b   : > { %1401 = vmatprep.mubr.bf16.mxu0 %v20408_v37  ;;  %1514 = vmatprep.mubr.bf16.mxu1 %v20408_v37  ;;  %v737_v48 = vmul.f32 %v20372_v45, %v694_v38  ;;  %v698_v38 = vmul.f32 %v17411_v8, %v20208_v40 }
 0x17c   : > { %v739_v55 = vmul.f32 %v20372_v45, %v696_v20  ;;  %v700_v20 = vmul.f32 %v17413_v52, %v20198_v35  ;;  %v20440_v29 = vpack.c.bf16 %v744_v49, %v742_v47 }
 0x17d   : > { %1582 = vmatpush1.bf16.msra.mxu0 %v17355_v24  ;;  %15740 = vmatpush1.bf16.msra.mxu1 %v17355_v24  ;;  %v17366_v24 = vld [vmem:[#allocation9 + $0x44] ss:$24 sps:$4 sm:$0xff]   ;;  %v17415_v23 = vpop.eup %17414  ;;  %v741_v8 = vmul.f32 %v20372_v45, %v698_v38  ;;  %v17370_v38 = vld [vmem:[#allocation9 + $0x2e0] ss:$24 sps:$4 sm:$0xff]  }
 0x17e   : > { %1583 = vmatprep.subr.bf16.mxu0 %v17360_v5  ;;  %15725 = vmatprep.subr.bf16.mxu1 %v17360_v5  ;;  %v665_v5 = vadd.f32 1e-06, %v649_v53  ;;  %v17417_v61 = vpop.eup %17416  ;;  %v20436_v62 = vpack.c.bf16 %v739_v55, %v737_v48  ;;  %v703_v53 = vmul.f32 %v17415_v23, %v20217_v44  ;;  %v743_v52 = vmul.f32 %v20372_v45, %v700_v20  ;;  %v17372_v48 = vld [vmem:[#allocation9 + $0x2e4] ss:$24 sps:$4 sm:$0xff]   ;;  %v17375_v20 = vld [vmem:[#allocation9 + $0x2b4] ss:$24 sps:$4 sm:$0xff]  }
 0x17f   : > { %v705_v1 = vmul.f32 %v17417_v61, %v20227_v51  ;;  %v702_v47 = vmul.f32 %v17415_v23, %v20214_v43  ;;  %v704_v49 = vmul.f32 %v17417_v61, %v20224_v50 }
 0x180   : > { %1402 = vmatmul.mubr.bf16.gmra.mxu0 %v20420_v42  ;;  %1515 = vmatmul.mubr.bf16.gmra.mxu1 %v20420_v42  ;;  %17422 = vrsqrt.f32 %v665_v5 }
 0x181   : > { %1584 = vmatpush1.bf16.msra.mxu0 %v17358_v25  ;;  %15741 = vmatpush1.bf16.msra.mxu1 %v17358_v25  ;;  %v17369_v25 = vld [vmem:[#allocation9 + $0x14] ss:$24 sps:$4 sm:$0xff]   ;;  %17424 = vrsqrt.f32 %v664_v26  ;;  %v17419_v55 = vpop.eup %17418  ;;  %v20452_v26 = vpack.c.bf16 %v743_v52, %v741_v8  ;;  %v745_v23 = vmul.f32 %v20372_v45, %v702_v47  ;;  %v747_v61 = vmul.f32 %v20372_v45, %v704_v49  ;;  %v17378_v8 = vld [vmem:[#allocation9 + $0x284] ss:$24 sps:$4 sm:$0xff]  }
 0x182   : > { %1585 = vmatprep.subr.bf16.mxu0 %v17363_v31  ;;  %15726 = vmatprep.subr.bf16.mxu1 %v17363_v31  ;;  %v17364_v31 = vld [vmem:[#allocation9 + $0x40] ss:$24 sps:$4 sm:$0xff]   ;;  %v17421_v5 = vpop.eup %17420  ;;  %v708_v49 = vmul.f32 %v17419_v55, %v20241_v4 }
 0x183   : > { %1411 = vmatprep.mubr.bf16.mxu0 %v20424_v12  ;;  %1524 = vmatprep.mubr.bf16.mxu1 %v20424_v12  ;;  %v706_v47 = vmul.f32 %v17421_v5, %v20234_v60 }
 0x185   : > { %1586 = vmatpush1.bf16.msra.mxu0 %v17361_v34  ;;  %15742 = vmatpush1.bf16.msra.mxu1 %v17361_v34  ;;  %v746_v34 = vmul.f32 %v20367_v22, %v703_v53  ;;  %v709_v53 = vmul.f32 %v17419_v55, %v20244_v6  ;;  %v751_v55 = vmul.f32 %v20372_v45, %v708_v49  ;;  %v17387_v49 = vld [vmem:[#allocation9 + $0x1f4] ss:$24 sps:$4 sm:$0xff]  }
 0x186   : > { %1587 = vmatprep.subr.bf16.mxu0 %v17366_v24  ;;  %15727 = vmatprep.subr.bf16.mxu1 %v17366_v24  ;;  %v748_v24 = vmul.f32 %v20367_v22, %v705_v1  ;;  %v17373_v1 = vld [vmem:[#allocation9 + $0x2b0] ss:$24 sps:$4 sm:$0xff]  }
 0x188   : > { %1412 = vmatmul.mubr.bf16.gmra.mxu0 %v20436_v62  ;;  %1525 = vmatmul.mubr.bf16.gmra.mxu1 %v20436_v62 }
 0x189   : > { %1588 = vmatpush1.bf16.msra.mxu0 %v17364_v31  ;;  %15743 = vmatpush1.bf16.msra.mxu1 %v17364_v31  ;;  %v20456_v31 = vpack.c.bf16 %v748_v24, %v746_v34  ;;  %v20468_v24 = vpack.c.bf16 %v747_v61, %v745_v23  ;;  %v17384_v23 = vld [vmem:[#allocation9 + $0x224] ss:$24 sps:$4 sm:$0xff]  }
 0x18a   : > { %1589 = vmatprep.subr.bf16.mxu0 %v17369_v25  ;;  %15728 = vmatprep.subr.bf16.mxu1 %v17369_v25  ;;  %v707_v25 = vmul.f32 %v17421_v5, %v20251_v16  ;;  %v749_v5 = vmul.f32 %v20372_v45, %v706_v47  ;;  %v17382_v47 = vld [vmem:[#allocation9 + $0x220] ss:$24 sps:$4 sm:$0xff]  }
 0x18b   : > { %1421 = vmatprep.mubr.bf16.mxu0 %v20440_v29  ;;  %1534 = vmatprep.mubr.bf16.mxu1 %v20440_v29 }
 0x18d   : > { %1590 = vmatpush1.bf16.msra.mxu0 %v17367_v0  ;;  %15744 = vmatpush1.bf16.msra.mxu1 %v17367_v0  ;;  %v17423_v52 = vpop.eup %17422  ;;  %v750_v0 = vmul.f32 %v20367_v22, %v707_v25 }
 0x18e   : > { %1591 = vmatprep.subr.bf16.mxu0 %v17372_v48  ;;  %15729 = vmatprep.subr.bf16.mxu1 %v17372_v48  ;;  %v752_v48 = vmul.f32 %v20367_v22, %v709_v53  ;;  %v17425_v34 = vpop.eup %17424  ;;  %v713_v25 = vmul.f32 %v17423_v52, %v20261_v32  ;;  %v17379_v53 = vld [vmem:[#allocation9 + $0x250] ss:$24 sps:$4 sm:$0xff]  }
 0x18f   : > { %v711_v16 = vmul.f32 %v17425_v34, %v20271_v39 }
 0x190   : > { %1422 = vmatmul.mubr.bf16.gmra.mxu0 %v20452_v26  ;;  %1535 = vmatmul.mubr.bf16.gmra.mxu1 %v20452_v26  ;;  %v20472_v6 = vpack.c.bf16 %v752_v48, %v750_v0  ;;  %v710_v0 = vmul.f32 %v17425_v34, %v20264_v33  ;;  %v712_v48 = vmul.f32 %v17423_v52, %v20258_v27  ;;  %v17390_v34 = vld [vmem:[#allocation9 + $0x1c4] ss:$24 sps:$4 sm:$0xff]  }
 0x191   : > { %1592 = vmatpush2.bf16.msra.mxu0 %v17370_v38  ;;  %15745 = vmatpush2.bf16.msra.mxu1 %v17370_v38  ;;  %v17376_v38 = vld [vmem:[#allocation9 + $0x280] ss:$24 sps:$4 sm:$0xff]   ;;  %v754_v61 = vmul.f32 %v20367_v22, %v711_v16 }
 0x192   : > { %1593 = vmatprep.subr.bf16.mxu0 %v17375_v20  ;;  %15730 = vmatprep.subr.bf16.mxu1 %v17375_v20  ;;  %v17381_v20 = vld [vmem:[#allocation9 + $0x254] ss:$24 sps:$4 sm:$0xff]   ;;  %v755_v16 = vmul.f32 %v20372_v45, %v712_v48 }
 0x193   : > { %1431 = vmatprep.mubr.bf16.mxu0 %v20456_v31  ;;  %1544 = vmatprep.mubr.bf16.mxu1 %v20456_v31 }
 0x195   : > { %1594 = vmatpush2.bf16.msra.mxu0 %v17373_v1  ;;  %15746 = vmatpush2.bf16.msra.mxu1 %v17373_v1  ;;  %v756_v1 = vmul.f32 %v20367_v22, %v713_v25  ;;  %v17385_v22 = vld [vmem:[#allocation9 + $0x1f0] ss:$24 sps:$4 sm:$0xff]   ;;  %v17388_v25 = vld [vmem:[#allocation9 + $0x1c0] ss:$24 sps:$4 sm:$0xff]  }
 0x196   : > { %1595 = vmatprep.subr.bf16.mxu0 %v17378_v8  ;;  %15731 = vmatprep.subr.bf16.mxu1 %v17378_v8  ;;  %v769_v8 = vpack.c.bf16 %v751_v55, %v749_v5  ;;  %v17393_v5 = vld [vmem:[#allocation9 + $0x194] ss:$24 sps:$4 sm:$0xff]  }
 0x198   : > { %1432 = vmatmul.mubr.bf16.gmra.mxu0 %v20468_v24  ;;  %1545 = vmatmul.mubr.bf16.gmra.mxu1 %v20468_v24 }
 0x199   : > { %1596 = vmatpush2.bf16.msra.mxu0 %v17376_v38  ;;  %15747 = vmatpush2.bf16.msra.mxu1 %v17376_v38  ;;  %v772_v38 = vpack.c.bf16 %v756_v1, %v754_v61 }
 0x19a   : > { %1597 = vmatprep.subr.bf16.mxu0 %v17381_v20  ;;  %15732 = vmatprep.subr.bf16.mxu1 %v17381_v20  ;;  %v753_v20 = vmul.f32 %v20372_v45, %v710_v0  ;;  %v17391_v45 = vld [vmem:[#allocation9 + $0x190] ss:$24 sps:$4 sm:$0xff]  }
 0x19b   : > { %1441 = vmatprep.mubr.bf16.mxu0 %v20472_v6  ;;  %1554 = vmatprep.mubr.bf16.mxu1 %v20472_v6 }
 0x19c   : > { %v771_v52 = vpack.c.bf16 %v755_v16, %v753_v20 }
 0x19d   : > { %1598 = vmatpush2.bf16.msra.mxu0 %v17379_v53  ;;  %15748 = vmatpush2.bf16.msra.mxu1 %v17379_v53 }
 0x19e   : > { %1599 = vmatprep.subr.bf16.mxu0 %v17384_v23  ;;  %15733 = vmatprep.subr.bf16.mxu1 %v17384_v23 }
 0x1a0   : > { %1442 = vmatmul.mubr.bf16.gmra.mxu0 %v769_v8  ;;  %1555 = vmatmul.mubr.bf16.gmra.mxu1 %v769_v8 }
 0x1a1   : > { %1600 = vmatpush2.bf16.msra.mxu0 %v17382_v47  ;;  %15749 = vmatpush2.bf16.msra.mxu1 %v17382_v47 }
 0x1a2   : > { %1601 = vmatprep.subr.bf16.mxu0 %v17387_v49  ;;  %15734 = vmatprep.subr.bf16.mxu1 %v17387_v49 }
 0x1a3   : > { %1451 = vmatprep.mubr.bf16.mxu0 %v772_v38  ;;  %1564 = vmatprep.mubr.bf16.mxu1 %v772_v38 }
 0x1a5   : > { %1602 = vmatpush2.bf16.msra.mxu0 %v17385_v22  ;;  %15750 = vmatpush2.bf16.msra.mxu1 %v17385_v22 }
 0x1a6   : > { %1603 = vmatprep.subr.bf16.mxu0 %v17390_v34  ;;  %15735 = vmatprep.subr.bf16.mxu1 %v17390_v34 }
 0x1a8   : > { %1452 = vmatmul.mubr.bf16.gmra.mxu0 %v771_v52  ;;  %1565 = vmatmul.mubr.bf16.gmra.mxu1 %v771_v52 }
 0x1a9   : > { %1604 = vmatpush2.bf16.msra.mxu0 %v17388_v25  ;;  %15751 = vmatpush2.bf16.msra.mxu1 %v17388_v25 }
 0x1aa   : > { %1607 = vmatprep.mubr.bf16.mxu0 %v20386_v2  ;;  %1605 = vmatprep.subr.bf16.mxu0 %v17393_v5  ;;  %v19769_v2 = vmov 1983009808  }
 0x1ab   : > { %15736 = vmatprep.subr.bf16.mxu1 %v17393_v5  ;;  %1647 = vmatprep.mubr.bf16.mxu1 %v20440_v29  ;;  %v19770_v29 = vmov 1934713408  }
 0x1ad   : > { %1606 = vmatpush2.bf16.msra.mxu0 %v17391_v45  ;;  %15752 = vmatpush2.bf16.msra.mxu1 %v17391_v45 }
 0x1b0   : > { %1608 = vmatmul.mubr.bf16.vlgmr.msra.gmra.mxu0 %v20388_v13  ;;  %1648 = vmatmul.mubr.bf16.vlgmr.msra.gmra.mxu1 %v20452_v26  ;;  %v1722_v13 = vunpack.c.l.s4 %v19769_v2 }
 0x1b1   : > { %1617 = vmatprep.mubr.bf16.mxu0 %v20392_v46  ;;  %1657 = vmatprep.mubr.bf16.mxu1 %v20456_v31 }
 0x1b2   : > { %v1723_v46 = vunpack.c.0.s8 %v1722_v13 }
 0x1b4   : > { %v20502_v26 = vsub.s32 %v1723_v46, %v20281_v54 }
 0x1b6   : > { %26743 = vst [vmem:[#allocation82_spill] sm:$0xff] %v20502_v26 }
 0x1b8   : > { %1618 = vmatmul.mubr.bf16.gmra.mxu0 %v20404_v18  ;;  %1658 = vmatmul.mubr.bf16.gmra.mxu1 %v20468_v24  ;;  %v1753_v18 = vunpack.c.l.s4 %v19770_v29  ;;  %v26359_v24 = vmov 0.0  }
 0x1b9   : > { %1627 = vmatprep.mubr.bf16.mxu0 %v20408_v37  ;;  %1667 = vmatprep.mubr.bf16.mxu1 %v20472_v6 }
 0x1ba   : > { %v1754_v37 = vunpack.c.0.s8 %v1753_v18 }
 0x1c0   : > { %1628 = vmatmul.mubr.bf16.gmra.mxu0 %v20420_v42  ;;  %1668 = vmatmul.mubr.bf16.gmra.mxu1 %v769_v8 }
 0x1c1   : > { %1637 = vmatprep.mubr.bf16.mxu0 %v20424_v12  ;;  %1677 = vmatprep.mubr.bf16.mxu1 %v772_v38 }
 0x1c8   : > { %1638 = vmatmul.mubr.bf16.gmra.mxu0 %v20436_v62  ;;  %1678 = vmatmul.mubr.bf16.gmra.mxu1 %v771_v52  ;;  %v20507_v62 = vsub.s32 %v1754_v37, %v20281_v54 }
 0x1ca   : > { %26744 = vst [vmem:[#allocation83_spill] sm:$0xff] %v20507_v62 }
 0x230   : > { %v1383_v31 = vpop.f32.mrf.mxu0  ;;  %v1496_v6 = vpop.f32.mrf.mxu1 }
 0x231   : > { %v1720_v42 = vcombine.high %v1383_v31, %v26359_v24  ;;  %v3752_v12 = vcombine.high %v1496_v6, %v26359_v24  ;;  %v1727_v23 = vrot.slane %v1383_v31, %v20502_v26  ;;  %v3759_v0 = vrot.slane %v1496_v6, %v20502_v26 }
 0x232   : > { %v1385_v55 = vpop.f32.mrf.mxu0  ;;  %v1498_v53 = vpop.f32.mrf.mxu1 }
 0x233   : > { %v1735_v61 = vcombine.high %v1385_v55, %v26359_v24  ;;  %v1742_v1 = vrot.slane %v1385_v55, %v20502_v26  ;;  %v1734_v8 = vrot.slane %v1720_v42, %v20502_v26  ;;  %v3767_v48 = vcombine.high %v1498_v53, %v26359_v24 }
 0x234   : > { %v3774_v47 = vrot.slane %v1498_v53, %v20502_v26  ;;  %v1387_v49 = vpop.f32.mrf.mxu0  ;;  %v3766_v38 = vrot.slane %v3752_v12, %v20502_v26  ;;  %v1500_v29 = vpop.f32.mrf.mxu1 }
 0x235   : > { %v1749_v20 = vrot.slane %v1735_v61, %v20502_v26  ;;  %v1750_v16 = vcombine.low %v1727_v23, %v1742_v1  ;;  %v1751_v22 = vcombine.high %v1727_v23, %v1742_v1  ;;  %v3781_v34 = vrot.slane %v3767_v48, %v20502_v26 }
 0x236   : > { %v3782_v52 = vcombine.low %v3759_v0, %v3774_v47  ;;  %v3783_v25 = vcombine.high %v3759_v0, %v3774_v47  ;;  %v1786_v5 = vcombine.high %v1387_v49, %v26359_v24  ;;  %v1389_v0 = vpop.f32.mrf.mxu0 }
 0x237   : > { %v1758_v45 = vrot.slane %v1750_v16, %v20507_v62  ;;  %v1765_v2 = vrot.slane %v1751_v22, %v20507_v62  ;;  %v1766_v13 = vcombine.low %v1734_v8, %v1749_v20  ;;  %v1767_v46 = vcombine.high %v1734_v8, %v1749_v20  ;;  %v1502_v16 = vpop.f32.mrf.mxu1 }
 0x238   : > { %v3790_v18 = vrot.slane %v3782_v52, %v20507_v62  ;;  %v3797_v37 = vrot.slane %v3783_v25, %v20507_v62  ;;  %v3798_v31 = vcombine.low %v3766_v38, %v3781_v34  ;;  %v3799_v6 = vcombine.high %v3766_v38, %v3781_v34 }
 0x239   : > { %v20525_v42 = vrot.slane %v1766_v13, %v20507_v62  ;;  %v20528_v12 = vrot.slane %v1767_v46, %v20507_v62  ;;  %v2776_v55 = vcombine.low %v1758_v45, %v1765_v2  ;;  %v14804_v53 = vcombine.high %v1758_v45, %v1765_v2  ;;  %v1506_v22 = vpop.f32.mrf.mxu1 }
 0x23a   : > { %v20531_v23 = vrot.slane %v3798_v31, %v20507_v62  ;;  %v20534_v61 = vrot.slane %v3799_v6, %v20507_v62  ;;  %v4808_v1 = vcombine.low %v3790_v18, %v3797_v37  ;;  %v14836_v8 = vcombine.high %v3790_v18, %v3797_v37  ;;  %v1393_v6 = vpop.f32.mrf.mxu0 }
 0x23b   : > { %v20537_v48 = vrot.slane %v2776_v55, %v20502_v26  ;;  %v20540_v47 = vrot.slane %v14804_v53, %v20502_v26  ;;  %v1793_v20 = vrot.slane %v1387_v49, %v20502_v26  ;;  %v1800_v2 = vrot.slane %v1786_v5, %v20502_v26 }
 0x23c   : > { %v20548_v34 = vrot.slane %v4808_v1, %v20502_v26  ;;  %v20551_v52 = vrot.slane %v14836_v8, %v20502_v26  ;;  %v3818_v49 = vcombine.high %v1500_v29, %v26359_v24  ;;  %v1801_v13 = vcombine.high %v1389_v0, %v26359_v24 }
 0x23d   : > { %v3825_v46 = vrot.slane %v1500_v29, %v20502_v26  ;;  %v1808_v18 = vrot.slane %v1389_v0, %v20502_v26  ;;  %v3833_v37 = vcombine.high %v1502_v16, %v26359_v24  ;;  %v3840_v31 = vrot.slane %v1502_v16, %v20502_v26 }
 0x23e   : > { %v3832_v55 = vrot.slane %v3818_v49, %v20502_v26  ;;  %v1815_v53 = vrot.slane %v1801_v13, %v20502_v26  ;;  %v1852_v1 = vcombine.high %v1393_v6, %v26359_v24  ;;  %v1859_v5 = vrot.slane %v1393_v6, %v20502_v26 }
 0x23f   : > { %v1816_v8 = vcombine.low %v1793_v20, %v1808_v18  ;;  %v1817_v45 = vcombine.high %v1793_v20, %v1808_v18  ;;  %v3847_v25 = vrot.slane %v3833_v37, %v20502_v26  ;;  %v3848_v29 = vcombine.low %v3825_v46, %v3840_v31 }
 0x240   : > { %v1832_v0 = vcombine.low %v1800_v2, %v1815_v53  ;;  %v1833_v38 = vcombine.high %v1800_v2, %v1815_v53  ;;  %v3849_v32 = vcombine.high %v3825_v46, %v3840_v31  ;;  %v3884_v16 = vcombine.high %v1506_v22, %v26359_v24 }
 0x241   : > { %v1824_v27 = vrot.slane %v1816_v8, %v20507_v62  ;;  %v1831_v49 = vrot.slane %v1817_v45, %v20507_v62  ;;  %v3856_v13 = vrot.slane %v3848_v29, %v20507_v62  ;;  %v3864_v39 = vcombine.low %v3832_v55, %v3847_v25  ;;  %v1395_v45 = vpop.f32.mrf.mxu0 }
 0x242   : > { %v20574_v6 = vrot.slane %v1832_v0, %v20507_v62  ;;  %v20577_v20 = vrot.slane %v1833_v38, %v20507_v62  ;;  %v3863_v18 = vrot.slane %v3849_v32, %v20507_v62  ;;  %v3865_v37 = vcombine.high %v3832_v55, %v3847_v25  ;;  %v1508_v55 = vpop.f32.mrf.mxu1 }
 0x243   : > { %v2826_v2 = vcombine.low %v1824_v27, %v1831_v49  ;;  %v14806_v46 = vcombine.high %v1824_v27, %v1831_v49  ;;  %v20581_v31 = vrot.slane %v3864_v39, %v20507_v62  ;;  %v1866_v53 = vrot.slane %v1852_v1, %v20502_v26 }
 0x244   : > { %v20587_v29 = vrot.slane %v3865_v37, %v20507_v62  ;;  %v4858_v0 = vcombine.low %v3856_v13, %v3863_v18  ;;  %v3891_v38 = vrot.slane %v1506_v22, %v20502_v26  ;;  %v14838_v25 = vcombine.high %v3856_v13, %v3863_v18  ;;  %v1397_v18 = vpop.f32.mrf.mxu0 }
 0x245   : > { %v20591_v32 = vrot.slane %v2826_v2, %v20502_v26  ;;  %v20594_v27 = vrot.slane %v14806_v46, %v20502_v26  ;;  %v3898_v37 = vrot.slane %v3884_v16, %v20502_v26  ;;  %v1867_v22 = vcombine.high %v1395_v45, %v26359_v24 }
 0x246   : > { %v20599_v1 = vrot.slane %v4858_v0, %v20502_v26  ;;  %v1874_v46 = vrot.slane %v1395_v45, %v20502_v26  ;;  %v3899_v8 = vcombine.high %v1508_v55, %v26359_v24  ;;  %v3906_v13 = vrot.slane %v1508_v55, %v20502_v26  ;;  %v1510_v45 = vpop.f32.mrf.mxu1 }
 0x247   : > { %v20611_v0 = vrot.slane %v14838_v25, %v20502_v26  ;;  %v1881_v39 = vrot.slane %v1867_v22, %v20502_v26  ;;  %v1918_v49 = vcombine.high %v1397_v18, %v26359_v24  ;;  %v1925_v16 = vrot.slane %v1397_v18, %v20502_v26 }
 0x248   : > { %v1882_v33 = vcombine.low %v1859_v5, %v1874_v46  ;;  %v1883_v4 = vcombine.high %v1859_v5, %v1874_v46  ;;  %v3913_v2 = vrot.slane %v3899_v8, %v20502_v26  ;;  %v3914_v60 = vcombine.low %v3891_v38, %v3906_v13 }
 0x249   : > { %v1898_v51 = vcombine.low %v1866_v53, %v1881_v39  ;;  %v1899_v50 = vcombine.high %v1866_v53, %v1881_v39  ;;  %v3915_v44 = vcombine.high %v3891_v38, %v3906_v13  ;;  %v3950_v55 = vcombine.high %v1510_v45, %v26359_v24  ;;  %v1512_v24 = vpop.f32.mrf.mxu1 }
 0x24a   : > { %v1890_v25 = vrot.slane %v1882_v33, %v20507_v62  ;;  %v1897_v43 = vrot.slane %v1883_v4, %v20507_v62  ;;  %v3922_v22 = vrot.slane %v3914_v60, %v20507_v62  ;;  %v3930_v36 = vcombine.low %v3898_v37, %v3913_v2  ;;  %v1399_v4 = vpop.f32.mrf.mxu0 }
 0x24b   : > { %v20622_v18 = vrot.slane %v1898_v51, %v20507_v62  ;;  %v20625_v5 = vrot.slane %v1899_v50, %v20507_v62  ;;  %v3929_v8 = vrot.slane %v3915_v44, %v20507_v62  ;;  %v3931_v46 = vcombine.high %v3898_v37, %v3913_v2 }
 0x24c   : > { %v2876_v53 = vcombine.low %v1890_v25, %v1897_v43  ;;  %v14808_v38 = vcombine.high %v1890_v25, %v1897_v43  ;;  %v20629_v39 = vrot.slane %v3930_v36, %v20507_v62  ;;  %v1932_v33 = vrot.slane %v1918_v49, %v20502_v26 }
 0x24d   : > { %v20635_v51 = vrot.slane %v3931_v46, %v20507_v62  ;;  %v4908_v13 = vcombine.low %v3922_v22, %v3929_v8  ;;  %v3957_v50 = vrot.slane %v1510_v45, %v20502_v26  ;;  %v14840_v49 = vcombine.high %v3922_v22, %v3929_v8  ;;  %v1403_v22 = vpop.f32.mrf.mxu0 }
 0x24e   : > { %v20639_v44 = vrot.slane %v2876_v53, %v20502_v26  ;;  %v20642_v43 = vrot.slane %v14808_v38, %v20502_v26  ;;  %v3964_v25 = vrot.slane %v3950_v55, %v20502_v26  ;;  %v26745_v45 = vmov 0.0  }
 0x24f   : > { %v20647_v37 = vrot.slane %v4908_v13, %v20502_v26  ;;  %v1933_v46 = vcombine.high %v1399_v4, %v26745_v45  ;;  %v1940_v38 = vrot.slane %v1399_v4, %v20502_v26  ;;  %v3965_v60 = vcombine.high %v1512_v24, %v26745_v45  ;;  %v1516_v4 = vpop.f32.mrf.mxu1 }
 0x250   : > { %v3972_v36 = vrot.slane %v1512_v24, %v20502_v26  ;;  %v20659_v8 = vrot.slane %v14840_v49, %v20502_v26  ;;  %v1984_v2 = vcombine.high %v1403_v22, %v26745_v45  ;;  %v1991_v55 = vrot.slane %v1403_v22, %v20502_v26 }
 0x251   : > { %v1947_v13 = vrot.slane %v1933_v46, %v20502_v26  ;;  %v1948_v35 = vcombine.low %v1925_v16, %v1940_v38  ;;  %v1949_v41 = vcombine.high %v1925_v16, %v1940_v38  ;;  %v3979_v53 = vrot.slane %v3965_v60, %v20502_v26 }
 0x252   : > { %v3980_v40 = vcombine.low %v3957_v50, %v3972_v36  ;;  %v3981_v14 = vcombine.high %v3957_v50, %v3972_v36  ;;  %v4016_v24 = vcombine.high %v1516_v4, %v26745_v45 }
 0x253   : > { %v1964_v30 = vcombine.low %v1932_v33, %v1947_v13  ;;  %v1965_v28 = vcombine.high %v1932_v33, %v1947_v13  ;;  %v1956_v49 = vrot.slane %v1948_v35, %v20507_v62  ;;  %v1963_v19 = vrot.slane %v1949_v41, %v20507_v62  ;;  %v1405_v41 = vpop.f32.mrf.mxu0 }
 0x254   : > { %v3988_v46 = vrot.slane %v3980_v40, %v20507_v62  ;;  %v3996_v7 = vcombine.low %v3964_v25, %v3979_v53  ;;  %v3995_v60 = vrot.slane %v3981_v14, %v20507_v62  ;;  %v3997_v38 = vcombine.high %v3964_v25, %v3979_v53  ;;  %v1518_v25 = vpop.f32.mrf.mxu1 }
 0x255   : > { %v20670_v22 = vrot.slane %v1964_v30, %v20507_v62  ;;  %v20673_v16 = vrot.slane %v1965_v28, %v20507_v62  ;;  %v2926_v33 = vcombine.low %v1956_v49, %v1963_v19  ;;  %v14810_v50 = vcombine.high %v1956_v49, %v1963_v19 }
 0x256   : > { %v20677_v36 = vrot.slane %v3996_v7, %v20507_v62  ;;  %v1998_v35 = vrot.slane %v1984_v2, %v20502_v26  ;;  %v20683_v30 = vrot.slane %v3997_v38, %v20507_v62  ;;  %v4958_v13 = vcombine.low %v3988_v46, %v3995_v60 }
 0x257   : > { %v4023_v28 = vrot.slane %v1516_v4, %v20502_v26  ;;  %v20687_v14 = vrot.slane %v2926_v33, %v20502_v26  ;;  %v20690_v19 = vrot.slane %v14810_v50, %v20502_v26  ;;  %v14842_v2 = vcombine.high %v3988_v46, %v3995_v60  ;;  %v1407_v60 = vpop.f32.mrf.mxu0 }
 0x258   : > { %v20695_v53 = vrot.slane %v4958_v13, %v20502_v26  ;;  %v4030_v38 = vrot.slane %v4016_v24, %v20502_v26  ;;  %v1999_v4 = vcombine.high %v1405_v41, %v26745_v45  ;;  %v2006_v50 = vrot.slane %v1405_v41, %v20502_v26  ;;  %v1520_v41 = vpop.f32.mrf.mxu1 }
 0x259   : > { %v4031_v40 = vcombine.high %v1518_v25, %v26745_v45  ;;  %v4038_v46 = vrot.slane %v1518_v25, %v20502_v26  ;;  %v20707_v13 = vrot.slane %v14842_v2, %v20502_v26  ;;  %v2050_v49 = vcombine.high %v1407_v60, %v26745_v45 }
 0x25a   : > { %v2013_v7 = vrot.slane %v1999_v4, %v20502_v26  ;;  %v2057_v24 = vrot.slane %v1407_v60, %v20502_v26  ;;  %v2014_v11 = vcombine.low %v1991_v55, %v2006_v50  ;;  %v2015_v10 = vcombine.high %v1991_v55, %v2006_v50 }
 0x25b   : > { %v4045_v33 = vrot.slane %v4031_v40, %v20502_v26  ;;  %v4046_v21 = vcombine.low %v4023_v28, %v4038_v46  ;;  %v4047_v59 = vcombine.high %v4023_v28, %v4038_v46  ;;  %v4082_v25 = vcombine.high %v1520_v41, %v26745_v45  ;;  %v1409_v46 = vpop.f32.mrf.mxu0 }
 0x25c   : > { %v2030_v15 = vcombine.low %v1998_v35, %v2013_v7  ;;  %v2031_v63 = vcombine.high %v1998_v35, %v2013_v7  ;;  %v2022_v2 = vrot.slane %v2014_v11, %v20507_v62  ;;  %v2029_v9 = vrot.slane %v2015_v10, %v20507_v62 }
 0x25d   : > { %v4054_v4 = vrot.slane %v4046_v21, %v20507_v62  ;;  %v4062_v3 = vcombine.low %v4030_v38, %v4045_v33  ;;  %v4061_v40 = vrot.slane %v4047_v59, %v20507_v62  ;;  %v4063_v50 = vcombine.high %v4030_v38, %v4045_v33  ;;  %v1522_v33 = vpop.f32.mrf.mxu1  ;;  %v1413_v10 = vpop.f32.mrf.mxu0 }
 0x25e   : > { %v20718_v60 = vrot.slane %v2030_v15, %v20507_v62  ;;  %v20721_v55 = vrot.slane %v2031_v63, %v20507_v62  ;;  %v2976_v35 = vcombine.low %v2022_v2, %v2029_v9  ;;  %v14812_v28 = vcombine.high %v2022_v2, %v2029_v9 }
 0x25f   : > { %v20725_v7 = vrot.slane %v4062_v3, %v20507_v62  ;;  %v2064_v11 = vrot.slane %v2050_v49, %v20502_v26  ;;  %v20731_v21 = vrot.slane %v4063_v50, %v20507_v62  ;;  %v5008_v15 = vcombine.low %v4054_v4, %v4061_v40 }
 0x260   : > { %v4089_v63 = vrot.slane %v1520_v41, %v20502_v26  ;;  %v20735_v59 = vrot.slane %v2976_v35, %v20502_v26  ;;  %v20738_v9 = vrot.slane %v14812_v28, %v20502_v26  ;;  %v14844_v49 = vcombine.high %v4054_v4, %v4061_v40 }
 0x261   : > { %v20743_v38 = vrot.slane %v5008_v15, %v20502_v26  ;;  %v4096_v2 = vrot.slane %v4082_v25, %v20502_v26  ;;  %v26747_v41 = vcombine.low %v20525_v42, %v20528_v12  ;;  %v26748_v4 = vcombine.high %v20525_v42, %v20528_v12 }
 0x262   : > { %v2808_v28 = vcombine.low %v20537_v48, %v20540_v47  ;;  %v2065_v15 = vcombine.high %v1409_v46, %v26745_v45  ;;  %v20762_v25 = vrot.slane %v14844_v49, %v20502_v26  ;;  %v2072_v3 = vrot.slane %v1409_v46, %v20502_v26 }
 0x263   : > { %26746 = vst [vmem:[#allocation84_spill] sm:$0xff] %v20743_v38  ;;  %v2799_v50 = vrot.slane %v26747_v41, %v20502_v26  ;;  %v2807_v40 = vrot.slane %v26748_v4, %v20502_v26  ;;  %v4097_v41 = vcombine.high %v1522_v33, %v26745_v45  ;;  %v4104_v35 = vrot.slane %v1522_v33, %v20502_v26 }
 0x264   : > { %v2815_v56 = vrot.slane %v2808_v28, %v20507_v62  ;;  %v2079_v12 = vrot.slane %v2065_v15, %v20502_v26  ;;  %v2116_v48 = vcombine.high %v1413_v10, %v26745_v45  ;;  %v2080_v47 = vcombine.low %v2057_v24, %v2072_v3 }
 0x265   : > { %v2816_v42 = vcombine.low %v2799_v50, %v2807_v40  ;;  %v2081_v4 = vcombine.high %v2057_v24, %v2072_v3  ;;  %v4111_v58 = vrot.slane %v4097_v41, %v20502_v26  ;;  %v4112_v49 = vcombine.low %v4089_v63, %v4104_v35 }
 0x266   : > { %v2096_v46 = vcombine.low %v2064_v11, %v2079_v12  ;;  %v2097_v17 = vcombine.high %v2064_v11, %v2079_v12  ;;  %v4113_v57 = vcombine.high %v4089_v63, %v4104_v35  ;;  %v2088_v33 = vrot.slane %v2080_v47, %v20507_v62 }
 0x267   : > { %v2823_v54 = vrot.slane %v2816_v42, %v20507_v62  ;;  %v2095_v38 = vrot.slane %v2081_v4, %v20507_v62  ;;  %v4120_v50 = vrot.slane %v4112_v49, %v20507_v62  ;;  %v4128_v40 = vcombine.low %v4096_v2, %v4111_v58  ;;  %v1526_v4 = vpop.f32.mrf.mxu1  ;;  %v1415_v49 = vpop.f32.mrf.mxu0 }
 0x268   : > { %v20778_v15 = vrot.slane %v2096_v46, %v20507_v62  ;;  %v20781_v24 = vrot.slane %v2097_v17, %v20507_v62  ;;  %v4127_v3 = vrot.slane %v4113_v57, %v20507_v62  ;;  %v4129_v63 = vcombine.high %v4096_v2, %v4111_v58 }
 0x269   : > { %v20775_v28 = vcombine.low %v2815_v56, %v2823_v54  ;;  %v3026_v41 = vcombine.low %v2088_v33, %v2095_v38  ;;  %v14814_v11 = vcombine.high %v2088_v33, %v2095_v38  ;;  %v20785_v35 = vrot.slane %v4128_v40, %v20507_v62  ;;  %v1417_v42 = vpop.f32.mrf.mxu0 }
 0x26a   : > { %v5058_v12 = vcombine.low %v4120_v50, %v4127_v3  ;;  %v14846_v47 = vcombine.high %v4120_v50, %v4127_v3  ;;  %v2123_v17 = vrot.slane %v1413_v10, %v20502_v26  ;;  %v20801_v2 = vrot.slane %v4129_v63, %v20507_v62 }
 0x26b   : > { %26749 = vst [vmem:[#allocation85_spill] sm:$0xff] %v20775_v28  ;;  %26750 = vst [vmem:[#allocation86_spill] sm:$0xff] %v20785_v35  ;;  %3576 = vrot.lane.b32.xlu0 %v20775_v28, %s19772_s20  ;;  %v20793_v57 = vrot.slane %v3026_v41, %v20502_v26  ;;  %v20796_v58 = vrot.slane %v14814_v11, %v20502_v26  ;;  %v2130_v10 = vrot.slane %v2116_v48, %v20502_v26 }
 0x26c   : > { %26751 = vst [vmem:[#allocation87_spill] sm:$0xff] %v20801_v2  ;;  %v20804_v46 = vrot.slane %v5058_v12, %v20502_v26  ;;  %v20807_v33 = vrot.slane %v14846_v47, %v20502_v26  ;;  %v4148_v50 = vcombine.high %v1526_v4, %v26745_v45  ;;  %v4155_v3 = vrot.slane %v1526_v4, %v20502_v26 }
 0x26d   : > { %v20814_v41 = vcombine.high %v2815_v56, %v2823_v54  ;;  %v26755_v11 = vcombine.low %v20574_v6, %v20577_v20  ;;  %v26756_v48 = vcombine.high %v20574_v6, %v20577_v20  ;;  %v2858_v40 = vcombine.low %v20591_v32, %v20594_v27  ;;  %v1528_v54 = vpop.f32.mrf.mxu1 }
 0x26e   : > { %26752 = vst [vmem:[#allocation88_spill] sm:$0xff] %v20804_v46  ;;  %26753 = vst [vmem:[#allocation89_spill] sm:$0xff] %v20807_v33  ;;  %v2131_v4 = vcombine.high %v1415_v49, %v26745_v45  ;;  %v4162_v56 = vrot.slane %v4148_v50, %v20502_v26  ;;  %v4163_v12 = vcombine.high %v1528_v54, %v26745_v45 }
 0x26f   : > { %26754 = vst [vmem:[#allocation90_spill] sm:$0xff] %v20814_v41  ;;  %v2849_v63 = vrot.slane %v26755_v11, %v20502_v26  ;;  %v2857_v47 = vrot.slane %v26756_v48, %v20502_v26  ;;  %3608 = vrot.lane.b32.xlu0 %v20814_v41, %s19772_s20  ;;  %v2138_v11 = vrot.slane %v1415_v49, %v20502_v26 }
 0x270   : > { %v4170_v38 = vrot.slane %v1528_v54, %v20502_v26  ;;  %v2865_v6 = vrot.slane %v2858_v40, %v20507_v62  ;;  %v2145_v32 = vrot.slane %v2131_v4, %v20502_v26  ;;  %v2182_v27 = vcombine.high %v1417_v42, %v26745_v45 }
 0x271   : > { %v2866_v20 = vcombine.low %v2849_v63, %v2857_v47  ;;  %v2146_v48 = vcombine.low %v2123_v17, %v2138_v11  ;;  %v2147_v28 = vcombine.high %v2123_v17, %v2138_v11  ;;  %v4177_v50 = vrot.slane %v4163_v12, %v20502_v26 }
 0x272   : > { %v4178_v46 = vcombine.low %v4155_v3, %v4170_v38  ;;  %v2162_v49 = vcombine.low %v2130_v10, %v2145_v32  ;;  %v2163_v33 = vcombine.high %v2130_v10, %v2145_v32  ;;  %v4179_v2 = vcombine.high %v4155_v3, %v4170_v38 }
 0x273   : > { %v2873_v41 = vrot.slane %v2866_v20, %v20507_v62  ;;  %v2154_v54 = vrot.slane %v2146_v48, %v20507_v62  ;;  %v2161_v35 = vrot.slane %v2147_v28, %v20507_v62  ;;  %v4194_v63 = vcombine.low %v4162_v56, %v4177_v50 }
 0x274   : > { %v4186_v40 = vrot.slane %v4178_v46, %v20507_v62  ;;  %v20846_v4 = vrot.slane %v2162_v49, %v20507_v62  ;;  %v20849_v17 = vrot.slane %v2163_v33, %v20507_v62  ;;  %v4193_v12 = vrot.slane %v4179_v2, %v20507_v62  ;;  %v1530_v33 = vpop.f32.mrf.mxu1 }
 0x275   : > { %v20843_v47 = vcombine.low %v2865_v6, %v2873_v41  ;;  %v3076_v11 = vcombine.low %v2154_v54, %v2161_v35  ;;  %v14816_v10 = vcombine.high %v2154_v54, %v2161_v35  ;;  %v4195_v38 = vcombine.high %v4162_v56, %v4177_v50  ;;  %v1419_v50 = vpop.f32.mrf.mxu0 }
 0x276   : > { %v20853_v3 = vrot.slane %v4194_v63, %v20507_v62  ;;  %v5108_v46 = vcombine.low %v4186_v40, %v4193_v12  ;;  %v14848_v20 = vcombine.high %v4186_v40, %v4193_v12  ;;  %v2189_v32 = vrot.slane %v1417_v42, %v20502_v26 }
 0x277   : > { %26757 = vst [vmem:[#allocation91_spill] sm:$0xff] %v20843_v47  ;;  %3578 = vrot.lane.b32.xlu1 %v20843_v47, %s19772_s20  ;;  %v20861_v48 = vrot.slane %v3076_v11, %v20502_v26  ;;  %v20864_v35 = vrot.slane %v14816_v10, %v20502_v26  ;;  %v20869_v56 = vrot.slane %v4195_v38, %v20507_v62 }
 0x278   : > { %v20872_v49 = vrot.slane %v5108_v46, %v20502_v26  ;;  %v20875_v54 = vrot.slane %v14848_v20, %v20502_v26  ;;  %v2196_v42 = vrot.slane %v2182_v27, %v20502_v26  ;;  %v4214_v40 = vcombine.high %v1530_v33, %v26745_v45 }
 0x279   : > { %26758 = vst [vmem:[#allocation92_spill] sm:$0xff] %v20869_v56  ;;  %v4221_v12 = vrot.slane %v1530_v33, %v20502_v26  ;;  %v26761_v11 = vcombine.low %v20531_v23, %v20534_v61  ;;  %v26762_v38 = vcombine.high %v20531_v23, %v20534_v61  ;;  %v4840_v27 = vcombine.low %v20548_v34, %v20551_v52  ;;  %v1532_v33 = vpop.f32.mrf.mxu1 }
 0x27a   : > { %26759 = vst [vmem:[#allocation93_spill] sm:$0xff] %v20872_v49  ;;  %26760 = vst [vmem:[#allocation94_spill] sm:$0xff] %v20875_v54  ;;  %v4228_v20 = vrot.slane %v4214_v40, %v20502_v26  ;;  %v20893_v2 = vcombine.high %v2865_v6, %v2873_v41  ;;  %v2197_v63 = vcombine.high %v1419_v50, %v26745_v45  ;;  %v1423_v54 = vpop.f32.mrf.mxu0 }
 0x27b   : > { %v4831_v10 = vrot.slane %v26761_v11, %v20502_v26  ;;  %v4839_v46 = vrot.slane %v26762_v38, %v20502_v26  ;;  %v2204_v47 = vrot.slane %v1419_v50, %v20502_v26  ;;  %v4229_v11 = vcombine.high %v1532_v33, %v26745_v45 }
 0x27c   : > { %26763 = vst [vmem:[#allocation95_spill] sm:$0xff] %v20893_v2  ;;  %v4236_v49 = vrot.slane %v1532_v33, %v20502_v26  ;;  %v4847_v61 = vrot.slane %v4840_v27, %v20507_v62  ;;  %3610 = vrot.lane.b32.xlu1 %v20893_v2, %s19772_s20  ;;  %v2211_v34 = vrot.slane %v2197_v63, %v20502_v26 }
 0x27d   : > { %v4848_v28 = vcombine.low %v4831_v10, %v4839_v46  ;;  %v2248_v52 = vcombine.high %v1423_v54, %v26745_v45  ;;  %v2212_v6 = vcombine.low %v2189_v32, %v2204_v47  ;;  %v2213_v50 = vcombine.high %v2189_v32, %v2204_v47 }
 0x27e   : > { %v4243_v40 = vrot.slane %v4229_v11, %v20502_v26  ;;  %v2228_v10 = vcombine.low %v2196_v42, %v2211_v34  ;;  %v2229_v38 = vcombine.high %v2196_v42, %v2211_v34  ;;  %v4244_v46 = vcombine.low %v4221_v12, %v4236_v49 }
 0x27f   : > { %v4855_v41 = vrot.slane %v4848_v28, %v20507_v62  ;;  %v4245_v33 = vcombine.high %v4221_v12, %v4236_v49  ;;  %v2220_v27 = vrot.slane %v2212_v6, %v20507_v62  ;;  %v2227_v2 = vrot.slane %v2213_v50, %v20507_v62 }
 0x280   : > { %v4260_v56 = vcombine.low %v4228_v20, %v4243_v40  ;;  %v20913_v63 = vrot.slane %v2228_v10, %v20507_v62  ;;  %v20916_v28 = vrot.slane %v2229_v38, %v20507_v62  ;;  %v4252_v47 = vrot.slane %v4244_v46, %v20507_v62  ;;  %v1536_v38 = vpop.f32.mrf.mxu1 }
 0x281   : > { %v20908_v23 = vcombine.low %v4847_v61, %v4855_v41  ;;  %v4259_v32 = vrot.slane %v4245_v33, %v20507_v62  ;;  %v3126_v49 = vcombine.low %v2220_v27, %v2227_v2  ;;  %v14818_v42 = vcombine.high %v2220_v27, %v2227_v2 }
 0x282   : > { %v4261_v12 = vcombine.high %v4228_v20, %v4243_v40  ;;  %v20923_v11 = vrot.slane %v4260_v56, %v20507_v62  ;;  %v2255_v10 = vrot.slane %v1423_v54, %v20502_v26  ;;  %v1425_v20 = vpop.f32.mrf.mxu0  ;;  %v2262_v27 = vrot.slane %v2248_v52, %v20502_v26 }
 0x283   : > { %26764 = vst [vmem:[#allocation96_spill] sm:$0xff] %v20908_v23  ;;  %5608 = vrot.lane.b32.xlu0 %v20908_v23, %s19772_s20  ;;  %v5158_v6 = vcombine.low %v4252_v47, %v4259_v32  ;;  %v14850_v50 = vcombine.high %v4252_v47, %v4259_v32  ;;  %v20929_v46 = vrot.slane %v3126_v49, %v20502_v26 }
 0x284   : > { %26765 = vst [vmem:[#allocation97_spill] sm:$0xff] %v20923_v11  ;;  %v20932_v33 = vrot.slane %v14818_v42, %v20502_v26  ;;  %v20937_v56 = vrot.slane %v4261_v12, %v20507_v62  ;;  %v4280_v54 = vcombine.high %v1536_v38, %v26745_v45  ;;  %v4287_v47 = vrot.slane %v1536_v38, %v20502_v26  ;;  %v1427_v23 = vpop.f32.mrf.mxu0 }
 0x285   : > { %26766 = vst [vmem:[#allocation98_spill] sm:$0xff] %v20929_v46  ;;  %v20940_v40 = vrot.slane %v5158_v6, %v20502_v26  ;;  %v20949_v42 = vcombine.high %v4847_v61, %v4855_v41  ;;  %v26770_v12 = vcombine.low %v20581_v31, %v20587_v29  ;;  %v20956_v2 = vrot.slane %v14850_v50, %v20502_v26  ;;  %v1538_v61 = vpop.f32.mrf.mxu1 }
 0x286   : > { %26767 = vst [vmem:[#allocation99_spill] sm:$0xff] %v20937_v56  ;;  %v26772_v52 = vcombine.high %v20581_v31, %v20587_v29  ;;  %v4890_v32 = vcombine.low %v20599_v1, %v20611_v0  ;;  %v2263_v49 = vcombine.high %v1425_v20, %v26745_v45  ;;  %v4294_v41 = vrot.slane %v4280_v54, %v20502_v26 }
 0x287   : > { %26768 = vst [vmem:[#allocation100_spill] sm:$0xff] %v20940_v40  ;;  %26769 = vst [vmem:[#allocation101_spill] sm:$0xff] %v20949_v42  ;;  %v4881_v6 = vrot.slane %v26770_v12, %v20502_v26  ;;  %5640 = vrot.lane.b32.xlu0 %v20949_v42, %s19772_s20  ;;  %v2270_v12 = vrot.slane %v1425_v20, %v20502_v26  ;;  %v4295_v50 = vcombine.high %v1538_v61, %v26745_v45 }
 0x288   : > { %26771 = vst [vmem:[#allocation102_spill] sm:$0xff] %v20956_v2  ;;  %v4889_v38 = vrot.slane %v26772_v52, %v20502_v26  ;;  %v4302_v34 = vrot.slane %v1538_v61, %v20502_v26  ;;  %v4897_v31 = vrot.slane %v4890_v32, %v20507_v62  ;;  %v2277_v1 = vrot.slane %v2263_v49, %v20502_v26 }
 0x289   : > { %v2314_v0 = vcombine.high %v1427_v23, %v26745_v45  ;;  %v2278_v52 = vcombine.low %v2255_v10, %v2270_v12  ;;  %v2279_v40 = vcombine.high %v2255_v10, %v2270_v12  ;;  %v4309_v54 = vrot.slane %v4295_v50, %v20502_v26 }
 0x28a   : > { %v4898_v29 = vcombine.low %v4881_v6, %v4889_v38  ;;  %v4310_v2 = vcombine.low %v4287_v47, %v4302_v34  ;;  %v2294_v20 = vcombine.low %v2262_v27, %v2277_v1  ;;  %v2295_v56 = vcombine.high %v2262_v27, %v2277_v1  ;;  %v1540_v1 = vpop.f32.mrf.mxu1 }
 0x28b   : > { %v4311_v11 = vcombine.high %v4287_v47, %v4302_v34  ;;  %v2286_v61 = vrot.slane %v2278_v52, %v20507_v62  ;;  %v2293_v46 = vrot.slane %v2279_v40, %v20507_v62  ;;  %v4326_v6 = vcombine.low %v4294_v41, %v4309_v54 }
 0x28c   : > { %v4905_v42 = vrot.slane %v4898_v29, %v20507_v62  ;;  %v4318_v32 = vrot.slane %v4310_v2, %v20507_v62  ;;  %v20982_v38 = vrot.slane %v2294_v20, %v20507_v62  ;;  %v20985_v10 = vrot.slane %v2295_v56, %v20507_v62 }
 0x28d   : > { %v4325_v12 = vrot.slane %v4311_v11, %v20507_v62  ;;  %v3176_v50 = vcombine.low %v2286_v61, %v2293_v46  ;;  %v14820_v27 = vcombine.high %v2286_v61, %v2293_v46  ;;  %v4327_v34 = vcombine.high %v4294_v41, %v4309_v54  ;;  %v1429_v54 = vpop.f32.mrf.mxu0 }
 0x28e   : > { %v20979_v49 = vcombine.low %v4897_v31, %v4905_v42  ;;  %v20989_v47 = vrot.slane %v4326_v6, %v20507_v62  ;;  %v2321_v52 = vrot.slane %v1427_v23, %v20502_v26  ;;  %v2328_v61 = vrot.slane %v2314_v0, %v20502_v26 }
 0x28f   : > { %v5208_v29 = vcombine.low %v4318_v32, %v4325_v12  ;;  %v14852_v56 = vcombine.high %v4318_v32, %v4325_v12  ;;  %v20998_v11 = vrot.slane %v3176_v50, %v20502_v26  ;;  %v21001_v46 = vrot.slane %v14820_v27, %v20502_v26  ;;  %v1433_v2 = vpop.f32.mrf.mxu0 }
 0x290   : > { %26773 = vst [vmem:[#allocation103_spill] sm:$0xff] %v20979_v49  ;;  %26774 = vst [vmem:[#allocation104_spill] sm:$0xff] %v20989_v47  ;;  %5610 = vrot.lane.b32.xlu1 %v20979_v49, %s19772_s20  ;;  %v21004_v41 = vrot.slane %v4327_v34, %v20507_v62  ;;  %v4346_v32 = vcombine.high %v1540_v1, %v26745_v45  ;;  %v4353_v6 = vrot.slane %v1540_v1, %v20502_v26 }
 0x291   : > { %v21008_v20 = vrot.slane %v5208_v29, %v20502_v26  ;;  %v21017_v27 = vcombine.high %v4897_v31, %v4905_v42  ;;  %v26778_v23 = vcombine.low %v20622_v18, %v20625_v5  ;;  %v21024_v29 = vrot.slane %v14852_v56, %v20502_v26  ;;  %v1542_v42 = vpop.f32.mrf.mxu1 }
 0x292   : > { %26775 = vst [vmem:[#allocation105_spill] sm:$0xff] %v21004_v41  ;;  %v26780_v0 = vcombine.high %v20622_v18, %v20625_v5  ;;  %v2908_v12 = vcombine.low %v20639_v44, %v20642_v43  ;;  %v2329_v50 = vcombine.high %v1429_v54, %v26745_v45  ;;  %v4360_v31 = vrot.slane %v4346_v32, %v20502_v26 }
 0x293   : > { %26776 = vst [vmem:[#allocation106_spill] sm:$0xff] %v21008_v20  ;;  %26777 = vst [vmem:[#allocation107_spill] sm:$0xff] %v21017_v27  ;;  %v2899_v34 = vrot.slane %v26778_v23, %v20502_v26  ;;  %v2336_v23 = vrot.slane %v1429_v54, %v20502_v26  ;;  %v4361_v56 = vcombine.high %v1542_v42, %v26745_v45 }
 0x294   : > { %26779 = vst [vmem:[#allocation108_spill] sm:$0xff] %v21024_v29  ;;  %v2907_v1 = vrot.slane %v26780_v0, %v20502_v26  ;;  %5642 = vrot.lane.b32.xlu1 %v21017_v27, %s19772_s20  ;;  %v4368_v40 = vrot.slane %v1542_v42, %v20502_v26  ;;  %v2915_v18 = vrot.slane %v2908_v12, %v20507_v62 }
 0x295   : > { %v2343_v44 = vrot.slane %v2329_v50, %v20502_v26  ;;  %v2380_v43 = vcombine.high %v1433_v2, %v26745_v45  ;;  %v2344_v0 = vcombine.low %v2321_v52, %v2336_v23  ;;  %v2345_v49 = vcombine.high %v2321_v52, %v2336_v23 }
 0x296   : > { %v2916_v5 = vcombine.low %v2899_v34, %v2907_v1  ;;  %v4375_v32 = vrot.slane %v4361_v56, %v20502_v26  ;;  %v4376_v20 = vcombine.low %v4353_v6, %v4368_v40  ;;  %v4377_v41 = vcombine.high %v4353_v6, %v4368_v40 }
 0x297   : > { %v2360_v54 = vcombine.low %v2328_v61, %v2343_v44  ;;  %v2361_v29 = vcombine.high %v2328_v61, %v2343_v44  ;;  %v2352_v42 = vrot.slane %v2344_v0, %v20507_v62  ;;  %v2359_v47 = vrot.slane %v2345_v49, %v20507_v62  ;;  %v1546_v44 = vpop.f32.mrf.mxu1 }
 0x298   : > { %v2923_v27 = vrot.slane %v2916_v5, %v20507_v62  ;;  %v4384_v12 = vrot.slane %v4376_v20, %v20507_v62  ;;  %v4392_v34 = vcombine.low %v4360_v31, %v4375_v32  ;;  %v4391_v23 = vrot.slane %v4377_v41, %v20507_v62 }
 0x299   : > { %v21050_v1 = vrot.slane %v2360_v54, %v20507_v62  ;;  %v21053_v52 = vrot.slane %v2361_v29, %v20507_v62  ;;  %v3226_v56 = vcombine.low %v2352_v42, %v2359_v47  ;;  %v14822_v61 = vcombine.high %v2352_v42, %v2359_v47 }
 0x29a   : > { %v21047_v50 = vcombine.high %v2915_v18, %v2923_v27  ;;  %v4393_v40 = vcombine.high %v4360_v31, %v4375_v32  ;;  %v21057_v6 = vrot.slane %v4392_v34, %v20507_v62  ;;  %v5258_v5 = vcombine.low %v4384_v12, %v4391_v23  ;;  %v1435_v32 = vpop.f32.mrf.mxu0 }
 0x29b   : > { %v14854_v29 = vcombine.high %v4384_v12, %v4391_v23  ;;  %v21066_v41 = vrot.slane %v3226_v56, %v20502_v26  ;;  %v21069_v47 = vrot.slane %v14822_v61, %v20502_v26  ;;  %v2387_v0 = vrot.slane %v1433_v2, %v20502_v26  ;;  %v1548_v56 = vpop.f32.mrf.mxu1 }
 0x29c   : > { %26781 = vst [vmem:[#allocation109_spill] sm:$0xff] %v21047_v50  ;;  %26782 = vst [vmem:[#allocation110_spill] sm:$0xff] %v21057_v6  ;;  %3612 = vrot.lane.b32.xlu0 %v21047_v50, %s19772_s20  ;;  %v21072_v31 = vrot.slane %v4393_v40, %v20507_v62  ;;  %v21076_v54 = vrot.slane %v5258_v5, %v20502_v26  ;;  %v2394_v42 = vrot.slane %v2380_v43, %v20502_v26 }
 0x29d   : > { %v4412_v12 = vcombine.high %v1546_v44, %v26745_v45  ;;  %v4419_v34 = vrot.slane %v1546_v44, %v20502_v26  ;;  %v26785_v2 = vcombine.low %v20629_v39, %v20635_v51  ;;  %v26786_v40 = vcombine.high %v20629_v39, %v20635_v51 }
 0x29e   : > { %26783 = vst [vmem:[#allocation111_spill] sm:$0xff] %v21072_v31  ;;  %26784 = vst [vmem:[#allocation112_spill] sm:$0xff] %v21076_v54  ;;  %v4940_v44 = vcombine.low %v20647_v37, %v20659_v8  ;;  %v21096_v20 = vcombine.low %v2915_v18, %v2923_v27  ;;  %v2395_v23 = vcombine.high %v1435_v32, %v26745_v45  ;;  %v1437_v31 = vpop.f32.mrf.mxu0 }
 0x29f   : > { %v4931_v61 = vrot.slane %v26785_v2, %v20502_v26  ;;  %v4939_v43 = vrot.slane %v26786_v40, %v20502_v26  ;;  %v4426_v5 = vrot.slane %v4412_v12, %v20502_v26  ;;  %v2402_v50 = vrot.slane %v1435_v32, %v20502_v26 }
 0x2a0   : > { %26787 = vst [vmem:[#allocation113_spill] sm:$0xff] %v21096_v20  ;;  %v4427_v2 = vcombine.high %v1548_v56, %v26745_v45  ;;  %v4434_v54 = vrot.slane %v1548_v56, %v20502_v26  ;;  %v21103_v39 = vrot.slane %v14854_v29, %v20502_v26  ;;  %v4947_v51 = vrot.slane %v4940_v44, %v20507_v62 }
 0x2a1   : > { %v4948_v49 = vcombine.low %v4931_v61, %v4939_v43  ;;  %3580 = vrot.lane.b32.xlu1 %v21096_v20, %s19772_s20  ;;  %v2409_v37 = vrot.slane %v2395_v23, %v20502_v26  ;;  %v2446_v8 = vcombine.high %v1437_v31, %v26745_v45  ;;  %v2410_v18 = vcombine.low %v2387_v0, %v2402_v50 }
 0x2a2   : > { %26788 = vst [vmem:[#allocation114_spill] sm:$0xff] %v21103_v39  ;;  %v2411_v32 = vcombine.high %v2387_v0, %v2402_v50  ;;  %v4441_v12 = vrot.slane %v4427_v2, %v20502_v26  ;;  %v4442_v40 = vcombine.low %v4419_v34, %v4434_v54  ;;  %v4443_v29 = vcombine.high %v4419_v34, %v4434_v54 }
 0x2a3   : > { %v4955_v27 = vrot.slane %v4948_v49, %v20507_v62  ;;  %v2426_v56 = vcombine.low %v2394_v42, %v2409_v37  ;;  %v2427_v61 = vcombine.high %v2394_v42, %v2409_v37  ;;  %v2418_v44 = vrot.slane %v2410_v18, %v20507_v62 }
 0x2a4   : > { %v2425_v20 = vrot.slane %v2411_v32, %v20507_v62  ;;  %v4458_v39 = vcombine.low %v4426_v5, %v4441_v12  ;;  %v4450_v50 = vrot.slane %v4442_v40, %v20507_v62  ;;  %v4457_v0 = vrot.slane %v4443_v29, %v20507_v62 }
 0x2a5   : > { %v21112_v43 = vcombine.low %v4947_v51, %v4955_v27  ;;  %v21117_v23 = vrot.slane %v2426_v56, %v20507_v62  ;;  %v21120_v49 = vrot.slane %v2427_v61, %v20507_v62  ;;  %v4459_v34 = vcombine.high %v4426_v5, %v4441_v12  ;;  %v1550_v61 = vpop.f32.mrf.mxu1 }
 0x2a6   : > { %v3276_v54 = vcombine.low %v2418_v44, %v2425_v20  ;;  %v14824_v42 = vcombine.high %v2418_v44, %v2425_v20  ;;  %v21127_v2 = vrot.slane %v4458_v39, %v20507_v62  ;;  %v5308_v18 = vcombine.low %v4450_v50, %v4457_v0  ;;  %v1439_v39 = vpop.f32.mrf.mxu0 }
 0x2a7   : > { %26789 = vst [vmem:[#allocation115_spill] sm:$0xff] %v21112_v43  ;;  %5612 = vrot.lane.b32.xlu0 %v21112_v43, %s19772_s20  ;;  %v14856_v32 = vcombine.high %v4450_v50, %v4457_v0  ;;  %v2453_v56 = vrot.slane %v1437_v31, %v20502_v26  ;;  %v21141_v5 = vrot.slane %v4459_v34, %v20507_v62 }
 0x2a8   : > { %26790 = vst [vmem:[#allocation116_spill] sm:$0xff] %v21127_v2  ;;  %v21133_v40 = vrot.slane %v3276_v54, %v20502_v26  ;;  %v21136_v29 = vrot.slane %v14824_v42, %v20502_v26  ;;  %v21144_v12 = vrot.slane %v5308_v18, %v20502_v26  ;;  %v2460_v31 = vrot.slane %v2446_v8, %v20502_v26  ;;  %v1443_v43 = vpop.f32.mrf.mxu0 }
 0x2a9   : > { %26791 = vst [vmem:[#allocation117_spill] sm:$0xff] %v21141_v5  ;;  %v21147_v44 = vrot.slane %v14856_v32, %v20502_v26  ;;  %v4478_v50 = vcombine.high %v1550_v61, %v26745_v45  ;;  %v4485_v54 = vrot.slane %v1550_v61, %v20502_v26  ;;  %v21154_v42 = vcombine.high %v4947_v51, %v4955_v27  ;;  %v1552_v51 = vpop.f32.mrf.mxu1 }
 0x2aa   : > { %26792 = vst [vmem:[#allocation118_spill] sm:$0xff] %v21144_v12  ;;  %v26795_v34 = vcombine.low %v20670_v22, %v20673_v16  ;;  %v26796_v8 = vcombine.high %v20670_v22, %v20673_v16  ;;  %v2958_v0 = vcombine.low %v20687_v14, %v20690_v19  ;;  %v2461_v61 = vcombine.high %v1439_v39, %v26745_v45 }
 0x2ab   : > { %26793 = vst [vmem:[#allocation119_spill] sm:$0xff] %v21147_v44  ;;  %26794 = vst [vmem:[#allocation120_spill] sm:$0xff] %v21154_v42  ;;  %v4492_v27 = vrot.slane %v4478_v50, %v20502_v26  ;;  %5644 = vrot.lane.b32.xlu0 %v21154_v42, %s19772_s20  ;;  %v4493_v32 = vcombine.high %v1552_v51, %v26745_v45  ;;  %v4500_v37 = vrot.slane %v1552_v51, %v20502_v26 }
 0x2ac   : > { %v2949_v18 = vrot.slane %v26795_v34, %v20502_v26  ;;  %v2957_v20 = vrot.slane %v26796_v8, %v20502_v26  ;;  %v2468_v34 = vrot.slane %v1439_v39, %v20502_v26  ;;  %v2965_v22 = vrot.slane %v2958_v0, %v20507_v62 }
 0x2ad   : > { %v2475_v14 = vrot.slane %v2461_v61, %v20502_v26  ;;  %v2512_v19 = vcombine.high %v1443_v43, %v26745_v45  ;;  %v4507_v50 = vrot.slane %v4493_v32, %v20502_v26  ;;  %v4508_v44 = vcombine.low %v4485_v54, %v4500_v37 }
 0x2ae   : > { %v2966_v16 = vcombine.low %v2949_v18, %v2957_v20  ;;  %v2476_v8 = vcombine.low %v2453_v56, %v2468_v34  ;;  %v2477_v12 = vcombine.high %v2453_v56, %v2468_v34  ;;  %v4509_v2 = vcombine.high %v4485_v54, %v4500_v37 }
 0x2af   : > { %v2492_v39 = vcombine.low %v2460_v31, %v2475_v14  ;;  %v2493_v5 = vcombine.high %v2460_v31, %v2475_v14  ;;  %v4516_v20 = vrot.slane %v4508_v44, %v20507_v62  ;;  %v4524_v0 = vcombine.low %v4492_v27, %v4507_v50 }
 0x2b0   : > { %v2973_v42 = vrot.slane %v2966_v16, %v20507_v62  ;;  %v2484_v51 = vrot.slane %v2476_v8, %v20507_v62  ;;  %v2491_v6 = vrot.slane %v2477_v12, %v20507_v62  ;;  %v4523_v32 = vrot.slane %v4509_v2, %v20507_v62 }
 0x2b1   : > { %v21186_v61 = vrot.slane %v2492_v39, %v20507_v62  ;;  %v21189_v56 = vrot.slane %v2493_v5, %v20507_v62  ;;  %v4525_v37 = vcombine.high %v4492_v27, %v4507_v50  ;;  %v21193_v54 = vrot.slane %v4524_v0, %v20507_v62  ;;  %v1556_v5 = vpop.f32.mrf.mxu1  ;;  %v1445_v50 = vpop.f32.mrf.mxu0 }
 0x2b2   : > { %v21183_v18 = vcombine.low %v2965_v22, %v2973_v42  ;;  %v3326_v34 = vcombine.low %v2484_v51, %v2491_v6  ;;  %v14826_v31 = vcombine.high %v2484_v51, %v2491_v6  ;;  %v5358_v44 = vcombine.low %v4516_v20, %v4523_v32 }
 0x2b3   : > { %26798 = vst [vmem:[#allocation122_spill] sm:$0xff] %v21193_v54  ;;  %v14858_v16 = vcombine.high %v4516_v20, %v4523_v32  ;;  %v2519_v14 = vrot.slane %v1443_v43, %v20502_v26  ;;  %v21209_v27 = vrot.slane %v4525_v37, %v20507_v62  ;;  %v2526_v43 = vrot.slane %v2512_v19, %v20502_v26  ;;  %v1447_v12 = vpop.f32.mrf.mxu0 }
 0x2b4   : > { %26797 = vst [vmem:[#allocation121_spill] sm:$0xff] %v21183_v18  ;;  %3582 = vrot.lane.b32.xlu1 %v21183_v18, %s19772_s20  ;;  %v21201_v8 = vrot.slane %v3326_v34, %v20502_v26  ;;  %v21204_v6 = vrot.slane %v14826_v31, %v20502_v26  ;;  %v21212_v39 = vrot.slane %v5358_v44, %v20502_v26 }
 0x2b5   : > { %26799 = vst [vmem:[#allocation123_spill] sm:$0xff] %v21209_v27  ;;  %v21215_v51 = vrot.slane %v14858_v16, %v20502_v26  ;;  %v4544_v20 = vcombine.high %v1556_v5, %v26745_v45  ;;  %v4551_v32 = vrot.slane %v1556_v5, %v20502_v26  ;;  %v21222_v34 = vcombine.high %v2965_v22, %v2973_v42  ;;  %v1558_v42 = vpop.f32.mrf.mxu1 }
 0x2b6   : > { %26800 = vst [vmem:[#allocation124_spill] sm:$0xff] %v21212_v39  ;;  %v26803_v31 = vcombine.low %v20718_v60, %v20721_v55  ;;  %v26804_v19 = vcombine.high %v20718_v60, %v20721_v55  ;;  %v3008_v0 = vcombine.low %v20735_v59, %v20738_v9  ;;  %v2527_v5 = vcombine.high %v1445_v50, %v26745_v45 }
 0x2b7   : > { %26801 = vst [vmem:[#allocation125_spill] sm:$0xff] %v21215_v51  ;;  %26802 = vst [vmem:[#allocation126_spill] sm:$0xff] %v21222_v34  ;;  %v4558_v22 = vrot.slane %v4544_v20, %v20502_v26  ;;  %v4559_v44 = vcombine.high %v1558_v42, %v26745_v45  ;;  %v4566_v2 = vrot.slane %v1558_v42, %v20502_v26 }
 0x2b8   : > { %v2999_v37 = vrot.slane %v26803_v31, %v20502_v26  ;;  %v3007_v16 = vrot.slane %v26804_v19, %v20502_v26  ;;  %3614 = vrot.lane.b32.xlu1 %v21222_v34, %s19772_s20  ;;  %v2534_v31 = vrot.slane %v1445_v50, %v20502_v26  ;;  %v3015_v60 = vrot.slane %v3008_v0, %v20507_v62 }
 0x2b9   : > { %v2541_v59 = vrot.slane %v2527_v5, %v20502_v26  ;;  %v2578_v9 = vcombine.high %v1447_v12, %v26745_v45  ;;  %v4573_v20 = vrot.slane %v4559_v44, %v20502_v26  ;;  %v4574_v39 = vcombine.low %v4551_v32, %v4566_v2 }
 0x2ba   : > { %v3016_v55 = vcombine.low %v2999_v37, %v3007_v16  ;;  %v2542_v19 = vcombine.low %v2519_v14, %v2534_v31  ;;  %v2543_v18 = vcombine.high %v2519_v14, %v2534_v31  ;;  %v4575_v27 = vcombine.high %v4551_v32, %v4566_v2 }
 0x2bb   : > { %v2558_v50 = vcombine.low %v2526_v43, %v2541_v59  ;;  %v2559_v51 = vcombine.high %v2526_v43, %v2541_v59  ;;  %v4582_v0 = vrot.slane %v4574_v39, %v20507_v62  ;;  %v4590_v37 = vcombine.low %v4558_v22, %v4573_v20 }
 0x2bc   : > { %v3023_v34 = vrot.slane %v3016_v55, %v20507_v62  ;;  %v2550_v42 = vrot.slane %v2542_v19, %v20507_v62  ;;  %v2557_v54 = vrot.slane %v2543_v18, %v20507_v62  ;;  %v4589_v44 = vrot.slane %v4575_v27, %v20507_v62 }
 0x2bd   : > { %v21254_v5 = vrot.slane %v2558_v50, %v20507_v62  ;;  %v21257_v14 = vrot.slane %v2559_v51, %v20507_v62  ;;  %v4591_v2 = vcombine.high %v4558_v22, %v4573_v20  ;;  %v21261_v32 = vrot.slane %v4590_v37, %v20507_v62  ;;  %v1560_v51 = vpop.f32.mrf.mxu1  ;;  %v1449_v20 = vpop.f32.mrf.mxu0 }
 0x2be   : > { %v21251_v16 = vcombine.low %v3015_v60, %v3023_v34  ;;  %v3376_v31 = vcombine.low %v2550_v42, %v2557_v54  ;;  %v14828_v43 = vcombine.high %v2550_v42, %v2557_v54  ;;  %v5408_v39 = vcombine.low %v4582_v0, %v4589_v44 }
 0x2bf   : > { %v14860_v55 = vcombine.high %v4582_v0, %v4589_v44  ;;  %v2585_v59 = vrot.slane %v1447_v12, %v20502_v26  ;;  %v21277_v22 = vrot.slane %v4591_v2, %v20507_v62  ;;  %v2592_v12 = vrot.slane %v2578_v9, %v20502_v26 }
 0x2c0   : > { %26805 = vst [vmem:[#allocation127_spill] sm:$0xff] %v21251_v16  ;;  %3584 = vrot.lane.b32.xlu0 %v21251_v16, %s19772_s20  ;;  %v21269_v19 = vrot.slane %v3376_v31, %v20502_v26  ;;  %v21272_v54 = vrot.slane %v14828_v43, %v20502_v26  ;;  %v21280_v50 = vrot.slane %v5408_v39, %v20502_v26 }
 0x2c1   : > { %26806 = vst [vmem:[#allocation128_spill] sm:$0xff] %v21277_v22  ;;  %v21283_v42 = vrot.slane %v14860_v55, %v20502_v26  ;;  %v4610_v0 = vcombine.high %v1560_v51, %v26745_v45  ;;  %v4617_v44 = vrot.slane %v1560_v51, %v20502_v26  ;;  %v26809_v31 = vcombine.low %v20677_v36, %v20683_v30  ;;  %v1562_v51 = vpop.f32.mrf.mxu1 }
 0x2c2   : > { %26807 = vst [vmem:[#allocation129_spill] sm:$0xff] %v21280_v50  ;;  %v26810_v2 = vcombine.high %v20677_v36, %v20683_v30  ;;  %v4990_v9 = vcombine.low %v20695_v53, %v20707_v13  ;;  %v21301_v27 = vcombine.high %v3015_v60, %v3023_v34  ;;  %v2593_v37 = vcombine.high %v1449_v20, %v26745_v45 }
 0x2c3   : > { %26808 = vst [vmem:[#allocation130_spill] sm:$0xff] %v21283_v42  ;;  %v4981_v43 = vrot.slane %v26809_v31, %v20502_v26  ;;  %v4624_v55 = vrot.slane %v4610_v0, %v20502_v26  ;;  %v2600_v16 = vrot.slane %v1449_v20, %v20502_v26  ;;  %v4625_v31 = vcombine.high %v1562_v51, %v26745_v45  ;;  %v1453_v42 = vpop.f32.mrf.mxu0 }
 0x2c4   : > { %v4989_v39 = vrot.slane %v26810_v2, %v20502_v26  ;;  %26811 = vst [vmem:[#allocation131_spill] sm:$0xff] %v21301_v27  ;;  %v4632_v50 = vrot.slane %v1562_v51, %v20502_v26  ;;  %v4997_v30 = vrot.slane %v4990_v9, %v20507_v62  ;;  %3616 = vrot.lane.b32.xlu0 %v21301_v27, %s19772_s20 }
 0x2c5   : > { %v2607_v53 = vrot.slane %v2593_v37, %v20502_v26  ;;  %v2644_v13 = vcombine.high %v1453_v42, %v26745_v45  ;;  %v2608_v60 = vcombine.low %v2585_v59, %v2600_v16  ;;  %v2609_v20 = vcombine.high %v2585_v59, %v2600_v16 }
 0x2c6   : > { %v4998_v18 = vcombine.low %v4981_v43, %v4989_v39  ;;  %v4639_v0 = vrot.slane %v4625_v31, %v20502_v26  ;;  %v4640_v39 = vcombine.low %v4617_v44, %v4632_v50  ;;  %v4641_v51 = vcombine.high %v4617_v44, %v4632_v50 }
 0x2c7   : > { %v2624_v43 = vcombine.low %v2592_v12, %v2607_v53  ;;  %v2625_v2 = vcombine.high %v2592_v12, %v2607_v53  ;;  %v2616_v9 = vrot.slane %v2608_v60, %v20507_v62  ;;  %v2623_v27 = vrot.slane %v2609_v20, %v20507_v62  ;;  %v26822_v53 = vld [vmem:[#allocation84_spill] sm:$0xff] }
 0x2c8   : > { %v5005_v34 = vrot.slane %v4998_v18, %v20507_v62  ;;  %v4656_v22 = vcombine.low %v4624_v55, %v4639_v0  ;;  %v4648_v16 = vrot.slane %v4640_v39, %v20507_v62  ;;  %v4655_v59 = vrot.slane %v4641_v51, %v20507_v62 }
 0x2c9   : > { %v21321_v37 = vrot.slane %v2624_v43, %v20507_v62  ;;  %v21324_v18 = vrot.slane %v2625_v2, %v20507_v62  ;;  %v3426_v50 = vcombine.low %v2616_v9, %v2623_v27  ;;  %v14830_v12 = vcombine.high %v2616_v9, %v2623_v27  ;;  %v1566_v2 = vpop.f32.mrf.mxu1 }
 0x2ca   : > { %v21316_v36 = vcombine.low %v4997_v30, %v5005_v34  ;;  %v4657_v44 = vcombine.high %v4624_v55, %v4639_v0  ;;  %v21331_v31 = vrot.slane %v4656_v22, %v20507_v62  ;;  %v5458_v60 = vcombine.low %v4648_v16, %v4655_v59  ;;  %v1455_v55 = vpop.f32.mrf.mxu0 }
 0x2cb   : > { %v14862_v20 = vcombine.high %v4648_v16, %v4655_v59  ;;  %v2651_v43 = vrot.slane %v1453_v42, %v20502_v26  ;;  %v21337_v39 = vrot.slane %v3426_v50, %v20502_v26  ;;  %v21340_v51 = vrot.slane %v14830_v12, %v20502_v26 }
 0x2cc   : > { %26812 = vst [vmem:[#allocation132_spill] sm:$0xff] %v21316_v36  ;;  %5614 = vrot.lane.b32.xlu1 %v21316_v36, %s19772_s20  ;;  %26813 = vst [vmem:[#allocation133_spill] sm:$0xff] %v21331_v31  ;;  %v21345_v22 = vrot.slane %v4657_v44, %v20507_v62  ;;  %v21348_v0 = vrot.slane %v5458_v60, %v20502_v26  ;;  %v2658_v42 = vrot.slane %v2644_v13, %v20502_v26 }
 0x2cd   : > { %26814 = vst [vmem:[#allocation134_spill] sm:$0xff] %v21337_v39  ;;  %26815 = vst [vmem:[#allocation135_spill] sm:$0xff] %v21340_v51  ;;  %v21351_v9 = vrot.slane %v14862_v20, %v20502_v26  ;;  %v4676_v16 = vcombine.high %v1566_v2, %v26745_v45  ;;  %v4683_v50 = vrot.slane %v1566_v2, %v20502_v26 }
 0x2ce   : > { %26816 = vst [vmem:[#allocation136_spill] sm:$0xff] %v21345_v22  ;;  %26817 = vst [vmem:[#allocation137_spill] sm:$0xff] %v21348_v0  ;;  %v21358_v12 = vcombine.high %v4997_v30, %v5005_v34  ;;  %v26820_v44 = vcombine.low %v20725_v7, %v20731_v21  ;;  %v26821_v13 = vcombine.high %v20725_v7, %v20731_v21  ;;  %v1568_v30 = vpop.f32.mrf.mxu1  ;;  %v1457_v0 = vpop.f32.mrf.mxu0 }
 0x2cf   : > { %26818 = vst [vmem:[#allocation138_spill] sm:$0xff] %v21351_v9  ;;  %v5040_v59 = vcombine.low %v26822_v53, %v20762_v25  ;;  %v2659_v2 = vcombine.high %v1455_v55, %v26745_v45  ;;  %v4690_v34 = vrot.slane %v4676_v16, %v20502_v26  ;;  %v4691_v20 = vcombine.high %v1568_v30, %v26745_v45 }
 0x2d0   : > { %26819 = vst [vmem:[#allocation139_spill] sm:$0xff] %v21358_v12  ;;  %v5031_v60 = vrot.slane %v26820_v44, %v20502_v26  ;;  %v5039_v27 = vrot.slane %v26821_v13, %v20502_v26  ;;  %5646 = vrot.lane.b32.xlu1 %v21358_v12, %s19772_s20  ;;  %v2666_v44 = vrot.slane %v1455_v55, %v20502_v26 }
 0x2d1   : > { %v4698_v36 = vrot.slane %v1568_v30, %v20502_v26  ;;  %v5047_v7 = vrot.slane %v5040_v59, %v20507_v62  ;;  %v2673_v25 = vrot.slane %v2659_v2, %v20502_v26  ;;  %v2710_v53 = vcombine.high %v1457_v0, %v26745_v45 }
 0x2d2   : > { %v5048_v21 = vcombine.low %v5031_v60, %v5039_v27  ;;  %v2674_v13 = vcombine.low %v2651_v43, %v2666_v44  ;;  %v2675_v9 = vcombine.high %v2651_v43, %v2666_v44  ;;  %v4705_v16 = vrot.slane %v4691_v20, %v20502_v26 }
 0x2d3   : > { %v4706_v22 = vcombine.low %v4683_v50, %v4698_v36  ;;  %v2690_v55 = vcombine.low %v2658_v42, %v2673_v25  ;;  %v2691_v31 = vcombine.high %v2658_v42, %v2673_v25  ;;  %v4707_v39 = vcombine.high %v4683_v50, %v4698_v36 }
 0x2d4   : > { %v5055_v12 = vrot.slane %v5048_v21, %v20507_v62  ;;  %v2682_v30 = vrot.slane %v2674_v13, %v20507_v62  ;;  %v2689_v51 = vrot.slane %v2675_v9, %v20507_v62  ;;  %v4722_v59 = vcombine.low %v4690_v34, %v4705_v16  ;;  %v1459_v9 = vpop.f32.mrf.mxu0  ;;  %v1570_v13 = vpop.f32.mrf.mxu1 }
 0x2d5   : > { %v4714_v27 = vrot.slane %v4706_v22, %v20507_v62  ;;  %v21390_v2 = vrot.slane %v2690_v55, %v20507_v62  ;;  %v21393_v43 = vrot.slane %v2691_v31, %v20507_v62  ;;  %v4721_v20 = vrot.slane %v4707_v39, %v20507_v62 }
 0x2d6   : > { %v21387_v60 = vcombine.low %v5047_v7, %v5055_v12  ;;  %v3476_v44 = vcombine.low %v2682_v30, %v2689_v51  ;;  %v14832_v42 = vcombine.high %v2682_v30, %v2689_v51  ;;  %v4723_v36 = vcombine.high %v4690_v34, %v4705_v16 }
 0x2d7   : > { %v21397_v50 = vrot.slane %v4722_v59, %v20507_v62  ;;  %v5508_v21 = vcombine.low %v4714_v27, %v4721_v20  ;;  %v14864_v25 = vcombine.high %v4714_v27, %v4721_v20  ;;  %v2717_v31 = vrot.slane %v1457_v0, %v20502_v26 }
 0x2d8   : > { %26823 = vst [vmem:[#allocation84_spill] sm:$0xff] %v21387_v60  ;;  %5616 = vrot.lane.b32.xlu0 %v21387_v60, %s19772_s20  ;;  %v21405_v39 = vrot.slane %v3476_v44, %v20502_v26  ;;  %v21408_v51 = vrot.slane %v14832_v42, %v20502_v26  ;;  %v21413_v16 = vrot.slane %v4723_v36, %v20507_v62 }
 0x2d9   : > { %26824 = vst [vmem:[#allocation140_spill] sm:$0xff] %v21397_v50  ;;  %v21416_v55 = vrot.slane %v5508_v21, %v20502_v26  ;;  %v21419_v30 = vrot.slane %v14864_v25, %v20502_v26  ;;  %v2724_v0 = vrot.slane %v2710_v53, %v20502_v26  ;;  %v4742_v27 = vcombine.high %v1570_v13, %v26745_v45  ;;  %v1609_v21 = vpop.f32.mrf.mxu0 }
 0x2da   : > { %26825 = vst [vmem:[#allocation141_spill] sm:$0xff] %v21413_v16  ;;  %v4749_v20 = vrot.slane %v1570_v13, %v20502_v26  ;;  %v21426_v44 = vcombine.high %v5047_v7, %v5055_v12  ;;  %v26829_v42 = vcombine.low %v20778_v15, %v20781_v24  ;;  %v26830_v53 = vcombine.high %v20778_v15, %v20781_v24  ;;  %v1572_v7 = vpop.f32.mrf.mxu1 }
 0x2db   : > { %26826 = vst [vmem:[#allocation142_spill] sm:$0xff] %v21416_v55  ;;  %26827 = vst [vmem:[#allocation143_spill] sm:$0xff] %v21419_v30  ;;  %v3058_v59 = vcombine.low %v20793_v57, %v20796_v58  ;;  %v2725_v12 = vcombine.high %v1459_v9, %v26745_v45  ;;  %v4756_v13 = vrot.slane %v4742_v27, %v20502_v26 }
 0x2dc   : > { %26828 = vst [vmem:[#allocation144_spill] sm:$0xff] %v21426_v44  ;;  %v3049_v36 = vrot.slane %v26829_v42, %v20502_v26  ;;  %v3057_v34 = vrot.slane %v26830_v53, %v20502_v26  ;;  %5648 = vrot.lane.b32.xlu0 %v21426_v44, %s19772_s20  ;;  %v2732_v42 = vrot.slane %v1459_v9, %v20502_v26 }
 0x2dd   : > { %v4757_v25 = vcombine.high %v1572_v7, %v26745_v45  ;;  %v4764_v22 = vrot.slane %v1572_v7, %v20502_v26  ;;  %v3065_v15 = vrot.slane %v3058_v59, %v20507_v62  ;;  %v2739_v53 = vrot.slane %v2725_v12, %v20502_v26 }
 0x2de   : > { %v3066_v24 = vcombine.low %v3049_v36, %v3057_v34  ;;  %v5784_v57 = vcombine.high %v1609_v21, %v26745_v45  ;;  %v2740_v58 = vcombine.low %v2717_v31, %v2732_v42  ;;  %v2741_v60 = vcombine.high %v2717_v31, %v2732_v42  ;;  %v1649_v42 = vpop.f32.mrf.mxu1 }
 0x2df   : > { %v4771_v27 = vrot.slane %v4757_v25, %v20502_v26  ;;  %v4772_v55 = vcombine.low %v4749_v20, %v4764_v22  ;;  %v2756_v30 = vcombine.low %v2724_v0, %v2739_v53  ;;  %v2757_v9 = vcombine.high %v2724_v0, %v2739_v53  ;;  %v1611_v0 = vpop.f32.mrf.mxu0 }
 0x2e0   : > { %v3073_v44 = vrot.slane %v3066_v24, %v20507_v62  ;;  %v4773_v16 = vcombine.high %v4749_v20, %v4764_v22  ;;  %v2748_v50 = vrot.slane %v2740_v58, %v20507_v62  ;;  %v2755_v7 = vrot.slane %v2741_v60, %v20507_v62 }
 0x2e1   : > { %v4780_v34 = vrot.slane %v4772_v55, %v20507_v62  ;;  %v4788_v59 = vcombine.low %v4756_v13, %v4771_v27  ;;  %v21458_v12 = vrot.slane %v2756_v30, %v20507_v62  ;;  %v21461_v31 = vrot.slane %v2757_v9, %v20507_v62 }
 0x2e2   : > { %v21455_v36 = vcombine.low %v3065_v15, %v3073_v44  ;;  %v4787_v25 = vrot.slane %v4773_v16, %v20507_v62  ;;  %v3526_v22 = vcombine.low %v2748_v50, %v2755_v7  ;;  %v14834_v20 = vcombine.high %v2748_v50, %v2755_v7 }
 0x2e3   : > { %26832 = vst [vmem:[#allocation146_spill] sm:$0xff] %v21458_v12  ;;  %26833 = vst [vmem:[#allocation147_spill] sm:$0xff] %v21461_v31  ;;  %v4789_v24 = vcombine.high %v4756_v13, %v4771_v27  ;;  %v21465_v60 = vrot.slane %v4788_v59, %v20507_v62  ;;  %v5791_v58 = vrot.slane %v1609_v21, %v20502_v26  ;;  %v1651_v59 = vpop.f32.mrf.mxu1 }
 0x2e4   : > { %26831 = vst [vmem:[#allocation145_spill] sm:$0xff] %v21455_v36  ;;  %3586 = vrot.lane.b32.xlu1 %v21455_v36, %s19772_s20  ;;  %v5558_v30 = vcombine.low %v4780_v34, %v4787_v25  ;;  %v14866_v53 = vcombine.high %v4780_v34, %v4787_v25  ;;  %v21473_v16 = vrot.slane %v3526_v22, %v20502_v26  ;;  %v1613_v25 = vpop.f32.mrf.mxu0 }
 0x2e5   : > { %26834 = vst [vmem:[#allocation148_spill] sm:$0xff] %v21465_v60  ;;  %v21476_v9 = vrot.slane %v14834_v20, %v20502_v26  ;;  %v21481_v13 = vrot.slane %v4789_v24, %v20507_v62  ;;  %v5798_v21 = vrot.slane %v5784_v57, %v20502_v26  ;;  %v6312_v34 = vcombine.high %v1649_v42, %v26745_v45 }
 0x2e6   : > { %26835 = vst [vmem:[#allocation149_spill] sm:$0xff] %v21473_v16  ;;  %v21484_v27 = vrot.slane %v5558_v30, %v20502_v26  ;;  %v21487_v7 = vrot.slane %v14866_v53, %v20502_v26  ;;  %v6319_v20 = vrot.slane %v1649_v42, %v20502_v26  ;;  %v21494_v50 = vcombine.high %v3065_v15, %v3073_v44 }
 0x2e7   : > { %26836 = vst [vmem:[#allocation150_spill] sm:$0xff] %v21476_v9  ;;  %26837 = vst [vmem:[#allocation151_spill] sm:$0xff] %v21481_v13  ;;  %v26841_v24 = vcombine.low %v20846_v4, %v20849_v17  ;;  %v6326_v53 = vrot.slane %v6312_v34, %v20502_v26  ;;  %v26842_v57 = vcombine.high %v20846_v4, %v20849_v17 }
 0x2e8   : > { %26838 = vst [vmem:[#allocation152_spill] sm:$0xff] %v21484_v27  ;;  %26839 = vst [vmem:[#allocation153_spill] sm:$0xff] %v21487_v7  ;;  %v3108_v36 = vcombine.low %v20861_v48, %v20864_v35  ;;  %v5799_v22 = vcombine.high %v1611_v0, %v26745_v45  ;;  %3618 = vrot.lane.b32.xlu1 %v21494_v50, %s19772_s20  ;;  %v5806_v44 = vrot.slane %v1611_v0, %v20502_v26 }
 0x2e9   : > { %26840 = vst [vmem:[#allocation154_spill] sm:$0xff] %v21494_v50  ;;  %v3099_v30 = vrot.slane %v26841_v24, %v20502_v26  ;;  %v3107_v55 = vrot.slane %v26842_v57, %v20502_v26  ;;  %v6327_v15 = vcombine.high %v1651_v59, %v26745_v45  ;;  %v6334_v42 = vrot.slane %v1651_v59, %v20502_v26 }
 0x2ea   : > { %v5850_v34 = vcombine.high %v1613_v25, %v26745_v45  ;;  %v3115_v24 = vrot.slane %v3108_v36, %v20507_v62  ;;  %v5813_v17 = vrot.slane %v5799_v22, %v20502_v26  ;;  %v21517_v48 = vrot.slane %v1613_v25, %v20502_v26 }
 0x2eb   : > { %v3116_v4 = vcombine.low %v3099_v30, %v3107_v55  ;;  %v5814_v35 = vcombine.low %v5791_v58, %v5806_v44  ;;  %v5815_v57 = vcombine.high %v5791_v58, %v5806_v44  ;;  %v6341_v50 = vrot.slane %v6327_v15, %v20502_v26 }
 0x2ec   : > { %v6342_v27 = vcombine.low %v6319_v20, %v6334_v42  ;;  %v5830_v7 = vcombine.low %v5798_v21, %v5813_v17  ;;  %v5831_v16 = vcombine.high %v5798_v21, %v5813_v17  ;;  %v6343_v59 = vcombine.high %v6319_v20, %v6334_v42 }
 0x2ed   : > { %v3123_v0 = vrot.slane %v3116_v4, %v20507_v62  ;;  %v5822_v9 = vrot.slane %v5814_v35, %v20507_v62  ;;  %v5829_v36 = vrot.slane %v5815_v57, %v20507_v62  ;;  %v6358_v22 = vcombine.low %v6326_v53, %v6341_v50  ;;  %v1653_v35 = vpop.f32.mrf.mxu1 }
 0x2ee   : > { %v6350_v55 = vrot.slane %v6342_v27, %v20507_v62  ;;  %v5838_v25 = vrot.slane %v5830_v7, %v20507_v62  ;;  %v5845_v58 = vrot.slane %v5831_v16, %v20507_v62  ;;  %v6357_v44 = vrot.slane %v6343_v59, %v20507_v62 }
 0x2ef   : > { %v21524_v30 = vcombine.low %v3115_v24, %v3123_v0  ;;  %v6840_v15 = vcombine.low %v5822_v9, %v5829_v36  ;;  %v14868_v4 = vcombine.high %v5822_v9, %v5829_v36  ;;  %v6359_v31 = vcombine.high %v6326_v53, %v6341_v50 }
 0x2f0   : > { %v6366_v21 = vrot.slane %v6358_v22, %v20507_v62  ;;  %v6856_v20 = vcombine.low %v5838_v25, %v5845_v58  ;;  %v14869_v42 = vcombine.high %v5838_v25, %v5845_v58  ;;  %v7240_v27 = vcombine.low %v6350_v55, %v6357_v44 }
 0x2f1   : > { %26843 = vst [vmem:[#allocation155_spill] sm:$0xff] %v21524_v30  ;;  %3588 = vrot.lane.b32.xlu0 %v21524_v30, %s19772_s20  ;;  %v14884_v17 = vcombine.high %v6350_v55, %v6357_v44  ;;  %v6847_v57 = vrot.slane %v6840_v15, %v20502_v26  ;;  %v6855_v7 = vrot.slane %v14868_v4, %v20502_v26  ;;  %v1615_v44 = vpop.f32.mrf.mxu0  ;;  %v26845_v30 = vld [vmem:[#allocation87_spill] sm:$0xff] }
 0x2f2   : > { %v6373_v16 = vrot.slane %v6359_v31, %v20507_v62  ;;  %v5864_v59 = vrot.slane %v5850_v34, %v20502_v26  ;;  %v6863_v9 = vrot.slane %v6856_v20, %v20502_v26  ;;  %v6871_v50 = vrot.slane %v14869_v42, %v20502_v26  ;;  %v26844_v34 = vld [vmem:[#allocation86_spill] sm:$0xff] }
 0x2f3   : > { %v7247_v53 = vrot.slane %v7240_v27, %v20502_v26  ;;  %v7255_v36 = vrot.slane %v14884_v17, %v20502_v26  ;;  %v6872_v22 = vcombine.low %v6847_v57, %v6855_v7  ;;  %v6378_v58 = vcombine.high %v1653_v35, %v26745_v45 }
 0x2f4   : > { %v7256_v25 = vcombine.low %v6366_v21, %v6373_v16  ;;  %v14885_v55 = vcombine.high %v6366_v21, %v6373_v16  ;;  %v6880_v15 = vcombine.low %v6863_v9, %v6871_v50  ;;  %v6385_v31 = vrot.slane %v1653_v35, %v20502_v26  ;;  %v26848_v9 = vld [vmem:[#allocation89_spill] sm:$0xff]  ;;  %v26849_v50 = vld [vmem:[#allocation88_spill] sm:$0xff] }
 0x2f5   : > { %v7272_v4 = vcombine.low %v7247_v53, %v7255_v36  ;;  %v26846_v20 = vcombine.low %v26844_v34, %v26845_v30  ;;  %v21547_v42 = vrot.slane %v6872_v22, %v20507_v62  ;;  %v6392_v21 = vrot.slane %v6378_v58, %v20502_v26  ;;  %v1655_v58 = vpop.f32.mrf.mxu1 }
 0x2f6   : > { %v7263_v27 = vrot.slane %v7256_v25, %v20502_v26  ;;  %v7271_v17 = vrot.slane %v14885_v55, %v20502_v26  ;;  %v21553_v57 = vrot.slane %v6880_v15, %v20507_v62  ;;  %v26847_v35 = vcombine.high %v26844_v34, %v26845_v30  ;;  %v1619_v15 = vpop.f32.mrf.mxu0 }
 0x2f7   : > { %v5081_v12 = vrot.slane %v26846_v20, %v20502_v26  ;;  %v21556_v7 = vrot.slane %v7272_v4, %v20507_v62  ;;  %v5090_v53 = vcombine.low %v26849_v50, %v26848_v9  ;;  %v21564_v22 = vcombine.high %v3115_v24, %v3123_v0 }
 0x2f8   : > { %v5089_v16 = vrot.slane %v26847_v35, %v20502_v26  ;;  %v7280_v36 = vcombine.low %v7263_v27, %v7271_v17  ;;  %v5865_v25 = vcombine.high %v1615_v44, %v26745_v45  ;;  %v5872_v55 = vrot.slane %v1615_v44, %v20502_v26 }
 0x2f9   : > { %26850 = vst [vmem:[#allocation86_spill] sm:$0xff] %v21564_v22  ;;  %v5097_v30 = vrot.slane %v5090_v53, %v20507_v62  ;;  %3620 = vrot.lane.b32.xlu0 %v21564_v22, %s19772_s20  ;;  %v6393_v17 = vcombine.high %v1655_v58, %v26745_v45  ;;  %v6400_v9 = vrot.slane %v1655_v58, %v20502_v26 }
 0x2fa   : > { %v5098_v34 = vcombine.low %v5081_v12, %v5089_v16  ;;  %v21574_v35 = vrot.slane %v7280_v36, %v20507_v62  ;;  %v5879_v24 = vrot.slane %v5865_v25, %v20502_v26  ;;  %v5880_v0 = vcombine.low %v21517_v48, %v5872_v55 }
 0x2fb   : > { %v5881_v44 = vcombine.high %v21517_v48, %v5872_v55  ;;  %v5916_v12 = vcombine.high %v1619_v15, %v26745_v45  ;;  %v6408_v4 = vcombine.low %v6385_v31, %v6400_v9  ;;  %v6409_v22 = vcombine.high %v6385_v31, %v6400_v9 }
 0x2fc   : > { %v5105_v27 = vrot.slane %v5098_v34, %v20507_v62  ;;  %v5888_v53 = vrot.slane %v5880_v0, %v20507_v62  ;;  %v5896_v48 = vcombine.low %v5864_v59, %v5879_v24  ;;  %v5897_v55 = vcombine.high %v5864_v59, %v5879_v24 }
 0x2fd   : > { %v5895_v36 = vrot.slane %v5881_v44, %v20507_v62  ;;  %v6407_v34 = vrot.slane %v6393_v17, %v20502_v26  ;;  %v6416_v59 = vrot.slane %v6408_v4, %v20507_v62  ;;  %v6423_v24 = vrot.slane %v6409_v22, %v20507_v62 }
 0x2fe   : > { %v21591_v25 = vcombine.low %v5097_v30, %v5105_v27  ;;  %v5904_v16 = vrot.slane %v5896_v48, %v20507_v62  ;;  %v5911_v50 = vrot.slane %v5897_v55, %v20507_v62  ;;  %v5923_v55 = vrot.slane %v1619_v15, %v20502_v26 }
 0x2ff   : > { %v6890_v20 = vcombine.low %v5888_v53, %v5895_v36  ;;  %v14870_v58 = vcombine.high %v5888_v53, %v5895_v36  ;;  %v6424_v0 = vcombine.low %v6392_v21, %v6407_v34  ;;  %v6425_v60 = vcombine.high %v6392_v21, %v6407_v34 }
 0x300   : > { %26851 = vst [vmem:[#allocation87_spill] sm:$0xff] %v21591_v25  ;;  %5618 = vrot.lane.b32.xlu1 %v21591_v25, %s19772_s20  ;;  %v6906_v17 = vcombine.low %v5904_v16, %v5911_v50  ;;  %v14871_v53 = vcombine.high %v5904_v16, %v5911_v50  ;;  %v7290_v48 = vcombine.low %v6416_v59, %v6423_v24 }
 0x301   : > { %v6897_v44 = vrot.slane %v6890_v20, %v20502_v26  ;;  %v6905_v13 = vrot.slane %v14870_v58, %v20502_v26  ;;  %v6432_v31 = vrot.slane %v6424_v0, %v20507_v62  ;;  %v6439_v9 = vrot.slane %v6425_v60, %v20507_v62 }
 0x302   : > { %v14886_v25 = vcombine.high %v6416_v59, %v6423_v24  ;;  %v6913_v21 = vrot.slane %v6906_v17, %v20502_v26  ;;  %v6921_v20 = vrot.slane %v14871_v53, %v20502_v26  ;;  %v7297_v16 = vrot.slane %v7290_v48, %v20502_v26  ;;  %v26853_v24 = vld [vmem:[#allocation92_spill] sm:$0xff] }
 0x303   : > { %v6922_v36 = vcombine.low %v6897_v44, %v6905_v13  ;;  %v7306_v34 = vcombine.low %v6432_v31, %v6439_v9  ;;  %v14887_v4 = vcombine.high %v6432_v31, %v6439_v9  ;;  %v5930_v60 = vrot.slane %v5916_v12, %v20502_v26  ;;  %v1621_v13 = vpop.f32.mrf.mxu0  ;;  %v26856_v12 = vld [vmem:[#allocation94_spill] sm:$0xff]  ;;  %v26857_v9 = vld [vmem:[#allocation93_spill] sm:$0xff] }
 0x304   : > { %v7305_v50 = vrot.slane %v14886_v25, %v20502_v26  ;;  %v6930_v58 = vcombine.low %v6913_v21, %v6921_v20  ;;  %v21613_v44 = vcombine.high %v5097_v30, %v5105_v27  ;;  %v26854_v17 = vcombine.low %v20853_v3, %v26853_v24  ;;  %v1659_v20 = vpop.f32.mrf.mxu1 }
 0x305   : > { %v6929_v22 = vrot.slane %v6922_v36, %v20507_v62  ;;  %v7313_v0 = vrot.slane %v7306_v34, %v20502_v26  ;;  %v7321_v15 = vrot.slane %v14887_v4, %v20502_v26  ;;  %v26855_v25 = vcombine.high %v20853_v3, %v26853_v24 }
 0x306   : > { %v7322_v59 = vcombine.low %v7297_v16, %v7305_v50  ;;  %v5131_v53 = vrot.slane %v26854_v17, %v20502_v26  ;;  %v5140_v36 = vcombine.low %v26857_v9, %v26856_v12  ;;  %v6937_v48 = vrot.slane %v6930_v58, %v20507_v62  ;;  %5650 = vrot.lane.b32.xlu1 %v21613_v44, %s19772_s20 }
 0x307   : > { %v5139_v31 = vrot.slane %v26855_v25, %v20502_v26  ;;  %v7330_v21 = vcombine.low %v7313_v0, %v7321_v15  ;;  %v5931_v30 = vcombine.high %v1621_v13, %v26745_v45  ;;  %v5938_v27 = vrot.slane %v1621_v13, %v20502_v26 }
 0x308   : > { %v7329_v34 = vrot.slane %v7322_v59, %v20507_v62  ;;  %v5147_v3 = vrot.slane %v5140_v36, %v20507_v62  ;;  %v6444_v16 = vcombine.high %v1659_v20, %v26745_v45  ;;  %v6938_v50 = vcombine.low %v6929_v22, %v6937_v48  ;;  %v1623_v36 = vpop.f32.mrf.mxu0 }
 0x309   : > { %v5148_v4 = vcombine.low %v5131_v53, %v5139_v31  ;;  %v6939_v24 = vcombine.high %v6929_v22, %v6937_v48  ;;  %v7337_v58 = vrot.slane %v7330_v21, %v20507_v62  ;;  %v5945_v0 = vrot.slane %v5931_v30, %v20502_v26 }
 0x30a   : > { %v5946_v17 = vcombine.low %v5923_v55, %v5938_v27  ;;  %v5947_v25 = vcombine.high %v5923_v55, %v5938_v27  ;;  %v6451_v13 = vrot.slane %v1659_v20, %v20502_v26  ;;  %v26858_v59 = vcombine.low %v21547_v42, %v21553_v57 }
 0x30b   : > { %v5155_v15 = vrot.slane %v5148_v4, %v20507_v62  ;;  %v26859_v53 = vcombine.high %v21547_v42, %v21553_v57  ;;  %v7338_v22 = vcombine.low %v7329_v34, %v7337_v58  ;;  %v7339_v9 = vcombine.high %v7329_v34, %v7337_v58 }
 0x30c   : > { %v15422_v12 = vpack.c.bf16 %v6938_v50, %v26858_v59  ;;  %v5954_v21 = vrot.slane %v5946_v17, %v20507_v62  ;;  %v5961_v30 = vrot.slane %v5947_v25, %v20507_v62  ;;  %v5962_v55 = vcombine.low %v5930_v60, %v5945_v0 }
 0x30d   : > { %v15462_v31 = vpack.c.bf16 %v6939_v24, %v26859_v53  ;;  %v21644_v48 = vcombine.low %v5147_v3, %v5155_v15  ;;  %v26860_v42 = vcombine.low %v21556_v7, %v21574_v35  ;;  %v26861_v27 = vcombine.high %v21556_v7, %v21574_v35 }
 0x30e   : > { %15423 = vst [vmem:[%s21650_s28] sm:$0xff] %v15422_v12   ;;  %v5963_v34 = vcombine.high %v5930_v60, %v5945_v0  ;;  %v6458_v4 = vrot.slane %v6444_v16, %v20502_v26  ;;  %v5970_v50 = vrot.slane %v5962_v55, %v20507_v62  ;;  %v6940_v24 = vcombine.low %v5954_v21, %v5961_v30  ;;  %v1625_v16 = vpop.f32.mrf.mxu0 }
 0x30f   : > { %15521 = vst [vmem:[%s21650_s28 + $0x40] sm:$0xff] %v15462_v31   ;;  %v15442_v57 = vpack.c.bf16 %v7338_v22, %v26860_v42  ;;  %v15482_v20 = vpack.c.bf16 %v7339_v9, %v26861_v27  ;;  %5620 = vrot.lane.b32.xlu0 %v21644_v48, %s19772_s20  ;;  %v14872_v58 = vcombine.high %v5954_v21, %v5961_v30  ;;  %v1661_v9 = vpop.f32.mrf.mxu1 }
 0x310   : > { %v5982_v17 = vcombine.high %v1623_v36, %v26745_v45  ;;  %v5977_v25 = vrot.slane %v5963_v34, %v20507_v62  ;;  %v5989_v59 = vrot.slane %v1623_v36, %v20502_v26  ;;  %v21669_v7 = vcombine.high %v5147_v3, %v5155_v15  ;;  %v26864_v36 = vld [vmem:[#allocation98_spill] sm:$0xff] }
 0x311   : > { %15517 = vst [vmem:[%s21650_s28 + $0x20] sm:$0xff] %v15442_v57   ;;  %15525 = vst [vmem:[%s21650_s28 + $0x60] sm:$0xff] %v15482_v20   ;;  %v26862_v35 = vcombine.low %v20913_v63, %v20916_v28  ;;  %v6947_v0 = vrot.slane %v6940_v24, %v20502_v26  ;;  %v6955_v12 = vrot.slane %v14872_v58, %v20502_v26 }
 0x312   : > { %v5996_v53 = vrot.slane %v5982_v17, %v20502_v26  ;;  %v26863_v31 = vcombine.high %v20913_v63, %v20916_v28  ;;  %v6956_v3 = vcombine.low %v5970_v50, %v5977_v25  ;;  %v14873_v15 = vcombine.high %v5970_v50, %v5977_v25 }
 0x313   : > { %v3149_v60 = vrot.slane %v26862_v35, %v20502_v26  ;;  %v3158_v21 = vcombine.low %v26864_v36, %v20932_v33  ;;  %v6459_v30 = vcombine.high %v1661_v9, %v26745_v45  ;;  %v6972_v55 = vcombine.low %v6947_v0, %v6955_v12  ;;  %5652 = vrot.lane.b32.xlu0 %v21669_v7, %s19772_s20 }
 0x314   : > { %v3157_v22 = vrot.slane %v26863_v31, %v20502_v26  ;;  %v6466_v57 = vrot.slane %v1661_v9, %v20502_v26  ;;  %v5997_v27 = vcombine.high %v1625_v16, %v26745_v45  ;;  %v6963_v63 = vrot.slane %v6956_v3, %v20502_v26 }
 0x315   : > { %v6971_v28 = vrot.slane %v14873_v15, %v20502_v26  ;;  %v3165_v20 = vrot.slane %v3158_v21, %v20507_v62  ;;  %v6473_v34 = vrot.slane %v6459_v30, %v20502_v26  ;;  %v21694_v33 = vrot.slane %v6972_v55, %v20507_v62 }
 0x316   : > { %v3166_v42 = vcombine.low %v3149_v60, %v3157_v22  ;;  %v6474_v24 = vcombine.low %v6451_v13, %v6466_v57  ;;  %v6475_v58 = vcombine.high %v6451_v13, %v6466_v57  ;;  %v6004_v60 = vrot.slane %v1625_v16, %v20502_v26 }
 0x317   : > { %v6980_v17 = vcombine.low %v6963_v63, %v6971_v28  ;;  %v6490_v25 = vcombine.low %v6458_v4, %v6473_v34  ;;  %v6491_v35 = vcombine.high %v6458_v4, %v6473_v34  ;;  %v6011_v22 = vrot.slane %v5997_v27, %v20502_v26  ;;  %v1629_v27 = vpop.f32.mrf.mxu0 }
 0x318   : > { %v3173_v50 = vrot.slane %v3166_v42, %v20507_v62  ;;  %v6482_v12 = vrot.slane %v6474_v24, %v20507_v62  ;;  %v6489_v31 = vrot.slane %v6475_v58, %v20507_v62  ;;  %v6012_v15 = vcombine.low %v5989_v59, %v6004_v60 }
 0x319   : > { %v21704_v9 = vrot.slane %v6980_v17, %v20507_v62  ;;  %v6498_v3 = vrot.slane %v6490_v25, %v20507_v62  ;;  %v6505_v13 = vrot.slane %v6491_v35, %v20507_v62  ;;  %v6013_v36 = vcombine.high %v5989_v59, %v6004_v60  ;;  %v1663_v35 = vpop.f32.mrf.mxu1 }
 0x31a   : > { %v21698_v0 = vcombine.low %v3165_v20, %v3173_v50  ;;  %v7340_v4 = vcombine.low %v6482_v12, %v6489_v31  ;;  %v14888_v16 = vcombine.high %v6482_v12, %v6489_v31  ;;  %v6028_v21 = vcombine.low %v5996_v53, %v6011_v22 }
 0x31b   : > { %v6988_v30 = vcombine.low %v21694_v33, %v21704_v9  ;;  %v7356_v42 = vcombine.low %v6498_v3, %v6505_v13  ;;  %v14889_v57 = vcombine.high %v6498_v3, %v6505_v13  ;;  %v6020_v34 = vrot.slane %v6012_v15, %v20507_v62 }
 0x31c   : > { %3590 = vrot.lane.b32.xlu1 %v21698_v0, %s19772_s20  ;;  %v7347_v63 = vrot.slane %v7340_v4, %v20502_v26  ;;  %v7355_v28 = vrot.slane %v14888_v16, %v20502_v26  ;;  %v6027_v24 = vrot.slane %v6013_v36, %v20507_v62  ;;  %v6029_v17 = vcombine.high %v5996_v53, %v6011_v22  ;;  %v1631_v36 = vpop.f32.mrf.mxu0 }
 0x31d   : > { %v7363_v59 = vrot.slane %v7356_v42, %v20502_v26  ;;  %v7371_v58 = vrot.slane %v14889_v57, %v20502_v26  ;;  %v6036_v25 = vrot.slane %v6028_v21, %v20507_v62  ;;  %v6510_v3 = vcombine.high %v1663_v35, %v26745_v45 }
 0x31e   : > { %v7372_v60 = vcombine.low %v7347_v63, %v7355_v28  ;;  %v6990_v12 = vcombine.low %v6020_v34, %v6027_v24  ;;  %v14874_v31 = vcombine.high %v6020_v34, %v6027_v24  ;;  %v6043_v4 = vrot.slane %v6029_v17, %v20507_v62  ;;  %v1665_v24 = vpop.f32.mrf.mxu1 }
 0x31f   : > { %v7380_v13 = vcombine.low %v7363_v59, %v7371_v58  ;;  %v6517_v15 = vrot.slane %v1663_v35, %v20502_v26  ;;  %v6048_v16 = vcombine.high %v1629_v27, %v26745_v45  ;;  %v6524_v21 = vrot.slane %v6510_v3, %v20502_v26  ;;  %v1633_v3 = vpop.f32.mrf.mxu0 }
 0x320   : > { %v21726_v42 = vrot.slane %v7372_v60, %v20507_v62  ;;  %v6997_v53 = vrot.slane %v6990_v12, %v20502_v26  ;;  %v7005_v22 = vrot.slane %v14874_v31, %v20502_v26  ;;  %v7006_v63 = vcombine.low %v6036_v25, %v6043_v4 }
 0x321   : > { %v21732_v57 = vrot.slane %v7380_v13, %v20507_v62  ;;  %v14875_v28 = vcombine.high %v6036_v25, %v6043_v4  ;;  %v6055_v34 = vrot.slane %v1629_v27, %v20502_v26  ;;  %v6062_v58 = vrot.slane %v6048_v16, %v20502_v26 }
 0x322   : > { %v7022_v59 = vcombine.low %v6997_v53, %v7005_v22  ;;  %v21736_v17 = vcombine.high %v3165_v20, %v3173_v50  ;;  %v26865_v35 = vcombine.low %v20982_v38, %v20985_v10  ;;  %v7013_v25 = vrot.slane %v7006_v63, %v20502_v26 }
 0x323   : > { %v7021_v27 = vrot.slane %v14875_v28, %v20502_v26  ;;  %v26866_v20 = vcombine.high %v20982_v38, %v20985_v10  ;;  %v3208_v4 = vcombine.low %v20998_v11, %v21001_v46  ;;  %v6525_v16 = vcombine.high %v1665_v24, %v26745_v45 }
 0x324   : > { %v3199_v60 = vrot.slane %v26865_v35, %v20502_v26  ;;  %v7029_v13 = vrot.slane %v7022_v59, %v20507_v62  ;;  %3622 = vrot.lane.b32.xlu1 %v21736_v17, %s19772_s20  ;;  %v6532_v22 = vrot.slane %v1665_v24, %v20502_v26  ;;  %v6063_v63 = vcombine.high %v1631_v36, %v26745_v45 }
 0x325   : > { %v3207_v50 = vrot.slane %v26866_v20, %v20502_v26  ;;  %v7030_v53 = vcombine.low %v7013_v25, %v7021_v27  ;;  %v6070_v28 = vrot.slane %v1631_v36, %v20502_v26  ;;  %v3215_v59 = vrot.slane %v3208_v4, %v20507_v62 }
 0x326   : > { %v6539_v31 = vrot.slane %v6525_v16, %v20502_v26  ;;  %v6114_v38 = vcombine.high %v1633_v3, %v26745_v45  ;;  %v6540_v20 = vcombine.low %v6517_v15, %v6532_v22  ;;  %v6541_v11 = vcombine.high %v6517_v15, %v6532_v22 }
 0x327   : > { %v3216_v35 = vcombine.low %v3199_v60, %v3207_v50  ;;  %v7037_v10 = vrot.slane %v7030_v53, %v20507_v62  ;;  %v6077_v46 = vrot.slane %v6063_v63, %v20502_v26  ;;  %v6078_v12 = vcombine.low %v6055_v34, %v6070_v28 }
 0x328   : > { %v6556_v24 = vcombine.low %v6524_v21, %v6539_v31  ;;  %v6557_v27 = vcombine.high %v6524_v21, %v6539_v31  ;;  %v6548_v60 = vrot.slane %v6540_v20, %v20507_v62  ;;  %v6555_v50 = vrot.slane %v6541_v11, %v20507_v62 }
 0x329   : > { %v3223_v25 = vrot.slane %v3216_v35, %v20507_v62  ;;  %v7038_v55 = vcombine.low %v7029_v13, %v7037_v10  ;;  %v7039_v36 = vcombine.high %v7029_v13, %v7037_v10  ;;  %v6079_v53 = vcombine.high %v6055_v34, %v6070_v28 }
 0x32a   : > { %v6564_v16 = vrot.slane %v6556_v24, %v20507_v62  ;;  %v6571_v15 = vrot.slane %v6557_v27, %v20507_v62  ;;  %v26867_v31 = vcombine.high %v21694_v33, %v21704_v9  ;;  %v7390_v22 = vcombine.low %v6548_v60, %v6555_v50 }
 0x32b   : > { %v21769_v4 = vcombine.low %v3215_v59, %v3223_v25  ;;  %v15427_v21 = vpack.c.bf16 %v7038_v55, %v6988_v30  ;;  %v14890_v63 = vcombine.high %v6548_v60, %v6555_v50  ;;  %v6086_v20 = vrot.slane %v6078_v12, %v20507_v62 }
 0x32c   : > { %v15467_v13 = vpack.c.bf16 %v7039_v36, %v26867_v31  ;;  %v7406_v35 = vcombine.low %v6564_v16, %v6571_v15  ;;  %v14891_v10 = vcombine.high %v6564_v16, %v6571_v15  ;;  %v6093_v11 = vrot.slane %v6079_v53, %v20507_v62  ;;  %v1635_v16 = vpop.f32.mrf.mxu0 }
 0x32d   : > { %3592 = vrot.lane.b32.xlu0 %v21769_v4, %s19772_s20  ;;  %15514 = vst [vmem:[%s21650_s28 + $0x8] sm:$0xff] %v15427_v21   ;;  %v7397_v34 = vrot.slane %v7390_v22, %v20502_v26  ;;  %v7405_v30 = vrot.slane %v14890_v63, %v20502_v26  ;;  %v6094_v55 = vcombine.low %v6062_v58, %v6077_v46  ;;  %v26868_v22 = vld [vmem:[#allocation97_spill] sm:$0xff]  ;;  %v26869_v63 = vld [vmem:[#allocation99_spill] sm:$0xff] }
 0x32e   : > { %15522 = vst [vmem:[%s21650_s28 + $0x48] sm:$0xff] %v15467_v13   ;;  %v6095_v33 = vcombine.high %v6062_v58, %v6077_v46  ;;  %v7413_v9 = vrot.slane %v7406_v35, %v20502_v26  ;;  %v7421_v28 = vrot.slane %v14891_v10, %v20502_v26  ;;  %v7040_v24 = vcombine.low %v6086_v20, %v6093_v11 }
 0x32f   : > { %v14876_v27 = vcombine.high %v6086_v20, %v6093_v11  ;;  %v7422_v36 = vcombine.low %v7397_v34, %v7405_v30  ;;  %v6102_v60 = vrot.slane %v6094_v55, %v20507_v62  ;;  %v6121_v50 = vrot.slane %v1633_v3, %v20502_v26  ;;  %v26872_v30 = vld [vmem:[#allocation102_spill] sm:$0xff]  ;;  %v26873_v55 = vld [vmem:[#allocation100_spill] sm:$0xff] }
 0x330   : > { %v6109_v12 = vrot.slane %v6095_v33, %v20507_v62  ;;  %v7430_v15 = vcombine.low %v7413_v9, %v7421_v28  ;;  %v7047_v53 = vrot.slane %v7040_v24, %v20502_v26  ;;  %v6128_v58 = vrot.slane %v6114_v38, %v20502_v26 }
 0x331   : > { %v7055_v21 = vrot.slane %v14876_v27, %v20502_v26  ;;  %v7429_v46 = vrot.slane %v7422_v36, %v20507_v62  ;;  %v26870_v35 = vcombine.low %v26868_v22, %v26869_v63  ;;  %v26871_v11 = vcombine.high %v26868_v22, %v26869_v63  ;;  %v1639_v27 = vpop.f32.mrf.mxu0 }
 0x332   : > { %v7056_v31 = vcombine.low %v6102_v60, %v6109_v12  ;;  %v14877_v13 = vcombine.high %v6102_v60, %v6109_v12  ;;  %v7437_v20 = vrot.slane %v7430_v15, %v20507_v62  ;;  %v5190_v38 = vcombine.low %v26873_v55, %v26872_v30 }
 0x333   : > { %v5181_v10 = vrot.slane %v26870_v35, %v20502_v26  ;;  %v7072_v3 = vcombine.low %v7047_v53, %v7055_v21  ;;  %v5189_v34 = vrot.slane %v26871_v11, %v20502_v26  ;;  %v21809_v28 = vcombine.high %v3215_v59, %v3223_v25 }
 0x334   : > { %v7063_v33 = vrot.slane %v7056_v31, %v20502_v26  ;;  %v7071_v9 = vrot.slane %v14877_v13, %v20502_v26  ;;  %v6129_v24 = vcombine.high %v1635_v16, %v26745_v45  ;;  %v7438_v36 = vcombine.low %v7429_v46, %v7437_v20 }
 0x335   : > { %v7439_v60 = vcombine.high %v7429_v46, %v7437_v20  ;;  %v21813_v12 = vrot.slane %v7072_v3, %v20507_v62  ;;  %v5197_v15 = vrot.slane %v5190_v38, %v20507_v62  ;;  %v5198_v21 = vcombine.low %v5181_v10, %v5189_v34  ;;  %3624 = vrot.lane.b32.xlu0 %v21809_v28, %s19772_s20 }
 0x336   : > { %v7080_v53 = vcombine.low %v7063_v33, %v7071_v9  ;;  %v6136_v59 = vrot.slane %v1635_v16, %v20502_v26  ;;  %v6143_v25 = vrot.slane %v6129_v24, %v20502_v26  ;;  %v26874_v31 = vcombine.low %v21726_v42, %v21732_v57  ;;  %v1641_v33 = vpop.f32.mrf.mxu0 }
 0x337   : > { %v26875_v13 = vcombine.high %v21726_v42, %v21732_v57  ;;  %v6180_v63 = vcombine.high %v1639_v27, %v26745_v45  ;;  %v6187_v35 = vrot.slane %v1639_v27, %v20502_v26  ;;  %v5205_v20 = vrot.slane %v5198_v21, %v20507_v62  ;;  %v26876_v42 = vld [vmem:[#allocation104_spill] sm:$0xff]  ;;  %v26877_v57 = vld [vmem:[#allocation105_spill] sm:$0xff] }
 0x338   : > { %v15447_v46 = vpack.c.bf16 %v7438_v36, %v26874_v31  ;;  %v21829_v10 = vrot.slane %v7080_v53, %v20507_v62  ;;  %v6144_v16 = vcombine.low %v6121_v50, %v6136_v59  ;;  %v6145_v3 = vcombine.high %v6121_v50, %v6136_v59  ;;  %v26880_v59 = vld [vmem:[#allocation108_spill] sm:$0xff] }
 0x339   : > { %v15487_v22 = vpack.c.bf16 %v7439_v60, %v26875_v13  ;;  %v6160_v11 = vcombine.low %v6128_v58, %v6143_v25  ;;  %v6161_v34 = vcombine.high %v6128_v58, %v6143_v25  ;;  %v6194_v30 = vrot.slane %v6180_v63, %v20502_v26  ;;  %v26881_v25 = vld [vmem:[#allocation106_spill] sm:$0xff] }
 0x33a   : > { %15518 = vst [vmem:[%s21650_s28 + $0x28] sm:$0xff] %v15447_v46   ;;  %v26878_v55 = vcombine.low %v26876_v42, %v26877_v57  ;;  %v7088_v9 = vcombine.low %v21813_v12, %v21829_v10  ;;  %v7089_v24 = vcombine.high %v21813_v12, %v21829_v10  ;;  %v21843_v27 = vcombine.low %v5197_v15, %v5205_v20 }
 0x33b   : > { %15526 = vst [vmem:[%s21650_s28 + $0x68] sm:$0xff] %v15487_v22   ;;  %v6152_v50 = vrot.slane %v6144_v16, %v20507_v62  ;;  %v6159_v58 = vrot.slane %v6145_v3, %v20507_v62  ;;  %v6168_v36 = vrot.slane %v6160_v11, %v20507_v62  ;;  %v6175_v60 = vrot.slane %v6161_v34, %v20507_v62 }
 0x33c   : > { %v5231_v38 = vrot.slane %v26878_v55, %v20502_v26  ;;  %v21849_v53 = vcombine.high %v5197_v15, %v5205_v20  ;;  %5622 = vrot.lane.b32.xlu1 %v21843_v27, %s19772_s20  ;;  %v26879_v21 = vcombine.high %v26876_v42, %v26877_v57  ;;  %v5240_v31 = vcombine.low %v26881_v25, %v26880_v59  ;;  %v1643_v25 = vpop.f32.mrf.mxu0 }
 0x33d   : > { %v6195_v46 = vcombine.high %v1641_v33, %v26745_v45  ;;  %v6202_v13 = vrot.slane %v1641_v33, %v20502_v26  ;;  %v7090_v22 = vcombine.low %v6152_v50, %v6159_v58  ;;  %v14878_v63 = vcombine.high %v6152_v50, %v6159_v58 }
 0x33e   : > { %v5239_v12 = vrot.slane %v26879_v21, %v20502_v26  ;;  %v7106_v10 = vcombine.low %v6168_v36, %v6175_v60  ;;  %v14879_v15 = vcombine.high %v6168_v36, %v6175_v60  ;;  %v5247_v20 = vrot.slane %v5240_v31, %v20507_v62  ;;  %v1669_v36 = vpop.f32.mrf.mxu1 }
 0x33f   : > { %v6209_v3 = vrot.slane %v6195_v46, %v20502_v26  ;;  %v6210_v11 = vcombine.low %v6187_v35, %v6202_v13  ;;  %v7097_v34 = vrot.slane %v7090_v22, %v20502_v26  ;;  %v7105_v42 = vrot.slane %v14878_v63, %v20502_v26 }
 0x340   : > { %v5248_v16 = vcombine.low %v5231_v38, %v5239_v12  ;;  %v7113_v57 = vrot.slane %v7106_v10, %v20502_v26  ;;  %v7121_v55 = vrot.slane %v14879_v15, %v20502_v26  ;;  %5654 = vrot.lane.b32.xlu1 %v21849_v53, %s19772_s20  ;;  %v6211_v50 = vcombine.high %v6187_v35, %v6202_v13 }
 0x341   : > { %v6218_v58 = vrot.slane %v6210_v11, %v20507_v62  ;;  %v6226_v38 = vcombine.low %v6194_v30, %v6209_v3  ;;  %v7122_v60 = vcombine.low %v7097_v34, %v7105_v42  ;;  %v6227_v12 = vcombine.high %v6194_v30, %v6209_v3 }
 0x342   : > { %v5255_v33 = vrot.slane %v5248_v16, %v20507_v62  ;;  %v7130_v21 = vcombine.low %v7113_v57, %v7121_v55  ;;  %v6576_v59 = vcombine.high %v1669_v36, %v26745_v45  ;;  %v6225_v46 = vrot.slane %v6211_v50, %v20507_v62 }
 0x343   : > { %v6234_v22 = vrot.slane %v6226_v38, %v20507_v62  ;;  %v6583_v63 = vrot.slane %v1669_v36, %v20502_v26  ;;  %v7129_v35 = vrot.slane %v7122_v60, %v20507_v62  ;;  %v6241_v10 = vrot.slane %v6227_v12, %v20507_v62 }
 0x344   : > { %v21872_v31 = vcombine.low %v5247_v20, %v5255_v33  ;;  %v7137_v13 = vrot.slane %v7130_v21, %v20507_v62  ;;  %v6590_v15 = vrot.slane %v6576_v59, %v20502_v26  ;;  %v7140_v30 = vcombine.low %v6218_v58, %v6225_v46  ;;  %v1645_v21 = vpop.f32.mrf.mxu0 }
 0x345   : > { %v14880_v16 = vcombine.high %v6218_v58, %v6225_v46  ;;  %v6246_v3 = vcombine.high %v1643_v25, %v26745_v45  ;;  %v6253_v11 = vrot.slane %v1643_v25, %v20502_v26  ;;  %v7156_v57 = vcombine.low %v6234_v22, %v6241_v10 }
 0x346   : > { %26882 = vst [vmem:[#allocation89_spill] sm:$0xff] %v21872_v31  ;;  %5624 = vrot.lane.b32.xlu0 %v21872_v31, %s19772_s20  ;;  %v7138_v34 = vcombine.low %v7129_v35, %v7137_v13  ;;  %v7139_v42 = vcombine.high %v7129_v35, %v7137_v13  ;;  %v14881_v55 = vcombine.high %v6234_v22, %v6241_v10 }
 0x347   : > { %v7147_v50 = vrot.slane %v7140_v30, %v20502_v26  ;;  %v7155_v38 = vrot.slane %v14880_v16, %v20502_v26  ;;  %v6260_v36 = vrot.slane %v6246_v3, %v20502_v26  ;;  %v21888_v60 = vcombine.high %v5247_v20, %v5255_v33  ;;  %v21909_v3 = vpop.permute.xlu1 %3578 }
 0x348   : > { %v15432_v58 = vpack.c.bf16 %v7138_v34, %v7088_v9  ;;  %v15472_v12 = vpack.c.bf16 %v7139_v42, %v7089_v24  ;;  %v7163_v59 = vrot.slane %v7156_v57, %v20502_v26  ;;  %v7171_v25 = vrot.slane %v14881_v55, %v20502_v26  ;;  %v1671_v24 = vpop.f32.mrf.mxu1 }
 0x349   : > { %26883 = vst [vmem:[#allocation88_spill] sm:$0xff] %v21888_v60  ;;  %v7172_v46 = vcombine.low %v7147_v50, %v7155_v38  ;;  %v26884_v22 = vcombine.low %v21050_v1, %v21053_v52  ;;  %v26885_v20 = vcombine.high %v21050_v1, %v21053_v52  ;;  %v3258_v9 = vcombine.low %v21066_v41, %v21069_v47 }
 0x34a   : > { %5656 = vrot.lane.b32.xlu0 %v21888_v60, %s19772_s20  ;;  %15515 = vst [vmem:[%s21650_s28 + $0x10] sm:$0xff] %v15432_v58   ;;  %15523 = vst [vmem:[%s21650_s28 + $0x50] sm:$0xff] %v15472_v12   ;;  %v7180_v13 = vcombine.low %v7163_v59, %v7171_v25  ;;  %v6591_v10 = vcombine.high %v1671_v24, %v26745_v45  ;;  %v6598_v30 = vrot.slane %v1671_v24, %v20502_v26 }
 0x34b   : > { %v3249_v35 = vrot.slane %v26884_v22, %v20502_v26  ;;  %v3257_v33 = vrot.slane %v26885_v20, %v20502_v26  ;;  %v6261_v16 = vcombine.high %v1645_v21, %v26745_v45  ;;  %v21912_v34 = vrot.slane %v7172_v46, %v20507_v62 }
 0x34c   : > { %v3265_v1 = vrot.slane %v3258_v9, %v20507_v62  ;;  %v6268_v41 = vrot.slane %v1645_v21, %v20502_v26  ;;  %v21917_v47 = vrot.slane %v7180_v13, %v20507_v62  ;;  %v6605_v42 = vrot.slane %v6591_v10, %v20502_v26  ;;  %v1673_v13 = vpop.f32.mrf.mxu1  ;;  %v21932_v10 = vpop.permute.xlu1 %3610 }
 0x34d   : > { %v3266_v52 = vcombine.low %v3249_v35, %v3257_v33  ;;  %v6606_v57 = vcombine.low %v6583_v63, %v6598_v30  ;;  %v6607_v55 = vcombine.high %v6583_v63, %v6598_v30  ;;  %v6275_v38 = vrot.slane %v6261_v16, %v20502_v26 }
 0x34e   : > { %v6276_v58 = vcombine.low %v6253_v11, %v6268_v41  ;;  %v6277_v12 = vcombine.high %v6253_v11, %v6268_v41  ;;  %v6622_v35 = vcombine.low %v6590_v15, %v6605_v42  ;;  %v6623_v63 = vcombine.high %v6590_v15, %v6605_v42  ;;  %v1675_v60 = vpop.f32.mrf.mxu1 }
 0x34f   : > { %v3273_v50 = vrot.slane %v3266_v52, %v20507_v62  ;;  %v6614_v21 = vrot.slane %v6606_v57, %v20507_v62  ;;  %v6621_v46 = vrot.slane %v6607_v55, %v20507_v62  ;;  %v6292_v24 = vcombine.low %v6260_v36, %v6275_v38 }
 0x350   : > { %v6284_v20 = vrot.slane %v6276_v58, %v20507_v62  ;;  %v6291_v11 = vrot.slane %v6277_v12, %v20507_v62  ;;  %v6630_v30 = vrot.slane %v6622_v35, %v20507_v62  ;;  %v6637_v16 = vrot.slane %v6623_v63, %v20507_v62  ;;  %v21942_v58 = vpop.permute.xlu0 %3576 }
 0x351   : > { %v21928_v22 = vcombine.low %v3265_v1, %v3273_v50  ;;  %v7440_v33 = vcombine.low %v6614_v21, %v6621_v46  ;;  %v14892_v9 = vcombine.high %v6614_v21, %v6621_v46  ;;  %v6293_v52 = vcombine.high %v6260_v36, %v6275_v38 }
 0x352   : > { %v6642_v15 = vcombine.high %v1673_v13, %v26745_v45  ;;  %v6300_v57 = vrot.slane %v6292_v24, %v20507_v62  ;;  %v7190_v55 = vcombine.low %v6284_v20, %v6291_v11  ;;  %v7456_v12 = vcombine.low %v6630_v30, %v6637_v16 }
 0x353   : > { %3594 = vrot.lane.b32.xlu1 %v21928_v22, %s19772_s20  ;;  %v7447_v41 = vrot.slane %v7440_v33, %v20502_v26  ;;  %v7455_v42 = vrot.slane %v14892_v9, %v20502_v26  ;;  %v14893_v21 = vcombine.high %v6630_v30, %v6637_v16  ;;  %v6307_v46 = vrot.slane %v6293_v52, %v20507_v62  ;;  %v21960_v52 = vpop.permute.xlu1 %5610 }
 0x354   : > { %v14882_v25 = vcombine.high %v6284_v20, %v6291_v11  ;;  %v7197_v63 = vrot.slane %v7190_v55, %v20502_v26  ;;  %v6649_v36 = vrot.slane %v1673_v13, %v20502_v26  ;;  %v6656_v38 = vrot.slane %v6642_v15, %v20502_v26 }
 0x355   : > { %v7472_v35 = vcombine.low %v7447_v41, %v7455_v42  ;;  %v7463_v33 = vrot.slane %v7456_v12, %v20502_v26  ;;  %v7471_v9 = vrot.slane %v14893_v21, %v20502_v26  ;;  %v7206_v59 = vcombine.low %v6300_v57, %v6307_v46  ;;  %v21974_v21 = vpop.permute.xlu0 %3608 }
 0x356   : > { %v7205_v24 = vrot.slane %v14882_v25, %v20502_v26  ;;  %v14883_v16 = vcombine.high %v6300_v57, %v6307_v46  ;;  %v21954_v20 = vcombine.high %v3265_v1, %v3273_v50  ;;  %v26887_v11 = vcombine.low %v21117_v23, %v21120_v49  ;;  %v26889_v46 = vld [vmem:[#allocation110_spill] sm:$0xff] }
 0x357   : > { %v21952_v30 = vrot.slane %v7472_v35, %v20507_v62  ;;  %v7480_v15 = vcombine.low %v7463_v33, %v7471_v9  ;;  %v7213_v41 = vrot.slane %v7206_v59, %v20502_v26  ;;  %v26888_v25 = vcombine.high %v21117_v23, %v21120_v49  ;;  %v26890_v35 = vld [vmem:[#allocation111_spill] sm:$0xff] }
 0x358   : > { %26886 = vst [vmem:[#allocation92_spill] sm:$0xff] %v21954_v20  ;;  %v3299_v13 = vrot.slane %v26887_v11, %v20502_v26  ;;  %v7222_v42 = vcombine.low %v7197_v63, %v7205_v24  ;;  %v7221_v57 = vrot.slane %v14883_v16, %v20502_v26  ;;  %3626 = vrot.lane.b32.xlu1 %v21954_v20, %s19772_s20  ;;  %v26894_v16 = vld [vmem:[#allocation114_spill] sm:$0xff] }
 0x359   : > { %v3307_v55 = vrot.slane %v26888_v25, %v20502_v26  ;;  %v3308_v1 = vcombine.low %v21133_v40, %v21136_v29  ;;  %v6657_v50 = vcombine.high %v1675_v60, %v26745_v45  ;;  %v6664_v12 = vrot.slane %v1675_v60, %v20502_v26  ;;  %v22006_v60 = vpop.permute.xlu0 %5608 }
 0x35a   : > { %v21977_v59 = vrot.slane %v7480_v15, %v20507_v62  ;;  %v7229_v23 = vrot.slane %v7222_v42, %v20507_v62  ;;  %v26891_v63 = vcombine.low %v26889_v46, %v26890_v35  ;;  %v7230_v9 = vcombine.low %v7213_v41, %v7221_v57 }
 0x35b   : > { %v3316_v49 = vcombine.low %v3299_v13, %v3307_v55  ;;  %v3315_v40 = vrot.slane %v3308_v1, %v20507_v62  ;;  %v6671_v29 = vrot.slane %v6657_v50, %v20502_v26  ;;  %v6672_v24 = vcombine.low %v6649_v36, %v6664_v12  ;;  %v21993_v55 = vpop.permute.xlu1 %5642 }
 0x35c   : > { %v5281_v33 = vrot.slane %v26891_v63, %v20502_v26  ;;  %v6673_v13 = vcombine.high %v6649_v36, %v6664_v12  ;;  %v7237_v15 = vrot.slane %v7230_v9, %v20507_v62  ;;  %v26893_v50 = vcombine.high %v26889_v46, %v26890_v35 }
 0x35d   : > { %v3323_v11 = vrot.slane %v3316_v49, %v20507_v62  ;;  %v6680_v42 = vrot.slane %v6672_v24, %v20507_v62  ;;  %v6688_v25 = vcombine.low %v6656_v38, %v6671_v29  ;;  %v6689_v41 = vcombine.high %v6656_v38, %v6671_v29  ;;  %v26895_v49 = vld [vmem:[#allocation112_spill] sm:$0xff]  ;;  %v1679_v29 = vpop.f32.mrf.mxu1 }
 0x35e   : > { %v6687_v1 = vrot.slane %v6673_v13, %v20507_v62  ;;  %v5289_v63 = vrot.slane %v26893_v50, %v20502_v26  ;;  %v5290_v36 = vcombine.low %v26895_v49, %v26894_v16  ;;  %v7238_v12 = vcombine.low %v7229_v23, %v7237_v15 }
 0x35f   : > { %v21995_v57 = vcombine.low %v3315_v40, %v3323_v11  ;;  %v7239_v9 = vcombine.high %v7229_v23, %v7237_v15  ;;  %v6696_v24 = vrot.slane %v6688_v25, %v20507_v62  ;;  %v6703_v38 = vrot.slane %v6689_v41, %v20507_v62 }
 0x360   : > { %v7490_v13 = vcombine.low %v6680_v42, %v6687_v1  ;;  %v14894_v46 = vcombine.high %v6680_v42, %v6687_v1  ;;  %v5297_v35 = vrot.slane %v5290_v36, %v20507_v62  ;;  %v5298_v50 = vcombine.low %v5281_v33, %v5289_v63  ;;  %v26899_v63 = vld [vmem:[#allocation116_spill] sm:$0xff] }
 0x361   : > { %26892 = vst [vmem:[#allocation94_spill] sm:$0xff] %v21995_v57  ;;  %3596 = vrot.lane.b32.xlu0 %v21995_v57, %s19772_s20  ;;  %v26896_v23 = vcombine.low %v21912_v34, %v21917_v47  ;;  %v26897_v15 = vcombine.high %v21912_v34, %v21917_v47  ;;  %v7506_v41 = vcombine.low %v6696_v24, %v6703_v38  ;;  %v26900_v34 = vld [vmem:[#allocation117_spill] sm:$0xff] }
 0x362   : > { %v14895_v49 = vcombine.high %v6696_v24, %v6703_v38  ;;  %v7497_v31 = vrot.slane %v7490_v13, %v20502_v26  ;;  %v7505_v20 = vrot.slane %v14894_v46, %v20502_v26  ;;  %v5305_v57 = vrot.slane %v5298_v50, %v20507_v62  ;;  %v1681_v24 = vpop.f32.mrf.mxu1  ;;  %v22034_v38 = vpop.permute.xlu1 %3580  ;;  %v26903_v46 = vld [vmem:[#allocation119_spill] sm:$0xff]  ;;  %v26904_v50 = vld [vmem:[#allocation118_spill] sm:$0xff] }
 0x363   : > { %v15437_v16 = vpack.c.bf16 %v7238_v12, %v26896_v23  ;;  %v15477_v25 = vpack.c.bf16 %v7239_v9, %v26897_v15  ;;  %v22020_v42 = vcombine.high %v3315_v40, %v3323_v11  ;;  %v7513_v33 = vrot.slane %v7506_v41, %v20502_v26 }
 0x364   : > { %v7521_v1 = vrot.slane %v14895_v49, %v20502_v26  ;;  %v26901_v47 = vcombine.low %v26899_v63, %v26900_v34  ;;  %v26902_v12 = vcombine.high %v26899_v63, %v26900_v34  ;;  %v7522_v40 = vcombine.low %v7497_v31, %v7505_v20  ;;  %v22046_v49 = vpop.permute.xlu0 %5640 }
 0x365   : > { %26898 = vst [vmem:[#allocation93_spill] sm:$0xff] %v22020_v42  ;;  %15516 = vst [vmem:[%s21650_s28 + $0x18] sm:$0xff] %v15437_v16   ;;  %v22036_v11 = vcombine.low %v5297_v35, %v5305_v57  ;;  %3628 = vrot.lane.b32.xlu0 %v22020_v42, %s19772_s20  ;;  %v22040_v13 = vcombine.high %v5297_v35, %v5305_v57  ;;  %v5340_v23 = vcombine.low %v26904_v50, %v26903_v46 }
 0x366   : > { %15524 = vst [vmem:[%s21650_s28 + $0x58] sm:$0xff] %v15477_v25   ;;  %v5331_v36 = vrot.slane %v26901_v47, %v20502_v26  ;;  %v5339_v9 = vrot.slane %v26902_v12, %v20502_v26  ;;  %v7530_v16 = vcombine.low %v7513_v33, %v7521_v1  ;;  %v6708_v25 = vcombine.high %v1679_v29, %v26745_v45 }
 0x367   : > { %v6715_v41 = vrot.slane %v1679_v29, %v20502_v26  ;;  %v7529_v31 = vrot.slane %v7522_v40, %v20507_v62  ;;  %5626 = vrot.lane.b32.xlu1 %v22036_v11, %s19772_s20  ;;  %v5347_v20 = vrot.slane %v5340_v23, %v20507_v62  ;;  %v26905_v57 = vcombine.low %v21186_v61, %v21189_v56 }
 0x368   : > { %v5348_v15 = vcombine.low %v5331_v36, %v5339_v9  ;;  %v26906_v33 = vcombine.high %v21186_v61, %v21189_v56  ;;  %v7537_v29 = vrot.slane %v7530_v16, %v20507_v62  ;;  %v6722_v34 = vrot.slane %v6708_v25, %v20502_v26  ;;  %v1683_v36 = vpop.f32.mrf.mxu1  ;;  %v22072_v16 = vpop.permute.xlu1 %3582 }
 0x369   : > { %v3349_v35 = vrot.slane %v26905_v57, %v20502_v26  ;;  %v3358_v47 = vcombine.low %v21201_v8, %v21204_v6  ;;  %v6723_v9 = vcombine.high %v1681_v24, %v26745_v45  ;;  %v6730_v40 = vrot.slane %v1681_v24, %v20502_v26 }
 0x36a   : > { %v3357_v1 = vrot.slane %v26906_v33, %v20502_v26  ;;  %v5355_v63 = vrot.slane %v5348_v15, %v20507_v62  ;;  %v6774_v46 = vcombine.high %v1683_v36, %v26745_v45  ;;  %v7538_v50 = vcombine.low %v7529_v31, %v7537_v29 }
 0x36b   : > { %v7539_v61 = vcombine.high %v7529_v31, %v7537_v29  ;;  %5658 = vrot.lane.b32.xlu1 %v22040_v13, %s19772_s20  ;;  %v3365_v8 = vrot.slane %v3358_v47, %v20507_v62  ;;  %v6737_v24 = vrot.slane %v6723_v9, %v20502_v26  ;;  %v6738_v15 = vcombine.low %v6715_v41, %v6730_v40  ;;  %v1685_v9 = vpop.f32.mrf.mxu1 }
 0x36c   : > { %v3366_v12 = vcombine.low %v3349_v35, %v3357_v1  ;;  %v22068_v56 = vcombine.low %v5347_v20, %v5355_v63  ;;  %v22070_v23 = vcombine.high %v5347_v20, %v5355_v63  ;;  %v26909_v25 = vcombine.low %v21952_v30, %v21977_v59  ;;  %v22088_v1 = vpop.permute.xlu0 %3612 }
 0x36d   : > { %v26910_v20 = vcombine.high %v21952_v30, %v21977_v59  ;;  %v6739_v35 = vcombine.high %v6715_v41, %v6730_v40  ;;  %v6781_v33 = vrot.slane %v1683_v36, %v20502_v26  ;;  %v6746_v63 = vrot.slane %v6738_v15, %v20507_v62 }
 0x36e   : > { %26907 = vst [vmem:[#allocation98_spill] sm:$0xff] %v22068_v56  ;;  %26908 = vst [vmem:[#allocation97_spill] sm:$0xff] %v22070_v23  ;;  %v3373_v6 = vrot.slane %v3366_v12, %v20507_v62  ;;  %v15452_v31 = vpack.c.bf16 %v7538_v50, %v26909_v25  ;;  %5628 = vrot.lane.b32.xlu0 %v22068_v56, %s19772_s20  ;;  %v6754_v47 = vcombine.low %v6722_v34, %v6737_v24 }
 0x36f   : > { %v15492_v57 = vpack.c.bf16 %v7539_v61, %v26910_v20  ;;  %v6755_v12 = vcombine.high %v6722_v34, %v6737_v24  ;;  %v6753_v30 = vrot.slane %v6739_v35, %v20507_v62  ;;  %v6788_v59 = vrot.slane %v6774_v46, %v20502_v26 }
 0x370   : > { %v22090_v29 = vcombine.low %v3365_v8, %v3373_v6  ;;  %15519 = vst [vmem:[%s21650_s28 + $0x30] sm:$0xff] %v15452_v31   ;;  %v22097_v50 = vcombine.high %v3365_v8, %v3373_v6  ;;  %v26912_v41 = vcombine.low %v21254_v5, %v21257_v14  ;;  %v6762_v40 = vrot.slane %v6754_v47, %v20507_v62  ;;  %v22117_v31 = vpop.permute.xlu1 %3614 }
 0x371   : > { %15527 = vst [vmem:[%s21650_s28 + $0x70] sm:$0xff] %v15492_v57   ;;  %v6769_v34 = vrot.slane %v6755_v12, %v20507_v62  ;;  %v26913_v61 = vcombine.high %v21254_v5, %v21257_v14  ;;  %v3408_v46 = vcombine.low %v21269_v19, %v21272_v54  ;;  %v7540_v8 = vcombine.low %v6746_v63, %v6753_v30  ;;  %v22123_v12 = vpop.permute.xlu0 %5612 }
 0x372   : > { %26911 = vst [vmem:[#allocation99_spill] sm:$0xff] %v22097_v50  ;;  %v3399_v36 = vrot.slane %v26912_v41, %v20502_v26  ;;  %3598 = vrot.lane.b32.xlu1 %v22090_v29, %s19772_s20  ;;  %5660 = vrot.lane.b32.xlu0 %v22070_v23, %s19772_s20  ;;  %v14896_v6 = vcombine.high %v6746_v63, %v6753_v30 }
 0x373   : > { %v3407_v24 = vrot.slane %v26913_v61, %v20502_v26  ;;  %v6789_v15 = vcombine.high %v1685_v9, %v26745_v45  ;;  %v6796_v25 = vrot.slane %v1685_v9, %v20502_v26  ;;  %v7556_v20 = vcombine.low %v6762_v40, %v6769_v34 }
 0x374   : > { %v14897_v57 = vcombine.high %v6762_v40, %v6769_v34  ;;  %v3415_v35 = vrot.slane %v3408_v46, %v20507_v62  ;;  %v7547_v14 = vrot.slane %v7540_v8, %v20502_v26  ;;  %v7555_v19 = vrot.slane %v14896_v6, %v20502_v26  ;;  %v26915_v8 = vld [vmem:[#allocation122_spill] sm:$0xff]  ;;  %v26916_v6 = vld [vmem:[#allocation123_spill] sm:$0xff] }
 0x375   : > { %v3416_v5 = vcombine.low %v3399_v36, %v3407_v24  ;;  %v6803_v54 = vrot.slane %v6789_v15, %v20502_v26  ;;  %v6804_v47 = vcombine.low %v6781_v33, %v6796_v25  ;;  %v7563_v45 = vrot.slane %v7556_v20, %v20502_v26  ;;  %v22154_v23 = vpop.permute.xlu0 %5644 }
 0x376   : > { %v7571_v63 = vrot.slane %v14897_v57, %v20502_v26  ;;  %3630 = vrot.lane.b32.xlu1 %v22097_v50, %s19772_s20  ;;  %v6805_v30 = vcombine.high %v6781_v33, %v6796_v25  ;;  %v7572_v41 = vcombine.low %v7547_v14, %v7555_v19  ;;  %v26917_v15 = vcombine.low %v26915_v8, %v26916_v6  ;;  %v22145_v14 = vpop.permute.xlu1 %5614 }
 0x377   : > { %v3423_v9 = vrot.slane %v3416_v5, %v20507_v62  ;;  %v6812_v36 = vrot.slane %v6804_v47, %v20507_v62  ;;  %v6820_v40 = vcombine.low %v6788_v59, %v6803_v54  ;;  %v6821_v34 = vcombine.high %v6788_v59, %v6803_v54 }
 0x378   : > { %v7580_v61 = vcombine.low %v7563_v45, %v7571_v63  ;;  %v6819_v46 = vrot.slane %v6805_v30, %v20507_v62  ;;  %v5381_v20 = vrot.slane %v26917_v15, %v20502_v26  ;;  %v7579_v57 = vrot.slane %v7572_v41, %v20507_v62  ;;  %v26919_v45 = vld [vmem:[#allocation125_spill] sm:$0xff]  ;;  %v26920_v63 = vld [vmem:[#allocation124_spill] sm:$0xff] }
 0x379   : > { %v22131_v24 = vcombine.low %v3415_v35, %v3423_v9  ;;  %v6828_v5 = vrot.slane %v6820_v40, %v20507_v62  ;;  %v6835_v33 = vrot.slane %v6821_v34, %v20507_v62  ;;  %v26918_v59 = vcombine.high %v26915_v8, %v26916_v6 }
 0x37a   : > { %v7587_v19 = vrot.slane %v7580_v61, %v20507_v62  ;;  %v7590_v54 = vcombine.low %v6812_v36, %v6819_v46  ;;  %v14898_v47 = vcombine.high %v6812_v36, %v6819_v46  ;;  %v5390_v30 = vcombine.low %v26920_v63, %v26919_v45 }
 0x37b   : > { %26914 = vst [vmem:[#allocation102_spill] sm:$0xff] %v22131_v24  ;;  %v5389_v25 = vrot.slane %v26918_v59, %v20502_v26  ;;  %3600 = vrot.lane.b32.xlu0 %v22131_v24, %s19772_s20  ;;  %v7606_v41 = vcombine.low %v6828_v5, %v6835_v33  ;;  %v14899_v40 = vcombine.high %v6828_v5, %v6835_v33 }
 0x37c   : > { %v22152_v15 = vcombine.high %v3415_v35, %v3423_v9  ;;  %v7588_v8 = vcombine.low %v7579_v57, %v7587_v19  ;;  %v7589_v6 = vcombine.high %v7579_v57, %v7587_v19  ;;  %v7597_v59 = vrot.slane %v7590_v54, %v20502_v26  ;;  %v26922_v35 = vld [vmem:[#allocation128_spill] sm:$0xff]  ;;  %v26926_v19 = vld [vmem:[#allocation129_spill] sm:$0xff] }
 0x37d   : > { %v5398_v34 = vcombine.low %v5381_v20, %v5389_v25  ;;  %v7605_v61 = vrot.slane %v14898_v47, %v20502_v26  ;;  %v7613_v24 = vrot.slane %v7606_v41, %v20502_v26  ;;  %v7621_v36 = vrot.slane %v14899_v40, %v20502_v26  ;;  %v26925_v25 = vld [vmem:[#allocation130_spill] sm:$0xff] }
 0x37e   : > { %26921 = vst [vmem:[#allocation100_spill] sm:$0xff] %v22152_v15  ;;  %v5397_v46 = vrot.slane %v5390_v30, %v20507_v62  ;;  %v26923_v9 = vcombine.low %v21261_v32, %v26922_v35  ;;  %v26924_v57 = vcombine.high %v21261_v32, %v26922_v35  ;;  %v5440_v54 = vcombine.low %v26926_v19, %v26925_v25  ;;  %v26932_v35 = vld [vmem:[#allocation134_spill] sm:$0xff] }
 0x37f   : > { %v5405_v45 = vrot.slane %v5398_v34, %v20507_v62  ;;  %v7622_v5 = vcombine.low %v7597_v59, %v7605_v61  ;;  %3632 = vrot.lane.b32.xlu0 %v22152_v15, %s19772_s20  ;;  %v7630_v47 = vcombine.low %v7613_v24, %v7621_v36  ;;  %v26929_v41 = vcombine.low %v21321_v37, %v21324_v18  ;;  %v22182_v34 = vpop.permute.xlu1 %5646 }
 0x380   : > { %v5431_v20 = vrot.slane %v26923_v9, %v20502_v26  ;;  %v5439_v33 = vrot.slane %v26924_v57, %v20502_v26  ;;  %v5447_v32 = vrot.slane %v5440_v54, %v20507_v62  ;;  %v26930_v24 = vcombine.high %v21321_v37, %v21324_v18  ;;  %v22203_v18 = vpop.permute.xlu0 %3584  ;;  %v26935_v54 = vld [vmem:[#allocation133_spill] sm:$0xff] }
 0x381   : > { %v22174_v63 = vcombine.low %v5397_v46, %v5405_v45  ;;  %v22176_v30 = vcombine.high %v5397_v46, %v5405_v45  ;;  %v3449_v40 = vrot.slane %v26929_v41, %v20502_v26  ;;  %v7629_v59 = vrot.slane %v7622_v5, %v20507_v62  ;;  %v26931_v45 = vld [vmem:[#allocation135_spill] sm:$0xff] }
 0x382   : > { %v5448_v61 = vcombine.low %v5431_v20, %v5439_v33  ;;  %v3457_v36 = vrot.slane %v26930_v24, %v20502_v26  ;;  %v7637_v46 = vrot.slane %v7630_v47, %v20507_v62  ;;  %v3458_v9 = vcombine.low %v26932_v35, %v26931_v45  ;;  %v26936_v47 = vld [vmem:[#allocation136_spill] sm:$0xff] }
 0x383   : > { %26927 = vst [vmem:[#allocation104_spill] sm:$0xff] %v22174_v63  ;;  %26928 = vst [vmem:[#allocation105_spill] sm:$0xff] %v22176_v30  ;;  %5630 = vrot.lane.b32.xlu1 %v22174_v63, %s19772_s20  ;;  %v26933_v5 = vcombine.low %v21390_v2, %v21393_v43  ;;  %v26934_v20 = vcombine.high %v21390_v2, %v21393_v43  ;;  %v3508_v19 = vcombine.low %v21405_v39, %v21408_v51  ;;  %v26938_v43 = vld [vmem:[#allocation151_spill] sm:$0xff]  ;;  %v1688_v51 = vld [vmem:[%s20115_s27] sm:$0xff] }
 0x384   : > { %v5455_v33 = vrot.slane %v5448_v61, %v20507_v62  ;;  %v3466_v25 = vcombine.low %v3449_v40, %v3457_v36  ;;  %v26937_v41 = vcombine.low %v26935_v54, %v26936_v47  ;;  %v7638_v45 = vcombine.low %v7629_v59, %v7637_v46 }
 0x385   : > { %v3499_v57 = vrot.slane %v26933_v5, %v20502_v26  ;;  %v3507_v37 = vrot.slane %v26934_v20, %v20502_v26  ;;  %v7639_v35 = vcombine.high %v7629_v59, %v7637_v46  ;;  %v3465_v5 = vrot.slane %v3458_v9, %v20507_v62  ;;  %v26939_v20 = vld [vmem:[#allocation148_spill] sm:$0xff]  ;;  %v1704_v59 = vld [vmem:[%s22221_s6] sm:$0xff] }
 0x386   : > { %v5481_v24 = vrot.slane %v26937_v41, %v20502_v26  ;;  %v22215_v63 = vcombine.low %v5447_v32, %v5455_v33  ;;  %v3473_v40 = vrot.slane %v3466_v25, %v20507_v62  ;;  %v3515_v39 = vrot.slane %v3508_v19, %v20507_v62  ;;  %v26944_v41 = vld [vmem:[#allocation137_spill] sm:$0xff] }
 0x387   : > { %v3516_v2 = vcombine.low %v3499_v57, %v3507_v37  ;;  %v15457_v61 = vpack.c.bf16 %v7638_v45, %v7588_v8  ;;  %v15497_v36 = vpack.c.bf16 %v7639_v35, %v7589_v6  ;;  %5662 = vrot.lane.b32.xlu1 %v22176_v30, %s19772_s20  ;;  %v26941_v9 = vcombine.high %v26935_v54, %v26936_v47  ;;  %v22231_v37 = vpop.permute.xlu1 %3586  ;;  %v26943_v6 = vld [vmem:[#allocation138_spill] sm:$0xff]  ;;  %v26951_v30 = vld [vmem:[#allocation143_spill] sm:$0xff] }
 0x388   : > { %26940 = vst [vmem:[#allocation108_spill] sm:$0xff] %v22215_v63  ;;  %5632 = vrot.lane.b32.xlu0 %v22215_v63, %s19772_s20  ;;  %v22235_v25 = vcombine.high %v5447_v32, %v5455_v33  ;;  %v22237_v19 = vcombine.low %v3465_v5, %v3473_v40  ;;  %v22239_v8 = vcombine.high %v3465_v5, %v3473_v40  ;;  %v22244_v35 = vld [vmem:[%s20115_s27 + $0x8] sm:$0xff]  ;;  %v22255_v33 = vpop.permute.xlu0 %3616  ;;  %v26947_v40 = vld [vmem:[#allocation140_spill] sm:$0xff] }
 0x389   : > { %v3523_v46 = vrot.slane %v3516_v2, %v20507_v62  ;;  %v5489_v57 = vrot.slane %v26941_v9, %v20502_v26  ;;  %v5490_v45 = vcombine.low %v26944_v41, %v26943_v6  ;;  %v22247_v2 = vld [vmem:[%s22221_s6 + $0x8] sm:$0xff]  ;;  %15520 = vst [vmem:[%s21650_s28 + $0x38] sm:$0xff] %v15457_v61   ;;  %15528 = vst [vmem:[%s21650_s28 + $0x78] sm:$0xff] %v15497_v36   ;;  %v26946_v9 = vld [vmem:[#allocation85_spill] sm:$0xff] }
 0x38a   : > { %26942 = vst [vmem:[#allocation106_spill] sm:$0xff] %v22237_v19  ;;  %v3640_v15 = vmul.f32 %v26946_v9, %v1688_v51  ;;  %v3672_v32 = vmul.f32 %v21942_v58, %v1704_v59  ;;  %v26948_v6 = vld [vmem:[#allocation141_spill] sm:$0xff] }
 0x38b   : > { %v22251_v54 = vcombine.low %v3515_v39, %v3523_v46  ;;  %v5498_v47 = vcombine.low %v5481_v24, %v5489_v57  ;;  %v5497_v5 = vrot.slane %v5490_v45, %v20507_v62  ;;  %v26949_v41 = vcombine.low %v26947_v40, %v26948_v6  ;;  %v26952_v24 = vld [vmem:[#allocation142_spill] sm:$0xff]  ;;  %3602 = vrot.lane.b32.xlu1 %v22237_v19, %s19772_s20  ;;  %v26954_v45 = vld [vmem:[#allocation91_spill] sm:$0xff]  ;;  %v22292_v42 = vpop.permute.xlu1 %3618 }
 0x38c   : > { %v26950_v61 = vcombine.high %v26947_v40, %v26948_v6  ;;  %v5540_v57 = vcombine.low %v26952_v24, %v26951_v30  ;;  %v22271_v9 = vadd.f32 %v3672_v32, %v3640_v15  ;;  %v3641_v56 = vmul.f32 %v26954_v45, %v22244_v35  ;;  %5664 = vrot.lane.b32.xlu0 %v22235_v25, %s19772_s20  ;;  %v26955_v30 = vld [vmem:[#allocation90_spill] sm:$0xff]  ;;  %v26958_v45 = vld [vmem:[#allocation147_spill] sm:$0xff] }
 0x38d   : > { %26945 = vst [vmem:[#allocation110_spill] sm:$0xff] %v22251_v54  ;;  %v5531_v63 = vrot.slane %v26949_v41, %v20502_v26  ;;  %v5505_v58 = vrot.slane %v5498_v47, %v20507_v62  ;;  %v3673_v41 = vmul.f32 %v21909_v3, %v22247_v2  ;;  %v3688_v24 = vmul.f32 %v21974_v21, %v1704_v59  ;;  %v26957_v32 = vld [vmem:[#allocation146_spill] sm:$0xff] }
 0x38e   : > { %v5539_v36 = vrot.slane %v26950_v61, %v20502_v26  ;;  %26953 = vst [vmem:[#allocation111_spill] sm:$0xff] %v22271_v9  ;;  %v5547_v40 = vrot.slane %v5540_v57, %v20507_v62  ;;  %v3656_v61 = vmul.f32 %v26955_v30, %v1688_v51  ;;  %v22284_v15 = vcombine.high %v3515_v39, %v3523_v46  ;;  %v26962_v39 = vld [vmem:[#allocation150_spill] sm:$0xff]  ;;  %v26963_v46 = vld [vmem:[#allocation149_spill] sm:$0xff] }
 0x38f   : > { %v22282_v19 = vcombine.low %v5497_v5, %v5505_v58  ;;  %v22286_v47 = vadd.f32 %v3673_v41, %v3641_v56  ;;  %v26959_v3 = vcombine.low %v26957_v32, %v26958_v45  ;;  %v26961_v21 = vcombine.high %v26957_v32, %v26958_v45  ;;  %3634 = vrot.lane.b32.xlu1 %v22239_v8, %s19772_s20 }
 0x390   : > { %v5548_v6 = vcombine.low %v5531_v63, %v5539_v36  ;;  %v22295_v63 = vadd.f32 %v3688_v24, %v3656_v61  ;;  %v3558_v56 = vcombine.low %v26963_v46, %v26962_v39  ;;  %v22305_v41 = vcombine.high %v5497_v5, %v5505_v58  ;;  %3604 = vrot.lane.b32.xlu0 %v22251_v54, %s19772_s20  ;;  %v26965_v58 = vld [vmem:[#allocation96_spill] sm:$0xff] }
 0x391   : > { %26956 = vst [vmem:[#allocation114_spill] sm:$0xff] %v22286_v47  ;;  %v3549_v50 = vrot.slane %v26959_v3, %v20502_v26  ;;  %v3557_v36 = vrot.slane %v26961_v21, %v20502_v26  ;;  %v3689_v24 = vmul.f32 %v21932_v10, %v22247_v2  ;;  %v22313_v3 = vpop.permute.xlu0 %5616  ;;  %v5672_v21 = vmul.f32 %v26965_v58, %v1688_v51  ;;  %v26967_v10 = vld [vmem:[#allocation103_spill] sm:$0xff]  ;;  %v26968_v47 = vld [vmem:[#allocation101_spill] sm:$0xff] }
 0x392   : > { %v5555_v57 = vrot.slane %v5548_v6, %v20507_v62  ;;  %26960 = vst [vmem:[#allocation112_spill] sm:$0xff] %v22295_v63  ;;  %v26964_v6 = vld [vmem:[#allocation95_spill] sm:$0xff]  ;;  %v3565_v45 = vrot.slane %v3558_v56, %v20507_v62  ;;  %v5704_v46 = vmul.f32 %v22006_v60, %v1704_v59  ;;  %v5705_v30 = vmul.f32 %v21960_v52, %v22247_v2  ;;  %v1691_v60 = vld [vmem:[%s20115_s27 + $0x18] sm:$0xff] }
 0x393   : > { %v3657_v61 = vmul.f32 %v26964_v6, %v22244_v35  ;;  %v3566_v5 = vcombine.low %v3549_v50, %v3557_v36  ;;  %v5673_v6 = vmul.f32 %v26967_v10, %v22244_v35  ;;  %v5688_v54 = vmul.f32 %v26968_v47, %v1688_v51  ;;  %5634 = vrot.lane.b32.xlu1 %v22282_v19, %s19772_s20  ;;  %v1706_v47 = vld [vmem:[%s22221_s6 + $0x10] sm:$0xff] }
 0x394   : > { %v22317_v32 = vcombine.low %v5547_v40, %v5555_v57  ;;  %v5720_v56 = vmul.f32 %v22046_v49, %v1704_v59  ;;  %v26969_v50 = vcombine.low %v26939_v20, %v26938_v43  ;;  %v26970_v51 = vcombine.high %v26939_v20, %v26938_v43  ;;  %v1690_v59 = vld [vmem:[%s20115_s27 + $0x10] sm:$0xff]  ;;  %3636 = vrot.lane.b32.xlu0 %v22284_v15, %s19772_s20 }
 0x395   : > { %v22321_v39 = vadd.f32 %v3689_v24, %v3657_v61  ;;  %v3573_v9 = vrot.slane %v3566_v5, %v20507_v62  ;;  %v5736_v61 = vadd.f32 %v5704_v46, %v5672_v21  ;;  %v5737_v52 = vadd.f32 %v5705_v30, %v5673_v6  ;;  %v22345_v24 = vpop.permute.xlu1 %5618  ;;  %v26971_v46 = vld [vmem:[#allocation153_spill] sm:$0xff]  ;;  %v26972_v30 = vld [vmem:[#allocation152_spill] sm:$0xff]  ;;  %v26973_v43 = vld [vmem:[#allocation107_spill] sm:$0xff]  ;;  %v22361_v63 = vpop.permute.xlu0 %5648 }
 0x396   : > { %v5581_v36 = vrot.slane %v26969_v50, %v20502_v26  ;;  %v5589_v49 = vrot.slane %v26970_v51, %v20502_v26  ;;  %v22349_v5 = vcombine.high %v5547_v40, %v5555_v57  ;;  %v5752_v21 = vadd.f32 %v5720_v56, %v5688_v54  ;;  %v1707_v26 = vld [vmem:[%s22221_s6 + $0x18] sm:$0xff]  ;;  %v26974_v57 = vld [vmem:[#allocation109_spill] sm:$0xff] }
 0x397   : > { %26966 = vst [vmem:[#allocation116_spill] sm:$0xff] %v22321_v39  ;;  %v22351_v58 = vcombine.low %v3565_v45, %v3573_v9  ;;  %v5590_v10 = vcombine.low %v26972_v30, %v26971_v46  ;;  %v15342_v6 = vpack.c.bf16 %v5737_v52, %v5736_v61  ;;  %v5689_v20 = vmul.f32 %v26973_v43, %v22244_v35  ;;  %v26975_v61 = vld [vmem:[#allocation113_spill] sm:$0xff]  ;;  %v26976_v52 = vld [vmem:[#allocation115_spill] sm:$0xff] }
 0x398   : > { %v5598_v50 = vcombine.low %v5581_v36, %v5589_v49  ;;  %v5721_v51 = vmul.f32 %v21993_v55, %v22247_v2  ;;  %v3658_v54 = vmul.f32 %v26974_v57, %v1690_v59  ;;  %v3690_v56 = vmul.f32 %v22088_v1, %v1706_v47  ;;  %5666 = vrot.lane.b32.xlu1 %v22305_v41, %s19772_s20  ;;  %v26978_v30 = vld [vmem:[#allocation121_spill] sm:$0xff] }
 0x399   : > { %v5597_v40 = vrot.slane %v5590_v10, %v20507_v62  ;;  %v3642_v36 = vmul.f32 %v26975_v61, %v1690_v59  ;;  %15343 = vst [vmem:[%s22371_s24] sm:$0xff] %v15342_v6   ;;  %v3674_v2 = vmul.f32 %v22034_v38, %v1706_v47  ;;  %v5674_v49 = vmul.f32 %v26976_v52, %v1690_v59  ;;  %v1692_v6 = vld [vmem:[%s20115_s27 + $0x20] sm:$0xff]  ;;  %v22392_v61 = vpop.permute.xlu1 %5650 }
 0x39a   : > { %v5605_v55 = vrot.slane %v5598_v50, %v20507_v62  ;;  %v5753_v35 = vadd.f32 %v5721_v51, %v5689_v20  ;;  %5636 = vrot.lane.b32.xlu0 %v22317_v32, %s19772_s20  ;;  %v22379_v1 = vadd.f32 %v3690_v56, %v3658_v54  ;;  %v5706_v46 = vmul.f32 %v22123_v12, %v1706_v47  ;;  %v1708_v57 = vld [vmem:[%s22221_s6 + $0x20] sm:$0xff] }
 0x39b   : > { %v3643_v10 = vmul.f32 %v26978_v30, %v1691_v60  ;;  %v3675_v43 = vmul.f32 %v22072_v16, %v1707_v26  ;;  %v22386_v50 = vcombine.high %v3565_v45, %v3573_v9  ;;  %v22390_v51 = vadd.f32 %v3674_v2, %v3642_v36  ;;  %v26981_v16 = vld [vmem:[#allocation126_spill] sm:$0xff]  ;;  %v26984_v2 = vld [vmem:[#allocation132_spill] sm:$0xff] }
 0x39c   : > { %26977 = vst [vmem:[#allocation117_spill] sm:$0xff] %v22379_v1  ;;  %v22388_v20 = vcombine.low %v5597_v40, %v5605_v55  ;;  %v15382_v38 = vpack.c.bf16 %v5753_v35, %v5752_v21  ;;  %v22394_v54 = vcombine.high %v5597_v40, %v5605_v55  ;;  %v5738_v56 = vadd.f32 %v5706_v46, %v5674_v49  ;;  %v26982_v21 = vld [vmem:[#allocation127_spill] sm:$0xff]  ;;  %v3589_v55 = vpop.permute.xlu0 %3588 }
 0x39d   : > { %26979 = vst [vmem:[#allocation119_spill] sm:$0xff] %v22390_v51  ;;  %v22396_v52 = vadd.f32 %v3675_v43, %v3643_v10  ;;  %v5722_v12 = vmul.f32 %v22154_v23, %v1706_v47  ;;  %3606 = vrot.lane.b32.xlu1 %v22351_v58, %s19772_s20  ;;  %v3659_v9 = vmul.f32 %v26981_v16, %v1691_v60  ;;  %v26983_v47 = vld [vmem:[#allocation120_spill] sm:$0xff]  ;;  %v1709_v16 = vld [vmem:[%s22221_s6 + $0x28] sm:$0xff]  ;;  %v22665_v62 = vmov 0.0  }
 0x39e   : > { %15506 = vst [vmem:[%s22371_s24 + $0x40] sm:$0xff] %v15382_v38   ;;  %v3691_v45 = vmul.f32 %v22117_v31, %v1707_v26  ;;  %v3644_v36 = vmul.f32 %v26982_v21, %v1692_v6  ;;  %v3676_v40 = vmul.f32 %v22203_v18, %v1708_v57  ;;  %5668 = vrot.lane.b32.xlu0 %v22349_v5, %s19772_s20  ;;  %v26987_v18 = vld [vmem:[#allocation131_spill] sm:$0xff]  ;;  %v1693_v38 = vld [vmem:[%s20115_s27 + $0x28] sm:$0xff]  ;;  %v22715_v1 = vmov 0.0  }
 0x39f   : > { %26980 = vst [vmem:[#allocation118_spill] sm:$0xff] %v22396_v52  ;;  %v5690_v35 = vmul.f32 %v26983_v47, %v1690_v59  ;;  %v5675_v49 = vmul.f32 %v26984_v2, %v1691_v60  ;;  %v5707_v46 = vmul.f32 %v22145_v14, %v1707_v26  ;;  %v3660_v10 = vmul.f32 %v26987_v18, %v1692_v6  ;;  %v26988_v59 = vld [vmem:[#allocation139_spill] sm:$0xff]  ;;  %v26992_v18 = vld [vmem:[#allocation144_spill] sm:$0xff] }
 0x3a0   : > { %v22413_v30 = vadd.f32 %v3691_v45, %v3659_v9  ;;  %v22415_v31 = vadd.f32 %v3676_v40, %v3644_v36  ;;  %v3692_v43 = vmul.f32 %v22255_v33, %v1708_v57  ;;  %v5691_v47 = vmul.f32 %v26988_v59, %v1691_v60  ;;  %v26990_v45 = vld [vmem:[#allocation84_spill] sm:$0xff]  ;;  %v1710_v40 = vld [vmem:[%s22221_s6 + $0x30] sm:$0xff] }
 0x3a1   : > { %v5754_v21 = vadd.f32 %v5722_v12, %v5690_v35  ;;  %v5739_v23 = vadd.f32 %v5707_v46, %v5675_v49  ;;  %v5723_v2 = vmul.f32 %v22182_v34, %v1707_v26  ;;  %3638 = vrot.lane.b32.xlu1 %v22386_v50, %s19772_s20  ;;  %v5676_v33 = vmul.f32 %v26990_v45, %v1692_v6  ;;  %v1694_v12 = vld [vmem:[%s20115_s27 + $0x30] sm:$0xff]  ;;  %v3591_v35 = vpop.permute.xlu1 %3590  ;;  %v26991_v46 = vld [vmem:[#allocation145_spill] sm:$0xff] }
 0x3a2   : > { %26985 = vst [vmem:[#allocation122_spill] sm:$0xff] %v22413_v30  ;;  %26986 = vst [vmem:[#allocation123_spill] sm:$0xff] %v22415_v31  ;;  %v22427_v9 = vadd.f32 %v3692_v43, %v3660_v10  ;;  %v5708_v36 = vmul.f32 %v22313_v3, %v1708_v57  ;;  %v3645_v26 = vmul.f32 %v26991_v46, %v1693_v38  ;;  %v26993_v43 = vld [vmem:[#allocation154_spill] sm:$0xff]  ;;  %v3621_v3 = vpop.permute.xlu0 %3620  ;;  %v22711_v31 = vmov 0.0  }
 0x3a3   : > { %v15347_v49 = vpack.c.bf16 %v5739_v23, %v5738_v56  ;;  %v5755_v60 = vadd.f32 %v5723_v2, %v5691_v47  ;;  %v3677_v34 = vmul.f32 %v22231_v37, %v1709_v16  ;;  %v5692_v59 = vmul.f32 %v26992_v18, %v1692_v6  ;;  %v26995_v47 = vld [vmem:[#allocation155_spill] sm:$0xff]  ;;  %v1711_v18 = vld [vmem:[%s22221_s6 + $0x38] sm:$0xff] }
 0x3a4   : > { %26989 = vst [vmem:[#allocation125_spill] sm:$0xff] %v22427_v9  ;;  %v5724_v10 = vmul.f32 %v22361_v63, %v1708_v57  ;;  %v3661_v14 = vmul.f32 %v26993_v43, %v1693_v38  ;;  %v3693_v45 = vmul.f32 %v22292_v42, %v1709_v16  ;;  %v3646_v2 = vmul.f32 %v26995_v47, %v1694_v12  ;;  %v26997_v63 = vld [vmem:[#allocation87_spill] sm:$0xff] }
 0x3a5   : > { %15499 = vst [vmem:[%s22371_s24 + $0x8] sm:$0xff] %v15347_v49   ;;  %v15387_v56 = vpack.c.bf16 %v5755_v60, %v5754_v21  ;;  %v22441_v23 = vadd.f32 %v3677_v34, %v3645_v26  ;;  %v3678_v37 = vmul.f32 %v3589_v55, %v1710_v40  ;;  %5638 = vrot.lane.b32.xlu1 %v22388_v20, %s19772_s20  ;;  %v26999_v60 = vld [vmem:[#allocation86_spill] sm:$0xff]  ;;  %v1695_v55 = vld [vmem:[%s20115_s27 + $0x38] sm:$0xff]  ;;  %v3623_v43 = vpop.permute.xlu1 %3622  ;;  %v22663_v49 = vmov 0.0  }
 0x3a6   : > { %v5740_v6 = vadd.f32 %v5708_v36, %v5676_v33  ;;  %v22446_v46 = vadd.f32 %v3693_v45, %v3661_v14  ;;  %v5677_v57 = vmul.f32 %v26997_v63, %v1693_v38  ;;  %v5709_v42 = vmul.f32 %v22345_v24, %v1709_v16 }
 0x3a7   : > { %26994 = vst [vmem:[#allocation124_spill] sm:$0xff] %v22441_v23  ;;  %15507 = vst [vmem:[%s22371_s24 + $0x48] sm:$0xff] %v15387_v56   ;;  %v22453_v21 = vadd.f32 %v3678_v37, %v3646_v2  ;;  %v3662_v26 = vmul.f32 %v26999_v60, %v1694_v12  ;;  %v3694_v34 = vmul.f32 %v3621_v3, %v1710_v40  ;;  %v22661_v14 = vmov 0.0  }
 0x3a8   : > { %26996 = vst [vmem:[#allocation128_spill] sm:$0xff] %v22446_v46  ;;  %v5741_v33 = vadd.f32 %v5709_v42, %v5677_v57  ;;  %v5693_v36 = vmul.f32 %v21613_v44, %v1693_v38  ;;  %v5725_v24 = vmul.f32 %v22392_v61, %v1709_v16  ;;  %v5756_v45 = vadd.f32 %v5724_v10, %v5692_v59  ;;  %v5621_v10 = vpop.permute.xlu0 %5620  ;;  %v1701_v59 = vld [vmem:[%s20115_s27 + $0x68] sm:$0xff] }
 0x3a9   : > { %26998 = vst [vmem:[#allocation130_spill] sm:$0xff] %v22453_v21  ;;  %v22462_v56 = vadd.f32 %v3694_v34, %v3662_v26  ;;  %5670 = vrot.lane.b32.xlu1 %v22394_v54, %s19772_s20  ;;  %v3647_v2 = vmul.f32 %v21698_v0, %v1695_v55  ;;  %v3679_v37 = vmul.f32 %v3591_v35, %v1711_v18  ;;  %v22703_v21 = vmov 0.0  }
 0x3aa   : > { %v15352_v3 = vpack.c.bf16 %v5741_v33, %v5740_v6  ;;  %v5757_v47 = vadd.f32 %v5725_v24, %v5693_v36  ;;  %v3663_v63 = vmul.f32 %v21736_v17, %v1695_v55  ;;  %v3695_v57 = vmul.f32 %v3623_v43, %v1711_v18 }
 0x3ab   : > { %27000 = vst [vmem:[#allocation129_spill] sm:$0xff] %v22462_v56  ;;  %v22469_v38 = vadd.f32 %v3679_v37, %v3647_v2  ;;  %v5710_v0 = vmul.f32 %v5621_v10, %v1710_v40  ;;  %v5678_v17 = vmul.f32 %v21644_v48, %v1694_v12  ;;  %v5679_v42 = vmul.f32 %v21843_v27, %v1695_v55  ;;  %v1712_v37 = vld [vmem:[%s22221_s6 + $0x40] sm:$0xff] }
 0x3ac   : > { %15500 = vst [vmem:[%s22371_s24 + $0x10] sm:$0xff] %v15352_v3   ;;  %v15392_v44 = vpack.c.bf16 %v5757_v47, %v5756_v45  ;;  %v22471_v61 = vadd.f32 %v3695_v57, %v3663_v63  ;;  %v5653_v35 = vpop.permute.xlu0 %5652  ;;  %v5694_v24 = vmul.f32 %v21669_v7, %v1694_v12  ;;  %v5695_v45 = vmul.f32 %v21849_v53, %v1695_v55  ;;  %v1696_v57 = vld [vmem:[%s20115_s27 + $0x40] sm:$0xff] }
 0x3ad   : > { %27001 = vst [vmem:[#allocation135_spill] sm:$0xff] %v22469_v38  ;;  %v5742_v26 = vadd.f32 %v5710_v0, %v5678_v17  ;;  %v5726_v34 = vmul.f32 %v5653_v35, %v1710_v40  ;;  %v1697_v40 = vld [vmem:[%s20115_s27 + $0x48] sm:$0xff]  ;;  %v3648_v35 = vmul.f32 %v21769_v4, %v1696_v57  ;;  %v22699_v56 = vmov 0.0  }
 0x3ae   : > { %27002 = vst [vmem:[#allocation134_spill] sm:$0xff] %v22471_v61  ;;  %15508 = vst [vmem:[%s22371_s24 + $0x50] sm:$0xff] %v15392_v44   ;;  %v5623_v6 = vpop.permute.xlu1 %5622  ;;  %v1713_v44 = vld [vmem:[%s22221_s6 + $0x48] sm:$0xff]  ;;  %v3649_v7 = vmul.f32 %v21928_v22, %v1697_v40  ;;  %v22701_v61 = vmov 0.0   ;;  %v22705_v38 = vmov 0.0   ;;  %v22707_v9 = vmov 0.0  }
 0x3af   : > { %v5711_v60 = vmul.f32 %v5623_v6, %v1711_v18  ;;  %v5758_v47 = vadd.f32 %v5726_v34, %v5694_v24  ;;  %v27005_v34 = vld [vmem:[#allocation92_spill] sm:$0xff]  ;;  %v1700_v6 = vld [vmem:[%s20115_s27 + $0x60] sm:$0xff]  ;;  %v22709_v46 = vmov 0.0   ;;  %v22713_v23 = vmov 0.0  }
 0x3b0   : > { %v3593_v27 = vpop.permute.xlu0 %3592  ;;  %v22717_v30 = vmov 0.0   ;;  %v22719_v51 = vmov 0.0   ;;  %v22721_v52 = vmov 0.0   ;;  %v22723_v39 = vmov 0.0  }
 0x3b1   : > { %v5743_v33 = vadd.f32 %v5711_v60, %v5679_v42  ;;  %v3680_v10 = vmul.f32 %v3593_v27, %v1712_v37  ;;  %v3664_v60 = vmul.f32 %v21809_v28, %v1696_v57 }
 0x3b2   : > { %v5655_v36 = vpop.permute.xlu1 %5654 }
 0x3b3   : > { %v15357_v43 = vpack.c.bf16 %v5743_v33, %v5742_v26  ;;  %v5727_v3 = vmul.f32 %v5655_v36, %v1711_v18  ;;  %v22490_v55 = vadd.f32 %v3680_v10, %v3648_v35  ;;  %v3665_v33 = vmul.f32 %v27005_v34, %v1697_v40  ;;  %v1714_v35 = vld [vmem:[%s22221_s6 + $0x50] sm:$0xff] }
 0x3b4   : > { %v3625_v63 = vpop.permute.xlu0 %3624 }
 0x3b5   : > { %15501 = vst [vmem:[%s22371_s24 + $0x18] sm:$0xff] %v15357_v43   ;;  %v5759_v48 = vadd.f32 %v5727_v3, %v5695_v45  ;;  %27003 = vst [vmem:[#allocation133_spill] sm:$0xff] %v22490_v55  ;;  %v3696_v17 = vmul.f32 %v3625_v63, %v1712_v37  ;;  %v22695_v55 = vmov 0.0  }
 0x3b7   : > { %v15397_v2 = vpack.c.bf16 %v5759_v48, %v5758_v47  ;;  %v22498_v36 = vadd.f32 %v3696_v17, %v3664_v60  ;;  %v27008_v48 = vld [vmem:[#allocation89_spill] sm:$0xff] }
 0x3b8   : > { %v5625_v53 = vpop.permute.xlu0 %5624  ;;  %v5680_v28 = vmul.f32 %v27008_v48, %v1696_v57  ;;  %v1715_v48 = vld [vmem:[%s22221_s6 + $0x58] sm:$0xff] }
 0x3b9   : > { %15509 = vst [vmem:[%s22371_s24 + $0x58] sm:$0xff] %v15397_v2   ;;  %27006 = vst [vmem:[#allocation151_spill] sm:$0xff] %v22498_v36  ;;  %v5712_v45 = vmul.f32 %v5625_v53, %v1712_v37  ;;  %v5681_v2 = vmul.f32 %v22036_v11, %v1697_v40  ;;  %v5697_v53 = vmul.f32 %v22040_v13, %v1697_v40  ;;  %v22691_v36 = vmov 0.0  }
 0x3bb   : > { %v5744_v63 = vadd.f32 %v5712_v45, %v5680_v28 }
 0x3bc   : > { %v5657_v26 = vpop.permute.xlu0 %5656 }
 0x3bd   : > { %v5728_v10 = vmul.f32 %v5657_v26, %v1712_v37  ;;  %v27010_v37 = vld [vmem:[#allocation94_spill] sm:$0xff] }
 0x3c5   : > { %v3595_v0 = vpop.permute.xlu1 %3594 }
 0x3c6   : > { %v3681_v12 = vmul.f32 %v3595_v0, %v1713_v44 }
 0x3c8   : > { %v22492_v18 = vadd.f32 %v3681_v12, %v3649_v7  ;;  %v27009_v12 = vld [vmem:[#allocation88_spill] sm:$0xff] }
 0x3c9   : > { %v5696_v17 = vmul.f32 %v27009_v12, %v1696_v57 }
 0x3ca   : > { %27004 = vst [vmem:[#allocation136_spill] sm:$0xff] %v22492_v18  ;;  %v3627_v42 = vpop.permute.xlu1 %3626  ;;  %v22697_v18 = vmov 0.0  }
 0x3cb   : > { %v3697_v4 = vmul.f32 %v3627_v42, %v1713_v44  ;;  %v5760_v24 = vadd.f32 %v5728_v10, %v5696_v17 }
 0x3cd   : > { %v22500_v22 = vadd.f32 %v3697_v4, %v3665_v33  ;;  %v1698_v33 = vld [vmem:[%s20115_s27 + $0x50] sm:$0xff]  ;;  %v1699_v4 = vld [vmem:[%s20115_s27 + $0x58] sm:$0xff] }
 0x3ce   : > { %v3650_v26 = vmul.f32 %v27010_v37, %v1698_v33  ;;  %v27018_v37 = vld [vmem:[#allocation104_spill] sm:$0xff] }
 0x3cf   : > { %27007 = vst [vmem:[#allocation148_spill] sm:$0xff] %v22500_v22  ;;  %v22693_v22 = vmov 0.0  }
 0x3d3   : > { %v3597_v43 = vpop.permute.xlu0 %3596 }
 0x3d4   : > { %v3682_v11 = vmul.f32 %v3597_v43, %v1714_v35 }
 0x3d7   : > { %v3629_v3 = vpop.permute.xlu0 %3628 }
 0x3d8   : > { %v3698_v13 = vmul.f32 %v3629_v3, %v1714_v35 }
 0x3d9   : > { %v5627_v47 = vpop.permute.xlu1 %5626 }
 0x3da   : > { %v5713_v27 = vmul.f32 %v5627_v47, %v1713_v44 }
 0x3dc   : > { %v5745_v0 = vadd.f32 %v5713_v27, %v5681_v2  ;;  %v3651_v2 = vmul.f32 %v22090_v29, %v1699_v4 }
 0x3dd   : > { %v5659_v7 = vpop.permute.xlu1 %5658 }
 0x3de   : > { %v15362_v42 = vpack.c.bf16 %v5745_v0, %v5744_v63  ;;  %v5729_v60 = vmul.f32 %v5659_v7, %v1713_v44  ;;  %v22515_v63 = vadd.f32 %v3682_v11, %v3650_v26  ;;  %v27013_v0 = vld [vmem:[#allocation93_spill] sm:$0xff]  ;;  %v27014_v7 = vld [vmem:[#allocation99_spill] sm:$0xff]  ;;  %v5683_v26 = vmul.f32 %v27018_v37, %v1699_v4 }
 0x3df   : > { %v3666_v10 = vmul.f32 %v27013_v0, %v1698_v33  ;;  %v3667_v12 = vmul.f32 %v27014_v7, %v1699_v4 }
 0x3e0   : > { %v5629_v34 = vpop.permute.xlu0 %5628  ;;  %15502 = vst [vmem:[%s22371_s24 + $0x20] sm:$0xff] %v15362_v42   ;;  %v5761_v47 = vadd.f32 %v5729_v60, %v5697_v53  ;;  %27011 = vst [vmem:[#allocation138_spill] sm:$0xff] %v22515_v63  ;;  %v22687_v63 = vmov 0.0  }
 0x3e1   : > { %v22524_v17 = vadd.f32 %v3698_v13, %v3666_v10  ;;  %v5714_v53 = vmul.f32 %v5629_v34, %v1714_v35  ;;  %v27019_v10 = vld [vmem:[#allocation97_spill] sm:$0xff] }
 0x3e2   : > { %v15402_v28 = vpack.c.bf16 %v5761_v47, %v5760_v24  ;;  %v27017_v47 = vld [vmem:[#allocation98_spill] sm:$0xff]  ;;  %v5698_v7 = vmul.f32 %v27019_v10, %v1698_v33  ;;  %v27020_v34 = vld [vmem:[#allocation105_spill] sm:$0xff]  ;;  %v27025_v10 = vld [vmem:[#allocation100_spill] sm:$0xff] }
 0x3e3   : > { %27015 = vst [vmem:[#allocation85_spill] sm:$0xff] %v22524_v17  ;;  %v22683_v17 = vmov 0.0  }
 0x3e4   : > { %v3599_v45 = vpop.permute.xlu1 %3598  ;;  %v5661_v27 = vpop.permute.xlu0 %5660  ;;  %15510 = vst [vmem:[%s22371_s24 + $0x60] sm:$0xff] %v15402_v28  }
 0x3e5   : > { %v3683_v57 = vmul.f32 %v3599_v45, %v1715_v48  ;;  %v5682_v45 = vmul.f32 %v27017_v47, %v1698_v33  ;;  %v1717_v47 = vld [vmem:[%s22221_s6 + $0x68] sm:$0xff] }
 0x3e7   : > { %v22518_v40 = vadd.f32 %v3683_v57, %v3651_v2  ;;  %v5746_v2 = vadd.f32 %v5714_v53, %v5682_v45  ;;  %v5730_v57 = vmul.f32 %v5661_v27, %v1714_v35  ;;  %v27021_v35 = vld [vmem:[#allocation102_spill] sm:$0xff] }
 0x3e8   : > { %v3631_v44 = vpop.permute.xlu1 %3630  ;;  %v3652_v27 = vmul.f32 %v27021_v35, %v1700_v6  ;;  %v5685_v35 = vmul.f32 %v22282_v19, %v1701_v59 }
 0x3e9   : > { %27012 = vst [vmem:[#allocation137_spill] sm:$0xff] %v22518_v40  ;;  %v3699_v24 = vmul.f32 %v3631_v44, %v1715_v48  ;;  %v1716_v44 = vld [vmem:[%s22221_s6 + $0x60] sm:$0xff]  ;;  %v5762_v16 = vadd.f32 %v5730_v57, %v5698_v7  ;;  %v3668_v57 = vmul.f32 %v27025_v10, %v1700_v6  ;;  %v5701_v10 = vmul.f32 %v22305_v41, %v1701_v59 }
 0x3ea   : > { %v22689_v40 = vmov 0.0  }
 0x3eb   : > { %v22526_v29 = vadd.f32 %v3699_v24, %v3667_v12  ;;  %v5699_v24 = vmul.f32 %v27020_v34, %v1699_v4 }
 0x3ed   : > { %27016 = vst [vmem:[#allocation140_spill] sm:$0xff] %v22526_v29  ;;  %v3601_v42 = vpop.permute.xlu0 %3600  ;;  %v22685_v29 = vmov 0.0  }
 0x3ee   : > { %v3684_v37 = vmul.f32 %v3601_v42, %v1716_v44  ;;  %v22659_v42 = vmov 0.0  }
 0x3f1   : > { %v3633_v60 = vpop.permute.xlu0 %3632 }
 0x3f2   : > { %v3700_v4 = vmul.f32 %v3633_v60, %v1716_v44 }
 0x3f5   : > { %v5631_v11 = vpop.permute.xlu1 %5630 }
 0x3f6   : > { %v5715_v28 = vmul.f32 %v5631_v11, %v1715_v48 }
 0x3f8   : > { %v5747_v13 = vadd.f32 %v5715_v28, %v5683_v26  ;;  %v27022_v26 = vld [vmem:[#allocation106_spill] sm:$0xff] }
 0x3f9   : > { %v5663_v0 = vpop.permute.xlu1 %5662  ;;  %v3653_v28 = vmul.f32 %v27022_v26, %v1701_v59 }
 0x3fa   : > { %v15367_v12 = vpack.c.bf16 %v5747_v13, %v5746_v2  ;;  %v5731_v3 = vmul.f32 %v5663_v0, %v1715_v48  ;;  %v5633_v43 = vpop.permute.xlu0 %5632  ;;  %v22541_v13 = vadd.f32 %v3684_v37, %v3652_v27  ;;  %v27028_v37 = vld [vmem:[#allocation108_spill] sm:$0xff] }
 0x3fb   : > { %v5716_v34 = vmul.f32 %v5633_v43, %v1716_v44 }
 0x3fc   : > { %15503 = vst [vmem:[%s22371_s24 + $0x28] sm:$0xff] %v15367_v12   ;;  %v5763_v11 = vadd.f32 %v5731_v3, %v5699_v24  ;;  %27023 = vst [vmem:[#allocation141_spill] sm:$0xff] %v22541_v13  ;;  %v3669_v3 = vmul.f32 %v22239_v8, %v1701_v59  ;;  %v22550_v12 = vadd.f32 %v3700_v4, %v3668_v57  ;;  %v22679_v13 = vmov 0.0  }
 0x3fd   : > { %v3603_v53 = vpop.permute.xlu1 %3602  ;;  %v5700_v4 = vmul.f32 %v22235_v25, %v1700_v6 }
 0x3fe   : > { %v15407_v45 = vpack.c.bf16 %v5763_v11, %v5762_v16  ;;  %v3685_v33 = vmul.f32 %v3603_v53, %v1717_v47  ;;  %v5665_v2 = vpop.permute.xlu0 %5664  ;;  %27026 = vst [vmem:[#allocation142_spill] sm:$0xff] %v22550_v12  ;;  %v5684_v11 = vmul.f32 %v27028_v37, %v1700_v6  ;;  %v1719_v37 = vld [vmem:[%s22221_s6 + $0x78] sm:$0xff]  ;;  %v22675_v12 = vmov 0.0  }
 0x400   : > { %15511 = vst [vmem:[%s22371_s24 + $0x68] sm:$0xff] %v15407_v45   ;;  %v22544_v48 = vadd.f32 %v3685_v33, %v3653_v28  ;;  %v5748_v8 = vadd.f32 %v5716_v34, %v5684_v11  ;;  %v5732_v45 = vmul.f32 %v5665_v2, %v1716_v44  ;;  %v1718_v28 = vld [vmem:[%s22221_s6 + $0x70] sm:$0xff]  ;;  %v27029_v44 = vld [vmem:[#allocation110_spill] sm:$0xff] }
 0x401   : > { %v3635_v0 = vpop.permute.xlu1 %3634 }
 0x402   : > { %27024 = vst [vmem:[#allocation143_spill] sm:$0xff] %v22544_v48  ;;  %v3701_v16 = vmul.f32 %v3635_v0, %v1717_v47  ;;  %v3605_v7 = vpop.permute.xlu0 %3604  ;;  %v5764_v53 = vadd.f32 %v5732_v45, %v5700_v4  ;;  %v22681_v48 = vmov 0.0  }
 0x403   : > { %v3686_v19 = vmul.f32 %v3605_v7, %v1718_v28  ;;  %v22657_v7 = vmov 0.0  }
 0x404   : > { %v22552_v24 = vadd.f32 %v3701_v16, %v3669_v3  ;;  %v1702_v3 = vld [vmem:[%s20115_s27 + $0x70] sm:$0xff]  ;;  %v1703_v16 = vld [vmem:[%s20115_s27 + $0x78] sm:$0xff] }
 0x405   : > { %v5635_v60 = vpop.permute.xlu1 %5634  ;;  %v3654_v2 = vmul.f32 %v27029_v44, %v1702_v3  ;;  %v3671_v45 = vmul.f32 %v22386_v50, %v1703_v16  ;;  %v5702_v44 = vmul.f32 %v22349_v5, %v1702_v3  ;;  %v22599_v5 = vmov 0.0  }
 0x406   : > { %27027 = vst [vmem:[#allocation91_spill] sm:$0xff] %v22552_v24  ;;  %v5717_v27 = vmul.f32 %v5635_v60, %v1717_v47  ;;  %v3637_v43 = vpop.permute.xlu0 %3636  ;;  %v22677_v24 = vmov 0.0  }
 0x407   : > { %v22567_v6 = vadd.f32 %v3686_v19, %v3654_v2  ;;  %v3702_v41 = vmul.f32 %v3637_v43, %v1718_v28 }
 0x408   : > { %v5749_v26 = vadd.f32 %v5717_v27, %v5685_v35  ;;  %v3655_v35 = vmul.f32 %v22351_v58, %v1703_v16 }
 0x409   : > { %27030 = vst [vmem:[#allocation90_spill] sm:$0xff] %v22567_v6  ;;  %v22671_v6 = vmov 0.0  }
 0x40a   : > { %v5667_v33 = vpop.permute.xlu1 %5666  ;;  %v15372_v0 = vpack.c.bf16 %v5749_v26, %v5748_v8  ;;  %v3670_v8 = vmul.f32 %v22284_v15, %v1702_v3  ;;  %v22655_v15 = vmov 0.0  }
 0x40b   : > { %v5733_v57 = vmul.f32 %v5667_v33, %v1717_v47 }
 0x40c   : > { %15504 = vst [vmem:[%s22371_s24 + $0x30] sm:$0xff] %v15372_v0   ;;  %v5637_v25 = vpop.permute.xlu0 %5636  ;;  %v5686_v0 = vmul.f32 %v22317_v32, %v1702_v3  ;;  %v22605_v3 = vmov 0.0  }
 0x40d   : > { %v5765_v60 = vadd.f32 %v5733_v57, %v5701_v10  ;;  %v5718_v58 = vmul.f32 %v5637_v25, %v1718_v28  ;;  %v5687_v10 = vmul.f32 %v22388_v20, %v1703_v16  ;;  %v22597_v20 = vmov 0.0  }
 0x40f   : > { %v3607_v34 = vpop.permute.xlu1 %3606  ;;  %v15412_v11 = vpack.c.bf16 %v5765_v60, %v5764_v53  ;;  %v22576_v53 = vadd.f32 %v3702_v41, %v3670_v8  ;;  %v5750_v50 = vadd.f32 %v5718_v58, %v5686_v0  ;;  %v22611_v41 = vmov 0.0  }
 0x410   : > { %v3687_v27 = vmul.f32 %v3607_v34, %v1719_v37  ;;  %v5669_v4 = vpop.permute.xlu0 %5668  ;;  %v22615_v8 = vmov 0.0   ;;  %v22621_v58 = vmov 0.0   ;;  %v22627_v0 = vmov 0.0  }
 0x411   : > { %15512 = vst [vmem:[%s22371_s24 + $0x70] sm:$0xff] %v15412_v11   ;;  %27032 = vst [vmem:[#allocation147_spill] sm:$0xff] %v22576_v53  ;;  %v5734_v19 = vmul.f32 %v5669_v4, %v1718_v28  ;;  %v5703_v11 = vmul.f32 %v22394_v54, %v1703_v16  ;;  %v22601_v28 = vmov 0.0   ;;  %v22603_v54 = vmov 0.0  }
 0x412   : > { %v22570_v59 = vadd.f32 %v3687_v27, %v3655_v35  ;;  %v22607_v16 = vmov 0.0   ;;  %v22623_v4 = vmov 0.0   ;;  %v22667_v53 = vmov 0.0  }
 0x413   : > { %v3639_v47 = vpop.permute.xlu1 %3638  ;;  %v5766_v27 = vadd.f32 %v5734_v19, %v5702_v44  ;;  %v22635_v19 = vmov 0.0   ;;  %v22641_v44 = vmov 0.0  }
 0x414   : > { %27031 = vst [vmem:[#allocation146_spill] sm:$0xff] %v22570_v59  ;;  %v3703_v26 = vmul.f32 %v3639_v47, %v1719_v37  ;;  %v22613_v47 = vmov 0.0   ;;  %v22673_v59 = vmov 0.0  }
 0x416   : > { %v22578_v33 = vadd.f32 %v3703_v26, %v3671_v45  ;;  %v22617_v45 = vmov 0.0   ;;  %v22619_v26 = vmov 0.0  }
 0x417   : > { %v5639_v43 = vpop.permute.xlu1 %5638 }
 0x418   : > { %27033 = vst [vmem:[#allocation150_spill] sm:$0xff] %v22578_v33  ;;  %v5719_v57 = vmul.f32 %v5639_v43, %v1719_v37  ;;  %v22625_v43 = vmov 0.0   ;;  %v22669_v33 = vmov 0.0  }
 0x41a   : > { %v5751_v60 = vadd.f32 %v5719_v57, %v5687_v10  ;;  %v22629_v10 = vmov 0.0   ;;  %v22631_v57 = vmov 0.0  }
 0x41b   : > { %v5671_v34 = vpop.permute.xlu1 %5670 }
 0x41c   : > { %v15377_v2 = vpack.c.bf16 %v5751_v60, %v5750_v50  ;;  %v5735_v35 = vmul.f32 %v5671_v34, %v1719_v37  ;;  %v22609_v37 = vmov 0.0   ;;  %v22633_v50 = vmov 0.0  }
 0x41d   : > { %v22637_v60 = vmov 0.0   ;;  %v22639_v34 = vmov 0.0  }
 0x41e   : > { %15505 = vst [vmem:[%s22371_s24 + $0x38] sm:$0xff] %v15377_v2   ;;  %v5767_v32 = vadd.f32 %v5735_v35, %v5703_v11  ;;  %v22643_v2 = vmov 0.0   ;;  %v22645_v11 = vmov 0.0   ;;  %v22647_v35 = vmov 0.0   ;;  %14385 = sbr.rel (%p22593_p3) target bundleno = 1832 (0x728), region = 148 }
 0x41f   : > { %27035 = vst [vmem:[#allocation149_spill] sm:$0xff] %v22645_v11  ;;  %27036 = vst [vmem:[#allocation95_spill] sm:$0xff] %v22647_v35 }
 0x420   : > { %v15417_v25 = vpack.c.bf16 %v5767_v32, %v5766_v27  ;;  %v22649_v27 = vmov 0.0   ;;  %v22651_v32 = vmov 0.0  }
 0x422   : > { %15513 = vst [vmem:[%s22371_s24 + $0x78] sm:$0xff] %v15417_v25   ;;  %v22653_v25 = vmov 0.0  }
 0x423   : > { %v22727_v0 = vmov 0.0   ;;  %v22729_v1 = vmov 0.0   ;;  %v22731_v2 = vmov 0.0   ;;  %v22733_v3 = vmov 0.0   ;;  %s22919_s4 = smov 0  }
 0x424   : > { %27037 = vst [vmem:[#allocation149_spill] sm:$0xff] %v22727_v0  ;;  %27038 = vst [vmem:[#allocation95_spill] sm:$0xff] %v22731_v2  ;;  %v22735_v4 = vmov 0.0   ;;  %v22737_v5 = vmov 0.0   ;;  %v22739_v6 = vmov 0.0   ;;  %v22741_v7 = vmov 0.0  }
 0x425   : > { %v22743_v8 = vmov 0.0   ;;  %v22745_v9 = vmov 0.0   ;;  %v22747_v62 = vmov 0.0   ;;  %v22749_v39 = vmov 0.0  }
 0x426   : > { %v22751_v51 = vmov 0.0   ;;  %v22753_v52 = vmov 0.0   ;;  %v22755_v30 = vmov 0.0   ;;  %v22757_v31 = vmov 0.0  }
 0x427   : > { %27039 = vst [vmem:[#allocation156_spill] sm:$0xff] %v22757_v31  ;;  %v22759_v23 = vmov 0.0   ;;  %v22761_v46 = vmov 0.0   ;;  %v22763_v49 = vmov 0.0   ;;  %v22765_v21 = vmov 0.0  }
 0x428   : > { %27040 = vst [vmem:[#allocation157_spill] sm:$0xff] %v22759_v23  ;;  %27041 = vst [vmem:[#allocation158_spill] sm:$0xff] %v22761_v46  ;;  %v22767_v14 = vmov 0.0   ;;  %v22769_v56 = vmov 0.0   ;;  %v22771_v38 = vmov 0.0   ;;  %v22773_v61 = vmov 0.0  }
 0x429   : > { %v22775_v55 = vmov 0.0   ;;  %v22777_v18 = vmov 0.0   ;;  %v22779_v36 = vmov 0.0   ;;  %v22781_v22 = vmov 0.0  }
 0x42a   : > { %27042 = vst [vmem:[#allocation159_spill] sm:$0xff] %v22779_v36  ;;  %v22783_v63 = vmov 0.0   ;;  %v22785_v40 = vmov 0.0   ;;  %v22787_v17 = vmov 0.0   ;;  %v22789_v29 = vmov 0.0  }
 0x42b   : > { %27043 = vst [vmem:[#allocation160_spill] sm:$0xff] %v22787_v17  ;;  %v22791_v13 = vmov 0.0   ;;  %v22793_v48 = vmov 0.0   ;;  %v22795_v42 = vmov 0.0   ;;  %v22797_v12 = vmov 0.0  }
 0x42c   : > { %27044 = vst [vmem:[#allocation161_spill] sm:$0xff] %v22793_v48  ;;  %27045 = vst [vmem:[#allocation162_spill] sm:$0xff] %v22795_v42  ;;  %v22799_v24 = vmov 0.0   ;;  %v22801_v59 = vmov 0.0   ;;  %v22803_v53 = vmov 0.0   ;;  %v22805_v33 = vmov 0.0  }
 0x42d   : > { %27046 = vst [vmem:[#allocation163_spill] sm:$0xff] %v22797_v12  ;;  %27047 = vst [vmem:[#allocation164_spill] sm:$0xff] %v22799_v24  ;;  %v22807_v15 = vmov 0.0   ;;  %v22809_v20 = vmov 0.0   ;;  %v22811_v28 = vmov 0.0   ;;  %v22813_v54 = vmov 0.0  }
 0x42e   : > { %27048 = vst [vmem:[#allocation165_spill] sm:$0xff] %v22803_v53  ;;  %27049 = vst [vmem:[#allocation166_spill] sm:$0xff] %v22805_v33  ;;  %v22815_v16 = vmov 0.0   ;;  %v22817_v37 = vmov 0.0   ;;  %v22819_v41 = vmov 0.0   ;;  %v22821_v47 = vmov 0.0  }
 0x42f   : > { %27050 = vst [vmem:[#allocation167_spill] sm:$0xff] %v22809_v20  ;;  %27051 = vst [vmem:[#allocation168_spill] sm:$0xff] %v22813_v54  ;;  %v22823_v45 = vmov 0.0   ;;  %v22825_v26 = vmov 0.0   ;;  %v22827_v58 = vmov 0.0   ;;  %v22829_v43 = vmov 0.0  }
 0x430   : > { %27052 = vst [vmem:[#allocation169_spill] sm:$0xff] %v22815_v16  ;;  %27053 = vst [vmem:[#allocation170_spill] sm:$0xff] %v22817_v37  ;;  %v22831_v10 = vmov 0.0   ;;  %v22833_v57 = vmov 0.0   ;;  %v22835_v50 = vmov 0.0   ;;  %v22837_v19 = vmov 0.0  }
 0x431   : > { %27054 = vst [vmem:[#allocation171_spill] sm:$0xff] %v22819_v41  ;;  %27055 = vst [vmem:[#allocation172_spill] sm:$0xff] %v22821_v47  ;;  %v22839_v60 = vmov 0.0   ;;  %v22841_v34 = vmov 0.0   ;;  %v22843_v44 = vmov 0.0   ;;  %v22845_v11 = vmov 0.0  }
 0x432   : > { %27056 = vst [vmem:[#allocation173_spill] sm:$0xff] %v22833_v57  ;;  %27057 = vst [vmem:[#allocation174_spill] sm:$0xff] %v22835_v50  ;;  %v22847_v35 = vmov 0.0   ;;  %v22849_v27 = vmov 0.0   ;;  %v22851_v32 = vmov 0.0   ;;  %v22853_v25 = vmov 0.0  }
 0x433   : > { %27058 = vst [vmem:[#allocation175_spill] sm:$0xff] %v22837_v19  ;;  %27059 = vst [vmem:[#allocation176_spill] sm:$0xff] %v22839_v60  ;;  %v22855_v57 = vmov -inf   ;;  %v22857_v50 = vmov -inf   ;;  %v22859_v19 = vmov -inf   ;;  %v22861_v60 = vmov -inf  }
 0x434   : > { %27060 = vst [vmem:[#allocation177_spill] sm:$0xff] %v22841_v34  ;;  %27061 = vst [vmem:[#allocation178_spill] sm:$0xff] %v22843_v44  ;;  %v22863_v34 = vmov -inf   ;;  %v22865_v44 = vmov -inf  }
 0x435   : > { %27062 = vst [vmem:[#allocation179_spill] sm:$0xff] %v22845_v11  ;;  %27063 = vst [vmem:[#allocation180_spill] sm:$0xff] %v22847_v35  ;;  %v22867_v11 = vmov -inf   ;;  %v22869_v35 = vmov -inf  }
 0x436   : > { %27064 = vst [vmem:[#allocation181_spill] sm:$0xff] %v22849_v27  ;;  %27065 = vst [vmem:[#allocation182_spill] sm:$0xff] %v22851_v32  ;;  %v22871_v27 = vmov -inf   ;;  %v22873_v32 = vmov -inf  }
 0x437   : > { %27066 = vst [vmem:[#allocation183_spill] sm:$0xff] %v22853_v25  ;;  %27067 = vst [vmem:[#allocation184_spill] sm:$0xff] %v22855_v57  ;;  %v22875_v25 = vmov -inf   ;;  %v22877_v57 = vmov -inf  }
 0x438   : > { %27068 = vst [vmem:[#allocation185_spill] sm:$0xff] %v22857_v50  ;;  %27069 = vst [vmem:[#allocation186_spill] sm:$0xff] %v22859_v19  ;;  %v22879_v50 = vmov -inf   ;;  %v22881_v19 = vmov -inf  }
 0x439   : > { %27070 = vst [vmem:[#allocation187_spill] sm:$0xff] %v22861_v60  ;;  %27071 = vst [vmem:[#allocation188_spill] sm:$0xff] %v22863_v34  ;;  %v22883_v60 = vmov -inf   ;;  %v22885_v34 = vmov -inf  }
 0x43a   : > { %27072 = vst [vmem:[#allocation189_spill] sm:$0xff] %v22865_v44  ;;  %27073 = vst [vmem:[#allocation190_spill] sm:$0xff] %v22867_v11  ;;  %v22887_v44 = vmov -inf   ;;  %v22889_v11 = vmov -inf  }
 0x43b   : > { %27074 = vst [vmem:[#allocation191_spill] sm:$0xff] %v22869_v35  ;;  %27075 = vst [vmem:[#allocation192_spill] sm:$0xff] %v22871_v27  ;;  %v22891_v35 = vmov -inf   ;;  %v22893_v27 = vmov -inf  }
 0x43c   : > { %27076 = vst [vmem:[#allocation193_spill] sm:$0xff] %v22873_v32  ;;  %27077 = vst [vmem:[#allocation194_spill] sm:$0xff] %v22875_v25  ;;  %v22895_v32 = vmov -inf   ;;  %v22897_v25 = vmov -inf  }
 0x43d   : > { %27078 = vst [vmem:[#allocation195_spill] sm:$0xff] %v22877_v57  ;;  %27079 = vst [vmem:[#allocation196_spill] sm:$0xff] %v22879_v50  ;;  %v22899_v57 = vmov -inf   ;;  %v22901_v50 = vmov -inf  }
 0x43e   : > { %27080 = vst [vmem:[#allocation197_spill] sm:$0xff] %v22881_v19  ;;  %27081 = vst [vmem:[#allocation198_spill] sm:$0xff] %v22883_v60  ;;  %v22903_v19 = vmov -inf   ;;  %v22905_v60 = vmov -inf  }
 0x43f   : > { %27082 = vst [vmem:[#allocation199_spill] sm:$0xff] %v22885_v34  ;;  %27083 = vst [vmem:[#allocation200_spill] sm:$0xff] %v22887_v44  ;;  %v22907_v34 = vmov -inf   ;;  %v22909_v44 = vmov -inf  }
 0x440   : > { %27084 = vst [vmem:[#allocation201_spill] sm:$0xff] %v22889_v11  ;;  %27085 = vst [vmem:[#allocation202_spill] sm:$0xff] %v22891_v35  ;;  %v22911_v11 = vmov -inf   ;;  %v22913_v35 = vmov -inf  }
 0x441   : > { %27086 = vst [vmem:[#allocation203_spill] sm:$0xff] %v22893_v27  ;;  %27087 = vst [vmem:[#allocation204_spill] sm:$0xff] %v22895_v32  ;;  %v22915_v27 = vmov -inf   ;;  %v22917_v32 = vmov -inf  }
 0x442   : > { %27088 = vst [vmem:[#allocation205_spill] sm:$0xff] %v22911_v11  ;;  %27089 = vst [vmem:[#allocation206_spill] sm:$0xff] %v22913_v35 }
 0x443   : > { %27090 = vst [vmem:[#allocation207_spill] sm:$0xff] %v22915_v27  ;;  %27091 = vst [vmem:[#allocation208_spill] sm:$0xff] %v22917_v32 }
 0x444 LB: >> { %v27147_v0 = vld [vmem:[#allocation149_spill] sm:$0xff]  ;;  %27149 = vst [vmem:[#allocation209_spill] sm:$0xff] %v19115_v1  ;;  %v27150_v2 = vld [vmem:[#allocation95_spill] sm:$0xff]  ;;  %27152 = vst [vmem:[#allocation210_spill] sm:$0xff] %v19123_v3  ;;  %s15336_s25 = sshll.u32 %s19495_s4, 7  ;;  %s27287_s26 = sld [smem:[#allocation26_spill]]  ;;  %s19495_s4 = sphi %s22919_s4, %s27790_s4   ;;  %v19475_v44 = vphi %v22909_v44, %v27781_v44   ;;  %v19471_v34 = vphi %v22907_v34, %v27780_v34   ;;  %v19467_v60 = vphi %v22905_v60, %v27779_v60   ;;  %v19463_v19 = vphi %v22903_v19, %v27778_v19   ;;  %v19459_v50 = vphi %v22901_v50, %v27777_v50   ;;  %v19455_v57 = vphi %v22899_v57, %v27776_v57   ;;  %v19451_v25 = vphi %v22897_v25, %v27775_v25   ;;  %v19319_v10 = vphi %v22831_v10, %v27711_v10   ;;  %v19315_v43 = vphi %v22829_v43, %v27710_v43   ;;  %v19311_v58 = vphi %v22827_v58, %v27709_v58   ;;  %v19307_v26 = vphi %v22825_v26, %v27708_v26   ;;  %v19303_v45 = vphi %v22823_v45, %v27707_v45   ;;  %v19279_v28 = vphi %v22811_v28, %v27696_v28   ;;  %v19271_v15 = vphi %v22807_v15, %v27693_v15   ;;  %v19259_v59 = vphi %v22801_v59, %v27688_v59   ;;  %v19239_v13 = vphi %v22791_v13, %v27679_v13   ;;  %v19235_v29 = vphi %v22789_v29, %v27678_v29   ;;  %v19227_v40 = vphi %v22785_v40, %v27675_v40   ;;  %v19223_v63 = vphi %v22783_v63, %v27674_v63   ;;  %v19219_v22 = vphi %v22781_v22, %v27673_v22   ;;  %v19211_v18 = vphi %v22777_v18, %v27670_v18   ;;  %v19207_v55 = vphi %v22775_v55, %v27669_v55   ;;  %v19203_v61 = vphi %v22773_v61, %v27668_v61   ;;  %v19199_v38 = vphi %v22771_v38, %v27667_v38   ;;  %v19195_v56 = vphi %v22769_v56, %v27666_v56   ;;  %v19191_v14 = vphi %v22767_v14, %v27665_v14   ;;  %v19187_v21 = vphi %v22765_v21, %v27664_v21   ;;  %v19183_v49 = vphi %v22763_v49, %v27663_v49   ;;  %v19167_v30 = vphi %v22755_v30, %v27659_v30   ;;  %v19163_v52 = vphi %v22753_v52, %v27658_v52   ;;  %v19159_v51 = vphi %v22751_v51, %v27657_v51   ;;  %v19155_v39 = vphi %v22749_v39, %v27656_v39   ;;  %v19151_v62 = vphi %v22747_v62, %v27655_v62   ;;  %v19147_v9 = vphi %v22745_v9, %v27654_v9   ;;  %v19143_v8 = vphi %v22743_v8, %v27653_v8   ;;  %v19139_v7 = vphi %v22741_v7, %v27652_v7   ;;  %v19135_v6 = vphi %v22739_v6, %v27651_v6   ;;  %v19131_v5 = vphi %v22737_v5, %v27650_v5   ;;  %v19127_v4 = vphi %v22735_v4, %v27649_v4   ;;  %v19123_v3 = vphi %v22733_v3, %v27648_v3   ;;  %v19115_v1 = vphi %v22729_v1, %v27646_v1  }
 0x445   : >> { %27148 = vst [vmem:[#allocation149_spill] sm:$0xff] %v27147_v0  ;;  %27151 = vst [vmem:[#allocation95_spill] sm:$0xff] %v27150_v2  ;;  %v27164_v31 = vld [vmem:[#allocation156_spill] sm:$0xff]  ;;  %v27166_v23 = vld [vmem:[#allocation157_spill] sm:$0xff]  ;;  %s23219_s23 = scalar_lea.vmem [#allocation2], %s15336_s25  ;;  %s23229_s16 = scalar_lea.vmem [#allocation3], %s15336_s25 }
 0x446   : >> { %27153 = vst [vmem:[#allocation211_spill] sm:$0xff] %v19127_v4  ;;  %27154 = vst [vmem:[#allocation212_spill] sm:$0xff] %v19131_v5  ;;  %v27168_v46 = vld [vmem:[#allocation158_spill] sm:$0xff]  ;;  %v27178_v36 = vld [vmem:[#allocation159_spill] sm:$0xff]  ;;  %s7988_s0 = sadd.s32 1, %s19495_s4  }
 0x447   : >> { %27155 = vst [vmem:[#allocation213_spill] sm:$0xff] %v19135_v6  ;;  %27156 = vst [vmem:[#allocation214_spill] sm:$0xff] %v19139_v7  ;;  %v27183_v17 = vld [vmem:[#allocation160_spill] sm:$0xff]  ;;  %v27187_v48 = vld [vmem:[#allocation161_spill] sm:$0xff]  ;;  %p24202_p8 = scmp.ge.s32.totalorder %s7988_s0, %s7984_s13 }
 0x448   : >> { %27157 = vst [vmem:[#allocation215_spill] sm:$0xff] %v19143_v8  ;;  %27158 = vst [vmem:[#allocation216_spill] sm:$0xff] %v19147_v9  ;;  %v27189_v42 = vld [vmem:[#allocation162_spill] sm:$0xff]  ;;  %v27191_v12 = vld [vmem:[#allocation163_spill] sm:$0xff] }
 0x449   : >> { %27159 = vst [vmem:[#allocation217_spill] sm:$0xff] %v19151_v62  ;;  %27160 = vst [vmem:[#allocation218_spill] sm:$0xff] %v19155_v39  ;;  %v27193_v24 = vld [vmem:[#allocation164_spill] sm:$0xff]  ;;  %v27196_v53 = vld [vmem:[#allocation165_spill] sm:$0xff] }
 0x44a   : >> { %27161 = vst [vmem:[#allocation219_spill] sm:$0xff] %v19159_v51  ;;  %27162 = vst [vmem:[#allocation220_spill] sm:$0xff] %v19163_v52  ;;  %v27198_v33 = vld [vmem:[#allocation166_spill] sm:$0xff]  ;;  %v27201_v20 = vld [vmem:[#allocation167_spill] sm:$0xff]  ;;  %s8446_s1 = ssub.s32 %s19495_s4, %s27287_s26  ;;  %s27790_s4 = smov %s7988_s0 }
 0x44b   : >> { %27163 = vst [vmem:[#allocation221_spill] sm:$0xff] %v19167_v30  ;;  %27165 = vst [vmem:[#allocation156_spill] sm:$0xff] %v27164_v31  ;;  %v27204_v54 = vld [vmem:[#allocation168_spill] sm:$0xff]  ;;  %v27206_v16 = vld [vmem:[#allocation169_spill] sm:$0xff]  ;;  %s14987_s30 = sshll.u32 %s8446_s1, 7 }
 0x44c   : >> { %27167 = vst [vmem:[#allocation157_spill] sm:$0xff] %v27166_v23  ;;  %27169 = vst [vmem:[#allocation158_spill] sm:$0xff] %v27168_v46  ;;  %v27208_v37 = vld [vmem:[#allocation170_spill] sm:$0xff]  ;;  %v27210_v41 = vld [vmem:[#allocation171_spill] sm:$0xff] }
 0x44d   : >> { %27170 = vst [vmem:[#allocation222_spill] sm:$0xff] %v19183_v49  ;;  %27171 = vst [vmem:[#allocation223_spill] sm:$0xff] %v19187_v21  ;;  %v27212_v47 = vld [vmem:[#allocation172_spill] sm:$0xff]  ;;  %v27219_v2 = vld [vmem:[#allocation173_spill] sm:$0xff] }
 0x44e   : >> { %27172 = vst [vmem:[#allocation224_spill] sm:$0xff] %v19191_v14  ;;  %27173 = vst [vmem:[#allocation225_spill] sm:$0xff] %v19195_v56  ;;  %v27221_v0 = vld [vmem:[#allocation174_spill] sm:$0xff]  ;;  %v27223_v3 = vld [vmem:[#allocation175_spill] sm:$0xff] }
 0x44f   : >> { %27174 = vst [vmem:[#allocation226_spill] sm:$0xff] %v19199_v38  ;;  %27175 = vst [vmem:[#allocation227_spill] sm:$0xff] %v19203_v61  ;;  %v27225_v1 = vld [vmem:[#allocation176_spill] sm:$0xff]  ;;  %v27227_v49 = vld [vmem:[#allocation177_spill] sm:$0xff] }
 0x450   : >> { %27176 = vst [vmem:[#allocation228_spill] sm:$0xff] %v19207_v55  ;;  %27177 = vst [vmem:[#allocation229_spill] sm:$0xff] %v19211_v18  ;;  %v27229_v23 = vld [vmem:[#allocation178_spill] sm:$0xff]  ;;  %v27231_v21 = vld [vmem:[#allocation179_spill] sm:$0xff] }
 0x451   : >> { %27179 = vst [vmem:[#allocation159_spill] sm:$0xff] %v27178_v36  ;;  %27180 = vst [vmem:[#allocation230_spill] sm:$0xff] %v19219_v22  ;;  %v27233_v46 = vld [vmem:[#allocation180_spill] sm:$0xff]  ;;  %v27235_v6 = vld [vmem:[#allocation181_spill] sm:$0xff] }
 0x452   : >> { %27181 = vst [vmem:[#allocation231_spill] sm:$0xff] %v19223_v63  ;;  %27182 = vst [vmem:[#allocation232_spill] sm:$0xff] %v19227_v40  ;;  %v27237_v4 = vld [vmem:[#allocation182_spill] sm:$0xff]  ;;  %v27239_v7 = vld [vmem:[#allocation183_spill] sm:$0xff] }
 0x453   : >> { %27184 = vst [vmem:[#allocation160_spill] sm:$0xff] %v27183_v17  ;;  %27185 = vst [vmem:[#allocation233_spill] sm:$0xff] %v19235_v29  ;;  %v27241_v38 = vld [vmem:[#allocation184_spill] sm:$0xff]  ;;  %v27243_v5 = vld [vmem:[#allocation185_spill] sm:$0xff] }
 0x454   : >> { %27186 = vst [vmem:[#allocation234_spill] sm:$0xff] %v19239_v13  ;;  %27188 = vst [vmem:[#allocation161_spill] sm:$0xff] %v27187_v48  ;;  %v27245_v14 = vld [vmem:[#allocation186_spill] sm:$0xff]  ;;  %v27247_v61 = vld [vmem:[#allocation187_spill] sm:$0xff] }
 0x455   : >> { %27190 = vst [vmem:[#allocation162_spill] sm:$0xff] %v27189_v42  ;;  %27192 = vst [vmem:[#allocation163_spill] sm:$0xff] %v27191_v12  ;;  %v27249_v56 = vld [vmem:[#allocation188_spill] sm:$0xff]  ;;  %v27250_v62 = vld [vmem:[#allocation189_spill] sm:$0xff] }
 0x456   : >> { %27194 = vst [vmem:[#allocation164_spill] sm:$0xff] %v27193_v24  ;;  %27195 = vst [vmem:[#allocation235_spill] sm:$0xff] %v19259_v59  ;;  %v27251_v8 = vld [vmem:[#allocation190_spill] sm:$0xff]  ;;  %v27253_v39 = vld [vmem:[#allocation191_spill] sm:$0xff] }
 0x457   : >> { %27197 = vst [vmem:[#allocation165_spill] sm:$0xff] %v27196_v53  ;;  %27199 = vst [vmem:[#allocation166_spill] sm:$0xff] %v27198_v33  ;;  %v27254_v36 = vld [vmem:[#allocation192_spill] sm:$0xff]  ;;  %v27256_v9 = vld [vmem:[#allocation193_spill] sm:$0xff] }
 0x458   : >> { %27200 = vst [vmem:[#allocation236_spill] sm:$0xff] %v19271_v15  ;;  %27202 = vst [vmem:[#allocation167_spill] sm:$0xff] %v27201_v20  ;;  %v27257_v55 = vld [vmem:[#allocation194_spill] sm:$0xff]  ;;  %v27258_v22 = vld [vmem:[#allocation195_spill] sm:$0xff] }
 0x459   : >> { %27203 = vst [vmem:[#allocation237_spill] sm:$0xff] %v19279_v28  ;;  %27205 = vst [vmem:[#allocation168_spill] sm:$0xff] %v27204_v54  ;;  %v27259_v18 = vld [vmem:[#allocation196_spill] sm:$0xff]  ;;  %v27260_v30 = vld [vmem:[#allocation197_spill] sm:$0xff] }
 0x45a   : >> { %27207 = vst [vmem:[#allocation169_spill] sm:$0xff] %v27206_v16  ;;  %27209 = vst [vmem:[#allocation170_spill] sm:$0xff] %v27208_v37  ;;  %v27261_v51 = vld [vmem:[#allocation198_spill] sm:$0xff]  ;;  %v27262_v17 = vld [vmem:[#allocation199_spill] sm:$0xff] }
 0x45b   : >> { %27211 = vst [vmem:[#allocation171_spill] sm:$0xff] %v27210_v41  ;;  %27213 = vst [vmem:[#allocation172_spill] sm:$0xff] %v27212_v47  ;;  %v27264_v31 = vld [vmem:[#allocation200_spill] sm:$0xff]  ;;  %v27266_v63 = vld [vmem:[#allocation201_spill] sm:$0xff] }
 0x45c   : >> { %27214 = vst [vmem:[#allocation238_spill] sm:$0xff] %v19303_v45  ;;  %27215 = vst [vmem:[#allocation239_spill] sm:$0xff] %v19307_v26  ;;  %v27267_v52 = vld [vmem:[#allocation202_spill] sm:$0xff]  ;;  %v27269_v29 = vld [vmem:[#allocation203_spill] sm:$0xff] }
 0x45d   : >> { %27216 = vst [vmem:[#allocation240_spill] sm:$0xff] %v19311_v58  ;;  %27217 = vst [vmem:[#allocation241_spill] sm:$0xff] %v19315_v43  ;;  %v27271_v40 = vld [vmem:[#allocation204_spill] sm:$0xff]  ;;  %v27274_v11 = vld [vmem:[#allocation205_spill] sm:$0xff] }
 0x45e   : >> { %27218 = vst [vmem:[#allocation242_spill] sm:$0xff] %v19319_v10  ;;  %27220 = vst [vmem:[#allocation173_spill] sm:$0xff] %v27219_v2  ;;  %v27275_v35 = vld [vmem:[#allocation206_spill] sm:$0xff]  ;;  %v27277_v27 = vld [vmem:[#allocation207_spill] sm:$0xff] }
 0x45f   : >> { %27222 = vst [vmem:[#allocation174_spill] sm:$0xff] %v27221_v0  ;;  %27224 = vst [vmem:[#allocation175_spill] sm:$0xff] %v27223_v3  ;;  %v27279_v32 = vld [vmem:[#allocation208_spill] sm:$0xff]  ;;  %v27281_v13 = vld [vmem:[#allocation114_spill] sm:$0xff] }
 0x460   : >> { %27226 = vst [vmem:[#allocation176_spill] sm:$0xff] %v27225_v1  ;;  %27228 = vst [vmem:[#allocation177_spill] sm:$0xff] %v27227_v49  ;;  %v27282_v42 = vld [vmem:[#allocation111_spill] sm:$0xff]  ;;  %v27284_v58 = vld [vmem:[#allocation116_spill] sm:$0xff] }
 0x461   : >> { %27230 = vst [vmem:[#allocation178_spill] sm:$0xff] %v27229_v23  ;;  %27232 = vst [vmem:[#allocation179_spill] sm:$0xff] %v27231_v21  ;;  %v27283_v48 = vpack.c.bf16 %v27281_v13, %v27282_v42  ;;  %v27285_v12 = vld [vmem:[#allocation112_spill] sm:$0xff]  ;;  %v17428_v13 = vld [vmem:[%s23219_s23 + $0x30] sm:$0xff]  }
 0x462   : >> { %27234 = vst [vmem:[#allocation180_spill] sm:$0xff] %v27233_v46  ;;  %27236 = vst [vmem:[#allocation181_spill] sm:$0xff] %v27235_v6  ;;  %v27286_v45 = vpack.c.bf16 %v27284_v58, %v27285_v12  ;;  %v17426_v43 = vld [vmem:[%s23219_s23 + $0x38] sm:$0xff]   ;;  %v17430_v42 = vld [vmem:[%s23219_s23 + $0x28] sm:$0xff]  }
 0x463   : >> { %27238 = vst [vmem:[#allocation182_spill] sm:$0xff] %v27237_v4  ;;  %27240 = vst [vmem:[#allocation183_spill] sm:$0xff] %v27239_v7  ;;  %15609 = vmatprep.mubr.bf16.mxu0 %v27283_v48  ;;  %v17427_v53 = vld [vmem:[%s23219_s23 + $0x78] sm:$0xff]   ;;  %15593 = vmatprep.subr.bf16.mxu0 %v17426_v43  ;;  %v17429_v48 = vld [vmem:[%s23219_s23 + $0x70] sm:$0xff]  }
 0x464   : >> { %27242 = vst [vmem:[#allocation184_spill] sm:$0xff] %v27241_v38  ;;  %27244 = vst [vmem:[#allocation185_spill] sm:$0xff] %v27243_v5  ;;  %15641 = vmatprep.mubr.bf16.mxu1 %v27286_v45  ;;  %15625 = vmatprep.subr.bf16.mxu1 %v17427_v53  ;;  %v17431_v12 = vld [vmem:[%s23219_s23 + $0x68] sm:$0xff]   ;;  %v17432_v45 = vld [vmem:[%s23219_s23 + $0x20] sm:$0xff]  }
 0x465   : >> { %27246 = vst [vmem:[#allocation186_spill] sm:$0xff] %v27245_v14  ;;  %27248 = vst [vmem:[#allocation187_spill] sm:$0xff] %v27247_v61  ;;  %15594 = vmatpush3.bf16.xpose.msra.mxu0 %v17426_v43  ;;  %15626 = vmatpush3.bf16.xpose.msra.mxu1 %v17427_v53  ;;  %v17433_v58 = vld [vmem:[%s23219_s23 + $0x60] sm:$0xff]   ;;  %v17434_v53 = vld [vmem:[%s23219_s23 + $0x18] sm:$0xff]  }
 0x466   : >> { %27252 = vst [vmem:[#allocation188_spill] sm:$0xff] %v27251_v8  ;;  %27255 = vst [vmem:[#allocation191_spill] sm:$0xff] %v27254_v36  ;;  %15595 = vmatprep.subr.bf16.mxu0 %v17428_v13  ;;  %15627 = vmatprep.subr.bf16.mxu1 %v17429_v48  ;;  %v17435_v43 = vld [vmem:[%s23219_s23 + $0x58] sm:$0xff]   ;;  %v17439_v26 = vld [vmem:[%s23219_s23 + $0x48] sm:$0xff]  }
 0x467   : >> { %27263 = vst [vmem:[#allocation193_spill] sm:$0xff] %v27262_v17  ;;  %27265 = vst [vmem:[#allocation200_spill] sm:$0xff] %v27264_v31  ;;  %v17441_v0 = vld [vmem:[%s23219_s23 + $0x40] sm:$0xff]   ;;  %v27295_v24 = vld [vmem:[#allocation123_spill] sm:$0xff] }
 0x468   : >> { %27268 = vst [vmem:[#allocation194_spill] sm:$0xff] %v27267_v52  ;;  %27270 = vst [vmem:[#allocation195_spill] sm:$0xff] %v27269_v29  ;;  %v27292_v33 = vld [vmem:[#allocation117_spill] sm:$0xff]  ;;  %v27301_v59 = vld [vmem:[#allocation130_spill] sm:$0xff] }
 0x469   : >> { %27272 = vst [vmem:[#allocation196_spill] sm:$0xff] %v19455_v57  ;;  %27273 = vst [vmem:[#allocation197_spill] sm:$0xff] %v19459_v50  ;;  %v27304_v2 = vld [vmem:[#allocation129_spill] sm:$0xff]  ;;  %v27344_v54 = vld [vmem:[#allocation72_spill] sm:$0xff] }
 0x46a   : >> { %27276 = vst [vmem:[#allocation198_spill] sm:$0xff] %v27275_v35  ;;  %27278 = vst [vmem:[#allocation207_spill] sm:$0xff] %v27277_v27  ;;  %v17443_v15 = vld [vmem:[%s23229_s16 + $0x78] sm:$0xff]   ;;  %v17444_v1 = vld [vmem:[%s23229_s16 + $0x30] sm:$0xff]  }
 0x46b   : >> { %27280 = vst [vmem:[#allocation208_spill] sm:$0xff] %v27279_v32  ;;  %v17451_v49 = vld [vmem:[%s23229_s16 + $0x58] sm:$0xff]   ;;  %v17452_v46 = vld [vmem:[%s23229_s16 + $0x10] sm:$0xff]   ;;  %v17455_v7 = vld [vmem:[%s23229_s16 + $0x48] sm:$0xff]  }
 0x46c   : >> { %v17457_v61 = vld [vmem:[%s23229_s16 + $0x40] sm:$0xff]   ;;  %v27382_v5 = vld [vmem:[#allocation78_spill] sm:$0xff] }
 0x46d   : >> { %15596 = vmatpush3.bf16.xpose.msra.mxu0 %v17428_v13  ;;  %15628 = vmatpush3.bf16.xpose.msra.mxu1 %v17429_v48  ;;  %v17436_v13 = vld [vmem:[%s23219_s23 + $0x10] sm:$0xff]  }
 0x46e   : >> { %15597 = vmatprep.subr.bf16.mxu0 %v17430_v42  ;;  %15629 = vmatprep.subr.bf16.mxu1 %v17431_v12  ;;  %v17437_v48 = vld [vmem:[%s23219_s23 + $0x50] sm:$0xff]  }
 0x475   : >> { %15598 = vmatpush3.bf16.xpose.msra.mxu0 %v17430_v42  ;;  %15630 = vmatpush3.bf16.xpose.msra.mxu1 %v17431_v12  ;;  %v17438_v42 = vld [vmem:[%s23219_s23 + $0x8] sm:$0xff]   ;;  %v17440_v12 = vld [vmem:[%s23219_s23] sm:$0xff]  }
 0x476   : >> { %15599 = vmatprep.subr.bf16.mxu0 %v17432_v45  ;;  %15631 = vmatprep.subr.bf16.mxu1 %v17433_v58 }
 0x47d   : >> { %15600 = vmatpush3.bf16.xpose.msra.mxu0 %v17432_v45  ;;  %15632 = vmatpush3.bf16.xpose.msra.mxu1 %v17433_v58  ;;  %v27288_v45 = vld [vmem:[#allocation118_spill] sm:$0xff]  ;;  %v27289_v58 = vld [vmem:[#allocation119_spill] sm:$0xff] }
 0x47e   : >> { %15601 = vmatprep.subr.bf16.mxu0 %v17434_v53  ;;  %15633 = vmatprep.subr.bf16.mxu1 %v17435_v43 }
 0x485   : >> { %15602 = vmatpush3.bf16.xpose.msra.mxu0 %v17434_v53  ;;  %15634 = vmatpush3.bf16.xpose.msra.mxu1 %v17435_v43  ;;  %v27290_v53 = vpack.c.bf16 %v27288_v45, %v27289_v58  ;;  %v27291_v43 = vld [vmem:[#allocation122_spill] sm:$0xff]  ;;  %v27306_v58 = vld [vmem:[#allocation136_spill] sm:$0xff] }
 0x486   : >> { %15603 = vmatprep.subr.bf16.mxu0 %v17436_v13  ;;  %15635 = vmatprep.subr.bf16.mxu1 %v17437_v48 }
 0x48d   : >> { %15604 = vmatpush3.bf16.xpose.msra.mxu0 %v17436_v13  ;;  %15636 = vmatpush3.bf16.xpose.msra.mxu1 %v17437_v48  ;;  %v27293_v13 = vpack.c.bf16 %v27291_v43, %v27292_v33  ;;  %v27294_v48 = vld [vmem:[#allocation124_spill] sm:$0xff] }
 0x48e   : >> { %15605 = vmatprep.subr.bf16.mxu0 %v17438_v42  ;;  %15637 = vmatprep.subr.bf16.mxu1 %v17439_v26  ;;  %v27296_v3 = vpack.c.bf16 %v27294_v48, %v27295_v24  ;;  %v27309_v43 = vld [vmem:[#allocation148_spill] sm:$0xff]  ;;  %v27313_v48 = vld [vmem:[#allocation138_spill] sm:$0xff] }
 0x495   : >> { %15606 = vmatpush3.bf16.xpose.msra.mxu0 %v17438_v42  ;;  %15638 = vmatpush3.bf16.xpose.msra.mxu1 %v17439_v26  ;;  %v27297_v42 = vld [vmem:[#allocation128_spill] sm:$0xff]  ;;  %v27298_v26 = vld [vmem:[#allocation125_spill] sm:$0xff] }
 0x496   : >> { %15607 = vmatprep.subr.bf16.mxu0 %v17440_v12  ;;  %15639 = vmatprep.subr.bf16.mxu1 %v17441_v0  ;;  %v27299_v10 = vpack.c.bf16 %v27297_v42, %v27298_v26  ;;  %v27316_v26 = vld [vmem:[#allocation85_spill] sm:$0xff] }
 0x49d   : >> { %15608 = vmatpush3.bf16.xpose.msra.mxu0 %v17440_v12  ;;  %15640 = vmatpush3.bf16.xpose.msra.mxu1 %v17441_v0  ;;  %v27300_v12 = vld [vmem:[#allocation135_spill] sm:$0xff]  ;;  %v27303_v0 = vld [vmem:[#allocation134_spill] sm:$0xff] }
 0x49e   : >> { %v27302_v28 = vpack.c.bf16 %v27300_v12, %v27301_v59  ;;  %v27305_v45 = vpack.c.bf16 %v27303_v0, %v27304_v2  ;;  %v27319_v12 = vld [vmem:[#allocation141_spill] sm:$0xff]  ;;  %v27321_v0 = vld [vmem:[#allocation91_spill] sm:$0xff]  ;;  %15689 = vmatprep.subr.bf16.mxu1 %v17443_v15 }
 0x4a4   : >> { %15610 = vmatmul.mubr.bf16.vlgmr.msra.gmra.mxu0 %v27290_v53  ;;  %15642 = vmatmul.mubr.bf16.vlgmr.msra.gmra.mxu1 %v27293_v13  ;;  %v27307_v53 = vld [vmem:[#allocation133_spill] sm:$0xff]  ;;  %v27310_v13 = vld [vmem:[#allocation151_spill] sm:$0xff] }
 0x4a5   : >> { %15613 = vmatprep.mubr.bf16.mxu0 %v27296_v3  ;;  %15645 = vmatprep.mubr.bf16.mxu1 %v27299_v10  ;;  %v27308_v33 = vpack.c.bf16 %v27306_v58, %v27307_v53  ;;  %v27311_v24 = vpack.c.bf16 %v27309_v43, %v27310_v13  ;;  %v27312_v3 = vld [vmem:[#allocation137_spill] sm:$0xff]  ;;  %v27315_v10 = vld [vmem:[#allocation140_spill] sm:$0xff]  ;;  %v27324_v53 = vld [vmem:[#allocation146_spill] sm:$0xff] }
 0x4a6   : >> { %v27314_v42 = vpack.c.bf16 %v27312_v3, %v27313_v48  ;;  %v27317_v59 = vpack.c.bf16 %v27315_v10, %v27316_v26  ;;  %v27327_v13 = vld [vmem:[#allocation150_spill] sm:$0xff]  ;;  %v23283_v48 = vstv %s14987_s30  ;;  %v27331_v10 = vld [vmem:[#allocation76_spill] sm:$0xff]  ;;  %15690 = vmatpush3.bf16.msra.mxu1 %v17443_v15 }
 0x4a7   : >> { %v27332_v32 = vmov %v27331_v10 }
 0x4ac   : >> { %15614 = vmatmul.mubr.bf16.gmra.mxu0 %v27302_v28  ;;  %15646 = vmatmul.mubr.bf16.gmra.mxu1 %v27305_v45  ;;  %v27318_v28 = vld [vmem:[#allocation143_spill] sm:$0xff]  ;;  %v27322_v45 = vld [vmem:[#allocation142_spill] sm:$0xff] }
 0x4ad   : >> { %15617 = vmatprep.mubr.bf16.mxu0 %v27308_v33  ;;  %15649 = vmatprep.mubr.bf16.mxu1 %v27311_v24  ;;  %v27320_v2 = vpack.c.bf16 %v27318_v28, %v27319_v12  ;;  %v27323_v58 = vpack.c.bf16 %v27321_v0, %v27322_v45  ;;  %v27325_v33 = vld [vmem:[#allocation90_spill] sm:$0xff]  ;;  %v27328_v24 = vld [vmem:[#allocation147_spill] sm:$0xff] }
 0x4ae   : >> { %v27326_v43 = vpack.c.bf16 %v27324_v53, %v27325_v33  ;;  %v27329_v3 = vpack.c.bf16 %v27327_v13, %v27328_v24  ;;  %v27336_v13 = vld [vmem:[#allocation68_spill] sm:$0xff] }
 0x4af   : >> { %v27337_v24 = vsub.s32 %v27336_v13, %v27332_v32 }
 0x4b1   : >> { %vm8452_vm2 = vcmp.ge.s32.totalorder %v27337_v24, %v23283_v48  ;;  %v17446_v24 = vld [vmem:[%s23229_s16 + $0x28] sm:$0xff]  }
 0x4b4   : >> { %15618 = vmatmul.mubr.bf16.gmra.mxu0 %v27314_v42  ;;  %15650 = vmatmul.mubr.bf16.gmra.mxu1 %v27317_v59  ;;  %v27330_v42 = vld [vmem:[#allocation67_spill] sm:$0xff] }
 0x4b5   : >> { %15621 = vmatprep.mubr.bf16.mxu0 %v27320_v2  ;;  %15653 = vmatprep.mubr.bf16.mxu1 %v27323_v58  ;;  %v27333_v26 = vsub.s32 %v27330_v42, %v27331_v10  ;;  %v27334_v2 = vld [vmem:[#allocation65_spill] sm:$0xff] }
 0x4b6   : >> { %v27335_v0 = vsub.s32 %v27334_v2, %v27332_v32 }
 0x4b7   : >> { %vm8451_vm0 = vcmp.ge.s32.totalorder %v27333_v26, %v23283_v48 }
 0x4b8   : >> { %vm8449_vm1 = vcmp.ge.s32.totalorder %v27335_v0, %v23283_v48 }
 0x4bc   : >> { %15622 = vmatmul.mubr.bf16.gmra.mxu0 %v27326_v43  ;;  %15654 = vmatmul.mubr.bf16.gmra.mxu1 %v27329_v3 }
 0x564   : >> { %v15611_v59 = vpop.f32.mrf.mxu0  ;;  %v15643_v28 = vpop.f32.mrf.mxu1 }
 0x565   : >> { %v23289_v12 = vsel %vm8451_vm0, %v15611_v59, -1e+30  ;;  %v23299_v43 = vsel %vm8451_vm0, %v15643_v28, -1e+30  ;;  %v27338_v59 = vld [vmem:[#allocation66_spill] sm:$0xff] }
 0x566   : >> { %8533 = vmax.xlane.f32.xlu0 %v23289_v12  ;;  %v8238_v45 = vpop.f32.mrf.mxu0  ;;  %v8383_v58 = vpop.f32.mrf.mxu1  ;;  %v27339_v28 = vsub.s32 %v27338_v59, %v27332_v32 }
 0x567   : >> { %v23296_v53 = vsel %vm8449_vm1, %v8383_v58, -1e+30  ;;  %v23309_v26 = vsel %vm8449_vm1, %v8238_v45, -1e+30  ;;  %v27340_v45 = vld [vmem:[#allocation71_spill] sm:$0xff] }
 0x568   : >> { %v15612_v33 = vpop.f32.mrf.mxu0  ;;  %8561 = vmax.xlane.f32.xlu1 %v23296_v53  ;;  %v15644_v10 = vpop.f32.mrf.mxu1  ;;  %vm8450_vm3 = vcmp.ge.s32.totalorder %v27339_v28, %v23283_v48  ;;  %v27341_v13 = vsub.s32 %v27340_v45, %v27332_v32  ;;  %v27345_v45 = vsub.s32 %v27344_v54, %v27332_v32 }
 0x569   : >> { %v23306_v42 = vsel %vm8452_vm2, %v15612_v33, -1e+30  ;;  %v23316_v0 = vsel %vm8452_vm2, %v15644_v10, -1e+30  ;;  %v17442_v10 = vld [vmem:[%s23229_s16 + $0x38] sm:$0xff]  }
 0x56a   : >> { %8565 = vmax.xlane.f32.xlu0 %v23299_v43  ;;  %v8241_v3 = vpop.f32.mrf.mxu0  ;;  %v8386_v58 = vpop.f32.mrf.mxu1  ;;  %vm23326_vm4 = vcmp.ge.s32.totalorder %v27341_v13, %v23283_v48  ;;  %vm23342_vm5 = vcmp.ge.s32.totalorder %v27345_v45, %v23283_v48  ;;  %15657 = vmatprep.subr.bf16.mxu0 %v17442_v10  ;;  %v17445_v45 = vld [vmem:[%s23229_s16 + $0x70] sm:$0xff]   ;;  %v17447_v13 = vld [vmem:[%s23229_s16 + $0x68] sm:$0xff]  }
 0x56b   : >> { %v23319_v33 = vsel %vm8450_vm3, %v8241_v3, -1e+30  ;;  %v23331_v23 = vsel %vm8450_vm3, %v8386_v58, -1e+30  ;;  %15658 = vmatpush3.bf16.msra.mxu0 %v17442_v10  ;;  %v27348_v10 = vld [vmem:[#allocation69_spill] sm:$0xff]  ;;  %15691 = vmatprep.subr.bf16.mxu1 %v17445_v45 }
 0x56c   : >> { %8535 = vmax.xlane.f32.xlu1 %v23306_v42  ;;  %v15615_v2 = vpop.f32.mrf.mxu0  ;;  %v15647_v28 = vpop.f32.mrf.mxu1  ;;  %15659 = vmatprep.subr.bf16.mxu0 %v17444_v1  ;;  %v27349_v20 = vsub.s32 %v27348_v10, %v27332_v32  ;;  %v27352_v10 = vld [vmem:[#allocation70_spill] sm:$0xff] }
 0x56d   : >> { %v23336_v3 = vsel %vm23326_vm4, %v15615_v2, -1e+30  ;;  %v23356_v54 = vsel %vm23326_vm4, %v15647_v28, -1e+30  ;;  %15692 = vmatpush3.bf16.msra.mxu1 %v17445_v45 }
 0x56e   : >> { %8529 = vmax.xlane.f32.xlu0 %v23309_v26  ;;  %v8254_v59 = vpop.f32.mrf.mxu0  ;;  %v8399_v21 = vpop.f32.mrf.mxu1  ;;  %vm23364_vm6 = vcmp.ge.s32.totalorder %v27349_v20, %v23283_v48  ;;  %15693 = vmatprep.subr.bf16.mxu1 %v17447_v13 }
 0x56f   : >> { %15660 = vmatpush3.bf16.msra.mxu0 %v17444_v1  ;;  %v23376_v20 = vsel %vm23364_vm6, %v8254_v59, -1e+30  ;;  %v27353_v1 = vsub.s32 %v27352_v10, %v27332_v32  ;;  %v23396_v10 = vsel %vm23364_vm6, %v8399_v21, -1e+30  ;;  %v17450_v21 = vld [vmem:[%s23229_s16 + $0x18] sm:$0xff]  }
 0x570   : >> { %8567 = vmax.xlane.f32.xlu1 %v23316_v0  ;;  %v15616_v58 = vpop.f32.mrf.mxu0  ;;  %v15648_v15 = vpop.f32.mrf.mxu1  ;;  %15661 = vmatprep.subr.bf16.mxu0 %v17446_v24 }
 0x571   : >> { %v23351_v2 = vsel %vm23342_vm5, %v15616_v58, -1e+30  ;;  %v23371_v28 = vsel %vm23342_vm5, %v15648_v15, -1e+30  ;;  %vm23382_vm7 = vcmp.ge.s32.totalorder %v27353_v1, %v23283_v48  ;;  %v17448_v15 = vld [vmem:[%s23229_s16 + $0x20] sm:$0xff]   ;;  %15694 = vmatpush3.bf16.msra.mxu1 %v17447_v13 }
 0x572   : >> { %8531 = vmax.xlane.f32.xlu0 %v23319_v33  ;;  %v8257_v58 = vpop.f32.mrf.mxu0  ;;  %v8402_v4 = vpop.f32.mrf.mxu1  ;;  %v17449_v1 = vld [vmem:[%s23229_s16 + $0x60] sm:$0xff]  }
 0x573   : >> { %15662 = vmatpush3.bf16.msra.mxu0 %v17446_v24  ;;  %v23391_v59 = vsel %vm23382_vm7, %v8257_v58, -1e+30  ;;  %v27356_v24 = vld [vmem:[#allocation75_spill] sm:$0xff]  ;;  %15695 = vmatprep.subr.bf16.mxu1 %v17449_v1  ;;  %v23411_v41 = vsel %vm23382_vm7, %v8402_v4, -1e+30 }
 0x574   : >> { %8563 = vmax.xlane.f32.xlu1 %v23331_v23  ;;  %v15619_v45 = vpop.f32.mrf.mxu0  ;;  %15663 = vmatprep.subr.bf16.mxu0 %v17448_v15  ;;  %v27357_v47 = vsub.s32 %v27356_v24, %v27332_v32  ;;  %v15651_v16 = vpop.f32.mrf.mxu1  ;;  %v27360_v24 = vld [vmem:[#allocation77_spill] sm:$0xff] }
 0x575   : >> { %15696 = vmatpush3.bf16.msra.mxu1 %v17449_v1 }
 0x576   : >> { %8541 = vmax.xlane.f32.xlu0 %v23336_v3  ;;  %vm23404_vm8 = vcmp.ge.s32.totalorder %v27357_v47, %v23283_v48  ;;  %v8270_v13 = vpop.f32.mrf.mxu0  ;;  %v8415_v1 = vpop.f32.mrf.mxu1  ;;  %15697 = vmatprep.subr.bf16.mxu1 %v17451_v49 }
 0x577   : >> { %15664 = vmatpush3.bf16.msra.mxu0 %v17448_v15  ;;  %v23416_v47 = vsel %vm23404_vm8, %v15619_v45, -1e+30  ;;  %v27361_v15 = vsub.s32 %v27360_v24, %v27332_v32  ;;  %v23436_v24 = vsel %vm23404_vm8, %v15651_v16, -1e+30  ;;  %v17454_v16 = vld [vmem:[%s23229_s16 + $0x8] sm:$0xff]  }
 0x578   : >> { %8543 = vmax.xlane.f32.xlu1 %v23351_v2  ;;  %15665 = vmatprep.subr.bf16.mxu0 %v17450_v21  ;;  %v15620_v4 = vpop.f32.mrf.mxu0 }
 0x579   : >> { %vm23422_vm9 = vcmp.ge.s32.totalorder %v27361_v15, %v23283_v48  ;;  %15698 = vmatpush3.bf16.msra.mxu1 %v17451_v49  ;;  %v17453_v15 = vld [vmem:[%s23229_s16 + $0x50] sm:$0xff]  }
 0x57a   : >> { %8573 = vmax.xlane.f32.xlu0 %v23356_v54  ;;  %v23431_v45 = vsel %vm23422_vm9, %v15620_v4, -1e+30  ;;  %v8273_v49 = vpop.f32.mrf.mxu0  ;;  %v15652_v4 = vpop.f32.mrf.mxu1  ;;  %15699 = vmatprep.subr.bf16.mxu1 %v17453_v15 }
 0x57b   : >> { %15666 = vmatpush3.bf16.msra.mxu0 %v17450_v21  ;;  %v27364_v21 = vld [vmem:[#allocation73_spill] sm:$0xff]  ;;  %v23451_v58 = vsel %vm23422_vm9, %v15652_v4, -1e+30 }
 0x57c   : >> { %8575 = vmax.xlane.f32.xlu1 %v23371_v28  ;;  %15667 = vmatprep.subr.bf16.mxu0 %v17452_v46  ;;  %v27365_v37 = vsub.s32 %v27364_v21, %v27332_v32  ;;  %v15623_v38 = vpop.f32.mrf.mxu0  ;;  %v27368_v21 = vld [vmem:[#allocation74_spill] sm:$0xff]  ;;  %v17456_v4 = vld [vmem:[%s23229_s16] sm:$0xff]  }
 0x57d   : >> { %15700 = vmatpush3.bf16.msra.mxu1 %v17453_v15  ;;  %v8418_v15 = vpop.f32.mrf.mxu1 }
 0x57e   : >> { %8537 = vmax.xlane.f32.xlu0 %v23376_v20  ;;  %vm23444_vm10 = vcmp.ge.s32.totalorder %v27365_v37, %v23283_v48  ;;  %15701 = vmatprep.subr.bf16.mxu1 %v17455_v7  ;;  %v8286_v14 = vpop.f32.mrf.mxu0 }
 0x57f   : >> { %15668 = vmatpush3.bf16.msra.mxu0 %v17452_v46  ;;  %v23456_v37 = vsel %vm23444_vm10, %v8270_v13, -1e+30  ;;  %v27369_v46 = vsub.s32 %v27368_v21, %v27332_v32  ;;  %v15655_v21 = vpop.f32.mrf.mxu1 }
 0x580   : >> { %8539 = vmax.xlane.f32.xlu1 %v23391_v59  ;;  %15669 = vmatprep.subr.bf16.mxu0 %v17454_v16  ;;  %v15624_v6 = vpop.f32.mrf.mxu0 }
 0x581   : >> { %vm23462_vm11 = vcmp.ge.s32.totalorder %v27369_v46, %v23283_v48  ;;  %15702 = vmatpush3.bf16.msra.mxu1 %v17455_v7  ;;  %v23476_v46 = vsel %vm23444_vm10, %v8415_v1, -1e+30  ;;  %v8431_v1 = vpop.f32.mrf.mxu1 }
 0x582   : >> { %8569 = vmax.xlane.f32.xlu0 %v23396_v10  ;;  %v23471_v13 = vsel %vm23462_vm11, %v8273_v49, -1e+30  ;;  %15703 = vmatprep.subr.bf16.mxu1 %v17457_v61  ;;  %v23490_v7 = vsel %vm23462_vm11, %v8418_v15, -1e+30 }
 0x583   : >> { %15670 = vmatpush3.bf16.msra.mxu0 %v17454_v16  ;;  %v27372_v16 = vld [vmem:[#allocation80_spill] sm:$0xff]  ;;  %27376 = vst [vmem:[#allocation199_spill] sm:$0xff] %v23490_v7  ;;  %v15656_v31 = vpop.f32.mrf.mxu1 }
 0x584   : >> { %8571 = vmax.xlane.f32.xlu1 %v23411_v41  ;;  %15671 = vmatprep.subr.bf16.mxu0 %v17456_v4  ;;  %v27373_v52 = vsub.s32 %v27372_v16, %v27332_v32 }
 0x585   : >> { %15704 = vmatpush3.bf16.msra.mxu1 %v17457_v61  ;;  %v27383_v61 = vsub.s32 %v27382_v5, %v27332_v32  ;;  %v8434_v5 = vpop.f32.mrf.mxu1 }
 0x586   : >> { %8549 = vmax.xlane.f32.xlu0 %v23416_v47  ;;  %vm23484_vm12 = vcmp.ge.s32.totalorder %v27373_v52, %v23283_v48  ;;  %v27378_v52 = vld [vmem:[#allocation81_spill] sm:$0xff] }
 0x587   : >> { %15672 = vmatpush3.bf16.msra.mxu0 %v17456_v4  ;;  %v23495_v29 = vsel %vm23484_vm12, %v15623_v38, -1e+30  ;;  %v27379_v16 = vsub.s32 %v27378_v52, %v27332_v32  ;;  %vm8461_vm14 = vcmp.ge.s32.totalorder %v27383_v61, %v23283_v48  ;;  %v8289_v38 = vpop.f32.mrf.mxu0 }
 0x588   : >> { %8551 = vmax.xlane.f32.xlu1 %v23431_v45  ;;  %27377 = vst [vmem:[#allocation201_spill] sm:$0xff] %v23495_v29  ;;  %v23515_v52 = vsel %vm8461_vm14, %v8286_v14, -1e+30  ;;  %v23533_v14 = vsel %vm23484_vm12, %v15655_v21, -1e+30 }
 0x589   : >> { %vm23501_vm13 = vcmp.ge.s32.totalorder %v27379_v16, %v23283_v48  ;;  %v27384_v16 = vld [vmem:[#allocation79_spill] sm:$0xff] }
 0x58a   : >> { %8581 = vmax.xlane.f32.xlu0 %v23436_v24  ;;  %v23512_v15 = vsel %vm23501_vm13, %v15624_v6, -1e+30  ;;  %v23525_v6 = vsel %vm8461_vm14, %v8431_v1, -1e+30 }
 0x58c   : >> { %8583 = vmax.xlane.f32.xlu1 %v23451_v58 }
 0x58e   : >> { %8545 = vmax.xlane.f32.xlu0 %v23456_v37 }
 0x590   : >> { %8547 = vmax.xlane.f32.xlu1 %v23471_v13 }
 0x592   : >> { %8577 = vmax.xlane.f32.xlu0 %v23476_v46 }
 0x594   : >> { %8579 = vmax.xlane.f32.xlu1 %v23490_v7  ;;  %v27385_v7 = vsub.s32 %v27384_v16, %v27332_v32 }
 0x596   : >> { %8557 = vmax.xlane.f32.xlu0 %v23495_v29  ;;  %vm8462_vm15 = vcmp.ge.s32.totalorder %v27385_v7, %v23283_v48  ;;  %v23538_v48 = vsel %vm23501_vm13, %v15656_v31, -1e+30 }
 0x597   : >> { %v23522_v29 = vsel %vm8462_vm15, %v8289_v38, -1e+30  ;;  %v23528_v61 = vsel %vm8462_vm15, %v8434_v5, -1e+30  ;;  %27386 = vst [vmem:[#allocation202_spill] sm:$0xff] %v23538_v48 }
 0x598   : >> { %8559 = vmax.xlane.f32.xlu1 %v23512_v15 }
 0x59a   : >> { %8553 = vmax.xlane.f32.xlu0 %v23515_v52 }
 0x59c   : >> { %8555 = vmax.xlane.f32.xlu1 %v23522_v29 }
 0x59e   : >> { %8585 = vmax.xlane.f32.xlu0 %v23525_v6 }
 0x5a0   : >> { %8587 = vmax.xlane.f32.xlu1 %v23528_v61 }
 0x5a2   : >> { %8589 = vmax.xlane.f32.xlu0 %v23533_v14 }
 0x5a4   : >> { %8591 = vmax.xlane.f32.xlu1 %v23538_v48 }
 0x5ef   : >> { %v8534_v7 = vpop.xlane.xlu0 %8533 }
 0x5f0   : >> { %v23542_v1 = vmax.f32 %v27275_v35, %v8534_v7   ;;  %v27400_v7 = vld [vmem:[#allocation207_spill] sm:$0xff] }
 0x5f1   : >> { %v8562_v21 = vpop.xlane.xlu1 %8561 }
 0x5f2   : >> { %27387 = vst [vmem:[#allocation206_spill] sm:$0xff] %v23542_v1  ;;  %v27388_v32 = vmov %v23542_v1  ;;  %v23549_v16 = vmax.f32 %v27262_v17, %v8562_v21  }
 0x5f3   : >> { %v8723_v49 = vsub.f32 %v23289_v12, %v27388_v32  ;;  %v8566_v5 = vpop.xlane.xlu0 %8565 }
 0x5f4   : >> { %27389 = vst [vmem:[#allocation203_spill] sm:$0xff] %v23549_v16  ;;  %v27390_v57 = vmov %v23549_v16  ;;  %v23552_v31 = vmax.f32 %v27260_v30, %v8566_v5  }
 0x5f5   : >> { %v8757_v4 = vmul.f32 1.442695, %v8723_v49  ;;  %v8536_v38 = vpop.xlane.xlu1 %8535  ;;  %v27395_v49 = vld [vmem:[#allocation208_spill] sm:$0xff] }
 0x5f6   : >> { %27391 = vst [vmem:[#allocation204_spill] sm:$0xff] %v23552_v31  ;;  %v27392_v50 = vmov %v23552_v31  ;;  %v23561_v12 = vmax.f32 %v27274_v11, %v8536_v38   ;;  %v8737_v38 = vsub.f32 %v23296_v53, %v27390_v57 }
 0x5f7   : >> { %v8739_v1 = vsub.f32 %v23299_v43, %v27392_v50  ;;  %17458 = vpow2.f32 %v8757_v4  ;;  %v8530_v21 = vpop.xlane.xlu0 %8529 }
 0x5f8   : >> { %27393 = vst [vmem:[#allocation205_spill] sm:$0xff] %v23561_v12  ;;  %v27394_v32 = vmov %v23561_v12  ;;  %v23564_v35 = vmax.f32 %v27395_v49, %v8530_v21  }
 0x5f9   : >> { %v8789_v16 = vmul.f32 1.442695, %v8739_v1  ;;  %v8724_v31 = vsub.f32 %v23306_v42, %v27394_v32  ;;  %v8568_v4 = vpop.xlane.xlu1 %8567 }
 0x5fa   : >> { %27396 = vst [vmem:[#allocation208_spill] sm:$0xff] %v23564_v35  ;;  %v27397_v27 = vmov %v23564_v35  ;;  %v23577_v12 = vmax.f32 %v27259_v18, %v8568_v4  }
 0x5fb   : >> { %v8721_v43 = vsub.f32 %v23309_v26, %v27397_v27  ;;  %v8759_v1 = vmul.f32 1.442695, %v8724_v31  ;;  %v8532_v21 = vpop.xlane.xlu0 %8531  ;;  %17460 = vpow2.f32 %v8789_v16 }
 0x5fc   : >> { %27398 = vst [vmem:[#allocation243_spill] sm:$0xff] %v23577_v12  ;;  %v27399_v35 = vmov %v23577_v12  ;;  %v23580_v17 = vmax.f32 %v27400_v7, %v8532_v21   ;;  %v8785_v12 = vmul.f32 1.442695, %v8737_v38 }
 0x5fd   : >> { %v8753_v5 = vmul.f32 1.442695, %v8721_v43  ;;  %v8740_v26 = vsub.f32 %v23316_v0, %v27399_v35  ;;  %17462 = vpow2.f32 %v8759_v1  ;;  %v8564_v4 = vpop.xlane.xlu1 %8563 }
 0x5fe   : >> { %27401 = vst [vmem:[#allocation207_spill] sm:$0xff] %v23580_v17  ;;  %v27402_v32 = vmov %v23580_v17  ;;  %v23591_v43 = vmax.f32 %v27261_v51, %v8564_v4  }
 0x5ff   : >> { %v8722_v31 = vsub.f32 %v23319_v33, %v27402_v32  ;;  %v8791_v16 = vmul.f32 1.442695, %v8740_v26  ;;  %v8542_v17 = vpop.xlane.xlu0 %8541  ;;  %17464 = vpow2.f32 %v8753_v5 }
 0x600   : >> { %27403 = vst [vmem:[#allocation244_spill] sm:$0xff] %v23591_v43  ;;  %v27404_v48 = vmov %v23591_v43  ;;  %v23594_v42 = vmax.f32 %v19467_v60, %v8542_v17  }
 0x601   : >> { %v8755_v21 = vmul.f32 1.442695, %v8722_v31  ;;  %v8738_v1 = vsub.f32 %v23331_v23, %v27404_v48  ;;  %17466 = vpow2.f32 %v8791_v16  ;;  %v8544_v26 = vpop.xlane.xlu1 %8543 }
 0x602   : >> { %27405 = vst [vmem:[#allocation245_spill] sm:$0xff] %v23594_v42  ;;  %v27406_v27 = vmov %v23594_v42  ;;  %17468 = vpow2.f32 %v8785_v12  ;;  %v23605_v31 = vmax.f32 %v19463_v19, %v8544_v26  }
 0x603   : >> { %v8727_v38 = vsub.f32 %v23336_v3, %v27406_v27  ;;  %v8787_v5 = vmul.f32 1.442695, %v8738_v1  ;;  %v8574_v42 = vpop.xlane.xlu0 %8573  ;;  %17470 = vpow2.f32 %v8755_v21 }
 0x604   : >> { %27407 = vst [vmem:[#allocation246_spill] sm:$0xff] %v23605_v31  ;;  %v27408_v53 = vmov %v23605_v31  ;;  %v23607_v4 = vpop.eup %17458  ;;  %v23610_v23 = vmax.f32 %v27256_v9, %v8574_v42  }
 0x605   : >> { %v8765_v43 = vmul.f32 1.442695, %v8727_v38  ;;  %8853 = vadd.xlane.f32.xlu0 %v23607_v4  ;;  %17472 = vpow2.f32 %v8787_v5  ;;  %v8728_v3 = vsub.f32 %v23351_v2, %v27408_v53  ;;  %v8576_v21 = vpop.xlane.xlu1 %8575 }
 0x606   : >> { %27409 = vst [vmem:[#allocation247_spill] sm:$0xff] %v23610_v23  ;;  %v27410_v0 = vmov %v23610_v23  ;;  %v23622_v1 = vmax.f32 %v27254_v36, %v8576_v21  }
 0x607   : >> { %v8743_v17 = vsub.f32 %v23356_v54, %v27410_v0  ;;  %v8538_v38 = vpop.xlane.xlu0 %8537  ;;  %17474 = vpow2.f32 %v8765_v43  ;;  %v8767_v23 = vmul.f32 1.442695, %v8728_v3 }
 0x608   : >> { %27411 = vst [vmem:[#allocation192_spill] sm:$0xff] %v23622_v1  ;;  %v27412_v33 = vmov %v23622_v1  ;;  %v23625_v31 = vmax.f32 %v19475_v44, %v8538_v38   ;;  %v23627_v5 = vpop.eup %17460 }
 0x609   : >> { %v8797_v26 = vmul.f32 1.442695, %v8743_v17  ;;  %v8744_v42 = vsub.f32 %v23371_v28, %v27412_v33  ;;  %8885 = vadd.xlane.f32.xlu0 %v23627_v5  ;;  %v8540_v43 = vpop.xlane.xlu1 %8539 }
 0x60a   : >> { %27413 = vst [vmem:[#allocation248_spill] sm:$0xff] %v23625_v31  ;;  %v27414_v16 = vmov %v23625_v31  ;;  %v17463_v17 = vpop.eup %17462  ;;  %v23639_v1 = vmax.f32 %v19471_v34, %v8540_v43  }
 0x60b   : >> { %v8725_v21 = vsub.f32 %v23376_v20, %v27414_v16  ;;  %v8570_v38 = vpop.xlane.xlu0 %8569  ;;  %17476 = vpow2.f32 %v8797_v26  ;;  %8855 = vadd.xlane.f32.xlu1 %v17463_v17  ;;  %v8799_v33 = vmul.f32 1.442695, %v8744_v42 }
 0x60c   : >> { %27415 = vst [vmem:[#allocation249_spill] sm:$0xff] %v23639_v1  ;;  %v27416_v12 = vmov %v23639_v1  ;;  %v23642_v28 = vmax.f32 %v27258_v22, %v8570_v38   ;;  %v17465_v3 = vpop.eup %17464  ;;  %17478 = vpow2.f32 %v8767_v23 }
 0x60d   : >> { %v8761_v31 = vmul.f32 1.442695, %v8725_v21  ;;  %v8726_v20 = vsub.f32 %v23391_v59, %v27416_v12  ;;  %8849 = vadd.xlane.f32.xlu0 %v17465_v3  ;;  %v8572_v21 = vpop.xlane.xlu1 %8571 }
 0x60e   : >> { %27417 = vst [vmem:[#allocation250_spill] sm:$0xff] %v23642_v28  ;;  %v27418_v2 = vmov %v23642_v28  ;;  %v17467_v1 = vpop.eup %17466  ;;  %v23653_v28 = vmax.f32 %v27257_v55, %v8572_v21  }
 0x60f   : >> { %v8741_v26 = vsub.f32 %v23396_v10, %v27418_v2  ;;  %v8763_v38 = vmul.f32 1.442695, %v8726_v20  ;;  %v8550_v42 = vpop.xlane.xlu0 %8549  ;;  %v17469_v36 = vpop.eup %17468  ;;  %17480 = vpow2.f32 %v8761_v31  ;;  %8887 = vadd.xlane.f32.xlu1 %v17467_v1  ;;  %v8978_v10 = vpack.c.bf16 %v17463_v17, %v23607_v4 }
 0x610   : >> { %27419 = vst [vmem:[#allocation251_spill] sm:$0xff] %v23653_v28  ;;  %v27420_v16 = vmov %v23653_v28  ;;  %v23656_v59 = vmax.f32 %v19451_v25, %v8550_v42   ;;  %v17471_v23 = vpop.eup %17470  ;;  %17482 = vpow2.f32 %v8799_v33 }
 0x611   : >> { %v8793_v54 = vmul.f32 1.442695, %v8741_v26  ;;  %v8742_v43 = vsub.f32 %v23411_v41, %v27420_v16  ;;  %17484 = vpow2.f32 %v8763_v38  ;;  %8881 = vadd.xlane.f32.xlu0 %v17469_v36  ;;  %v8552_v26 = vpop.xlane.xlu1 %8551  ;;  %v8977_v21 = vpack.c.bf16 %v17471_v23, %v17465_v3 }
 0x612   : >> { %27421 = vst [vmem:[#allocation252_spill] sm:$0xff] %v23656_v59  ;;  %v27422_v12 = vmov %v23656_v59  ;;  %v17473_v28 = vpop.eup %17472  ;;  %v23667_v33 = vmax.f32 %v27271_v40, %v8552_v26  }
 0x613   : >> { %v8731_v31 = vsub.f32 %v23416_v47, %v27422_v12  ;;  %v8795_v42 = vmul.f32 1.442695, %v8742_v43  ;;  %v8582_v59 = vpop.xlane.xlu0 %8581  ;;  %17486 = vpow2.f32 %v8793_v54  ;;  %15673 = vmatprep.mubr.bf16.mxu0 %v8977_v21  ;;  %8851 = vadd.xlane.f32.xlu1 %v17471_v23  ;;  %v8985_v3 = vpack.c.bf16 %v17473_v28, %v17469_v36 }
 0x614   : >> { %27423 = vst [vmem:[#allocation253_spill] sm:$0xff] %v23667_v33  ;;  %v23671_v38 = vmax.f32 %v27250_v62, %v8582_v59   ;;  %v23673_v16 = vpop.eup %17474  ;;  %15674 = vmatmul.mubr.bf16.vlgmr.msra.gmra.mxu0 %v8978_v10  ;;  %v8986_v43 = vpack.c.bf16 %v17467_v1, %v23627_v5  ;;  %v8732_v4 = vsub.f32 %v23431_v45, %v23667_v33  ;;  %v27427_v1 = vld [vmem:[#allocation197_spill] sm:$0xff] }
 0x615   : >> { %v8773_v41 = vmul.f32 1.442695, %v8731_v31  ;;  %17488 = vpow2.f32 %v8795_v42  ;;  %8861 = vadd.xlane.f32.xlu0 %v23673_v16  ;;  %v8584_v23 = vpop.xlane.xlu1 %8583  ;;  %15705 = vmatprep.mubr.bf16.mxu1 %v8985_v3 }
 0x616   : >> { %v27424_v20 = vmov %v23671_v38  ;;  %v23686_v31 = vmax.f32 %v27249_v56, %v8584_v23   ;;  %15706 = vmatmul.mubr.bf16.vlgmr.msra.gmra.mxu1 %v8986_v43  ;;  %v8775_v21 = vmul.f32 1.442695, %v8732_v4  ;;  %v27430_v38 = vld [vmem:[#allocation196_spill] sm:$0xff] }
 0x617   : >> { %v8747_v17 = vsub.f32 %v23436_v24, %v27424_v20  ;;  %v8546_v36 = vpop.xlane.xlu0 %8545  ;;  %17490 = vpow2.f32 %v8773_v41  ;;  %8883 = vadd.xlane.f32.xlu1 %v17473_v28 }
 0x618   : >> { %27425 = vst [vmem:[#allocation189_spill] sm:$0xff] %v23686_v31  ;;  %v27426_v47 = vmov %v23686_v31  ;;  %v23689_v45 = vmax.f32 %v27427_v1, %v8546_v36   ;;  %v23691_v10 = vpop.eup %17476 }
 0x619   : >> { %v8805_v5 = vmul.f32 1.442695, %v8747_v17  ;;  %v8748_v26 = vsub.f32 %v23451_v58, %v27426_v47  ;;  %8893 = vadd.xlane.f32.xlu0 %v23691_v10  ;;  %v8548_v28 = vpop.xlane.xlu1 %8547  ;;  %v17479_v41 = vpop.eup %17478 }
 0x61a   : >> { %27428 = vst [vmem:[#allocation254_spill] sm:$0xff] %v23689_v45  ;;  %v27429_v33 = vmov %v23689_v45  ;;  %v23703_v3 = vmax.f32 %v27430_v38, %v8548_v28  }
 0x61b   : >> { %v8729_v59 = vsub.f32 %v23456_v37, %v27429_v33  ;;  %v8578_v43 = vpop.xlane.xlu0 %8577  ;;  %17492 = vpow2.f32 %v8805_v5  ;;  %8863 = vadd.xlane.f32.xlu1 %v17479_v41  ;;  %v8807_v23 = vmul.f32 1.442695, %v8748_v26 }
 0x61c   : >> { %27431 = vst [vmem:[#allocation255_spill] sm:$0xff] %v23703_v3  ;;  %v27432_v54 = vmov %v23703_v3  ;;  %v23706_v58 = vmax.f32 %v27253_v39, %v8578_v43   ;;  %v17481_v4 = vpop.eup %17480  ;;  %17494 = vpow2.f32 %v8775_v21 }
 0x61d   : >> { %v8769_v17 = vmul.f32 1.442695, %v8729_v59  ;;  %v8730_v37 = vsub.f32 %v23471_v13, %v27432_v54  ;;  %v17483_v36 = vpop.eup %17482  ;;  %8857 = vadd.xlane.f32.xlu0 %v17481_v4  ;;  %v8580_v59 = vpop.xlane.xlu1 %8579 }
 0x61e   : >> { %27433 = vst [vmem:[#allocation197_spill] sm:$0xff] %v23706_v58  ;;  %v27434_v24 = vmov %v23706_v58  ;;  %v17485_v28 = vpop.eup %17484  ;;  %v23717_v26 = vmax.f32 %v27251_v8, %v8580_v59  }
 0x61f   : >> { %v8745_v5 = vsub.f32 %v23476_v46, %v27434_v24  ;;  %v8771_v3 = vmul.f32 1.442695, %v8730_v37  ;;  %v8558_v43 = vpop.xlane.xlu0 %8557  ;;  %17496 = vpow2.f32 %v8769_v17  ;;  %8895 = vadd.xlane.f32.xlu1 %v17483_v36  ;;  %v27439_v46 = vld [vmem:[#allocation199_spill] sm:$0xff]  ;;  %v8979_v38 = vpack.c.bf16 %v17485_v28, %v17481_v4  ;;  %v27440_v17 = vld [vmem:[#allocation201_spill] sm:$0xff] }
 0x620   : >> { %27435 = vst [vmem:[#allocation190_spill] sm:$0xff] %v23717_v26  ;;  %v27436_v42 = vmov %v23717_v26  ;;  %v23720_v13 = vmax.f32 %v27266_v63, %v8558_v43   ;;  %v17487_v21 = vpop.eup %17486  ;;  %17498 = vpow2.f32 %v8807_v23  ;;  %v8980_v26 = vpack.c.bf16 %v17479_v41, %v23673_v16 }
 0x621   : >> { %v8801_v58 = vmul.f32 1.442695, %v8745_v5  ;;  %v8746_v54 = vsub.f32 %v27439_v46, %v27436_v42  ;;  %17500 = vpow2.f32 %v8771_v3  ;;  %8889 = vadd.xlane.f32.xlu0 %v17487_v21  ;;  %v8560_v59 = vpop.xlane.xlu1 %8559  ;;  %15677 = vmatprep.mubr.bf16.mxu0 %v8979_v38  ;;  %v27444_v3 = vld [vmem:[#allocation195_spill] sm:$0xff] }
 0x622   : >> { %27437 = vst [vmem:[#allocation256_spill] sm:$0xff] %v23720_v13  ;;  %v27438_v31 = vmov %v23720_v13  ;;  %v17489_v43 = vpop.eup %17488  ;;  %v27441_v13 = vld [vmem:[#allocation200_spill] sm:$0xff]  ;;  %15678 = vmatmul.mubr.bf16.gmra.mxu0 %v8980_v26 }
 0x623   : >> { %v8735_v5 = vsub.f32 %v27440_v17, %v27438_v31  ;;  %v8803_v23 = vmul.f32 1.442695, %v8746_v54  ;;  %v23732_v45 = vmax.f32 %v27441_v13, %v8560_v59   ;;  %v8554_v8 = vpop.xlane.xlu0 %8553  ;;  %17502 = vpow2.f32 %v8801_v58  ;;  %8859 = vadd.xlane.f32.xlu1 %v17485_v28  ;;  %v27447_v28 = vld [vmem:[#allocation194_spill] sm:$0xff] }
 0x624   : >> { %v23735_v46 = vmax.f32 %v27444_v3, %v8554_v8   ;;  %v17491_v42 = vpop.eup %17490  ;;  %v8987_v54 = vpack.c.bf16 %v17489_v43, %v17487_v21  ;;  %v8988_v8 = vpack.c.bf16 %v17483_v36, %v23691_v10 }
 0x625   : >> { %27442 = vst [vmem:[#allocation200_spill] sm:$0xff] %v23732_v45  ;;  %v27443_v24 = vmov %v23732_v45  ;;  %v8781_v4 = vmul.f32 1.442695, %v8735_v5  ;;  %17504 = vpow2.f32 %v8803_v23  ;;  %8869 = vadd.xlane.f32.xlu0 %v17491_v42  ;;  %v8556_v45 = vpop.xlane.xlu1 %8555 }
 0x626   : >> { %27445 = vst [vmem:[#allocation257_spill] sm:$0xff] %v23735_v46  ;;  %v27446_v37 = vmov %v23735_v46  ;;  %v8736_v16 = vsub.f32 %v23512_v15, %v27443_v24  ;;  %15709 = vmatprep.mubr.bf16.mxu1 %v8987_v54  ;;  %v27450_v15 = vld [vmem:[#allocation187_spill] sm:$0xff]  ;;  %v27453_v54 = vld [vmem:[#allocation186_spill] sm:$0xff] }
 0x627   : >> { %v8733_v38 = vsub.f32 %v23515_v52, %v27446_v37  ;;  %v23747_v52 = vmax.f32 %v27447_v28, %v8556_v45   ;;  %v8586_v58 = vpop.xlane.xlu0 %8585  ;;  %17506 = vpow2.f32 %v8781_v4  ;;  %15710 = vmatmul.mubr.bf16.gmra.mxu1 %v8988_v8  ;;  %8891 = vadd.xlane.f32.xlu1 %v17489_v43  ;;  %v27456_v8 = vld [vmem:[#allocation185_spill] sm:$0xff] }
 0x628   : >> { %v23750_v21 = vmax.f32 %v27450_v15, %v8586_v58   ;;  %v17493_v59 = vpop.eup %17492  ;;  %v8783_v26 = vmul.f32 1.442695, %v8736_v16 }
 0x629   : >> { %27448 = vst [vmem:[#allocation258_spill] sm:$0xff] %v23747_v52  ;;  %v27449_v31 = vmov %v23747_v52  ;;  %v8777_v5 = vmul.f32 1.442695, %v8733_v38  ;;  %8901 = vadd.xlane.f32.xlu0 %v17493_v59  ;;  %v8588_v4 = vpop.xlane.xlu1 %8587  ;;  %v17495_v43 = vpop.eup %17494 }
 0x62a   : >> { %27451 = vst [vmem:[#allocation194_spill] sm:$0xff] %v23750_v21  ;;  %v27452_v17 = vmov %v23750_v21  ;;  %v8734_v10 = vsub.f32 %v23522_v29, %v27449_v31  ;;  %v23761_v38 = vmax.f32 %v27453_v54, %v8588_v4  }
 0x62b   : >> { %v8749_v52 = vsub.f32 %v23525_v6, %v27452_v17  ;;  %v8590_v16 = vpop.xlane.xlu0 %8589  ;;  %17508 = vpow2.f32 %v8777_v5  ;;  %8871 = vadd.xlane.f32.xlu1 %v17495_v43 }
 0x62c   : >> { %v8779_v46 = vmul.f32 1.442695, %v8734_v10  ;;  %27454 = vst [vmem:[#allocation195_spill] sm:$0xff] %v23761_v38  ;;  %v27455_v41 = vmov %v23761_v38  ;;  %v23764_v5 = vmax.f32 %v27456_v8, %v8590_v16   ;;  %v17497_v29 = vpop.eup %17496  ;;  %17510 = vpow2.f32 %v8783_v26  ;;  %v27459_v16 = vld [vmem:[#allocation184_spill] sm:$0xff]  ;;  %v27462_v10 = vld [vmem:[#allocation202_spill] sm:$0xff] }
 0x62d   : >> { %v8809_v45 = vmul.f32 1.442695, %v8749_v52  ;;  %v8750_v6 = vsub.f32 %v23528_v61, %v27455_v41  ;;  %v17499_v21 = vpop.eup %17498  ;;  %8865 = vadd.xlane.f32.xlu0 %v17497_v29  ;;  %v8592_v4 = vpop.xlane.xlu1 %8591  ;;  %v8982_v8 = vpack.c.bf16 %v17495_v43, %v17491_v42 }
 0x62e   : >> { %27457 = vst [vmem:[#allocation199_spill] sm:$0xff] %v23764_v5  ;;  %v27458_v23 = vmov %v23764_v5  ;;  %17512 = vpow2.f32 %v8779_v46  ;;  %v17501_v38 = vpop.eup %17500  ;;  %v23775_v26 = vmax.f32 %v27459_v16, %v8592_v4   ;;  %v8990_v4 = vpack.c.bf16 %v17499_v21, %v17493_v59 }
 0x62f   : >> { %v8751_v52 = vsub.f32 %v23533_v14, %v27458_v23  ;;  %v8811_v5 = vmul.f32 1.442695, %v8750_v6  ;;  %17514 = vpow2.f32 %v8809_v45  ;;  %8903 = vadd.xlane.f32.xlu1 %v17499_v21  ;;  %v8981_v54 = vpack.c.bf16 %v17501_v38, %v17497_v29 }
 0x630   : >> { %27460 = vst [vmem:[#allocation201_spill] sm:$0xff] %v23775_v26  ;;  %v27461_v36 = vmov %v23775_v26  ;;  %v17503_v61 = vpop.eup %17502 }
 0x631   : >> { %v8813_v58 = vmul.f32 1.442695, %v8751_v52  ;;  %v8752_v41 = vsub.f32 %v27462_v10, %v27461_v36  ;;  %17516 = vpow2.f32 %v8811_v5  ;;  %15681 = vmatprep.mubr.bf16.mxu0 %v8981_v54  ;;  %8897 = vadd.xlane.f32.xlu0 %v17503_v61  ;;  %v27464_v5 = vld [vmem:[#allocation206_spill] sm:$0xff] }
 0x632   : >> { %v17505_v14 = vpop.eup %17504  ;;  %15682 = vmatmul.mubr.bf16.gmra.mxu0 %v8982_v8 }
 0x633   : >> { %v8815_v6 = vmul.f32 1.442695, %v8752_v41  ;;  %17518 = vpow2.f32 %v8813_v58  ;;  %8867 = vadd.xlane.f32.xlu1 %v17501_v38  ;;  %v8989_v45 = vpack.c.bf16 %v17505_v14, %v17503_v61  ;;  %v27463_v38 = vld [vmem:[#allocation198_spill] sm:$0xff] }
 0x634   : >> { %v17507_v52 = vpop.eup %17506  ;;  %v27465_v61 = vsub.f32 %v27463_v38, %v27464_v5 }
 0x635   : >> { %17520 = vpow2.f32 %v8815_v6  ;;  %15713 = vmatprep.mubr.bf16.mxu1 %v8989_v45  ;;  %8877 = vadd.xlane.f32.xlu0 %v17507_v52  ;;  %v27466_v6 = vsub.f32 %v27260_v30, %v27392_v50  ;;  %v27474_v30 = vsub.f32 %v27400_v7, %v27402_v32  ;;  %v27478_v7 = vsub.f32 %v27256_v9, %v27410_v0  ;;  %v27483_v9 = vld [vmem:[#allocation170_spill] sm:$0xff] }
 0x636   : >> { %15714 = vmatmul.mubr.bf16.gmra.mxu1 %v8990_v4 }
 0x637   : >> { %8899 = vadd.xlane.f32.xlu1 %v17505_v14  ;;  %v8661_v14 = vmul.f32 1.442695, %v27465_v61  ;;  %v8693_v45 = vmul.f32 1.442695, %v27466_v6 }
 0x638   : >> { %v17509_v29 = vpop.eup %17508 }
 0x639   : >> { %v17511_v26 = vpop.eup %17510  ;;  %8873 = vadd.xlane.f32.xlu0 %v17509_v29  ;;  %17522 = vpow2.f32 %v8661_v14  ;;  %v27477_v14 = vld [vmem:[#allocation181_spill] sm:$0xff] }
 0x63a   : >> { %v8984_v10 = vpack.c.bf16 %v17511_v26, %v17507_v52  ;;  %v27467_v52 = vld [vmem:[#allocation205_spill] sm:$0xff]  ;;  %17524 = vpow2.f32 %v8693_v45  ;;  %v8701_v45 = vmul.f32 1.442695, %v27478_v7 }
 0x63b   : >> { %v17513_v42 = vpop.eup %17512  ;;  %8879 = vadd.xlane.f32.xlu1 %v17511_v26  ;;  %v27468_v4 = vsub.f32 %v27274_v11, %v27467_v52  ;;  %v27469_v26 = vld [vmem:[#allocation208_spill] sm:$0xff]  ;;  %v8659_v11 = vmul.f32 1.442695, %v27474_v30 }
 0x63c   : >> { %v8983_v43 = vpack.c.bf16 %v17513_v42, %v17509_v29  ;;  %v17515_v54 = vpop.eup %17514  ;;  %v27485_v30 = vld [vmem:[#allocation192_spill] sm:$0xff] }
 0x63d   : >> { %8905 = vadd.xlane.f32.xlu0 %v17515_v54  ;;  %v8663_v29 = vmul.f32 1.442695, %v27468_v4 }
 0x63e   : >> { %15685 = vmatprep.mubr.bf16.mxu0 %v8983_v43  ;;  %v17517_v41 = vpop.eup %17516  ;;  %v27470_v43 = vsub.f32 %v27395_v49, %v27469_v26  ;;  %v27475_v49 = vsub.f32 %v19467_v60, %v27406_v27  ;;  %v27480_v60 = vsub.f32 %v19463_v19, %v27408_v53 }
 0x63f   : >> { %15686 = vmatmul.mubr.bf16.gmra.mxu0 %v8984_v10  ;;  %8875 = vadd.xlane.f32.xlu1 %v17513_v42  ;;  %v8991_v8 = vpack.c.bf16 %v17517_v41, %v17515_v54  ;;  %17526 = vpow2.f32 %v8663_v29 }
 0x640   : >> { %v17519_v59 = vpop.eup %17518  ;;  %v8657_v10 = vmul.f32 1.442695, %v27470_v43  ;;  %v8669_v5 = vmul.f32 1.442695, %v27475_v49  ;;  %v8671_v29 = vmul.f32 1.442695, %v27480_v60 }
 0x641   : >> { %15717 = vmatprep.mubr.bf16.mxu1 %v8991_v8  ;;  %8909 = vadd.xlane.f32.xlu0 %v17519_v59  ;;  %v27481_v43 = vld [vmem:[#allocation248_spill] sm:$0xff] }
 0x642   : >> { %v17521_v58 = vpop.eup %17520  ;;  %17528 = vpow2.f32 %v8657_v10  ;;  %v27482_v10 = vsub.f32 %v19475_v44, %v27481_v43  ;;  %v27492_v43 = vld [vmem:[#allocation249_spill] sm:$0xff] }
 0x643   : >> { %8907 = vadd.xlane.f32.xlu1 %v17517_v41  ;;  %v8992_v21 = vpack.c.bf16 %v17521_v58, %v17519_v59  ;;  %v27471_v41 = vsub.f32 %v27259_v18, %v27399_v35  ;;  %v27472_v59 = vld [vmem:[#allocation193_spill] sm:$0xff]  ;;  %v27476_v18 = vsub.f32 %v27261_v51, %v27404_v48 }
 0x645   : >> { %15718 = vmatmul.mubr.bf16.gmra.mxu1 %v8992_v21  ;;  %v8695_v8 = vmul.f32 1.442695, %v27471_v41  ;;  %v8691_v61 = vmul.f32 1.442695, %v27476_v18  ;;  %v27488_v18 = vld [vmem:[#allocation180_spill] sm:$0xff]  ;;  %v27573_v41 = vld [vmem:[#allocation161_spill] sm:$0xff] }
 0x646   : >> { %v23802_v38 = vpop.eup %17522 }
 0x647   : >> { %8911 = vadd.xlane.f32.xlu1 %v17521_v58  ;;  %v27473_v58 = vsub.f32 %v27472_v59, %v27390_v57  ;;  %17530 = vpow2.f32 %v8695_v8  ;;  %v8819_v6 = vmul.f32 %v27477_v14, %v23802_v38  ;;  %v23815_v4 = vpop.eup %17524  ;;  %v8665_v8 = vmul.f32 1.442695, %v27482_v10 }
 0x648   : >> { %v8835_v59 = vmul.f32 %v27483_v9, %v23815_v4  ;;  %v27493_v10 = vsub.f32 %v19471_v34, %v27492_v43 }
 0x649   : >> { %v8689_v21 = vmul.f32 1.442695, %v27473_v58 }
 0x64a   : >> { %v8667_v9 = vmul.f32 1.442695, %v27493_v10 }
 0x64b   : >> { %17532 = vpow2.f32 %v8689_v21 }
 0x64c   : >> { %17534 = vpow2.f32 %v8659_v11  ;;  %v23822_v26 = vpop.eup %17526 }
 0x64d   : >> { %17536 = vpow2.f32 %v8669_v5 }
 0x64e   : >> { %17538 = vpow2.f32 %v8691_v61  ;;  %v8820_v61 = vmul.f32 %v27488_v18, %v23822_v26 }
 0x64f   : >> { %17540 = vpow2.f32 %v8701_v45  ;;  %v23829_v58 = vpop.eup %17528  ;;  %v27491_v45 = vld [vmem:[#allocation183_spill] sm:$0xff] }
 0x650   : >> { %17542 = vpow2.f32 %v8671_v29 }
 0x651   : >> { %17544 = vpow2.f32 %v8665_v8  ;;  %v27495_v8 = vld [vmem:[#allocation169_spill] sm:$0xff] }
 0x654   : >> { %v23838_v14 = vpop.eup %17530 }
 0x658   : >> { %v23847_v60 = vpop.eup %17532 }
 0x68e   : >> { %v8854_v52 = vpop.xlane.xlu0 %8853 }
 0x68f   : >> { %v23817_v51 = vadd.f32 %v8854_v52, %v8819_v6   ;;  %v27489_v6 = vsub.f32 %v27258_v22, %v27418_v2  ;;  %v8817_v52 = vmul.f32 %v27491_v45, %v23829_v58  ;;  %v23856_v22 = vpop.eup %17534 }
 0x690   : >> { %v23865_v34 = vpop.eup %17536 }
 0x691   : >> { %27479 = vst [vmem:[#allocation259_spill] sm:$0xff] %v23817_v51  ;;  %v27484_v51 = vld [vmem:[#allocation191_spill] sm:$0xff]  ;;  %v8697_v7 = vmul.f32 1.442695, %v27489_v6 }
 0x692   : >> { %v8886_v21 = vpop.xlane.xlu0 %8885  ;;  %v27486_v49 = vsub.f32 %v27484_v51, %v27485_v30 }
 0x693   : >> { %v23834_v19 = vadd.f32 %v8886_v21, %v8835_v59   ;;  %v8836_v21 = vmul.f32 %v27495_v8, %v23838_v14 }
 0x694   : >> { %v8703_v5 = vmul.f32 1.442695, %v27486_v49  ;;  %v8856_v44 = vpop.xlane.xlu1 %8855 }
 0x695   : >> { %27487 = vst [vmem:[#allocation260_spill] sm:$0xff] %v23834_v19  ;;  %v23843_v30 = vadd.f32 %v8856_v44, %v8820_v61   ;;  %v27499_v61 = vld [vmem:[#allocation251_spill] sm:$0xff] }
 0x696   : >> { %v8850_v29 = vpop.xlane.xlu0 %8849  ;;  %17546 = vpow2.f32 %v8703_v5  ;;  %v27498_v5 = vld [vmem:[#allocation172_spill] sm:$0xff]  ;;  %v27500_v6 = vsub.f32 %v27257_v55, %v27499_v61 }
 0x697   : >> { %27490 = vst [vmem:[#allocation261_spill] sm:$0xff] %v23843_v30  ;;  %v23852_v59 = vadd.f32 %v8850_v29, %v8817_v52   ;;  %17548 = vpow2.f32 %v8697_v7  ;;  %v27496_v30 = vsub.f32 %v19451_v25, %v27422_v12  ;;  %v8833_v19 = vmul.f32 %v27498_v5, %v23847_v60  ;;  %v27502_v7 = vld [vmem:[#allocation182_spill] sm:$0xff]  ;;  %v23874_v25 = vpop.eup %17538 }
 0x698   : >> { %v8888_v51 = vpop.xlane.xlu1 %8887  ;;  %17550 = vpow2.f32 %v8667_v9  ;;  %v8699_v45 = vmul.f32 1.442695, %v27500_v6  ;;  %v8818_v43 = vmul.f32 %v27502_v7, %v23856_v22  ;;  %v27505_v9 = vld [vmem:[#allocation177_spill] sm:$0xff]  ;;  %v23883_v55 = vpop.eup %17540 }
 0x699   : >> { %27494 = vst [vmem:[#allocation262_spill] sm:$0xff] %v23852_v59  ;;  %v8677_v49 = vmul.f32 1.442695, %v27496_v30  ;;  %v23861_v29 = vadd.f32 %v8888_v51, %v8836_v21   ;;  %v8823_v8 = vmul.f32 %v27505_v9, %v23865_v34  ;;  %v27506_v51 = vld [vmem:[#allocation253_spill] sm:$0xff]  ;;  %v27513_v9 = vsub.f32 %v27249_v56, %v27426_v47 }
 0x69a   : >> { %v8882_v18 = vpop.xlane.xlu0 %8881  ;;  %v27507_v30 = vsub.f32 %v27271_v40, %v27506_v51 }
 0x69b   : >> { %27497 = vst [vmem:[#allocation263_spill] sm:$0xff] %v23861_v29  ;;  %v23870_v52 = vadd.f32 %v8882_v18, %v8833_v19   ;;  %17552 = vpow2.f32 %v8677_v49  ;;  %v27503_v29 = vsub.f32 %v27250_v62, %v27424_v20  ;;  %v27509_v49 = vld [vmem:[#allocation171_spill] sm:$0xff]  ;;  %v23892_v62 = vpop.eup %17542 }
 0x69c   : >> { %v8852_v10 = vpop.xlane.xlu1 %8851  ;;  %17554 = vpow2.f32 %v8699_v45  ;;  %v8679_v5 = vmul.f32 1.442695, %v27507_v30  ;;  %v8834_v61 = vmul.f32 %v27509_v49, %v23874_v25  ;;  %v27512_v45 = vld [vmem:[#allocation167_spill] sm:$0xff] }
 0x69d   : >> { %27501 = vst [vmem:[#allocation264_spill] sm:$0xff] %v23870_v52  ;;  %v8709_v59 = vmul.f32 1.442695, %v27503_v29  ;;  %v23879_v52 = vadd.f32 %v8852_v10, %v8818_v43   ;;  %v8839_v43 = vmul.f32 %v27512_v45, %v23883_v55  ;;  %v23901_v10 = vpop.eup %17544  ;;  %v27520_v45 = vld [vmem:[#allocation196_spill] sm:$0xff]  ;;  %v27569_v19 = vld [vmem:[#allocation163_spill] sm:$0xff] }
 0x69e   : >> { %v8862_v21 = vpop.xlane.xlu0 %8861 }
 0x69f   : >> { %27504 = vst [vmem:[#allocation265_spill] sm:$0xff] %v23879_v52  ;;  %v23888_v18 = vadd.f32 %v8862_v21, %v8823_v8   ;;  %17556 = vpow2.f32 %v8709_v59  ;;  %v27510_v52 = vsub.f32 %v27427_v1, %v27429_v33  ;;  %v8711_v8 = vmul.f32 1.442695, %v27513_v9  ;;  %v27515_v59 = vld [vmem:[#allocation176_spill] sm:$0xff] }
 0x6a0   : >> { %v8884_v6 = vpop.xlane.xlu1 %8883  ;;  %17558 = vpow2.f32 %v8679_v5  ;;  %v8824_v51 = vmul.f32 %v27515_v59, %v23892_v62  ;;  %v27519_v5 = vld [vmem:[#allocation179_spill] sm:$0xff] }
 0x6a1   : >> { %27508 = vst [vmem:[#allocation266_spill] sm:$0xff] %v23888_v18  ;;  %v8673_v7 = vmul.f32 1.442695, %v27510_v52  ;;  %v23897_v40 = vadd.f32 %v8884_v6, %v8834_v61   ;;  %v8821_v6 = vmul.f32 %v27519_v5, %v23901_v10 }
 0x6a2   : >> { %v8894_v29 = vpop.xlane.xlu0 %8893 }
 0x6a3   : >> { %27511 = vst [vmem:[#allocation267_spill] sm:$0xff] %v23897_v40  ;;  %v23906_v21 = vadd.f32 %v8894_v29, %v8839_v43   ;;  %v23910_v1 = vpop.eup %17546  ;;  %17560 = vpow2.f32 %v8673_v7  ;;  %v27516_v40 = vld [vmem:[#allocation197_spill] sm:$0xff] }
 0x6a4   : >> { %v8864_v30 = vpop.xlane.xlu1 %8863  ;;  %v27517_v18 = vsub.f32 %v27253_v39, %v27516_v40  ;;  %v23919_v56 = vpop.eup %17548  ;;  %17562 = vpow2.f32 %v8711_v8  ;;  %v27521_v43 = vld [vmem:[#allocation255_spill] sm:$0xff]  ;;  %v27528_v8 = vld [vmem:[#allocation168_spill] sm:$0xff] }
 0x6a5   : >> { %27514 = vst [vmem:[#allocation268_spill] sm:$0xff] %v23906_v21  ;;  %v23915_v61 = vadd.f32 %v8864_v30, %v8824_v51   ;;  %v27522_v29 = vsub.f32 %v27520_v45, %v27521_v43  ;;  %v27524_v7 = vld [vmem:[#allocation236_spill] sm:$0xff]  ;;  %v23928_v39 = vpop.eup %17550  ;;  %v27525_v30 = vld [vmem:[#allocation256_spill] sm:$0xff]  ;;  %v8837_v5 = vmul.f32 %v27528_v8, %v23919_v56 }
 0x6a6   : >> { %v8705_v49 = vmul.f32 1.442695, %v27517_v18  ;;  %v8858_v52 = vpop.xlane.xlu0 %8857  ;;  %v8840_v59 = vmul.f32 %v27524_v7, %v23910_v1  ;;  %v27526_v40 = vsub.f32 %v27266_v63, %v27525_v30  ;;  %v27530_v8 = vld [vmem:[#allocation190_spill] sm:$0xff] }
 0x6a7   : >> { %27518 = vst [vmem:[#allocation269_spill] sm:$0xff] %v23915_v61  ;;  %v8675_v9 = vmul.f32 1.442695, %v27522_v29  ;;  %v23924_v21 = vadd.f32 %v8858_v52, %v8821_v6   ;;  %v27529_v52 = vld [vmem:[#allocation188_spill] sm:$0xff] }
 0x6a8   : >> { %v8896_v51 = vpop.xlane.xlu1 %8895  ;;  %17564 = vpow2.f32 %v8705_v49  ;;  %v8685_v18 = vmul.f32 1.442695, %v27526_v40  ;;  %v23937_v45 = vpop.eup %17552  ;;  %v27531_v43 = vsub.f32 %v27529_v52, %v27530_v8  ;;  %v27533_v49 = vld [vmem:[#allocation178_spill] sm:$0xff] }
 0x6a9   : >> { %27523 = vst [vmem:[#allocation270_spill] sm:$0xff] %v23924_v21  ;;  %v23933_v61 = vadd.f32 %v8896_v51, %v8840_v59   ;;  %17566 = vpow2.f32 %v8675_v9  ;;  %v8822_v7 = vmul.f32 %v27533_v49, %v23928_v39  ;;  %v23946_v63 = vpop.eup %17554  ;;  %v27534_v51 = vsub.f32 %v27444_v3, %v27446_v37  ;;  %v27536_v9 = vld [vmem:[#allocation173_spill] sm:$0xff] }
 0x6aa   : >> { %v8890_v6 = vpop.xlane.xlu0 %8889  ;;  %v8707_v29 = vmul.f32 1.442695, %v27531_v43  ;;  %17568 = vpow2.f32 %v8685_v18  ;;  %v27539_v18 = vld [vmem:[#allocation237_spill] sm:$0xff]  ;;  %v27571_v37 = vld [vmem:[#allocation240_spill] sm:$0xff] }
 0x6ab   : >> { %27527 = vst [vmem:[#allocation271_spill] sm:$0xff] %v23933_v61  ;;  %v23942_v21 = vadd.f32 %v8890_v6, %v8837_v5   ;;  %v8681_v30 = vmul.f32 1.442695, %v27534_v51  ;;  %v8827_v61 = vmul.f32 %v27536_v9, %v23937_v45  ;;  %v27537_v6 = vsub.f32 %v27441_v13, %v27443_v24 }
 0x6ac   : >> { %v8860_v59 = vpop.xlane.xlu1 %8859  ;;  %v23955_v8 = vpop.eup %17556  ;;  %17570 = vpow2.f32 %v8707_v29  ;;  %v8838_v43 = vmul.f32 %v27539_v18, %v23946_v63  ;;  %v27542_v29 = vld [vmem:[#allocation235_spill] sm:$0xff] }
 0x6ad   : >> { %27532 = vst [vmem:[#allocation272_spill] sm:$0xff] %v23942_v21  ;;  %v23951_v40 = vadd.f32 %v8860_v59, %v8822_v7   ;;  %v8687_v52 = vmul.f32 1.442695, %v27537_v6  ;;  %v23964_v3 = vpop.eup %17558  ;;  %17572 = vpow2.f32 %v8681_v30  ;;  %v27540_v7 = vsub.f32 %v27450_v15, %v27452_v17  ;;  %v27545_v30 = vld [vmem:[#allocation242_spill] sm:$0xff] }
 0x6ae   : >> { %v8870_v5 = vpop.xlane.xlu0 %8869  ;;  %v8828_v6 = vmul.f32 %v27545_v30, %v23964_v3 }
 0x6af   : >> { %27535 = vst [vmem:[#allocation273_spill] sm:$0xff] %v23951_v40  ;;  %v23960_v21 = vadd.f32 %v8870_v5, %v8827_v61   ;;  %v8713_v59 = vmul.f32 1.442695, %v27540_v7  ;;  %v8843_v40 = vmul.f32 %v27542_v29, %v23955_v8  ;;  %17574 = vpow2.f32 %v8687_v52  ;;  %v27549_v52 = vld [vmem:[#allocation175_spill] sm:$0xff] }
 0x6b0   : >> { %v8892_v49 = vpop.xlane.xlu1 %8891  ;;  %v23973_v13 = vpop.eup %17560 }
 0x6b1   : >> { %27538 = vst [vmem:[#allocation274_spill] sm:$0xff] %v23960_v21  ;;  %v23969_v51 = vadd.f32 %v8892_v49, %v8838_v43   ;;  %v27543_v21 = vsub.f32 %v27447_v28, %v27449_v31  ;;  %v23982_v15 = vpop.eup %17562  ;;  %17576 = vpow2.f32 %v8713_v59  ;;  %v27546_v43 = vld [vmem:[#allocation185_spill] sm:$0xff]  ;;  %v8825_v29 = vmul.f32 %v27549_v52, %v23973_v13  ;;  %v27554_v59 = vld [vmem:[#allocation164_spill] sm:$0xff] }
 0x6b2   : >> { %v8902_v9 = vpop.xlane.xlu0 %8901  ;;  %v27547_v49 = vsub.f32 %v27546_v43, %v27458_v23  ;;  %v8844_v53 = vmul.f32 %v27554_v59, %v23982_v15 }
 0x6b3   : >> { %27541 = vst [vmem:[#allocation275_spill] sm:$0xff] %v23969_v51  ;;  %v8683_v61 = vmul.f32 1.442695, %v27543_v21  ;;  %v23978_v5 = vadd.f32 %v8902_v9, %v8843_v40   ;;  %v27550_v9 = vld [vmem:[#allocation186_spill] sm:$0xff]  ;;  %v27551_v21 = vld [vmem:[#allocation195_spill] sm:$0xff] }
 0x6b4   : >> { %v8872_v18 = vpop.xlane.xlu1 %8871  ;;  %v8717_v7 = vmul.f32 1.442695, %v27547_v49  ;;  %v27556_v49 = vld [vmem:[#allocation166_spill] sm:$0xff] }
 0x6b5   : >> { %27544 = vst [vmem:[#allocation276_spill] sm:$0xff] %v23978_v5  ;;  %v23987_v51 = vadd.f32 %v8872_v18, %v8828_v6   ;;  %v23991_v28 = vpop.eup %17564  ;;  %17578 = vpow2.f32 %v8683_v61  ;;  %v27552_v5 = vsub.f32 %v27550_v9, %v27551_v21  ;;  %v27559_v21 = vld [vmem:[#allocation174_spill] sm:$0xff] }
 0x6b6   : >> { %v8866_v40 = vpop.xlane.xlu0 %8865  ;;  %v24000_v43 = vpop.eup %17566  ;;  %17580 = vpow2.f32 %v8717_v7 }
 0x6b7   : >> { %27548 = vst [vmem:[#allocation277_spill] sm:$0xff] %v23987_v51  ;;  %v8715_v30 = vmul.f32 1.442695, %v27552_v5  ;;  %v23996_v9 = vadd.f32 %v8866_v40, %v8825_v29   ;;  %v8841_v51 = vmul.f32 %v27556_v49, %v23991_v28  ;;  %v24006_v52 = vpop.eup %17568  ;;  %v27557_v29 = vsub.f32 %v27459_v16, %v27461_v36  ;;  %v27563_v16 = vld [vmem:[#allocation165_spill] sm:$0xff] }
 0x6b8   : >> { %v8904_v6 = vpop.xlane.xlu1 %8903  ;;  %v8826_v5 = vmul.f32 %v27559_v21, %v24000_v43  ;;  %v27565_v21 = vld [vmem:[#allocation241_spill] sm:$0xff] }
 0x6b9   : >> { %27553 = vst [vmem:[#allocation278_spill] sm:$0xff] %v23996_v9  ;;  %v24002_v18 = vadd.f32 %v8904_v6, %v8844_v53   ;;  %17582 = vpow2.f32 %v8715_v30  ;;  %v8719_v40 = vmul.f32 1.442695, %v27557_v29  ;;  %v24015_v59 = vpop.eup %17570  ;;  %v27561_v6 = vld [vmem:[#allocation239_spill] sm:$0xff] }
 0x6ba   : >> { %v8898_v61 = vpop.xlane.xlu0 %8897  ;;  %v24021_v49 = vpop.eup %17572 }
 0x6bb   : >> { %27555 = vst [vmem:[#allocation279_spill] sm:$0xff] %v24002_v18  ;;  %v24011_v9 = vadd.f32 %v8898_v61, %v8841_v51   ;;  %v8831_v18 = vmul.f32 %v27561_v6, %v24006_v52  ;;  %17584 = vpow2.f32 %v8719_v40  ;;  %v8842_v51 = vmul.f32 %v27563_v16, %v24015_v59  ;;  %v27567_v40 = vld [vmem:[#allocation238_spill] sm:$0xff] }
 0x6bc   : >> { %v8868_v53 = vpop.xlane.xlu1 %8867  ;;  %v24027_v61 = vpop.eup %17574 }
 0x6bd   : >> { %27558 = vst [vmem:[#allocation280_spill] sm:$0xff] %v24011_v9  ;;  %v24017_v7 = vadd.f32 %v8868_v53, %v8826_v5   ;;  %v8829_v5 = vmul.f32 %v27565_v21, %v24021_v49 }
 0x6be   : >> { %v8878_v30 = vpop.xlane.xlu0 %8877  ;;  %v24033_v53 = vpop.eup %17576 }
 0x6bf   : >> { %27560 = vst [vmem:[#allocation281_spill] sm:$0xff] %v24017_v7  ;;  %v24023_v42 = vadd.f32 %v8878_v30, %v8831_v18   ;;  %v8832_v18 = vmul.f32 %v27567_v40, %v24027_v61 }
 0x6c0   : >> { %v8900_v29 = vpop.xlane.xlu1 %8899 }
 0x6c1   : >> { %27562 = vst [vmem:[#allocation282_spill] sm:$0xff] %v24023_v42  ;;  %v24029_v9 = vadd.f32 %v8900_v29, %v8842_v51   ;;  %v8845_v51 = vmul.f32 %v27569_v19, %v24033_v53  ;;  %v27575_v19 = vld [vmem:[#allocation162_spill] sm:$0xff] }
 0x6c2   : >> { %v8874_v7 = vpop.xlane.xlu0 %8873  ;;  %v24039_v42 = vpop.eup %17578 }
 0x6c3   : >> { %27564 = vst [vmem:[#allocation283_spill] sm:$0xff] %v24029_v9  ;;  %v24035_v6 = vadd.f32 %v8874_v7, %v8829_v5   ;;  %v24045_v29 = vpop.eup %17580  ;;  %v8830_v5 = vmul.f32 %v27571_v37, %v24039_v42  ;;  %v27577_v37 = vld [vmem:[#allocation234_spill] sm:$0xff] }
 0x6c4   : >> { %v8880_v30 = vpop.xlane.xlu1 %8879 }
 0x6c5   : >> { %27566 = vst [vmem:[#allocation284_spill] sm:$0xff] %v24035_v6  ;;  %v24041_v16 = vadd.f32 %v8880_v30, %v8832_v18   ;;  %v8847_v18 = vmul.f32 %v27573_v41, %v24045_v29 }
 0x6c6   : >> { %v8906_v9 = vpop.xlane.xlu0 %8905  ;;  %v24051_v7 = vpop.eup %17582 }
 0x6c7   : >> { %27568 = vst [vmem:[#allocation285_spill] sm:$0xff] %v24041_v16  ;;  %v24047_v21 = vadd.f32 %v8906_v9, %v8845_v51   ;;  %v8846_v57 = vmul.f32 %v27575_v19, %v24051_v7  ;;  %v27582_v19 = vld [vmem:[#allocation220_spill] sm:$0xff] }
 0x6c8   : >> { %v8876_v6 = vpop.xlane.xlu1 %8875  ;;  %v24061_v50 = vpop.eup %17584 }
 0x6c9   : >> { %27570 = vst [vmem:[#allocation286_spill] sm:$0xff] %v24047_v21  ;;  %v24053_v40 = vadd.f32 %v8876_v6, %v8830_v5   ;;  %v8848_v21 = vmul.f32 %v27577_v37, %v24061_v50  ;;  %v27579_v6 = vld [vmem:[#allocation232_spill] sm:$0xff]  ;;  %v27584_v37 = vld [vmem:[#allocation231_spill] sm:$0xff] }
 0x6ca   : >> { %v8910_v30 = vpop.xlane.xlu0 %8909  ;;  %v8947_v41 = vmul.f32 %v27579_v6, %v23802_v38  ;;  %v27586_v38 = vld [vmem:[#allocation156_spill] sm:$0xff] }
 0x6cb   : >> { %27572 = vst [vmem:[#allocation287_spill] sm:$0xff] %v24053_v40  ;;  %v24057_v16 = vadd.f32 %v8910_v30, %v8847_v18   ;;  %v27581_v18 = vld [vmem:[#allocation233_spill] sm:$0xff]  ;;  %v8961_v6 = vmul.f32 %v27586_v38, %v23847_v60 }
 0x6cc   : >> { %v8908_v51 = vpop.xlane.xlu1 %8907  ;;  %v8945_v30 = vmul.f32 %v27581_v18, %v23829_v58  ;;  %v27588_v58 = vld [vmem:[#allocation160_spill] sm:$0xff] }
 0x6cd   : >> { %27574 = vst [vmem:[#allocation288_spill] sm:$0xff] %v24057_v16  ;;  %v24063_v9 = vadd.f32 %v8908_v51, %v8846_v57   ;;  %v8963_v57 = vmul.f32 %v27582_v19, %v23815_v4  ;;  %v8946_v18 = vmul.f32 %v27588_v58, %v23856_v22 }
 0x6cf   : >> { %27576 = vst [vmem:[#allocation289_spill] sm:$0xff] %v24063_v9 }
 0x6d0   : >> { %v8912_v2 = vpop.xlane.xlu1 %8911 }
 0x6d1   : >> { %v24067_v5 = vadd.f32 %v8912_v2, %v8848_v21   ;;  %v8948_v2 = vmul.f32 %v27584_v37, %v23822_v26  ;;  %v27595_v37 = vld [vmem:[#allocation229_spill] sm:$0xff] }
 0x6d2   : >> { %v8951_v22 = vmul.f32 %v27595_v37, %v23865_v34  ;;  %v27603_v34 = vld [vmem:[#allocation159_spill] sm:$0xff] }
 0x6d3   : >> { %27578 = vst [vmem:[#allocation290_spill] sm:$0xff] %v24067_v5  ;;  %v8950_v58 = vmul.f32 %v27603_v34, %v23928_v39 }
 0x6d4   : >> { %v15675_v40 = vpop.f32.mrf.mxu0 }
 0x6d5   : >> { %v24071_v40 = vadd.f32 %v15675_v40, %v8947_v41  }
 0x6d6   : >> { %v9075_v16 = vpop.f32.mrf.mxu0  ;;  %v15707_v9 = vpop.f32.mrf.mxu1 }
 0x6d7   : >> { %27580 = vst [vmem:[#allocation291_spill] sm:$0xff] %v24071_v40  ;;  %v24077_v51 = vadd.f32 %v9075_v16, %v8945_v30   ;;  %v24081_v21 = vadd.f32 %v15707_v9, %v8963_v57   ;;  %v27590_v30 = vld [vmem:[#allocation219_spill] sm:$0xff]  ;;  %v27593_v57 = vld [vmem:[#allocation221_spill] sm:$0xff] }
 0x6d8   : >> { %v15676_v5 = vpop.f32.mrf.mxu0  ;;  %v9220_v40 = vpop.f32.mrf.mxu1  ;;  %v8964_v16 = vmul.f32 %v27590_v30, %v23838_v14  ;;  %v8962_v60 = vmul.f32 %v27593_v57, %v23874_v25  ;;  %v27600_v25 = vld [vmem:[#allocation216_spill] sm:$0xff] }
 0x6d9   : >> { %27583 = vst [vmem:[#allocation292_spill] sm:$0xff] %v24077_v51  ;;  %v27585_v0 = vmov %v24081_v21  ;;  %v24085_v41 = vadd.f32 %v15676_v5, %v8948_v2   ;;  %v24089_v44 = vadd.f32 %v9220_v40, %v8961_v6   ;;  %v8967_v6 = vmul.f32 %v27600_v25, %v23883_v55 }
 0x6da   : >> { %v9078_v4 = vpop.f32.mrf.mxu0  ;;  %v15708_v26 = vpop.f32.mrf.mxu1 }
 0x6db   : >> { %27587 = vst [vmem:[#allocation293_spill] sm:$0xff] %v24085_v41  ;;  %v27589_v32 = vmov %v24089_v44  ;;  %v24093_v19 = vadd.f32 %v9078_v4, %v8946_v18   ;;  %v24095_v51 = vadd.f32 %v15708_v26, %v8964_v16   ;;  %v27597_v44 = vld [vmem:[#allocation230_spill] sm:$0xff] }
 0x6dc   : >> { %v9223_v9 = vpop.f32.mrf.mxu1  ;;  %v8949_v14 = vmul.f32 %v27597_v44, %v23901_v10  ;;  %v27604_v10 = vld [vmem:[#allocation218_spill] sm:$0xff]  ;;  %27660 = vst [vmem:[#allocation156_spill] sm:$0xff] %v27589_v32 }
 0x6dd   : >> { %27591 = vst [vmem:[#allocation294_spill] sm:$0xff] %v24093_v19  ;;  %v27592_v27 = vmov %v24095_v51  ;;  %v24099_v30 = vadd.f32 %v9223_v9, %v8962_v60   ;;  %v27599_v51 = vld [vmem:[#allocation228_spill] sm:$0xff] }
 0x6de   : >> { %v8952_v38 = vmul.f32 %v27599_v51, %v23892_v62  ;;  %v27607_v62 = vld [vmem:[#allocation215_spill] sm:$0xff] }
 0x6df   : >> { %v27594_v2 = vmov %v24099_v30  ;;  %v8968_v19 = vmul.f32 %v27607_v62, %v23910_v1 }
 0x6e2   : >> { %v15679_v21 = vpop.f32.mrf.mxu0 }
 0x6e3   : >> { %v24103_v18 = vadd.f32 %v15679_v21, %v8951_v22  }
 0x6e4   : >> { %v9091_v5 = vpop.f32.mrf.mxu0 }
 0x6e5   : >> { %27596 = vst [vmem:[#allocation295_spill] sm:$0xff] %v24103_v18  ;;  %v24107_v22 = vadd.f32 %v9091_v5, %v8949_v14   ;;  %v8965_v18 = vmul.f32 %v27604_v10, %v23919_v56  ;;  %v27611_v56 = vld [vmem:[#allocation225_spill] sm:$0xff]  ;;  %v27615_v14 = vld [vmem:[#allocation224_spill] sm:$0xff] }
 0x6e6   : >> { %v15680_v41 = vpop.f32.mrf.mxu0  ;;  %v8955_v37 = vmul.f32 %v27611_v56, %v23937_v45  ;;  %v8956_v5 = vmul.f32 %v27615_v14, %v23964_v3  ;;  %v27620_v45 = vld [vmem:[#allocation226_spill] sm:$0xff] }
 0x6e7   : >> { %27598 = vst [vmem:[#allocation296_spill] sm:$0xff] %v24107_v22  ;;  %v15711_v40 = vpop.f32.mrf.mxu1  ;;  %v24113_v55 = vadd.f32 %v15680_v41, %v8952_v38  }
 0x6e8   : >> { %v24115_v9 = vadd.f32 %v15711_v40, %v8967_v6   ;;  %v9094_v4 = vpop.f32.mrf.mxu0  ;;  %v8954_v6 = vmul.f32 %v27620_v45, %v24000_v43  ;;  %v27680_v45 = vld [vmem:[#allocation288_spill] sm:$0xff] }
 0x6e9   : >> { %27601 = vst [vmem:[#allocation297_spill] sm:$0xff] %v24113_v55  ;;  %v9236_v30 = vpop.f32.mrf.mxu1  ;;  %v24121_v16 = vadd.f32 %v9094_v4, %v8950_v58   ;;  %v27609_v55 = vld [vmem:[#allocation217_spill] sm:$0xff]  ;;  %27681 = vst [vmem:[#allocation161_spill] sm:$0xff] %v27680_v45  ;;  %v27707_v45 = vld [vmem:[#allocation285_spill] sm:$0xff] }
 0x6ea   : >> { %v27602_v36 = vmov %v24115_v9  ;;  %v24123_v39 = vadd.f32 %v9236_v30, %v8965_v18   ;;  %v8966_v60 = vmul.f32 %v27609_v55, %v23946_v63  ;;  %v27616_v63 = vld [vmem:[#allocation212_spill] sm:$0xff]  ;;  %v27626_v30 = vld [vmem:[#allocation213_spill] sm:$0xff]  ;;  %v27630_v55 = vld [vmem:[#allocation223_spill] sm:$0xff] }
 0x6eb   : >> { %27605 = vst [vmem:[#allocation298_spill] sm:$0xff] %v24121_v16  ;;  %v15712_v26 = vpop.f32.mrf.mxu1  ;;  %v8971_v51 = vmul.f32 %v27616_v63, %v23955_v8  ;;  %v27624_v8 = vld [vmem:[#allocation211_spill] sm:$0xff] }
 0x6ec   : >> { %v27606_v31 = vmov %v24123_v39  ;;  %v24127_v57 = vadd.f32 %v15712_v26, %v8968_v19   ;;  %v27613_v39 = vld [vmem:[#allocation227_spill] sm:$0xff]  ;;  %v8972_v10 = vmul.f32 %v27624_v8, %v23982_v15  ;;  %v27633_v15 = vld [vmem:[#allocation157_spill] sm:$0xff] }
 0x6ed   : >> { %v9239_v9 = vpop.f32.mrf.mxu1  ;;  %v8953_v21 = vmul.f32 %v27613_v39, %v23973_v13  ;;  %v27621_v13 = vld [vmem:[#allocation214_spill] sm:$0xff] }
 0x6ee   : >> { %v27608_v47 = vmov %v24127_v57  ;;  %v24131_v62 = vadd.f32 %v9239_v9, %v8966_v60   ;;  %v8969_v40 = vmul.f32 %v27621_v13, %v23991_v28  ;;  %v27628_v28 = vld [vmem:[#allocation158_spill] sm:$0xff]  ;;  %v8957_v60 = vmul.f32 %v27630_v55, %v24021_v49  ;;  %v27679_v13 = vld [vmem:[#allocation290_spill] sm:$0xff] }
 0x6ef   : >> { %v8959_v43 = vmul.f32 %v27628_v28, %v24006_v52  ;;  %v27636_v52 = vld [vmem:[#allocation209_spill] sm:$0xff]  ;;  %v27653_v8 = vmov %v27608_v47 }
 0x6f0   : >> { %v27610_v23 = vmov %v24131_v62  ;;  %v8970_v62 = vmul.f32 %v27626_v30, %v24015_v59  ;;  %v27635_v59 = vld [vmem:[#allocation222_spill] sm:$0xff]  ;;  %v27659_v30 = vmov %v27594_v2  ;;  %v27798_v8 = vmov (%p24202_p8), %v27602_v36  ;;  %v27832_v13 = vld [vmem:[#allocation268_spill] sm:$0xff] (%p24202_p8) }
 0x6f1   : >> { %v27669_v55 = vld [vmem:[#allocation297_spill] sm:$0xff]  ;;  %v27799_v45 = vmov (%p24202_p8), %v27610_v23 }
 0x6f2   : >> { %v15683_v22 = vpop.f32.mrf.mxu0  ;;  %v27840_v55 = vld [vmem:[#allocation282_spill] sm:$0xff] (%p24202_p8)  ;;  %v27851_v30 = vld [vmem:[#allocation261_spill] sm:$0xff] (%p24202_p8) }
 0x6f3   : >> { %v24135_v56 = vadd.f32 %v15683_v22, %v8955_v37   ;;  %v8958_v22 = vmul.f32 %v27635_v59, %v24039_v42  ;;  %v27688_v59 = vld [vmem:[#allocation276_spill] sm:$0xff] }
 0x6f4   : >> { %v9107_v44 = vpop.f32.mrf.mxu0  ;;  %v27829_v59 = vld [vmem:[#allocation283_spill] sm:$0xff] (%p24202_p8) }
 0x6f5   : >> { %27612 = vst [vmem:[#allocation299_spill] sm:$0xff] %v24135_v56  ;;  %v24139_v1 = vadd.f32 %v9107_v44, %v8953_v21   ;;  %v8975_v44 = vmul.f32 %v27636_v52, %v24045_v29  ;;  %v27658_v52 = vmov %v27585_v0 }
 0x6f6   : >> { %v15684_v38 = vpop.f32.mrf.mxu0  ;;  %v15715_v25 = vpop.f32.mrf.mxu1  ;;  %v27853_v52 = vld [vmem:[#allocation265_spill] sm:$0xff] (%p24202_p8) }
 0x6f7   : >> { %27614 = vst [vmem:[#allocation300_spill] sm:$0xff] %v24139_v1  ;;  %v24145_v14 = vadd.f32 %v15684_v38, %v8956_v5   ;;  %v24147_v5 = vadd.f32 %v15715_v25, %v8971_v51  }
 0x6f8   : >> { %v9110_v34 = vpop.f32.mrf.mxu0  ;;  %v9252_v58 = vpop.f32.mrf.mxu1 }
 0x6f9   : >> { %27617 = vst [vmem:[#allocation301_spill] sm:$0xff] %v24145_v14  ;;  %v27618_v35 = vmov %v24145_v14  ;;  %v27619_v41 = vmov %v24147_v5  ;;  %v24153_v38 = vadd.f32 %v9110_v34, %v8954_v6   ;;  %v24155_v3 = vadd.f32 %v9252_v58, %v8969_v40   ;;  %v27675_v40 = vld [vmem:[#allocation291_spill] sm:$0xff]  ;;  %v27682_v34 = vld [vmem:[#allocation289_spill] sm:$0xff]  ;;  %v27684_v58 = vld [vmem:[#allocation286_spill] sm:$0xff] }
 0x6fa   : >> { %v15716_v18 = vpop.f32.mrf.mxu1  ;;  %27683 = vst [vmem:[#allocation162_spill] sm:$0xff] %v27682_v34  ;;  %27685 = vst [vmem:[#allocation163_spill] sm:$0xff] %v27684_v58  ;;  %v27709_v58 = vld [vmem:[#allocation287_spill] sm:$0xff]  ;;  %v27718_v34 = vld [vmem:[#allocation269_spill] sm:$0xff] }
 0x6fb   : >> { %27622 = vst [vmem:[#allocation302_spill] sm:$0xff] %v24153_v38  ;;  %v27623_v12 = vmov %v24155_v3  ;;  %v24159_v4 = vadd.f32 %v15716_v18, %v8972_v10   ;;  %v27642_v38 = vld [vmem:[#allocation95_spill] sm:$0xff]  ;;  %v27670_v18 = vld [vmem:[#allocation295_spill] sm:$0xff]  ;;  %27719 = vst [vmem:[#allocation176_spill] sm:$0xff] %v27718_v34  ;;  %v27801_v58 = vmov (%p24202_p8), %v27592_v27 }
 0x6fc   : >> { %v9255_v19 = vpop.f32.mrf.mxu1  ;;  %v8974_v29 = vmul.f32 %v27642_v38, %v24051_v7  ;;  %v27652_v7 = vmov %v27623_v12  ;;  %v27734_v34 = vld [vmem:[#allocation201_spill] sm:$0xff] }
 0x6fd   : >> { %v27625_v16 = vmov %v24159_v4  ;;  %v24163_v6 = vadd.f32 %v9255_v19, %v8970_v62   ;;  %v8960_v4 = vmul.f32 %v27633_v15, %v24027_v61  ;;  %v27641_v61 = vld [vmem:[#allocation149_spill] sm:$0xff]  ;;  %v27655_v62 = vmov %v27610_v23  ;;  %v27691_v19 = vld [vmem:[#allocation280_spill] sm:$0xff]  ;;  %27735 = vst [vmem:[#allocation184_spill] sm:$0xff] %v27734_v34  ;;  %v27821_v7 = vld [vmem:[#allocation294_spill] sm:$0xff] (%p24202_p8) }
 0x6fe   : >> { %v8976_v63 = vmul.f32 %v27641_v61, %v24061_v50  ;;  %v27668_v61 = vld [vmem:[#allocation300_spill] sm:$0xff]  ;;  %v27671_v50 = vld [vmem:[#allocation298_spill] sm:$0xff]  ;;  %27692 = vst [vmem:[#allocation166_spill] sm:$0xff] %v27691_v19  ;;  %v27693_v15 = vld [vmem:[#allocation271_spill] sm:$0xff] }
 0x6ff   : >> { %v27627_v37 = vmov %v24163_v6  ;;  %v15687_v26 = vpop.f32.mrf.mxu0  ;;  %27672 = vst [vmem:[#allocation159_spill] sm:$0xff] %v27671_v50  ;;  %v27714_v50 = vld [vmem:[#allocation281_spill] sm:$0xff]  ;;  %v27720_v19 = vld [vmem:[#allocation266_spill] sm:$0xff]  ;;  %v27751_v34 = vld [vmem:[#allocation247_spill] sm:$0xff] }
 0x700   : >> { %v24167_v57 = vadd.f32 %v15687_v26, %v8959_v43   ;;  %v27651_v6 = vmov %v27627_v37  ;;  %v27697_v43 = vld [vmem:[#allocation272_spill] sm:$0xff]  ;;  %v27699_v26 = vld [vmem:[#allocation263_spill] sm:$0xff]  ;;  %27715 = vst [vmem:[#allocation174_spill] sm:$0xff] %v27714_v50  ;;  %27721 = vst [vmem:[#allocation177_spill] sm:$0xff] %v27720_v19 }
 0x701   : >> { %v9123_v9 = vpop.f32.mrf.mxu0  ;;  %27698 = vst [vmem:[#allocation168_spill] sm:$0xff] %v27697_v43  ;;  %27700 = vst [vmem:[#allocation169_spill] sm:$0xff] %v27699_v26  ;;  %v27708_v26 = vld [vmem:[#allocation282_spill] sm:$0xff]  ;;  %v27710_v43 = vld [vmem:[#allocation284_spill] sm:$0xff] }
 0x702   : >> { %v27629_v46 = vmov %v24167_v57  ;;  %v24171_v21 = vadd.f32 %v9123_v9, %v8957_v60   ;;  %v27654_v9 = vmov %v27602_v36  ;;  %v27667_v38 = vld [vmem:[#allocation302_spill] sm:$0xff]  ;;  %v27701_v60 = vld [vmem:[#allocation260_spill] sm:$0xff]  ;;  %v27730_v50 = vld [vmem:[#allocation265_spill] sm:$0xff]  ;;  %27752 = vst [vmem:[#allocation193_spill] sm:$0xff] %v27751_v34  ;;  %v27800_v26 = vmov (%p24202_p8), %v27606_v31 }
 0x703   : >> { %v15688_v56 = vpop.f32.mrf.mxu0  ;;  %27662 = vst [vmem:[#allocation158_spill] sm:$0xff] %v27629_v46  ;;  %27702 = vst [vmem:[#allocation170_spill] sm:$0xff] %v27701_v60  ;;  %v27722_v60 = vld [vmem:[#allocation273_spill] sm:$0xff]  ;;  %v27769_v34 = vld [vmem:[#allocation258_spill] sm:$0xff]  ;;  %v27803_v43 = vmov (%p24202_p8), %v27594_v2 }
 0x704   : >> { %27631 = vst [vmem:[#allocation303_spill] sm:$0xff] %v24171_v21  ;;  %v27632_v17 = vmov %v24171_v21  ;;  %v24175_v10 = vadd.f32 %v15688_v56, %v8960_v4   ;;  %v27639_v21 = vld [vmem:[#allocation210_spill] sm:$0xff]  ;;  %v27649_v4 = vmov %v27625_v16  ;;  %v27666_v56 = vld [vmem:[#allocation299_spill] sm:$0xff]  ;;  %27723 = vst [vmem:[#allocation178_spill] sm:$0xff] %v27722_v60 }
 0x705   : >> { %v9126_v39 = vpop.f32.mrf.mxu0  ;;  %v15719_v57 = vpop.f32.mrf.mxu1  ;;  %v8973_v14 = vmul.f32 %v27639_v21, %v24033_v53  ;;  %v27664_v21 = vmov %v27632_v17  ;;  %v27676_v53 = vld [vmem:[#allocation294_spill] sm:$0xff]  ;;  %27731 = vst [vmem:[#allocation182_spill] sm:$0xff] %v27730_v50  ;;  %v27736_v19 = vld [vmem:[#allocation199_spill] sm:$0xff]  ;;  %v27747_v50 = vld [vmem:[#allocation197_spill] sm:$0xff]  ;;  %v27802_v4 = vmov (%p24202_p8), %v27585_v0  ;;  %v27804_v0 = vmov (%p24202_p8), %v27589_v32 }
 0x706   : >> { %v27634_v33 = vmov %v24175_v10  ;;  %v24181_v49 = vadd.f32 %v9126_v39, %v8958_v22   ;;  %v24183_v1 = vadd.f32 %v15719_v57, %v8975_v44   ;;  %v27656_v39 = vmov %v27606_v31  ;;  %v27673_v22 = vld [vmem:[#allocation296_spill] sm:$0xff]  ;;  %27677 = vst [vmem:[#allocation160_spill] sm:$0xff] %v27676_v53  ;;  %v27686_v10 = vld [vmem:[#allocation279_spill] sm:$0xff]  ;;  %27737 = vst [vmem:[#allocation185_spill] sm:$0xff] %v27736_v19 }
 0x707   : >> { %v9268_v5 = vpop.f32.mrf.mxu1  ;;  %27661 = vst [vmem:[#allocation157_spill] sm:$0xff] %v27634_v33  ;;  %27687 = vst [vmem:[#allocation164_spill] sm:$0xff] %v27686_v10  ;;  %v27689_v53 = vld [vmem:[#allocation283_spill] sm:$0xff]  ;;  %v27705_v57 = vld [vmem:[#allocation264_spill] sm:$0xff] }
 0x708   : >> { %v27637_v24 = vmov %v24181_v49  ;;  %v27638_v54 = vmov %v24183_v1  ;;  %v24187_v3 = vadd.f32 %v9268_v5, %v8973_v14   ;;  %v27650_v5 = vmov %v27619_v41  ;;  %27690 = vst [vmem:[#allocation165_spill] sm:$0xff] %v27689_v53  ;;  %v27703_v44 = vld [vmem:[#allocation267_spill] sm:$0xff]  ;;  %27706 = vst [vmem:[#allocation172_spill] sm:$0xff] %v27705_v57  ;;  %v27711_v10 = vld [vmem:[#allocation277_spill] sm:$0xff] }
 0x709   : >> { %v15720_v51 = vpop.f32.mrf.mxu1  ;;  %v27646_v1 = vmov %v27638_v54  ;;  %v27663_v49 = vmov %v27637_v24  ;;  %v27665_v14 = vmov %v27618_v35  ;;  %27704 = vst [vmem:[#allocation171_spill] sm:$0xff] %v27703_v44  ;;  %v27716_v53 = vld [vmem:[#allocation278_spill] sm:$0xff]  ;;  %v27726_v57 = vld [vmem:[#allocation261_spill] sm:$0xff]  ;;  %27748 = vst [vmem:[#allocation191_spill] sm:$0xff] %v27747_v50  ;;  %v27792_v5 = vmov (%p24202_p8), %v27638_v54 }
 0x70a   : >> { %v27640_v48 = vmov %v24187_v3  ;;  %v24191_v42 = vadd.f32 %v15720_v51, %v8976_v63   ;;  %v27657_v51 = vmov %v27592_v27  ;;  %v27674_v63 = vld [vmem:[#allocation293_spill] sm:$0xff]  ;;  %27717 = vst [vmem:[#allocation175_spill] sm:$0xff] %v27716_v53  ;;  %v27724_v44 = vld [vmem:[#allocation270_spill] sm:$0xff]  ;;  %27727 = vst [vmem:[#allocation180_spill] sm:$0xff] %v27726_v57  ;;  %v27805_v10 = vmov (%p24202_p8), %v27634_v33 }
 0x70b   : >> { %v9271_v25 = vpop.f32.mrf.mxu1  ;;  %v27648_v3 = vmov %v27640_v48  ;;  %27725 = vst [vmem:[#allocation179_spill] sm:$0xff] %v27724_v44  ;;  %v27732_v53 = vld [vmem:[#allocation262_spill] sm:$0xff]  ;;  %v27738_v60 = vld [vmem:[#allocation195_spill] sm:$0xff]  ;;  %v27740_v44 = vld [vmem:[#allocation194_spill] sm:$0xff]  ;;  %v27794_v54 = vmov (%p24202_p8), %v27640_v48 }
 0x70c   : >> { %v24195_v28 = vadd.f32 %v9271_v25, %v8974_v29   ;;  %27645 = vst [vmem:[#allocation149_spill] sm:$0xff] %v24191_v42  ;;  %v27678_v29 = vld [vmem:[#allocation292_spill] sm:$0xff]  ;;  %v27712_v25 = vld [vmem:[#allocation274_spill] sm:$0xff]  ;;  %27733 = vst [vmem:[#allocation183_spill] sm:$0xff] %v27732_v53  ;;  %v27795_v3 = vmov (%p24202_p8), %v27625_v16  ;;  %v27796_v16 = vmov (%p24202_p8), %v27619_v41  ;;  %v27797_v41 = vmov (%p24202_p8), %v27623_v12 }
 0x70d   : >> { %27713 = vst [vmem:[#allocation173_spill] sm:$0xff] %v27712_v25  ;;  %v27728_v25 = vld [vmem:[#allocation259_spill] sm:$0xff]  ;;  %27739 = vst [vmem:[#allocation186_spill] sm:$0xff] %v27738_v60  ;;  %v27749_v53 = vld [vmem:[#allocation192_spill] sm:$0xff] }
 0x70e   : >> { %v27643_v11 = vmov %v24195_v28  ;;  %v27694_v28 = vld [vmem:[#allocation268_spill] sm:$0xff]  ;;  %27729 = vst [vmem:[#allocation181_spill] sm:$0xff] %v27728_v25  ;;  %27741 = vst [vmem:[#allocation187_spill] sm:$0xff] %v27740_v44  ;;  %v27742_v57 = vld [vmem:[#allocation189_spill] sm:$0xff] }
 0x70f   : >> { %27647 = vst [vmem:[#allocation95_spill] sm:$0xff] %v27643_v11  ;;  %27695 = vst [vmem:[#allocation167_spill] sm:$0xff] %v27694_v28  ;;  %v27696_v28 = vld [vmem:[#allocation275_spill] sm:$0xff]  ;;  %v27745_v25 = vld [vmem:[#allocation190_spill] sm:$0xff] }
 0x710   : >> { %27743 = vst [vmem:[#allocation188_spill] sm:$0xff] %v27742_v57  ;;  %27744 = vst [vmem:[#allocation189_spill] sm:$0xff] %v27424_v20  ;;  %v27753_v19 = vld [vmem:[#allocation251_spill] sm:$0xff]  ;;  %v27755_v60 = vld [vmem:[#allocation250_spill] sm:$0xff]  ;;  %v27793_v28 = vmov (%p24202_p8), %v27643_v11 }
 0x711   : >> { %27746 = vst [vmem:[#allocation190_spill] sm:$0xff] %v27745_v25  ;;  %27750 = vst [vmem:[#allocation192_spill] sm:$0xff] %v27749_v53  ;;  %v27757_v44 = vld [vmem:[#allocation243_spill] sm:$0xff]  ;;  %v27759_v20 = vld [vmem:[#allocation204_spill] sm:$0xff] }
 0x712   : >> { %27754 = vst [vmem:[#allocation194_spill] sm:$0xff] %v27753_v19  ;;  %27756 = vst [vmem:[#allocation195_spill] sm:$0xff] %v27755_v60  ;;  %v27761_v57 = vld [vmem:[#allocation244_spill] sm:$0xff]  ;;  %v27763_v25 = vld [vmem:[#allocation203_spill] sm:$0xff] }
 0x713   : >> { %27758 = vst [vmem:[#allocation196_spill] sm:$0xff] %v27757_v44  ;;  %27760 = vst [vmem:[#allocation197_spill] sm:$0xff] %v27759_v20  ;;  %v27765_v50 = vld [vmem:[#allocation200_spill] sm:$0xff]  ;;  %v27767_v53 = vld [vmem:[#allocation256_spill] sm:$0xff] }
 0x714   : >> { %27762 = vst [vmem:[#allocation198_spill] sm:$0xff] %v27761_v57  ;;  %27764 = vst [vmem:[#allocation199_spill] sm:$0xff] %v27763_v25  ;;  %v27771_v19 = vld [vmem:[#allocation257_spill] sm:$0xff]  ;;  %v27775_v25 = vld [vmem:[#allocation252_spill] sm:$0xff] }
 0x715   : >> { %27766 = vst [vmem:[#allocation200_spill] sm:$0xff] %v27765_v50  ;;  %27768 = vst [vmem:[#allocation201_spill] sm:$0xff] %v27767_v53  ;;  %v27773_v60 = vld [vmem:[#allocation253_spill] sm:$0xff]  ;;  %v27776_v57 = vld [vmem:[#allocation255_spill] sm:$0xff] }
 0x716   : >> { %27770 = vst [vmem:[#allocation202_spill] sm:$0xff] %v27769_v34  ;;  %27772 = vst [vmem:[#allocation203_spill] sm:$0xff] %v27771_v19  ;;  %v27777_v50 = vld [vmem:[#allocation254_spill] sm:$0xff]  ;;  %v27780_v34 = vld [vmem:[#allocation249_spill] sm:$0xff]  ;;  %7990 = sbr.rel (!%p24202_p8) target bundleno = 1092 (0x444), region = 154  ;;  %v27806_v57 = vmov (%p24202_p8), %v27629_v46 }
 0x717   : >> { %27774 = vst [vmem:[#allocation204_spill] sm:$0xff] %v27773_v60  ;;  %v27778_v19 = vld [vmem:[#allocation246_spill] sm:$0xff]  ;;  %v27779_v60 = vld [vmem:[#allocation245_spill] sm:$0xff]  ;;  %v27781_v44 = vld [vmem:[#allocation248_spill] sm:$0xff]  ;;  %v27807_v50 = vmov (%p24202_p8), %v27637_v24 }
 0x718   : >> { %v27782_v20 = vld [vmem:[#allocation205_spill] sm:$0xff]  ;;  %v27784_v53 = vld [vmem:[#allocation206_spill] sm:$0xff]  ;;  %v27786_v35 = vld [vmem:[#allocation207_spill] sm:$0xff] }
 0x719   : >> { %27783 = vst [vmem:[#allocation205_spill] sm:$0xff] %v27782_v20  ;;  %27785 = vst [vmem:[#allocation206_spill] sm:$0xff] %v27784_v53  ;;  %v27788_v17 = vld [vmem:[#allocation208_spill] sm:$0xff]  ;;  %v27791_v20 = vmov (%p24202_p8), %v24191_v42  ;;  %v27808_v19 = vld [vmem:[#allocation303_spill] sm:$0xff] (%p24202_p8) }
 0x71a   : >> { %27787 = vst [vmem:[#allocation207_spill] sm:$0xff] %v27786_v35  ;;  %27789 = vst [vmem:[#allocation208_spill] sm:$0xff] %v27788_v17  ;;  %v27809_v60 = vld [vmem:[#allocation301_spill] sm:$0xff] (%p24202_p8)  ;;  %v27810_v34 = vld [vmem:[#allocation299_spill] sm:$0xff] (%p24202_p8) }
 0x71b   : > { %v27811_v44 = vld [vmem:[#allocation302_spill] sm:$0xff]  ;;  %v27812_v2 = vld [vmem:[#allocation300_spill] sm:$0xff]  ;;  %v27813_v27 = vld [vmem:[#allocation297_spill] sm:$0xff] }
 0x71c   : > { %27814 = vst [vmem:[#allocation149_spill] sm:$0xff] %v27813_v27  ;;  %v27815_v32 = vld [vmem:[#allocation295_spill] sm:$0xff]  ;;  %v27817_v27 = vld [vmem:[#allocation298_spill] sm:$0xff]  ;;  %v27819_v25 = vld [vmem:[#allocation293_spill] sm:$0xff] }
 0x71d   : > { %27816 = vst [vmem:[#allocation95_spill] sm:$0xff] %v27815_v32  ;;  %v27818_v32 = vld [vmem:[#allocation296_spill] sm:$0xff]  ;;  %v27820_v15 = vld [vmem:[#allocation291_spill] sm:$0xff]  ;;  %v27823_v14 = vld [vmem:[#allocation290_spill] sm:$0xff] }
 0x71e   : > { %v27822_v42 = vld [vmem:[#allocation292_spill] sm:$0xff]  ;;  %v27825_v62 = vld [vmem:[#allocation289_spill] sm:$0xff]  ;;  %v27826_v53 = vld [vmem:[#allocation286_spill] sm:$0xff] }
 0x71f   : > { %v27824_v49 = vld [vmem:[#allocation288_spill] sm:$0xff]  ;;  %v27827_v33 = vld [vmem:[#allocation279_spill] sm:$0xff]  ;;  %v27839_v22 = vld [vmem:[#allocation285_spill] sm:$0xff] }
 0x720   : > { %v27828_v6 = vld [vmem:[#allocation276_spill] sm:$0xff]  ;;  %v27831_v24 = vld [vmem:[#allocation271_spill] sm:$0xff]  ;;  %v27843_v61 = vld [vmem:[#allocation277_spill] sm:$0xff] }
 0x721   : > { %v27830_v12 = vld [vmem:[#allocation280_spill] sm:$0xff]  ;;  %v27833_v48 = vld [vmem:[#allocation275_spill] sm:$0xff]  ;;  %v27844_v21 = vld [vmem:[#allocation274_spill] sm:$0xff] }
 0x722   : > { %v27834_v17 = vld [vmem:[#allocation272_spill] sm:$0xff]  ;;  %v27835_v29 = vld [vmem:[#allocation263_spill] sm:$0xff]  ;;  %v27845_v38 = vld [vmem:[#allocation281_spill] sm:$0xff] }
 0x723   : > { %v27836_v63 = vld [vmem:[#allocation260_spill] sm:$0xff]  ;;  %v27837_v40 = vld [vmem:[#allocation267_spill] sm:$0xff]  ;;  %v27846_v9 = vld [vmem:[#allocation278_spill] sm:$0xff] }
 0x724   : > { %v27838_v36 = vld [vmem:[#allocation264_spill] sm:$0xff]  ;;  %v27841_v18 = vld [vmem:[#allocation287_spill] sm:$0xff]  ;;  %v27847_v46 = vld [vmem:[#allocation269_spill] sm:$0xff] }
 0x725   : > { %v27842_v56 = vld [vmem:[#allocation284_spill] sm:$0xff]  ;;  %v27848_v31 = vld [vmem:[#allocation266_spill] sm:$0xff]  ;;  %v27849_v23 = vld [vmem:[#allocation273_spill] sm:$0xff] }
 0x726   : > { %v27850_v1 = vld [vmem:[#allocation270_spill] sm:$0xff]  ;;  %v27852_v51 = vld [vmem:[#allocation259_spill] sm:$0xff] }
 0x727   : > { %v27854_v39 = vld [vmem:[#allocation262_spill] sm:$0xff] }
 0x728 PF: > { %27857 = vst [vmem:[#allocation96_spill] sm:$0xff] %v19499_v20  ;;  %27858 = vst [vmem:[#allocation103_spill] sm:$0xff] %v19503_v5  ;;  %v17586_v20 = vld [vmem:[#allocation10 + $0x74] ss:$8 sps:$4 sm:$0xff]   ;;  %17730 = vrcp.f32 %v19751_v39  ;;  %v17588_v5 = vld [vmem:[#allocation10 + $0x70] ss:$8 sps:$4 sm:$0xff]   ;;  %v19751_v39 = vphi %v22723_v39, %v27854_v39   ;;  %v19747_v52 = vphi %v22721_v52, %v27853_v52   ;;  %v19743_v51 = vphi %v22719_v51, %v27852_v51   ;;  %v19739_v30 = vphi %v22717_v30, %v27851_v30   ;;  %v19735_v1 = vphi %v22715_v1, %v27850_v1   ;;  %v19731_v23 = vphi %v22713_v23, %v27849_v23   ;;  %v19727_v31 = vphi %v22711_v31, %v27848_v31   ;;  %v19723_v46 = vphi %v22709_v46, %v27847_v46   ;;  %v19719_v9 = vphi %v22707_v9, %v27846_v9   ;;  %v19715_v38 = vphi %v22705_v38, %v27845_v38   ;;  %v19711_v21 = vphi %v22703_v21, %v27844_v21   ;;  %v19707_v61 = vphi %v22701_v61, %v27843_v61   ;;  %v19703_v56 = vphi %v22699_v56, %v27842_v56   ;;  %v19699_v18 = vphi %v22697_v18, %v27841_v18   ;;  %v19695_v55 = vphi %v22695_v55, %v27840_v55   ;;  %v19691_v22 = vphi %v22693_v22, %v27839_v22   ;;  %v19687_v36 = vphi %v22691_v36, %v27838_v36   ;;  %v19683_v40 = vphi %v22689_v40, %v27837_v40   ;;  %v19679_v63 = vphi %v22687_v63, %v27836_v63   ;;  %v19675_v29 = vphi %v22685_v29, %v27835_v29   ;;  %v19671_v17 = vphi %v22683_v17, %v27834_v17   ;;  %v19667_v48 = vphi %v22681_v48, %v27833_v48   ;;  %v19663_v13 = vphi %v22679_v13, %v27832_v13   ;;  %v19659_v24 = vphi %v22677_v24, %v27831_v24   ;;  %v19655_v12 = vphi %v22675_v12, %v27830_v12   ;;  %v19651_v59 = vphi %v22673_v59, %v27829_v59   ;;  %v19647_v6 = vphi %v22671_v6, %v27828_v6   ;;  %v19643_v33 = vphi %v22669_v33, %v27827_v33   ;;  %v19639_v53 = vphi %v22667_v53, %v27826_v53   ;;  %v19635_v62 = vphi %v22665_v62, %v27825_v62   ;;  %v19631_v49 = vphi %v22663_v49, %v27824_v49   ;;  %v19627_v14 = vphi %v22661_v14, %v27823_v14   ;;  %v19623_v42 = vphi %v22659_v42, %v27822_v42   ;;  %v19619_v7 = vphi %v22657_v7, %v27821_v7   ;;  %v19615_v15 = vphi %v22655_v15, %v27820_v15   ;;  %v19611_v25 = vphi %v22653_v25, %v27819_v25   ;;  %v19607_v32 = vphi %v22651_v32, %v27818_v32   ;;  %v19603_v27 = vphi %v22649_v27, %v27817_v27   ;;  %v19591_v2 = vphi %v22643_v2, %v27812_v2   ;;  %v19587_v44 = vphi %v22641_v44, %v27811_v44   ;;  %v19583_v34 = vphi %v22639_v34, %v27810_v34   ;;  %v19579_v60 = vphi %v22637_v60, %v27809_v60   ;;  %v19575_v19 = vphi %v22635_v19, %v27808_v19   ;;  %v19571_v50 = vphi %v22633_v50, %v27807_v50   ;;  %v19567_v57 = vphi %v22631_v57, %v27806_v57   ;;  %v19563_v10 = vphi %v22629_v10, %v27805_v10   ;;  %v19559_v0 = vphi %v22627_v0, %v27804_v0   ;;  %v19555_v43 = vphi %v22625_v43, %v27803_v43   ;;  %v19551_v4 = vphi %v22623_v4, %v27802_v4   ;;  %v19547_v58 = vphi %v22621_v58, %v27801_v58   ;;  %v19543_v26 = vphi %v22619_v26, %v27800_v26   ;;  %v19539_v45 = vphi %v22617_v45, %v27799_v45   ;;  %v19535_v8 = vphi %v22615_v8, %v27798_v8   ;;  %v19531_v47 = vphi %v22613_v47, %v27608_v47   ;;  %v19527_v41 = vphi %v22611_v41, %v27797_v41   ;;  %v19523_v37 = vphi %v22609_v37, %v27627_v37   ;;  %v19519_v16 = vphi %v22607_v16, %v27796_v16   ;;  %v19515_v3 = vphi %v22605_v3, %v27795_v3   ;;  %v19511_v54 = vphi %v22603_v54, %v27794_v54   ;;  %v19507_v28 = vphi %v22601_v28, %v27793_v28   ;;  %v19503_v5 = vphi %v22599_v5, %v27792_v5   ;;  %v19499_v20 = vphi %v22597_v20, %v27791_v20  }
 0x729   : > { %27859 = vst [vmem:[#allocation101_spill] sm:$0xff] %v19507_v28  ;;  %27860 = vst [vmem:[#allocation153_spill] sm:$0xff] %v19511_v54  ;;  %17732 = vrcp.f32 %v19747_v52  ;;  %11443 = vmatprep.subr.bf16.mxu0 %v17586_v20  ;;  %v17592_v28 = vld [vmem:[#allocation10 + $0x54] ss:$8 sps:$4 sm:$0xff]   ;;  %v17594_v54 = vld [vmem:[#allocation10 + $0x50] ss:$8 sps:$4 sm:$0xff]  }
 0x72a   : > { %27861 = vst [vmem:[#allocation152_spill] sm:$0xff] %v19515_v3  ;;  %27862 = vst [vmem:[#allocation107_spill] sm:$0xff] %v19519_v16  ;;  %17734 = vrcp.f32 %v19687_v36  ;;  %11444 = vmatpush1.bf16.msra.mxu0 %v17588_v5  ;;  %v17597_v39 = vld [vmem:[#allocation10 + $0x40] ss:$8 sps:$4 sm:$0xff]   ;;  %v17598_v36 = vld [vmem:[#allocation10 + $0x34] ss:$8 sps:$4 sm:$0xff]  }
 0x72b   : > { %27863 = vst [vmem:[#allocation109_spill] sm:$0xff] %v19563_v10  ;;  %27864 = vst [vmem:[#allocation113_spill] sm:$0xff] %v19567_v57  ;;  %v27869_v35 = vld [vmem:[#allocation149_spill] sm:$0xff]  ;;  %v27870_v11 = vld [vmem:[#allocation95_spill] sm:$0xff]  ;;  %17736 = vrcp.f32 %v19683_v40  ;;  %s27958_s20 = sld [smem:[#allocation308_spill]]  ;;  %s14199_s4 = sshll.u32 %s22589_s29, 4  ;;  %s26224_s4 = int_to_ptr.vmem [resolvable:$true] %s14199_s4 }
 0x72c   : > { %27865 = vst [vmem:[#allocation115_spill] sm:$0xff] %v19571_v50  ;;  %27866 = vst [vmem:[#allocation121_spill] sm:$0xff] %v19575_v19  ;;  %v17589_v10 = vld [vmem:[#allocation10 + $0x64] ss:$8 sps:$4 sm:$0xff]   ;;  %v17591_v57 = vld [vmem:[#allocation10 + $0x60] ss:$8 sps:$4 sm:$0xff]   ;;  %17738 = vrcp.f32 %v19743_v51 }
 0x72d   : > { %27867 = vst [vmem:[#allocation126_spill] sm:$0xff] %v19579_v60  ;;  %27868 = vst [vmem:[#allocation127_spill] sm:$0xff] %v19583_v34  ;;  %11445 = vmatprep.subr.bf16.mxu0 %v17589_v10  ;;  %17740 = vrcp.f32 %v19739_v30  ;;  %v17595_v50 = vld [vmem:[#allocation10 + $0x44] ss:$8 sps:$4 sm:$0xff]   ;;  %s28078_s15 = sld [smem:[#allocation26_spill]]  ;;  %s26236_s30 = scalar_lea.sflag [#allocation6], %s430_s22 }
 0x72e   : > { %27871 = vst [vmem:[#allocation120_spill] sm:$0xff] %v19627_v14  ;;  %27872 = vst [vmem:[#allocation132_spill] sm:$0xff] %v19631_v49  ;;  %17742 = vrcp.f32 %v19679_v63  ;;  %11446 = vmatpush1.bf16.msra.mxu0 %v17591_v57  ;;  %v17600_v63 = vld [vmem:[#allocation10 + $0x30] ss:$8 sps:$4 sm:$0xff]   ;;  %s28079_s8 = sld [smem:[#allocation27_spill]]  ;;  %s18327_s0 = scalar_lea.vmem %s26224_s4, 4096 }
 0x72f   : > { %27873 = vst [vmem:[#allocation131_spill] sm:$0xff] %v19691_v22  ;;  %27874 = vst [vmem:[#allocation139_spill] sm:$0xff] %v19695_v55  ;;  %17744 = vrcp.f32 %v19675_v29  ;;  %11447 = vmatprep.subr.bf16.mxu0 %v17592_v28  ;;  %s28087_s3 = sld [smem:[#allocation31_spill]]  ;;  %p18328_p6 = scmp.ne.s32.totalorder %s26224_s4, %s18327_s0 }
 0x730   : > { %17746 = vrcp.f32 %v19735_v1  ;;  %s28090_s26 = sld [smem:[#allocation311_spill]]  ;;  %s19773_s2 = smov [#allocation17]  }
 0x731   : > { %17748 = vrcp.f32 %v19731_v23  ;;  %v17601_v23 = vld [vmem:[#allocation10 + $0x24] ss:$8 sps:$4 sm:$0xff]   ;;  %s18331_s9 = sshll.u32 %s19773_s2, 4  ;;  %s18332_s9 = int_to_ptr.vmem [resolvable:$false] %s18331_s9 }
 0x732   : > { %11448 = vmatpush1.bf16.msra.mxu0 %v17594_v54  ;;  %17750 = vrcp.f32 %v19671_v17  ;;  %v27875_v54 = vmov 0.0   ;;  %s18333_s27 = scalar_lea.vmem %s18332_s9, 8192  ;;  %p18334_p7 = scmp.lt.s32.totalorder %s26224_s4, %s18332_s9 }
 0x733   : > { %11449 = vmatprep.subr.bf16.mxu0 %v17595_v50  ;;  %17752 = vrcp.f32 %v19667_v48  ;;  %v27876_v48 = vld [vmem:[#allocation82_spill] sm:$0xff]  ;;  %s15338_s28 = sshll.u32 %s28078_s15, 5  ;;  %p18335_p2 = scmp.lt.s32.totalorder %s18333_s27, %s18327_s0 }
 0x734   : > { %17754 = vrcp.f32 %v19727_v31  ;;  %s15263_s6 = sshll.u32 %s28079_s8, 6 }
 0x735   : > { %v17731_v52 = vpop.eup %17730  ;;  %17756 = vrcp.f32 %v19723_v46  ;;  %s14196_s24 = sadd.s32 %s15338_s28, %s15263_s6  ;;  %p28091_p11 = scmp.ne.s32.totalorder %s28087_s3, 0 }
 0x736   : > { %v17733_v40 = vpop.eup %17732  ;;  %v9347_v5 = vmul.f32 %v19623_v42, %v17731_v52  ;;  %11450 = vmatpush1.bf16.msra.mxu0 %v17597_v39  ;;  %17758 = vrcp.f32 %v19663_v13  ;;  %s15264_s25 = sshll.u32 %s14196_s24, 7  ;;  %p18336_p5 = por %p18335_p2, %p18334_p7 }
 0x737   : > { %v17735_v30 = vpop.eup %17734  ;;  %v9348_v51 = vmul.f32 %v19619_v7, %v17733_v40  ;;  %11451 = vmatprep.subr.bf16.mxu0 %v17598_v36  ;;  %17760 = vrcp.f32 %v19659_v24  ;;  %v17603_v24 = vld [vmem:[#allocation10 + $0x20] ss:$8 sps:$4 sm:$0xff]   ;;  %v17604_v40 = vld [vmem:[#allocation10 + $0x14] ss:$8 sps:$4 sm:$0xff]   ;;  %s26231_s1 = scalar_lea.hbm %s28090_s26, %s15264_s25  ;;  %p18329_p13 = pnand %p18328_p6, %p28091_p11 }
 0x738   : > { %v17737_v1 = vpop.eup %17736  ;;  %v9363_v17 = vmul.f32 %v19559_v0, %v17735_v30  ;;  %v9379_v29 = vcombine.high %v9347_v5, %v27875_v54  ;;  %v9386_v10 = vrot.slane %v9347_v5, %v27876_v48  ;;  %17762 = vrcp.f32 %v19719_v9 }
 0x739   : > { %v17739_v31 = vpop.eup %17738  ;;  %v9364_v46 = vmul.f32 %v19555_v43, %v17737_v1  ;;  %v9445_v42 = vcombine.high %v9348_v51, %v27875_v54  ;;  %v9452_v28 = vrot.slane %v9348_v51, %v27876_v48  ;;  %17764 = vrcp.f32 %v19715_v38  ;;  %p18330_p0 = pneg %p18329_p13 }
 0x73a   : > { %v17741_v7 = vpop.eup %17740  ;;  %v9393_v13 = vrot.slane %v9379_v29, %v27876_v48  ;;  %v9394_v57 = vcombine.high %v9363_v17, %v27875_v54  ;;  %v9401_v0 = vrot.slane %v9363_v17, %v27876_v48  ;;  %v24865_v50 = vmul.f32 %v19615_v15, %v17739_v31  ;;  %11452 = vmatpush1.bf16.msra.mxu0 %v17600_v63  ;;  %v17606_v63 = vld [vmem:[#allocation10 + $0x10] ss:$8 sps:$4 sm:$0xff]  }
 0x73b   : > { %v17743_v20 = vpop.eup %17742  ;;  %v9459_v43 = vrot.slane %v9445_v42, %v27876_v48  ;;  %v9460_v39 = vcombine.high %v9364_v46, %v27875_v54  ;;  %v9467_v36 = vrot.slane %v9364_v46, %v27876_v48  ;;  %v24871_v9 = vmul.f32 %v19611_v25, %v17741_v7  ;;  %11453 = vmatprep.subr.bf16.mxu0 %v17601_v23  ;;  %v17607_v46 = vld [vmem:[#allocation10 + $0x4] ss:$8 sps:$4 sm:$0xff]   ;;  %v27877_v23 = vld [vmem:[#allocation83_spill] sm:$0xff]  ;;  %p18337_p9 = pnand %p18336_p5, %p18330_p0 }
 0x73c   : > { %v17745_v52 = vpop.eup %17744  ;;  %v9408_v5 = vrot.slane %v9394_v57, %v27876_v48  ;;  %v9409_v30 = vcombine.low %v9386_v10, %v9401_v0  ;;  %v9410_v15 = vcombine.high %v9386_v10, %v9401_v0  ;;  %v24875_v51 = vmul.f32 %v19551_v4, %v17743_v20 }
 0x73d   : > { %v9474_v1 = vrot.slane %v9460_v39, %v27876_v48  ;;  %v9475_v17 = vcombine.low %v9452_v28, %v9467_v36  ;;  %v9476_v29 = vcombine.high %v9452_v28, %v9467_v36  ;;  %v24879_v31 = vmul.f32 %v19547_v58, %v17745_v52  ;;  %v24881_v25 = vpop.eup %17746 }
 0x73e   : > { %v9417_v42 = vrot.slane %v9409_v30, %v27877_v23  ;;  %v9424_v7 = vrot.slane %v9410_v15, %v27877_v23  ;;  %v9425_v57 = vcombine.low %v9393_v13, %v9408_v5  ;;  %v9426_v10 = vcombine.high %v9393_v13, %v9408_v5  ;;  %v24885_v0 = vpop.eup %17748  ;;  %11454 = vmatpush1.bf16.msra.mxu0 %v17603_v24  ;;  %v17609_v13 = vld [vmem:[#allocation10] ss:$8 sps:$4 sm:$0xff]  }
 0x73f   : > { %v9483_v4 = vrot.slane %v9475_v17, %v27877_v23  ;;  %v9490_v20 = vrot.slane %v9476_v29, %v27877_v23  ;;  %v9491_v28 = vcombine.low %v9459_v43, %v9474_v1  ;;  %v9492_v39 = vcombine.high %v9459_v43, %v9474_v1  ;;  %v24889_v58 = vpop.eup %17750  ;;  %11455 = vmatprep.subr.bf16.mxu0 %v17604_v40  ;;  %v17610_v43 = vld [vmem:[#allocation10 + $0xf4] ss:$8 sps:$4 sm:$0xff]  }
 0x740   : > { %v9433_v36 = vrot.slane %v9425_v57, %v27877_v23  ;;  %v9440_v52 = vrot.slane %v9426_v10, %v27877_v23  ;;  %v10435_v30 = vcombine.low %v9417_v42, %v9424_v7  ;;  %v15004_v15 = vcombine.high %v9417_v42, %v9424_v7  ;;  %v24893_v19 = vpop.eup %17752 }
 0x741   : > { %v9499_v24 = vrot.slane %v9491_v28, %v27877_v23  ;;  %v9506_v5 = vrot.slane %v9492_v39, %v27877_v23  ;;  %v10485_v17 = vcombine.low %v9483_v4, %v9490_v20  ;;  %v15006_v29 = vcombine.high %v9483_v4, %v9490_v20  ;;  %v24897_v3 = vpop.eup %17754 }
 0x742   : > { %v10442_v40 = vrot.slane %v10435_v30, %v27876_v48  ;;  %v10450_v1 = vrot.slane %v15004_v15, %v27876_v48  ;;  %v10451_v57 = vcombine.low %v9433_v36, %v9440_v52  ;;  %v15005_v10 = vcombine.high %v9433_v36, %v9440_v52  ;;  %v24901_v16 = vpop.eup %17756  ;;  %11456 = vmatpush1.bf16.msra.mxu0 %v17606_v63  ;;  %v17612_v63 = vld [vmem:[#allocation10 + $0xf0] ss:$8 sps:$4 sm:$0xff]  }
 0x743   : > { %v10492_v42 = vrot.slane %v10485_v17, %v27876_v48  ;;  %v10500_v7 = vrot.slane %v15006_v29, %v27876_v48  ;;  %v10501_v28 = vcombine.low %v9499_v24, %v9506_v5  ;;  %v15007_v39 = vcombine.high %v9499_v24, %v9506_v5  ;;  %v24905_v14 = vpop.eup %17758  ;;  %11457 = vmatprep.subr.bf16.mxu0 %v17607_v46  ;;  %v17613_v5 = vld [vmem:[#allocation10 + $0xe4] ss:$8 sps:$4 sm:$0xff]  }
 0x744   : > { %v10458_v4 = vrot.slane %v10451_v57, %v27876_v48  ;;  %v10466_v20 = vrot.slane %v15005_v10, %v27876_v48  ;;  %v10467_v30 = vcombine.low %v10442_v40, %v10450_v1  ;;  %v9511_v36 = vcombine.high %v24865_v50, %v27875_v54  ;;  %v24911_v52 = vpop.eup %17760 }
 0x745   : > { %v10508_v15 = vrot.slane %v10501_v28, %v27876_v48  ;;  %v10516_v17 = vrot.slane %v15007_v39, %v27876_v48  ;;  %v10517_v29 = vcombine.low %v10492_v42, %v10500_v7  ;;  %v9518_v24 = vrot.slane %v24865_v50, %v27876_v48  ;;  %v24917_v46 = vpop.eup %17762 }
 0x746   : > { %v10474_v57 = vrot.slane %v10467_v30, %v27877_v23  ;;  %v10475_v40 = vcombine.low %v10458_v4, %v10466_v20  ;;  %v9525_v1 = vrot.slane %v9511_v36, %v27876_v48  ;;  %v9526_v10 = vcombine.high %v24875_v51, %v27875_v54  ;;  %11458 = vmatpush1.bf16.msra.mxu0 %v17609_v13  ;;  %v17615_v20 = vld [vmem:[#allocation10 + $0xe0] ss:$8 sps:$4 sm:$0xff]  }
 0x747   : > { %v10524_v28 = vrot.slane %v10517_v29, %v27877_v23  ;;  %v10525_v60 = vcombine.low %v10508_v15, %v10516_v17  ;;  %v9533_v42 = vrot.slane %v24875_v51, %v27876_v48  ;;  %v9577_v50 = vcombine.high %v24871_v9, %v27875_v54  ;;  %11459 = vmatprep.subr.bf16.mxu0 %v17610_v43  ;;  %v17616_v17 = vld [vmem:[#allocation10 + $0xd4] ss:$8 sps:$4 sm:$0xff]  }
 0x748   : > { %v10482_v7 = vrot.slane %v10475_v40, %v27877_v23  ;;  %v9540_v39 = vrot.slane %v9526_v10, %v27876_v48  ;;  %v9584_v4 = vrot.slane %v24871_v9, %v27876_v48  ;;  %v9592_v13 = vcombine.high %v24879_v31, %v27875_v54 }
 0x749   : > { %v10532_v30 = vrot.slane %v10525_v60, %v27877_v23  ;;  %v9541_v36 = vcombine.low %v9518_v24, %v9533_v42  ;;  %v9542_v15 = vcombine.high %v9518_v24, %v9533_v42  ;;  %v9591_v51 = vrot.slane %v9577_v50, %v27876_v48 }
 0x74a   : > { %v10484_v29 = vcombine.high %v10474_v57, %v10482_v7  ;;  %v10483_v43 = vcombine.low %v10474_v57, %v10482_v7  ;;  %v9557_v34 = vcombine.low %v9525_v1, %v9540_v39  ;;  %v9558_v40 = vcombine.high %v9525_v1, %v9540_v39  ;;  %11460 = vmatpush2.bf16.msra.mxu0 %v17612_v63  ;;  %v17618_v57 = vld [vmem:[#allocation10 + $0xd0] ss:$8 sps:$4 sm:$0xff]   ;;  %v17619_v7 = vld [vmem:[#allocation10 + $0xc4] ss:$8 sps:$4 sm:$0xff]  }
 0x74b   : > { %v10534_v10 = vcombine.high %v10524_v28, %v10532_v30  ;;  %v10533_v49 = vcombine.low %v10524_v28, %v10532_v30  ;;  %v9549_v9 = vrot.slane %v9541_v36, %v27877_v23  ;;  %v9556_v22 = vrot.slane %v9542_v15, %v27877_v23  ;;  %11461 = vmatprep.subr.bf16.mxu0 %v17613_v5 }
 0x74c   : > { %v9565_v55 = vrot.slane %v9557_v34, %v27877_v23  ;;  %v9572_v60 = vrot.slane %v9558_v40, %v27877_v23  ;;  %v9599_v24 = vrot.slane %v24879_v31, %v27876_v48  ;;  %v9606_v42 = vrot.slane %v9592_v13, %v27876_v48 }
 0x74d   : > { %v11236_v50 = vpack.c.bf16 %v10534_v10, %v10484_v29  ;;  %v24943_v1 = vpack.c.bf16 %v10533_v49, %v10483_v43  ;;  %v10535_v63 = vcombine.low %v9549_v9, %v9556_v22  ;;  %v15008_v28 = vcombine.high %v9549_v9, %v9556_v22 }
 0x74e   : > { %v9607_v39 = vcombine.low %v9584_v4, %v9599_v24  ;;  %v9608_v30 = vcombine.high %v9584_v4, %v9599_v24  ;;  %v9623_v36 = vcombine.low %v9591_v51, %v9606_v42  ;;  %v9624_v5 = vcombine.high %v9591_v51, %v9606_v42  ;;  %11462 = vmatpush2.bf16.msra.mxu0 %v17615_v20 }
 0x74f   : > { %11475 = vmatprep.mubr.bf16.mxu0 %v11236_v50  ;;  %v10542_v34 = vrot.slane %v10535_v63, %v27876_v48  ;;  %v10550_v15 = vrot.slane %v15008_v28, %v27876_v48  ;;  %v10551_v31 = vcombine.low %v9565_v55, %v9572_v60  ;;  %11463 = vmatprep.subr.bf16.mxu0 %v17616_v17  ;;  %v17621_v17 = vld [vmem:[#allocation10 + $0xc0] ss:$8 sps:$4 sm:$0xff]   ;;  %17766 = vrcp.f32 %v19655_v12 }
 0x750   : > { %v9615_v49 = vrot.slane %v9607_v39, %v27877_v23  ;;  %v9622_v13 = vrot.slane %v9608_v30, %v27877_v23  ;;  %v9631_v22 = vrot.slane %v9623_v36, %v27877_v23  ;;  %v9638_v4 = vrot.slane %v9624_v5, %v27877_v23  ;;  %v17624_v39 = vld [vmem:[#allocation10 + $0xb0] ss:$8 sps:$4 sm:$0xff]  }
 0x751   : > { %v10558_v51 = vrot.slane %v10551_v31, %v27876_v48  ;;  %v15009_v20 = vcombine.high %v9565_v55, %v9572_v60  ;;  %v10567_v29 = vcombine.low %v10542_v34, %v10550_v15  ;;  %v9351_v43 = vmul.f32 %v19607_v32, %v24881_v25  ;;  %v17622_v55 = vld [vmem:[#allocation10 + $0xb4] ss:$8 sps:$4 sm:$0xff]   ;;  %v17625_v15 = vld [vmem:[#allocation10 + $0xa4] ss:$8 sps:$4 sm:$0xff]  }
 0x752   : > { %v10585_v40 = vcombine.low %v9615_v49, %v9622_v13  ;;  %v15010_v10 = vcombine.high %v9615_v49, %v9622_v13  ;;  %v10601_v9 = vcombine.low %v9631_v22, %v9638_v4  ;;  %v15011_v38 = vcombine.high %v9631_v22, %v9638_v4  ;;  %11464 = vmatpush2.bf16.msra.mxu0 %v17618_v57 }
 0x753   : > { %v10566_v24 = vrot.slane %v15009_v20, %v27876_v48  ;;  %v9352_v42 = vmul.f32 %v19603_v27, %v24885_v0  ;;  %v9367_v50 = vmul.f32 %v19543_v26, %v24889_v58  ;;  %11465 = vmatprep.subr.bf16.mxu0 %v17619_v7  ;;  %v24966_v63 = vrot.slane %v10567_v29, %v27877_v23 }
 0x754   : > { %v10592_v32 = vrot.slane %v10585_v40, %v27876_v48  ;;  %v10600_v25 = vrot.slane %v15010_v10, %v27876_v48  ;;  %v10608_v60 = vrot.slane %v10601_v9, %v27876_v48  ;;  %v10616_v57 = vrot.slane %v15011_v38, %v27876_v48  ;;  %v17627_v10 = vld [vmem:[#allocation10 + $0xa0] ss:$8 sps:$4 sm:$0xff]  }
 0x755   : > { %v10575_v28 = vcombine.low %v10558_v51, %v10566_v24  ;;  %v9643_v27 = vcombine.high %v9351_v43, %v27875_v54  ;;  %v9650_v26 = vrot.slane %v9351_v43, %v27876_v48  ;;  %v9658_v58 = vcombine.high %v9367_v50, %v27875_v54 }
 0x756   : > { %v10617_v0 = vcombine.low %v10592_v32, %v10600_v25  ;;  %v10625_v12 = vcombine.low %v10608_v60, %v10616_v57  ;;  %v9665_v7 = vrot.slane %v9367_v50, %v27876_v48  ;;  %11466 = vmatpush2.bf16.msra.mxu0 %v17621_v17  ;;  %v9368_v36 = vmul.f32 %v19539_v45, %v24893_v19  ;;  %v24998_v50 = vpop.eup %17764 }
 0x757   : > { %v24973_v30 = vrot.slane %v10575_v28, %v27877_v23  ;;  %v9657_v5 = vrot.slane %v9643_v27, %v27876_v48  ;;  %v9709_v34 = vcombine.high %v9352_v42, %v27875_v54  ;;  %11467 = vmatprep.subr.bf16.mxu0 %v17622_v55  ;;  %v9672_v13 = vrot.slane %v9658_v58, %v27876_v48 }
 0x758   : > { %v24980_v31 = vrot.slane %v10617_v0, %v27877_v23  ;;  %v24983_v49 = vrot.slane %v10625_v12, %v27877_v23  ;;  %v9673_v22 = vcombine.low %v9650_v26, %v9665_v7  ;;  %v9674_v19 = vcombine.high %v9650_v26, %v9665_v7 }
 0x759   : > { %v10584_v4 = vcombine.high %v24966_v63, %v24973_v30  ;;  %v10583_v45 = vcombine.low %v24966_v63, %v24973_v30  ;;  %v9716_v51 = vrot.slane %v9352_v42, %v27876_v48  ;;  %v9689_v43 = vcombine.low %v9657_v5, %v9672_v13  ;;  %v17628_v42 = vld [vmem:[#allocation10 + $0x94] ss:$8 sps:$4 sm:$0xff]  }
 0x75a   : > { %v10634_v20 = vcombine.high %v24980_v31, %v24983_v49  ;;  %v9681_v29 = vrot.slane %v9673_v22, %v27877_v23  ;;  %v9723_v40 = vrot.slane %v9709_v34, %v27876_v48  ;;  %11468 = vmatpush2.bf16.msra.mxu0 %v17624_v39  ;;  %v9688_v9 = vrot.slane %v9674_v19, %v27877_v23  ;;  %v17630_v39 = vld [vmem:[#allocation10 + $0x90] ss:$8 sps:$4 sm:$0xff]  }
 0x75b   : > { %v9690_v38 = vcombine.high %v9657_v5, %v9672_v13  ;;  %v9724_v17 = vcombine.high %v9368_v36, %v27875_v54  ;;  %v9731_v24 = vrot.slane %v9368_v36, %v27876_v48  ;;  %11469 = vmatprep.subr.bf16.mxu0 %v17625_v15  ;;  %v10633_v32 = vcombine.low %v24980_v31, %v24983_v49  ;;  %v17631_v15 = vld [vmem:[#allocation10 + $0x84] ss:$8 sps:$4 sm:$0xff]  }
 0x75c   : > { %v25000_v55 = vpack.c.bf16 %v10634_v20, %v10584_v4  ;;  %v9697_v25 = vrot.slane %v9689_v43, %v27877_v23  ;;  %v9353_v60 = vmul.f32 %v27870_v11, %v24897_v3  ;;  %v10635_v0 = vcombine.low %v9681_v29, %v9688_v9  ;;  %v25015_v34 = vpop.eup %17766 }
 0x75d   : > { %v9704_v57 = vrot.slane %v9690_v38, %v27877_v23  ;;  %v9738_v28 = vrot.slane %v9724_v17, %v27876_v48  ;;  %v9739_v27 = vcombine.low %v9716_v51, %v9731_v24  ;;  %v9740_v26 = vcombine.high %v9716_v51, %v9731_v24 }
 0x75e   : > { %v15012_v12 = vcombine.high %v9681_v29, %v9688_v9  ;;  %v9354_v58 = vmul.f32 %v27869_v35, %v24901_v16  ;;  %v9369_v7 = vmul.f32 %v19535_v8, %v24905_v14  ;;  %11470 = vmatpush2.bf16.msra.mxu0 %v17627_v10  ;;  %v10642_v31 = vrot.slane %v10635_v0, %v27876_v48  ;;  %v17633_v29 = vld [vmem:[#allocation10 + $0x80] ss:$8 sps:$4 sm:$0xff]  }
 0x75f   : > { %v9747_v36 = vrot.slane %v9739_v27, %v27877_v23  ;;  %v9754_v3 = vrot.slane %v9740_v26, %v27877_v23  ;;  %v9755_v11 = vcombine.low %v9723_v40, %v9738_v28  ;;  %v9756_v5 = vcombine.high %v9723_v40, %v9738_v28  ;;  %11471 = vmatprep.subr.bf16.mxu0 %v17628_v42 }
 0x760   : > { %v10650_v49 = vrot.slane %v15012_v12, %v27876_v48  ;;  %v10651_v16 = vcombine.low %v9697_v25, %v9704_v57  ;;  %v15013_v35 = vcombine.high %v9697_v25, %v9704_v57  ;;  %v9370_v20 = vmul.f32 %v19531_v47, %v24911_v52 }
 0x761   : > { %v9763_v8 = vrot.slane %v9755_v11, %v27877_v23  ;;  %v9770_v14 = vrot.slane %v9756_v5, %v27877_v23  ;;  %v10685_v13 = vcombine.low %v9747_v36, %v9754_v3  ;;  %v15014_v22 = vcombine.high %v9747_v36, %v9754_v3 }
 0x762   : > { %v10658_v4 = vrot.slane %v10651_v16, %v27876_v48  ;;  %v10666_v19 = vrot.slane %v15013_v35, %v27876_v48  ;;  %v10667_v51 = vcombine.low %v10642_v31, %v10650_v49  ;;  %11472 = vmatpush2.bf16.msra.mxu0 %v17630_v39  ;;  %v9775_v24 = vcombine.high %v9353_v60, %v27875_v54 }
 0x763   : > { %v10692_v43 = vrot.slane %v10685_v13, %v27876_v48  ;;  %v10700_v40 = vrot.slane %v15014_v22, %v27876_v48  ;;  %v10701_v10 = vcombine.low %v9763_v8, %v9770_v14  ;;  %v15015_v9 = vcombine.high %v9763_v8, %v9770_v14  ;;  %11473 = vmatprep.subr.bf16.mxu0 %v17631_v15 }
 0x764   : > { %v25028_v38 = vrot.slane %v10667_v51, %v27877_v23  ;;  %v10675_v17 = vcombine.low %v10658_v4, %v10666_v19  ;;  %v9782_v42 = vrot.slane %v9353_v60, %v27876_v48  ;;  %v9790_v57 = vcombine.high %v9369_v7, %v27875_v54 }
 0x765   : > { %v10708_v25 = vrot.slane %v10701_v10, %v27876_v48  ;;  %v10716_v47 = vrot.slane %v15015_v9, %v27876_v48  ;;  %v10717_v52 = vcombine.low %v10692_v43, %v10700_v40  ;;  %v9789_v27 = vrot.slane %v9775_v24, %v27876_v48 }
 0x766   : > { %v25036_v28 = vrot.slane %v10675_v17, %v27877_v23  ;;  %v9797_v26 = vrot.slane %v9369_v7, %v27876_v48  ;;  %v9841_v0 = vcombine.high %v9354_v58, %v27875_v54  ;;  %11474 = vmatpush2.bf16.msra.mxu0 %v17633_v29  ;;  %v11237_v60 = vpack.c.bf16 %v10633_v32, %v10583_v45 }
 0x767   : > { %v25045_v12 = vrot.slane %v10717_v52, %v27877_v23  ;;  %v10725_v39 = vcombine.low %v10708_v25, %v10716_v47  ;;  %v9804_v36 = vrot.slane %v9790_v57, %v27876_v48  ;;  %v9848_v7 = vrot.slane %v9354_v58, %v27876_v48 }
 0x768   : > { %v10684_v3 = vcombine.high %v25028_v38, %v25036_v28  ;;  %v9805_v11 = vcombine.low %v9782_v42, %v9797_v26  ;;  %v9806_v5 = vcombine.high %v9782_v42, %v9797_v26  ;;  %v9855_v63 = vrot.slane %v9841_v0, %v27876_v48 }
 0x769   : > { %v10732_v15 = vrot.slane %v10725_v39, %v27877_v23  ;;  %v9821_v31 = vcombine.low %v9789_v27, %v9804_v36  ;;  %v9822_v49 = vcombine.high %v9789_v27, %v9804_v36  ;;  %11476 = vmatmul.mubr.bf16.vlgmr.msra.gmra.mxu0 %v24943_v1  ;;  %v9856_v32 = vcombine.high %v9370_v20, %v27875_v54 }
 0x76a   : > { %v9813_v30 = vrot.slane %v9805_v11, %v27877_v23  ;;  %v9820_v45 = vrot.slane %v9806_v5, %v27877_v23  ;;  %v9863_v16 = vrot.slane %v9370_v20, %v27876_v48  ;;  %11485 = vmatprep.mubr.bf16.mxu0 %v25000_v55  ;;  %v10683_v35 = vcombine.low %v25028_v38, %v25036_v28 }
 0x76b   : > { %v10734_v58 = vcombine.high %v25045_v12, %v10732_v15  ;;  %v9829_v8 = vrot.slane %v9821_v31, %v27877_v23  ;;  %v9836_v14 = vrot.slane %v9822_v49, %v27877_v23  ;;  %v9870_v1 = vrot.slane %v9856_v32, %v27876_v48 }
 0x76c   : > { %v9871_v13 = vcombine.low %v9848_v7, %v9863_v16  ;;  %v9872_v22 = vcombine.high %v9848_v7, %v9863_v16  ;;  %v10735_v4 = vcombine.low %v9813_v30, %v9820_v45  ;;  %v10733_v51 = vcombine.low %v25045_v12, %v10732_v15 }
 0x76d   : > { %v11240_v19 = vpack.c.bf16 %v10734_v58, %v10684_v3  ;;  %v15016_v20 = vcombine.high %v9813_v30, %v9820_v45  ;;  %v10751_v29 = vcombine.low %v9829_v8, %v9836_v14  ;;  %v9887_v40 = vcombine.low %v9855_v63, %v9870_v1 }
 0x76e   : > { %v9879_v55 = vrot.slane %v9871_v13, %v27877_v23  ;;  %v9886_v43 = vrot.slane %v9872_v22, %v27877_v23  ;;  %v9888_v10 = vcombine.high %v9855_v63, %v9870_v1  ;;  %v10742_v9 = vrot.slane %v10735_v4, %v27876_v48 }
 0x76f   : > { %v10750_v38 = vrot.slane %v15016_v20, %v27876_v48  ;;  %v10758_v17 = vrot.slane %v10751_v29, %v27876_v48  ;;  %v15017_v24 = vcombine.high %v9829_v8, %v9836_v14  ;;  %v9895_v42 = vrot.slane %v9887_v40, %v27877_v23 }
 0x770   : > { %v9902_v25 = vrot.slane %v9888_v10, %v27877_v23  ;;  %v10785_v47 = vcombine.low %v9879_v55, %v9886_v43  ;;  %v15018_v52 = vcombine.high %v9879_v55, %v9886_v43  ;;  %17768 = vrcp.f32 %v19651_v59 }
 0x771   : > { %v10766_v57 = vrot.slane %v15017_v24, %v27876_v48  ;;  %v10767_v28 = vcombine.low %v10742_v9, %v10750_v38  ;;  %v9355_v27 = vmul.f32 %v19591_v2, %v24917_v46  ;;  %11486 = vmatmul.mubr.bf16.gmra.mxu0 %v11237_v60  ;;  %v9371_v11 = vmul.f32 %v19527_v41, %v25015_v34 }
 0x772   : > { %v10792_v26 = vrot.slane %v10785_v47, %v27876_v48  ;;  %v10800_v0 = vrot.slane %v15018_v52, %v27876_v48  ;;  %v10801_v12 = vcombine.low %v9895_v42, %v9902_v25  ;;  %v15019_v39 = vcombine.high %v9895_v42, %v9902_v25  ;;  %11495 = vmatprep.mubr.bf16.mxu0 %v11240_v19 }
 0x773   : > { %v10774_v36 = vrot.slane %v10767_v28, %v27877_v23  ;;  %v10775_v3 = vcombine.low %v10758_v17, %v10766_v57  ;;  %v9907_v2 = vcombine.high %v9355_v27, %v27875_v54  ;;  %v9914_v60 = vrot.slane %v9355_v27, %v27876_v48 }
 0x774   : > { %v10808_v5 = vrot.slane %v10801_v12, %v27876_v48  ;;  %v10816_v59 = vrot.slane %v15019_v39, %v27876_v48  ;;  %v10817_v7 = vcombine.low %v10792_v26, %v10800_v0  ;;  %v9922_v15 = vcombine.high %v9371_v11, %v27875_v54 }
 0x775   : > { %v10782_v46 = vrot.slane %v10775_v3, %v27877_v23  ;;  %v9929_v31 = vrot.slane %v9371_v11, %v27876_v48  ;;  %v11239_v49 = vpack.c.bf16 %v10733_v51, %v10683_v35  ;;  %v9921_v41 = vrot.slane %v9907_v2, %v27876_v48  ;;  %v27880_v3 = vld [vmem:[#allocation132_spill] sm:$0xff] }
 0x776   : > { %v10824_v63 = vrot.slane %v10817_v7, %v27877_v23  ;;  %v10825_v30 = vcombine.low %v10808_v5, %v10816_v59  ;;  %v9356_v34 = vmul.f32 %v19587_v44, %v24998_v50  ;;  %v9936_v45 = vrot.slane %v9922_v15, %v27876_v48  ;;  %v27881_v15 = vld [vmem:[#allocation127_spill] sm:$0xff] }
 0x777   : > { %v9937_v32 = vcombine.low %v9914_v60, %v9929_v31  ;;  %v10784_v16 = vcombine.high %v10774_v36, %v10782_v46  ;;  %v10783_v8 = vcombine.low %v10774_v36, %v10782_v46  ;;  %v9938_v14 = vcombine.high %v9914_v60, %v9929_v31 }
 0x778   : > { %v10832_v58 = vrot.slane %v10825_v30, %v27877_v23  ;;  %v9953_v13 = vcombine.low %v9921_v41, %v9936_v45  ;;  %v9954_v35 = vcombine.high %v9921_v41, %v9936_v45  ;;  %17770 = vrcp.f32 %v19711_v21  ;;  %v27883_v30 = vld [vmem:[#allocation120_spill] sm:$0xff] }
 0x779   : > { %v9945_v1 = vrot.slane %v9937_v32, %v27877_v23  ;;  %11496 = vmatmul.mubr.bf16.gmra.mxu0 %v11239_v49  ;;  %v9952_v19 = vrot.slane %v9938_v14, %v27877_v23  ;;  %17772 = vrcp.f32 %v19707_v61  ;;  %v9973_v20 = vcombine.high %v9356_v34, %v27875_v54  ;;  %v27882_v49 = vld [vmem:[#allocation126_spill] sm:$0xff] }
 0x77a   : > { %v10834_v22 = vcombine.high %v10824_v63, %v10832_v58  ;;  %v10833_v4 = vcombine.low %v10824_v63, %v10832_v58  ;;  %v9961_v44 = vrot.slane %v9953_v13, %v27877_v23  ;;  %v9968_v50 = vrot.slane %v9954_v35, %v27877_v23  ;;  %v27884_v58 = vld [vmem:[#allocation107_spill] sm:$0xff] }
 0x77b   : > { %17774 = vrcp.f32 %v19647_v6  ;;  %v10835_v29 = vcombine.low %v9945_v1, %v9952_v19  ;;  %v15020_v55 = vcombine.high %v9945_v1, %v9952_v19  ;;  %v9980_v21 = vrot.slane %v9356_v34, %v27876_v48 }
 0x77c   : > { %v11242_v51 = vpack.c.bf16 %v10834_v22, %v10784_v16  ;;  %v10851_v43 = vcombine.low %v9961_v44, %v9968_v50  ;;  %v15021_v40 = vcombine.high %v9961_v44, %v9968_v50  ;;  %17776 = vrcp.f32 %v19643_v33  ;;  %v27885_v44 = vld [vmem:[#allocation152_spill] sm:$0xff] }
 0x77d   : > { %v17769_v10 = vpop.eup %17768  ;;  %v11241_v61 = vpack.c.bf16 %v10833_v4, %v10783_v8  ;;  %v10842_v9 = vrot.slane %v10835_v29, %v27876_v48  ;;  %v10850_v38 = vrot.slane %v15020_v55, %v27876_v48  ;;  %17778 = vrcp.f32 %v19703_v56  ;;  %v27878_v56 = vld [vmem:[#allocation139_spill] sm:$0xff] }
 0x77e   : > { %11505 = vmatprep.mubr.bf16.mxu0 %v11242_v51  ;;  %v9372_v6 = vmul.f32 %v19523_v37, %v17769_v10  ;;  %v10858_v17 = vrot.slane %v10851_v43, %v27876_v48  ;;  %v10866_v24 = vrot.slane %v15021_v40, %v27876_v48  ;;  %17780 = vrcp.f32 %v19699_v18 }
 0x77f   : > { %v9987_v42 = vrot.slane %v9973_v20, %v27876_v48  ;;  %v10867_v33 = vcombine.low %v10842_v9, %v10850_v38  ;;  %17782 = vrcp.f32 %v19639_v53  ;;  %v27879_v53 = vld [vmem:[#allocation131_spill] sm:$0xff] }
 0x780   : > { %v9988_v25 = vcombine.high %v9372_v6, %v27875_v54  ;;  %v9995_v47 = vrot.slane %v9372_v6, %v27876_v48  ;;  %v10875_v52 = vcombine.low %v10858_v17, %v10866_v24  ;;  %17784 = vrcp.f32 %v19635_v62 }
 0x781   : > { %11506 = vmatmul.mubr.bf16.gmra.mxu0 %v11241_v61  ;;  %v25118_v37 = vrot.slane %v10867_v33, %v27877_v23  ;;  %17786 = vrcp.f32 %v27878_v56  ;;  %v27887_v56 = vld [vmem:[#allocation115_spill] sm:$0xff] }
 0x782   : > { %v10002_v18 = vrot.slane %v9988_v25, %v27876_v48  ;;  %v10003_v57 = vcombine.low %v9980_v21, %v9995_v47  ;;  %v10004_v28 = vcombine.high %v9980_v21, %v9995_v47  ;;  %v25123_v27 = vrot.slane %v10875_v52, %v27877_v23  ;;  %v27886_v52 = vld [vmem:[#allocation121_spill] sm:$0xff] }
 0x783   : > { %17788 = vrcp.f32 %v27879_v53 }
 0x784   : > { %v10011_v26 = vrot.slane %v10003_v57, %v27877_v23  ;;  %v10018_v0 = vrot.slane %v10004_v28, %v27877_v23  ;;  %v10019_v62 = vcombine.low %v9987_v42, %v10002_v18  ;;  %v10020_v12 = vcombine.high %v9987_v42, %v10002_v18 }
 0x785   : > { %v17771_v39 = vpop.eup %17770  ;;  %v10884_v36 = vcombine.high %v25118_v37, %v25123_v27  ;;  %17790 = vrcp.f32 %v27880_v3  ;;  %v10883_v60 = vcombine.low %v25118_v37, %v25123_v27 }
 0x786   : > { %v17773_v11 = vpop.eup %17772  ;;  %v10027_v5 = vrot.slane %v10019_v62, %v27877_v23  ;;  %v10034_v59 = vrot.slane %v10020_v12, %v27877_v23  ;;  %v10885_v7 = vcombine.low %v10011_v26, %v10018_v0  ;;  %v15022_v2 = vcombine.high %v10011_v26, %v10018_v0 }
 0x787   : > { %v9357_v31 = vmul.f32 %v27881_v15, %v17771_v39  ;;  %v9358_v63 = vmul.f32 %v27882_v49, %v17773_v11  ;;  %17792 = vrcp.f32 %v27883_v30 }
 0x788   : > { %v17775_v46 = vpop.eup %17774  ;;  %v10892_v41 = vrot.slane %v10885_v7, %v27876_v48  ;;  %v10900_v34 = vrot.slane %v15022_v2, %v27876_v48  ;;  %v10901_v45 = vcombine.low %v10027_v5, %v10034_v59  ;;  %v15023_v32 = vcombine.high %v10027_v5, %v10034_v59 }
 0x789   : > { %v17777_v16 = vpop.eup %17776  ;;  %v9373_v8 = vmul.f32 %v27884_v58, %v17775_v46  ;;  %v10039_v14 = vcombine.high %v9357_v31, %v27875_v54  ;;  %v10046_v1 = vrot.slane %v9357_v31, %v27876_v48  ;;  %v10105_v13 = vcombine.high %v9358_v63, %v27875_v54 }
 0x78a   : > { %v17779_v35 = vpop.eup %17778  ;;  %v10908_v22 = vrot.slane %v10901_v45, %v27876_v48  ;;  %v10916_v4 = vrot.slane %v15023_v32, %v27876_v48  ;;  %v10917_v19 = vcombine.low %v10892_v41, %v10900_v34  ;;  %v9374_v50 = vmul.f32 %v27885_v44, %v17777_v16 }
 0x78b   : > { %v17781_v51 = vpop.eup %17780  ;;  %v10053_v20 = vrot.slane %v10039_v14, %v27876_v48  ;;  %v10054_v29 = vcombine.high %v9373_v8, %v27875_v54  ;;  %v10061_v55 = vrot.slane %v9373_v8, %v27876_v48  ;;  %v10112_v21 = vrot.slane %v9358_v63, %v27876_v48 }
 0x78c   : > { %v17783_v43 = vpop.eup %17782  ;;  %v10924_v40 = vrot.slane %v10917_v19, %v27877_v23  ;;  %v10925_v10 = vcombine.low %v10908_v22, %v10916_v4  ;;  %v10119_v61 = vrot.slane %v10105_v13, %v27876_v48  ;;  %v10120_v9 = vcombine.high %v9374_v50, %v27875_v54 }
 0x78d   : > { %v17785_v38 = vpop.eup %17784  ;;  %v10068_v6 = vrot.slane %v10054_v29, %v27876_v48  ;;  %v10069_v17 = vcombine.low %v10046_v1, %v10061_v55  ;;  %v10070_v24 = vcombine.high %v10046_v1, %v10061_v55  ;;  %v10127_v42 = vrot.slane %v9374_v50, %v27876_v48  ;;  %v27888_v50 = vld [vmem:[#allocation153_spill] sm:$0xff] }
 0x78e   : > { %v25156_v33 = vpop.eup %17786  ;;  %v10932_v25 = vrot.slane %v10925_v10, %v27877_v23  ;;  %v10134_v47 = vrot.slane %v10120_v9, %v27876_v48  ;;  %v9359_v37 = vmul.f32 %v27886_v52, %v17779_v35  ;;  %v9360_v18 = vmul.f32 %v27887_v56, %v17781_v51  ;;  %v27889_v55 = vld [vmem:[#allocation101_spill] sm:$0xff] }
 0x78f   : > { %v10077_v57 = vrot.slane %v10069_v17, %v27877_v23  ;;  %v10084_v28 = vrot.slane %v10070_v24, %v27877_v23  ;;  %v10085_v27 = vcombine.low %v10053_v20, %v10068_v6  ;;  %v10086_v53 = vcombine.high %v10053_v20, %v10068_v6 }
 0x790   : > { %v25164_v26 = vpop.eup %17788  ;;  %v10934_v0 = vcombine.high %v10924_v40, %v10932_v25  ;;  %v10933_v62 = vcombine.low %v10924_v40, %v10932_v25  ;;  %v10135_v12 = vcombine.low %v10112_v21, %v10127_v42  ;;  %v10136_v39 = vcombine.high %v10112_v21, %v10127_v42 }
 0x791   : > { %v10093_v3 = vrot.slane %v10085_v27, %v27877_v23  ;;  %v10100_v11 = vrot.slane %v10086_v53, %v27877_v23  ;;  %v10151_v5 = vcombine.low %v10119_v61, %v10134_v47  ;;  %v10152_v59 = vcombine.high %v10119_v61, %v10134_v47 }
 0x792   : > { %v25168_v7 = vpop.eup %17790  ;;  %v11244_v2 = vpack.c.bf16 %v10934_v0, %v10884_v36  ;;  %v11243_v46 = vpack.c.bf16 %v10933_v62, %v10883_v60  ;;  %v10143_v15 = vrot.slane %v10135_v12, %v27877_v23  ;;  %v10150_v31 = vrot.slane %v10136_v39, %v27877_v23 }
 0x793   : > { %v10159_v49 = vrot.slane %v10151_v5, %v27877_v23  ;;  %v10166_v63 = vrot.slane %v10152_v59, %v27877_v23  ;;  %v10935_v30 = vcombine.low %v10077_v57, %v10084_v28  ;;  %v15024_v41 = vcombine.high %v10077_v57, %v10084_v28 }
 0x794   : > { %v25174_v34 = vpop.eup %17792  ;;  %11515 = vmatprep.mubr.bf16.mxu0 %v11244_v2  ;;  %v10951_v45 = vcombine.low %v10093_v3, %v10100_v11  ;;  %v15025_v32 = vcombine.high %v10093_v3, %v10100_v11  ;;  %v10985_v16 = vcombine.low %v10143_v15, %v10150_v31  ;;  %v15026_v58 = vcombine.high %v10143_v15, %v10150_v31 }
 0x795   : > { %11516 = vmatmul.mubr.bf16.gmra.mxu0 %v11243_v46  ;;  %v10942_v36 = vrot.slane %v10935_v30, %v27876_v48  ;;  %v10950_v60 = vrot.slane %v15024_v41, %v27876_v48  ;;  %v11001_v8 = vcombine.low %v10159_v49, %v10166_v63  ;;  %v15027_v14 = vcombine.high %v10159_v49, %v10166_v63  ;;  %v27890_v41 = vld [vmem:[#allocation113_spill] sm:$0xff] }
 0x796   : > { %v10958_v1 = vrot.slane %v10951_v45, %v27876_v48  ;;  %v10966_v13 = vrot.slane %v15025_v32, %v27876_v48  ;;  %v10992_v35 = vrot.slane %v10985_v16, %v27876_v48  ;;  %v11000_v22 = vrot.slane %v15026_v58, %v27876_v48  ;;  %v27891_v32 = vld [vmem:[#allocation109_spill] sm:$0xff] }
 0x797   : > { %v10967_v4 = vcombine.low %v10942_v36, %v10950_v60  ;;  %v11008_v19 = vrot.slane %v11001_v8, %v27876_v48  ;;  %v11016_v44 = vrot.slane %v15027_v14, %v27876_v48  ;;  %v9375_v51 = vmul.f32 %v27888_v50, %v17783_v43  ;;  %v27892_v50 = vld [vmem:[#allocation103_spill] sm:$0xff] }
 0x798   : > { %v10975_v20 = vcombine.low %v10958_v1, %v10966_v13  ;;  %v11017_v29 = vcombine.low %v10992_v35, %v11000_v22  ;;  %v9376_v21 = vmul.f32 %v27889_v55, %v17785_v38  ;;  %v10171_v40 = vcombine.high %v9359_v37, %v27875_v54 }
 0x799   : > { %v10974_v10 = vrot.slane %v10967_v4, %v27877_v23  ;;  %v11025_v61 = vcombine.low %v11008_v19, %v11016_v44  ;;  %v10178_v9 = vrot.slane %v9359_v37, %v27876_v48  ;;  %v10186_v6 = vcombine.high %v9375_v51, %v27875_v54 }
 0x79a   : > { %v10982_v17 = vrot.slane %v10975_v20, %v27877_v23  ;;  %v11024_v24 = vrot.slane %v11017_v29, %v27877_v23  ;;  %v10185_v42 = vrot.slane %v10171_v40, %v27876_v48  ;;  %v10193_v43 = vrot.slane %v9375_v51, %v27876_v48  ;;  %v27893_v20 = vld [vmem:[#allocation96_spill] sm:$0xff] }
 0x79b   : > { %v11032_v25 = vrot.slane %v11025_v61, %v27877_v23  ;;  %v10200_v38 = vrot.slane %v10186_v6, %v27876_v48  ;;  %v10237_v47 = vcombine.high %v9360_v18, %v27875_v54  ;;  %v10244_v52 = vrot.slane %v9360_v18, %v27876_v48 }
 0x79c   : > { %v10984_v56 = vcombine.high %v10974_v10, %v10982_v17  ;;  %v10983_v37 = vcombine.low %v10974_v10, %v10982_v17  ;;  %v10201_v57 = vcombine.low %v10178_v9, %v10193_v43  ;;  %v10202_v28 = vcombine.high %v10178_v9, %v10193_v43 }
 0x79d   : > { %v11034_v27 = vcombine.high %v11024_v24, %v11032_v25  ;;  %v11033_v53 = vcombine.low %v11024_v24, %v11032_v25  ;;  %v10217_v0 = vcombine.low %v10185_v42, %v10200_v38  ;;  %v10218_v62 = vcombine.high %v10185_v42, %v10200_v38 }
 0x79e   : > { %v10209_v12 = vrot.slane %v10201_v57, %v27877_v23  ;;  %v10216_v39 = vrot.slane %v10202_v28, %v27877_v23  ;;  %v10251_v3 = vrot.slane %v10237_v47, %v27876_v48  ;;  %v10252_v11 = vcombine.high %v9376_v21, %v27875_v54 }
 0x79f   : > { %v11246_v5 = vpack.c.bf16 %v11034_v27, %v10984_v56  ;;  %v11245_v59 = vpack.c.bf16 %v11033_v53, %v10983_v37  ;;  %v10225_v18 = vrot.slane %v10217_v0, %v27877_v23  ;;  %v10232_v2 = vrot.slane %v10218_v62, %v27877_v23 }
 0x7a0   : > { %v10259_v46 = vrot.slane %v9376_v21, %v27876_v48  ;;  %v10266_v15 = vrot.slane %v10252_v11, %v27876_v48  ;;  %v11035_v31 = vcombine.low %v10209_v12, %v10216_v39  ;;  %v15028_v49 = vcombine.high %v10209_v12, %v10216_v39 }
 0x7a1   : > { %11525 = vmatprep.mubr.bf16.mxu0 %v11246_v5  ;;  %v11051_v63 = vcombine.low %v10225_v18, %v10232_v2  ;;  %v15029_v30 = vcombine.high %v10225_v18, %v10232_v2  ;;  %v9361_v45 = vmul.f32 %v27890_v41, %v25156_v33  ;;  %v9362_v16 = vmul.f32 %v27891_v32, %v25164_v26 }
 0x7a2   : > { %11526 = vmatmul.mubr.bf16.gmra.mxu0 %v11245_v59  ;;  %v10267_v58 = vcombine.low %v10244_v52, %v10259_v46  ;;  %v10268_v36 = vcombine.high %v10244_v52, %v10259_v46  ;;  %v10283_v60 = vcombine.low %v10251_v3, %v10266_v15  ;;  %v10284_v8 = vcombine.high %v10251_v3, %v10266_v15 }
 0x7a3   : > { %v11042_v14 = vrot.slane %v11035_v31, %v27876_v48  ;;  %v11050_v1 = vrot.slane %v15028_v49, %v27876_v48  ;;  %v11058_v13 = vrot.slane %v11051_v63, %v27876_v48  ;;  %v11066_v35 = vrot.slane %v15029_v30, %v27876_v48 }
 0x7a4   : > { %v10275_v22 = vrot.slane %v10267_v58, %v27877_v23  ;;  %v10282_v33 = vrot.slane %v10268_v36, %v27877_v23  ;;  %v10291_v4 = vrot.slane %v10283_v60, %v27877_v23  ;;  %v10298_v26 = vrot.slane %v10284_v8, %v27877_v23 }
 0x7a5   : > { %v11067_v19 = vcombine.low %v11042_v14, %v11050_v1  ;;  %v11075_v44 = vcombine.low %v11058_v13, %v11066_v35  ;;  %v9377_v51 = vmul.f32 %v27892_v50, %v25168_v7  ;;  %v9378_v29 = vmul.f32 %v27893_v20, %v25174_v34 }
 0x7a6   : > { %v11085_v55 = vcombine.low %v10275_v22, %v10282_v33  ;;  %v15030_v21 = vcombine.high %v10275_v22, %v10282_v33  ;;  %v11101_v40 = vcombine.low %v10291_v4, %v10298_v26  ;;  %v15031_v10 = vcombine.high %v10291_v4, %v10298_v26 }
 0x7a7   : > { %v11074_v61 = vrot.slane %v11067_v19, %v27877_v23  ;;  %v11082_v9 = vrot.slane %v11075_v44, %v27877_v23  ;;  %v10303_v6 = vcombine.high %v9361_v45, %v27875_v54  ;;  %v10310_v17 = vrot.slane %v9361_v45, %v27876_v48 }
 0x7a8   : > { %v11092_v24 = vrot.slane %v11085_v55, %v27876_v48  ;;  %v11100_v42 = vrot.slane %v15030_v21, %v27876_v48  ;;  %v11108_v7 = vrot.slane %v11101_v40, %v27876_v48  ;;  %v11116_v34 = vrot.slane %v15031_v10, %v27876_v48 }
 0x7a9   : > { %v11084_v43 = vcombine.high %v11074_v61, %v11082_v9  ;;  %v11083_v25 = vcombine.low %v11074_v61, %v11082_v9  ;;  %v10317_v38 = vrot.slane %v10303_v6, %v27876_v48  ;;  %v10318_v47 = vcombine.high %v9377_v51, %v27875_v54 }
 0x7aa   : > { %v11117_v52 = vcombine.low %v11092_v24, %v11100_v42  ;;  %v11125_v56 = vcombine.low %v11108_v7, %v11116_v34  ;;  %v10325_v37 = vrot.slane %v9377_v51, %v27876_v48  ;;  %v10369_v57 = vcombine.high %v9362_v16, %v27875_v54 }
 0x7ab   : > { %v10332_v28 = vrot.slane %v10318_v47, %v27876_v48  ;;  %v10376_v27 = vrot.slane %v9362_v16, %v27876_v48  ;;  %v10384_v53 = vcombine.high %v9378_v29, %v27875_v54  ;;  %v10391_v0 = vrot.slane %v9378_v29, %v27876_v48 }
 0x7ac   : > { %v11124_v62 = vrot.slane %v11117_v52, %v27877_v23  ;;  %v11132_v12 = vrot.slane %v11125_v56, %v27877_v23  ;;  %v10333_v39 = vcombine.low %v10310_v17, %v10325_v37  ;;  %v10334_v3 = vcombine.high %v10310_v17, %v10325_v37  ;;  %v11864_v52 = vld [vmem:[#allocation12 + $0x1c0] sm:$0xff]  ;;  %v11865_v56 = vld [vmem:[#allocation12 + $0x1c8] sm:$0xff] }
 0x7ad   : > { %v10349_v11 = vcombine.low %v10317_v38, %v10332_v28  ;;  %v10350_v5 = vcombine.high %v10317_v38, %v10332_v28  ;;  %v10383_v59 = vrot.slane %v10369_v57, %v27876_v48  ;;  %v10398_v18 = vrot.slane %v10384_v53, %v27876_v48  ;;  %v11869_v28 = vld [vmem:[#allocation12 + $0x1e8] sm:$0xff]  ;;  %v11860_v53 = vld [vmem:[#allocation12 + $0x1a0] sm:$0xff] }
 0x7ae   : > { %v11134_v2 = vcombine.high %v11124_v62, %v11132_v12  ;;  %v11133_v46 = vcombine.low %v11124_v62, %v11132_v12  ;;  %v10341_v15 = vrot.slane %v10333_v39, %v27877_v23  ;;  %v10348_v54 = vrot.slane %v10334_v3, %v27877_v23  ;;  %v11857_v39 = vld [vmem:[#allocation12 + $0x188] sm:$0xff]  ;;  %v11848_v3 = vld [vmem:[#allocation12 + $0x140] sm:$0xff] }
 0x7af   : > { %v10357_v31 = vrot.slane %v10349_v11, %v27877_v23  ;;  %v10364_v49 = vrot.slane %v10350_v5, %v27877_v23  ;;  %v10399_v63 = vcombine.low %v10376_v27, %v10391_v0  ;;  %v10400_v30 = vcombine.high %v10376_v27, %v10391_v0  ;;  %v11856_v27 = vld [vmem:[#allocation12 + $0x180] sm:$0xff] }
 0x7b0   : > { %v11248_v41 = vpack.c.bf16 %v11134_v2, %v11084_v43  ;;  %v11247_v45 = vpack.c.bf16 %v11133_v46, %v11083_v25  ;;  %v10415_v32 = vcombine.low %v10383_v59, %v10398_v18  ;;  %v10416_v16 = vcombine.high %v10383_v59, %v10398_v18  ;;  %v11852_v5 = vld [vmem:[#allocation12 + $0x160] sm:$0xff]  ;;  %v11849_v59 = vld [vmem:[#allocation12 + $0x148] sm:$0xff] }
 0x7b1   : > { %v10407_v58 = vrot.slane %v10399_v63, %v27877_v23  ;;  %v10414_v36 = vrot.slane %v10400_v30, %v27877_v23  ;;  %v11135_v60 = vcombine.low %v10341_v15, %v10348_v54  ;;  %v15032_v8 = vcombine.high %v10341_v15, %v10348_v54  ;;  %v11853_v18 = vld [vmem:[#allocation12 + $0x168] sm:$0xff] }
 0x7b2   : > { %11535 = vmatprep.mubr.bf16.mxu0 %v11248_v41  ;;  %v10423_v14 = vrot.slane %v10415_v32, %v27877_v23  ;;  %v10430_v1 = vrot.slane %v10416_v16, %v27877_v23  ;;  %v11151_v13 = vcombine.low %v10357_v31, %v10364_v49  ;;  %v15033_v35 = vcombine.high %v10357_v31, %v10364_v49  ;;  %v11840_v31 = vld [vmem:[#allocation12 + $0x100] sm:$0xff]  ;;  %v11841_v63 = vld [vmem:[#allocation12 + $0x108] sm:$0xff] }
 0x7b3   : > { %11536 = vmatmul.mubr.bf16.gmra.mxu0 %v11247_v45  ;;  %v11142_v22 = vrot.slane %v11135_v60, %v27876_v48  ;;  %v11150_v33 = vrot.slane %v15032_v8, %v27876_v48  ;;  %v11185_v4 = vcombine.low %v10407_v58, %v10414_v36  ;;  %v15034_v26 = vcombine.high %v10407_v58, %v10414_v36  ;;  %v11844_v49 = vld [vmem:[#allocation12 + $0x120] sm:$0xff]  ;;  %v11845_v30 = vld [vmem:[#allocation12 + $0x128] sm:$0xff] }
 0x7b4   : > { %v11158_v19 = vrot.slane %v11151_v13, %v27876_v48  ;;  %v11166_v44 = vrot.slane %v15033_v35, %v27876_v48  ;;  %v11201_v50 = vcombine.low %v10423_v14, %v10430_v1  ;;  %v15035_v51 = vcombine.high %v10423_v14, %v10430_v1  ;;  %v11832_v58 = vld [vmem:[#allocation12 + $0xc0] sm:$0xff]  ;;  %v11833_v60 = vld [vmem:[#allocation12 + $0xc8] sm:$0xff] }
 0x7b5   : > { %v11167_v20 = vcombine.low %v11142_v22, %v11150_v33  ;;  %v11192_v29 = vrot.slane %v11185_v4, %v27876_v48  ;;  %v11200_v55 = vrot.slane %v15034_v26, %v27876_v48  ;;  %v15126_v0 = vcombine.low %v11865_v56, %v11869_v28  ;;  %v11836_v36 = vld [vmem:[#allocation12 + $0xe0] sm:$0xff]  ;;  %v11837_v8 = vld [vmem:[#allocation12 + $0xe8] sm:$0xff] }
 0x7b6   : > { %v11175_v21 = vcombine.low %v11158_v19, %v11166_v44  ;;  %v11208_v40 = vrot.slane %v11201_v50, %v27876_v48  ;;  %v11216_v10 = vrot.slane %v15035_v51, %v27876_v48  ;;  %v11868_v48 = vld [vmem:[#allocation12 + $0x1e0] sm:$0xff]  ;;  %v15127_v62 = vcombine.high %v11865_v56, %v11869_v28  ;;  %v11825_v4 = vld [vmem:[#allocation12 + $0x88] sm:$0xff] }
 0x7b7   : > { %v11174_v61 = vrot.slane %v11167_v20, %v27877_v23  ;;  %v11217_v9 = vcombine.low %v11192_v29, %v11200_v55  ;;  %v15125_v37 = vcombine.high %v11864_v52, %v11868_v48  ;;  %v15124_v57 = vcombine.low %v11864_v52, %v11868_v48  ;;  %v11824_v22 = vld [vmem:[#allocation12 + $0x80] sm:$0xff]  ;;  %v11829_v26 = vld [vmem:[#allocation12 + $0xa8] sm:$0xff] }
 0x7b8   : > { %v11182_v6 = vrot.slane %v11175_v21, %v27877_v23  ;;  %v11225_v17 = vcombine.low %v11208_v40, %v11216_v10  ;;  %v15117_v12 = vcombine.high %v11856_v27, %v11860_v53  ;;  %12689 = vmatprep.subr.bf16.mxu0 %v15127_v62  ;;  %v15116_v2 = vcombine.low %v11856_v27, %v11860_v53  ;;  %v11828_v33 = vld [vmem:[#allocation12 + $0xa0] sm:$0xff]  ;;  %v11817_v55 = vld [vmem:[#allocation12 + $0x48] sm:$0xff] }
 0x7b9   : > { %v11224_v24 = vrot.slane %v11217_v9, %v27877_v23  ;;  %12576 = vmatprep.subr.bf16.mxu1 %v15125_v37  ;;  %12690 = vmatpush1.bf16.msra.mxu0 %v15126_v0  ;;  %v15109_v15 = vcombine.high %v11848_v3, %v11852_v5  ;;  %v15111_v54 = vcombine.high %v11849_v59, %v11853_v18  ;;  %v11816_v20 = vld [vmem:[#allocation12 + $0x40] sm:$0xff]  ;;  %v11821_v21 = vld [vmem:[#allocation12 + $0x68] sm:$0xff] }
 0x7ba   : > { %v11184_v42 = vcombine.high %v11174_v61, %v11182_v6  ;;  %v11232_v7 = vrot.slane %v11225_v17, %v27877_v23  ;;  %v11183_v34 = vcombine.low %v11174_v61, %v11182_v6  ;;  %v11861_v23 = vld [vmem:[#allocation12 + $0x1a8] sm:$0xff]  ;;  %12577 = vmatpush1.bf16.msra.mxu1 %v15124_v57  ;;  %v15108_v41 = vcombine.low %v11848_v3, %v11852_v5  ;;  %v11820_v29 = vld [vmem:[#allocation12 + $0x60] sm:$0xff]  ;;  %v27898_v3 = vld [vmem:[#allocation35_spill] sm:$0xff] }
 0x7bb   : > { %v15119_v11 = vcombine.high %v11857_v39, %v11861_v23  ;;  %12578 = vmatprep.subr.bf16.mxu1 %v15117_v12  ;;  %v15118_v46 = vcombine.low %v11857_v39, %v11861_v23  ;;  %v15110_v45 = vcombine.low %v11849_v59, %v11853_v18  ;;  %v15101_v32 = vcombine.high %v11840_v31, %v11844_v49  ;;  %v11808_v6 = vld [vmem:[#allocation12] sm:$0xff]  ;;  %v11929_v48 = vld [vmem:[#allocation12 + $0x3c8] sm:$0xff] }
 0x7bc   : > { %v11234_v43 = vcombine.high %v11224_v24, %v11232_v7  ;;  %v11233_v25 = vcombine.low %v11224_v24, %v11232_v7  ;;  %v15103_v16 = vcombine.high %v11841_v63, %v11845_v30  ;;  %v15100_v14 = vcombine.low %v11840_v31, %v11844_v49  ;;  %v11812_v17 = vld [vmem:[#allocation12 + $0x20] sm:$0xff]  ;;  %v11809_v24 = vld [vmem:[#allocation12 + $0x8] sm:$0xff] }
 0x7bd   : > { %12691 = vmatprep.subr.bf16.mxu0 %v15119_v11  ;;  %v15102_v1 = vcombine.low %v11841_v63, %v11845_v30  ;;  %v15093_v13 = vcombine.high %v11832_v58, %v11836_v36  ;;  %v15095_v35 = vcombine.high %v11833_v60, %v11837_v8  ;;  %v15092_v19 = vcombine.low %v11832_v58, %v11836_v36  ;;  %v11933_v56 = vld [vmem:[#allocation12 + $0x3e8] sm:$0xff]  ;;  %v27894_v37 = vld [vmem:[#allocation33_spill] sm:$0xff] }
 0x7be   : > { %v11250_v38 = vpack.c.bf16 %v11234_v43, %v11184_v42  ;;  %v11249_v47 = vpack.c.bf16 %v11233_v25, %v11183_v34  ;;  %12579 = vmatpush1.bf16.msra.mxu1 %v15116_v2  ;;  %12692 = vmatpush1.bf16.msra.mxu0 %v15118_v46  ;;  %v15094_v44 = vcombine.low %v11833_v60, %v11837_v8  ;;  %v11813_v42 = vld [vmem:[#allocation12 + $0x28] sm:$0xff]  ;;  %v27902_v63 = vld [vmem:[#allocation37_spill] sm:$0xff]  ;;  %v27906_v8 = vld [vmem:[#allocation39_spill] sm:$0xff] }
 0x7bf   : > { %12580 = vmatprep.subr.bf16.mxu1 %v15109_v15  ;;  %12693 = vmatprep.subr.bf16.mxu0 %v15111_v54  ;;  %v15085_v50 = vcombine.high %v11824_v22, %v11828_v33  ;;  %v15087_v51 = vcombine.high %v11825_v4, %v11829_v26  ;;  %v15084_v40 = vcombine.low %v11824_v22, %v11828_v33  ;;  %v27896_v62 = vld [vmem:[#allocation34_spill] sm:$0xff]  ;;  %v27900_v15 = vld [vmem:[#allocation36_spill] sm:$0xff] }
 0x7c0   : > { %11545 = vmatprep.mubr.bf16.mxu0 %v11250_v38  ;;  %v15086_v10 = vcombine.low %v11825_v4, %v11829_v26  ;;  %v15077_v61 = vcombine.high %v11816_v20, %v11820_v29  ;;  %v15079_v9 = vcombine.high %v11817_v55, %v11821_v21  ;;  %v15076_v7 = vcombine.low %v11816_v20, %v11820_v29  ;;  %v11928_v38 = vld [vmem:[#allocation12 + $0x3c0] sm:$0xff]  ;;  %v27908_v22 = vld [vmem:[#allocation40_spill] sm:$0xff] }
 0x7c1   : > { %11546 = vmatmul.mubr.bf16.gmra.mxu0 %v11249_v47  ;;  %v15078_v34 = vcombine.low %v11817_v55, %v11821_v21  ;;  %v15069_v43 = vcombine.high %v11808_v6, %v11812_v17  ;;  %v15071_v25 = vcombine.high %v11809_v24, %v11813_v42  ;;  %v11932_v47 = vld [vmem:[#allocation12 + $0x3e0] sm:$0xff]  ;;  %v15068_v28 = vcombine.low %v11808_v6, %v11812_v17  ;;  %v27912_v29 = vld [vmem:[#allocation44_spill] sm:$0xff] }
 0x7c2   : > { %12581 = vmatpush1.bf16.msra.mxu1 %v15108_v41  ;;  %12694 = vmatpush1.bf16.msra.mxu0 %v15110_v45  ;;  %v15070_v53 = vcombine.low %v11809_v24, %v11813_v42  ;;  %v15189_v0 = vcombine.high %v11928_v38, %v11932_v47  ;;  %v15191_v39 = vcombine.high %v11929_v48, %v11933_v56  ;;  %v27916_v24 = vld [vmem:[#allocation42_spill] sm:$0xff] }
 0x7c3   : > { %12582 = vmatprep.subr.bf16.mxu1 %v15101_v32  ;;  %12695 = vmatprep.subr.bf16.mxu0 %v15103_v16  ;;  %v15188_v18 = vcombine.low %v11928_v38, %v11932_v47  ;;  %v15190_v46 = vcombine.low %v11929_v48, %v11933_v56  ;;  %v27904_v16 = vld [vmem:[#allocation38_spill] sm:$0xff] }
 0x7c4   : > { %v11925_v56 = vld [vmem:[#allocation12 + $0x3a8] sm:$0xff] }
 0x7c6   : > { %12583 = vmatpush1.bf16.msra.mxu1 %v15100_v14  ;;  %12696 = vmatpush1.bf16.msra.mxu0 %v15102_v1 }
 0x7c7   : > { %12584 = vmatprep.subr.bf16.mxu1 %v15093_v13  ;;  %12697 = vmatprep.subr.bf16.mxu0 %v15095_v35 }
 0x7ca   : > { %12585 = vmatpush1.bf16.msra.mxu1 %v15092_v19  ;;  %12698 = vmatpush1.bf16.msra.mxu0 %v15094_v44  ;;  %v27910_v19 = vld [vmem:[#allocation43_spill] sm:$0xff] }
 0x7cb   : > { %12586 = vmatprep.subr.bf16.mxu1 %v15085_v50  ;;  %12699 = vmatprep.subr.bf16.mxu0 %v15087_v51 }
 0x7ce   : > { %12587 = vmatpush1.bf16.msra.mxu1 %v15084_v40  ;;  %12700 = vmatpush1.bf16.msra.mxu0 %v15086_v10  ;;  %v27914_v10 = vld [vmem:[#allocation41_spill] sm:$0xff] }
 0x7cf   : > { %12588 = vmatprep.subr.bf16.mxu1 %v15077_v61  ;;  %12701 = vmatprep.subr.bf16.mxu0 %v15079_v9 }
 0x7d2   : > { %12589 = vmatpush1.bf16.msra.mxu1 %v15076_v7  ;;  %12702 = vmatpush1.bf16.msra.mxu0 %v15078_v34  ;;  %v11920_v34 = vld [vmem:[#allocation12 + $0x380] sm:$0xff] }
 0x7d3   : > { %12590 = vmatprep.subr.bf16.mxu1 %v15069_v43  ;;  %12703 = vmatprep.subr.bf16.mxu0 %v15071_v25  ;;  %v11924_v43 = vld [vmem:[#allocation12 + $0x3a0] sm:$0xff]  ;;  %v11921_v25 = vld [vmem:[#allocation12 + $0x388] sm:$0xff] }
 0x7d4   : > { %v15180_v48 = vcombine.low %v11920_v34, %v11924_v43 }
 0x7d6   : > { %12591 = vmatpush1.bf16.msra.mxu1 %v15068_v28  ;;  %12704 = vmatpush1.bf16.msra.mxu0 %v15070_v53  ;;  %v15182_v53 = vcombine.low %v11921_v25, %v11925_v56 }
 0x7d7   : > { %12592 = vmatprep.subr.bf16.mxu1 %v15189_v0  ;;  %12705 = vmatprep.subr.bf16.mxu0 %v15191_v39  ;;  %v15183_v0 = vcombine.high %v11921_v25, %v11925_v56  ;;  %v27920_v39 = vld [vmem:[#allocation46_spill] sm:$0xff]  ;;  %v11892_v25 = vld [vmem:[#allocation12 + $0x2a0] sm:$0xff] }
 0x7da   : > { %12593 = vmatpush2.bf16.msra.mxu1 %v15188_v18  ;;  %12706 = vmatpush2.bf16.msra.mxu0 %v15190_v46  ;;  %v11913_v18 = vld [vmem:[#allocation12 + $0x348] sm:$0xff] }
 0x7db   : > { %12707 = vmatprep.subr.bf16.mxu0 %v15183_v0  ;;  %v11881_v0 = vld [vmem:[#allocation12 + $0x248] sm:$0xff] }
 0x7de   : > { %12708 = vmatpush2.bf16.msra.mxu0 %v15182_v53  ;;  %v11884_v53 = vld [vmem:[#allocation12 + $0x260] sm:$0xff] }
 0x829   : > { %v11477_v52 = vpop.f32.mrf.mxu0 }
 0x82a   : > { %v25263_v57 = vadd.f32 %v11477_v52, %v27894_v37  ;;  %v15181_v52 = vcombine.high %v11920_v34, %v11924_v43  ;;  %v27918_v37 = vld [vmem:[#allocation45_spill] sm:$0xff] }
 0x82b   : > { %v11479_v27 = vpop.f32.mrf.mxu0  ;;  %v11888_v43 = vld [vmem:[#allocation12 + $0x280] sm:$0xff] }
 0x82c   : > { %27895 = vst [vmem:[#allocation84_spill] sm:$0xff] %v25263_v57  ;;  %v25266_v12 = vadd.f32 %v11479_v27, %v27896_v62  ;;  %v11589_v5 = vmul.f32 %v25263_v57, %v25263_v57  ;;  %12594 = vmatprep.subr.bf16.mxu1 %v15181_v52  ;;  %v15148_v52 = vcombine.low %v11888_v43, %v11892_v25 }
 0x82d   : > { %v11481_v23 = vpop.f32.mrf.mxu0  ;;  %12595 = vmatpush2.bf16.msra.mxu1 %v15180_v48  ;;  %v11893_v48 = vld [vmem:[#allocation12 + $0x2a8] sm:$0xff] }
 0x82e   : > { %27897 = vst [vmem:[#allocation145_spill] sm:$0xff] %v25266_v12  ;;  %v25269_v11 = vadd.f32 %v11481_v23, %v27898_v3  ;;  %v11590_v59 = vmul.f32 %v25266_v12, %v25266_v12 }
 0x82f   : > { %v11483_v2 = vpop.f32.mrf.mxu0 }
 0x830   : > { %27899 = vst [vmem:[#allocation144_spill] sm:$0xff] %v25269_v11  ;;  %v25276_v54 = vadd.f32 %v11483_v2, %v27900_v15  ;;  %v11621_v31 = vadd.f32 %v11590_v59, %v11589_v5  ;;  %v11591_v41 = vmul.f32 %v25269_v11, %v25269_v11  ;;  %v11912_v5 = vld [vmem:[#allocation12 + $0x340] sm:$0xff] }
 0x831   : > { %v11487_v49 = vpop.f32.mrf.mxu0  ;;  %v11916_v59 = vld [vmem:[#allocation12 + $0x360] sm:$0xff] }
 0x832   : > { %27901 = vst [vmem:[#allocation154_spill] sm:$0xff] %v25276_v54  ;;  %v25279_v30 = vadd.f32 %v11487_v49, %v27902_v63  ;;  %11622 = vadd.xlane.f32.xlu0 %v11621_v31  ;;  %v11592_v45 = vmul.f32 %v25276_v54, %v25276_v54  ;;  %v15173_v15 = vcombine.high %v11912_v5, %v11916_v59  ;;  %v11917_v49 = vld [vmem:[#allocation12 + $0x368] sm:$0xff]  ;;  %v27922_v63 = vld [vmem:[#allocation47_spill] sm:$0xff] }
 0x833   : > { %v11489_v32 = vpop.f32.mrf.mxu0  ;;  %v15172_v31 = vcombine.low %v11912_v5, %v11916_v59  ;;  %v11885_v5 = vld [vmem:[#allocation12 + $0x268] sm:$0xff]  ;;  %v27926_v59 = vld [vmem:[#allocation51_spill] sm:$0xff] }
 0x834   : > { %27903 = vst [vmem:[#allocation155_spill] sm:$0xff] %v25279_v30  ;;  %v25286_v58 = vadd.f32 %v11489_v32, %v27904_v16  ;;  %v11624_v36 = vadd.f32 %v11592_v45, %v11591_v41  ;;  %v11593_v1 = vmul.f32 %v25279_v30, %v25279_v30  ;;  %v15174_v32 = vcombine.low %v11913_v18, %v11917_v49 }
 0x835   : > { %v11491_v60 = vpop.f32.mrf.mxu0  ;;  %v15175_v16 = vcombine.high %v11913_v18, %v11917_v49  ;;  %12596 = vmatprep.subr.bf16.mxu1 %v15173_v15 }
 0x836   : > { %27905 = vst [vmem:[#allocation87_spill] sm:$0xff] %v25286_v58  ;;  %v25289_v14 = vadd.f32 %v11491_v60, %v27906_v8  ;;  %11625 = vadd.xlane.f32.xlu0 %v11624_v36  ;;  %v11594_v13 = vmul.f32 %v25286_v58, %v25286_v58  ;;  %v27924_v60 = vld [vmem:[#allocation48_spill] sm:$0xff]  ;;  %12597 = vmatpush2.bf16.msra.mxu1 %v15172_v31 }
 0x837   : > { %v11493_v35 = vpop.f32.mrf.mxu0  ;;  %12709 = vmatprep.subr.bf16.mxu0 %v15175_v16  ;;  %v27928_v31 = vld [vmem:[#allocation52_spill] sm:$0xff] }
 0x838   : > { %27907 = vst [vmem:[#allocation86_spill] sm:$0xff] %v25289_v14  ;;  %v25296_v33 = vadd.f32 %v11493_v35, %v27908_v22  ;;  %v11627_v4 = vadd.f32 %v11594_v13, %v11593_v1  ;;  %v11595_v50 = vmul.f32 %v25289_v14, %v25289_v14  ;;  %v11904_v13 = vld [vmem:[#allocation12 + $0x300] sm:$0xff]  ;;  %v11905_v22 = vld [vmem:[#allocation12 + $0x308] sm:$0xff]  ;;  %12710 = vmatpush2.bf16.msra.mxu0 %v15174_v32 }
 0x839   : > { %v11497_v26 = vpop.f32.mrf.mxu0  ;;  %v11908_v35 = vld [vmem:[#allocation12 + $0x320] sm:$0xff]  ;;  %v11873_v32 = vld [vmem:[#allocation12 + $0x208] sm:$0xff] }
 0x83a   : > { %27909 = vst [vmem:[#allocation92_spill] sm:$0xff] %v25296_v33  ;;  %v25299_v44 = vadd.f32 %v11497_v26, %v27910_v19  ;;  %11628 = vadd.xlane.f32.xlu1 %v11627_v4  ;;  %v11596_v51 = vmul.f32 %v25296_v33, %v25296_v33  ;;  %v15165_v4 = vcombine.high %v11904_v13, %v11908_v35  ;;  %v11909_v19 = vld [vmem:[#allocation12 + $0x328] sm:$0xff] }
 0x83b   : > { %v11499_v20 = vpop.f32.mrf.mxu0  ;;  %v15164_v26 = vcombine.low %v11904_v13, %v11908_v35  ;;  %v11877_v13 = vld [vmem:[#allocation12 + $0x228] sm:$0xff]  ;;  %v27930_v35 = vld [vmem:[#allocation49_spill] sm:$0xff] }
 0x83c   : > { %27911 = vst [vmem:[#allocation89_spill] sm:$0xff] %v25299_v44  ;;  %v25306_v55 = vadd.f32 %v11499_v20, %v27912_v29  ;;  %v11630_v21 = vadd.f32 %v11596_v51, %v11595_v50  ;;  %v11597_v9 = vmul.f32 %v25299_v44, %v25299_v44  ;;  %v15166_v20 = vcombine.low %v11905_v22, %v11909_v19 }
 0x83d   : > { %v11501_v40 = vpop.f32.mrf.mxu0  ;;  %v15167_v29 = vcombine.high %v11905_v22, %v11909_v19  ;;  %12598 = vmatprep.subr.bf16.mxu1 %v15165_v4  ;;  %v15135_v19 = vcombine.high %v11873_v32, %v11877_v13 }
 0x83e   : > { %27913 = vst [vmem:[#allocation88_spill] sm:$0xff] %v25306_v55  ;;  %v25309_v61 = vadd.f32 %v11501_v40, %v27914_v10  ;;  %11631 = vadd.xlane.f32.xlu1 %v11630_v21  ;;  %v11598_v6 = vmul.f32 %v25306_v55, %v25306_v55  ;;  %12599 = vmatpush2.bf16.msra.mxu1 %v15164_v26  ;;  %v11896_v40 = vld [vmem:[#allocation12 + $0x2c0] sm:$0xff] }
 0x83f   : > { %v11503_v17 = vpop.f32.mrf.mxu0  ;;  %12711 = vmatprep.subr.bf16.mxu0 %v15167_v29  ;;  %v11900_v10 = vld [vmem:[#allocation12 + $0x2e0] sm:$0xff]  ;;  %v15134_v26 = vcombine.low %v11873_v32, %v11877_v13  ;;  %v27946_v13 = vld [vmem:[#allocation58_spill] sm:$0xff] }
 0x840   : > { %27915 = vst [vmem:[#allocation94_spill] sm:$0xff] %v25309_v61  ;;  %v25316_v42 = vadd.f32 %v11503_v17, %v27916_v24  ;;  %v11633_v7 = vadd.f32 %v11598_v6, %v11597_v9  ;;  %v11599_v47 = vmul.f32 %v25309_v61, %v25309_v61  ;;  %v11897_v9 = vld [vmem:[#allocation12 + $0x2c8] sm:$0xff]  ;;  %12712 = vmatpush2.bf16.msra.mxu0 %v15166_v20 }
 0x841   : > { %v11507_v38 = vpop.f32.mrf.mxu0  ;;  %v15157_v6 = vcombine.high %v11896_v40, %v11900_v10  ;;  %v15156_v17 = vcombine.low %v11896_v40, %v11900_v10  ;;  %v11901_v24 = vld [vmem:[#allocation12 + $0x2e8] sm:$0xff]  ;;  %v25360_v40 = vld [vmem:[#allocation12 + $0x1f0] sm:$0xff] }
 0x842   : > { %27917 = vst [vmem:[#allocation93_spill] sm:$0xff] %v25316_v42  ;;  %v25321_v28 = vadd.f32 %v11507_v38, %v27918_v37  ;;  %11634 = vadd.xlane.f32.xlu0 %v11633_v7  ;;  %v11600_v27 = vmul.f32 %v25316_v42, %v25316_v42  ;;  %v15158_v7 = vcombine.low %v11897_v9, %v11901_v24  ;;  %v11889_v38 = vld [vmem:[#allocation12 + $0x288] sm:$0xff] }
 0x843   : > { %v11509_v62 = vpop.f32.mrf.mxu0  ;;  %v15159_v34 = vcombine.high %v11897_v9, %v11901_v24  ;;  %12600 = vmatprep.subr.bf16.mxu1 %v15157_v6  ;;  %v15150_v56 = vcombine.low %v11889_v38, %v11893_v48  ;;  %v15151_v37 = vcombine.high %v11889_v38, %v11893_v48  ;;  %v25366_v6 = vld [vmem:[#allocation12 + $0x1d8] sm:$0xff] }
 0x844   : > { %27919 = vst [vmem:[#allocation99_spill] sm:$0xff] %v25321_v28  ;;  %v25326_v23 = vadd.f32 %v11509_v62, %v27920_v39  ;;  %v11636_v3 = vadd.f32 %v11600_v27, %v11599_v47  ;;  %v11601_v46 = vmul.f32 %v25321_v28, %v25321_v28  ;;  %12601 = vmatpush2.bf16.msra.mxu1 %v15156_v17  ;;  %v11880_v27 = vld [vmem:[#allocation12 + $0x240] sm:$0xff]  ;;  %v25368_v17 = vld [vmem:[#allocation12 + $0x1f8] sm:$0xff] }
 0x845   : > { %v11511_v2 = vpop.f32.mrf.mxu0  ;;  %12713 = vmatprep.subr.bf16.mxu0 %v15159_v34  ;;  %v15149_v47 = vcombine.high %v11888_v43, %v11892_v25  ;;  %v15141_v39 = vcombine.high %v11880_v27, %v11884_v53  ;;  %v15130_v34 = vcombine.low %v25366_v6, %v25368_v17  ;;  %v15131_v43 = vcombine.high %v25366_v6, %v25368_v17  ;;  %v11846_v6 = vld [vmem:[#allocation12 + $0x130] sm:$0xff]  ;;  %v11843_v17 = vld [vmem:[#allocation12 + $0x118] sm:$0xff] }
 0x846   : > { %27921 = vst [vmem:[#allocation98_spill] sm:$0xff] %v25326_v23  ;;  %v25331_v41 = vadd.f32 %v11511_v2, %v27922_v63  ;;  %11637 = vadd.xlane.f32.xlu1 %v11636_v3  ;;  %v11602_v45 = vmul.f32 %v25326_v23, %v25326_v23  ;;  %12714 = vmatpush2.bf16.msra.mxu0 %v15158_v7  ;;  %v11872_v63 = vld [vmem:[#allocation12 + $0x200] sm:$0xff] }
 0x847   : > { %v11513_v36 = vpop.f32.mrf.mxu0  ;;  %12602 = vmatprep.subr.bf16.mxu1 %v15149_v47  ;;  %12715 = vmatprep.subr.bf16.mxu0 %v15151_v37  ;;  %v15140_v3 = vcombine.low %v11880_v27, %v11884_v53  ;;  %v15142_v2 = vcombine.low %v11881_v0, %v11885_v5  ;;  %v27934_v47 = vld [vmem:[#allocation53_spill] sm:$0xff]  ;;  %v27938_v53 = vld [vmem:[#allocation55_spill] sm:$0xff] }
 0x848   : > { %27923 = vst [vmem:[#allocation104_spill] sm:$0xff] %v25331_v41  ;;  %v25336_v8 = vadd.f32 %v11513_v36, %v27924_v60  ;;  %v11639_v1 = vadd.f32 %v11602_v45, %v11601_v46  ;;  %v11603_v50 = vmul.f32 %v25331_v41, %v25331_v41  ;;  %12603 = vmatpush2.bf16.msra.mxu1 %v15148_v52  ;;  %v11876_v45 = vld [vmem:[#allocation12 + $0x220] sm:$0xff] }
 0x849   : > { %v15143_v46 = vcombine.high %v11881_v0, %v11885_v5  ;;  %12604 = vmatprep.subr.bf16.mxu1 %v15141_v39  ;;  %v15133_v60 = vcombine.high %v11872_v63, %v11876_v45  ;;  %v27940_v5 = vld [vmem:[#allocation56_spill] sm:$0xff] }
 0x84a   : > { %27925 = vst [vmem:[#allocation97_spill] sm:$0xff] %v25336_v8  ;;  %11640 = vadd.xlane.f32.xlu0 %v11639_v1  ;;  %v11604_v51 = vmul.f32 %v25336_v8, %v25336_v8  ;;  %12716 = vmatpush2.bf16.msra.mxu0 %v15150_v56  ;;  %v15132_v1 = vcombine.low %v11872_v63, %v11876_v45  ;;  %v27936_v56 = vld [vmem:[#allocation54_spill] sm:$0xff]  ;;  %v27942_v45 = vld [vmem:[#allocation57_spill] sm:$0xff] }
 0x84b   : > { %12717 = vmatprep.subr.bf16.mxu0 %v15143_v46 }
 0x84c   : > { %v11642_v21 = vadd.f32 %v11604_v51, %v11603_v50  ;;  %12605 = vmatpush2.bf16.msra.mxu1 %v15140_v3  ;;  %v27932_v51 = vld [vmem:[#allocation50_spill] sm:$0xff] }
 0x84d   : > { %12606 = vmatprep.subr.bf16.mxu1 %v15133_v60 }
 0x84e   : > { %11643 = vadd.xlane.f32.xlu1 %v11642_v21  ;;  %12718 = vmatpush2.bf16.msra.mxu0 %v15142_v2  ;;  %v25358_v21 = vld [vmem:[#allocation12 + $0x1d0] sm:$0xff] }
 0x84f   : > { %12719 = vmatprep.subr.bf16.mxu0 %v15135_v19  ;;  %v15128_v10 = vcombine.low %v25358_v21, %v25360_v40  ;;  %v15129_v9 = vcombine.high %v25358_v21, %v25360_v40 }
 0x850   : > { %12607 = vmatpush2.bf16.msra.mxu1 %v15132_v1 }
 0x851   : > { %12802 = vmatprep.subr.bf16.mxu1 %v15129_v9 }
 0x852   : > { %12720 = vmatpush2.bf16.msra.mxu0 %v15134_v26 }
 0x853   : > { %12915 = vmatprep.subr.bf16.mxu0 %v15131_v43 }
 0x855   : > { %v11517_v62 = vpop.f32.mrf.mxu0 }
 0x856   : > { %v25343_v18 = vadd.f32 %v11517_v62, %v27926_v59 }
 0x857   : > { %v11519_v15 = vpop.f32.mrf.mxu0 }
 0x858   : > { %27927 = vst [vmem:[#allocation105_spill] sm:$0xff] %v25343_v18  ;;  %v25346_v49 = vadd.f32 %v11519_v15, %v27928_v31  ;;  %v11605_v36 = vmul.f32 %v25343_v18, %v25343_v18 }
 0x859   : > { %v11521_v16 = vpop.f32.mrf.mxu0 }
 0x85a   : > { %27929 = vst [vmem:[#allocation102_spill] sm:$0xff] %v25346_v49  ;;  %v25351_v22 = vadd.f32 %v11521_v16, %v27930_v35  ;;  %v11606_v4 = vmul.f32 %v25346_v49, %v25346_v49 }
 0x85b   : > { %v11523_v50 = vpop.f32.mrf.mxu0 }
 0x85c   : > { %27931 = vst [vmem:[#allocation106_spill] sm:$0xff] %v25351_v22  ;;  %v25356_v20 = vadd.f32 %v11523_v50, %v27932_v51  ;;  %v11645_v29 = vadd.f32 %v11606_v4, %v11605_v36  ;;  %v11607_v24 = vmul.f32 %v25351_v22, %v25351_v22  ;;  %v27944_v36 = vld [vmem:[#allocation60_spill] sm:$0xff]  ;;  %v27948_v50 = vld [vmem:[#allocation59_spill] sm:$0xff] }
 0x85e   : > { %27933 = vst [vmem:[#allocation100_spill] sm:$0xff] %v25356_v20  ;;  %11646 = vadd.xlane.f32.xlu0 %v11645_v29  ;;  %v11608_v7 = vmul.f32 %v25356_v20, %v25356_v20 }
 0x860   : > { %v11648_v25 = vadd.f32 %v11608_v7, %v11607_v24 }
 0x862   : > { %v11527_v38 = vpop.f32.mrf.mxu0  ;;  %11649 = vadd.xlane.f32.xlu1 %v11648_v25  ;;  %v27950_v25 = vld [vmem:[#allocation63_spill] sm:$0xff] }
 0x863   : > { %v25379_v52 = vadd.f32 %v11527_v38, %v27934_v47 }
 0x864   : > { %v11529_v48 = vpop.f32.mrf.mxu0 }
 0x865   : > { %27935 = vst [vmem:[#allocation108_spill] sm:$0xff] %v25379_v52  ;;  %v25382_v37 = vadd.f32 %v11529_v48, %v27936_v56  ;;  %v11609_v62 = vmul.f32 %v25379_v52, %v25379_v52  ;;  %v27952_v48 = vld [vmem:[#allocation64_spill] sm:$0xff] }
 0x866   : > { %v11531_v27 = vpop.f32.mrf.mxu0 }
 0x867   : > { %27937 = vst [vmem:[#allocation110_spill] sm:$0xff] %v25382_v37  ;;  %v25385_v0 = vadd.f32 %v11531_v27, %v27938_v53  ;;  %v11610_v39 = vmul.f32 %v25382_v37, %v25382_v37  ;;  %v27954_v53 = vld [vmem:[#allocation61_spill] sm:$0xff] }
 0x868   : > { %v11533_v3 = vpop.f32.mrf.mxu0 }
 0x869   : > { %27939 = vst [vmem:[#allocation66_spill] sm:$0xff] %v25385_v0  ;;  %v25392_v59 = vadd.f32 %v11533_v3, %v27940_v5  ;;  %v11651_v2 = vadd.f32 %v11610_v39, %v11609_v62  ;;  %v11611_v46 = vmul.f32 %v25385_v0, %v25385_v0 }
 0x86b   : > { %27941 = vst [vmem:[#allocation67_spill] sm:$0xff] %v25392_v59  ;;  %11652 = vadd.xlane.f32.xlu0 %v11651_v2  ;;  %v11612_v15 = vmul.f32 %v25392_v59, %v25392_v59  ;;  %v27956_v2 = vld [vmem:[#allocation62_spill] sm:$0xff] }
 0x86d   : > { %v11654_v31 = vadd.f32 %v11612_v15, %v11611_v46 }
 0x86f   : > { %11655 = vadd.xlane.f32.xlu1 %v11654_v31 }
 0x873   : > { %v11537_v63 = vpop.f32.mrf.mxu0 }
 0x874   : > { %v25399_v32 = vadd.f32 %v11537_v63, %v27942_v45 }
 0x875   : > { %v11539_v16 = vpop.f32.mrf.mxu0 }
 0x876   : > { %27943 = vst [vmem:[#allocation68_spill] sm:$0xff] %v25399_v32  ;;  %v25402_v60 = vadd.f32 %v11539_v16, %v27944_v36  ;;  %v11613_v4 = vmul.f32 %v25399_v32, %v25399_v32 }
 0x877   : > { %v11541_v1 = vpop.f32.mrf.mxu0 }
 0x878   : > { %27945 = vst [vmem:[#allocation69_spill] sm:$0xff] %v25402_v60  ;;  %v25405_v35 = vadd.f32 %v11541_v1, %v27946_v13  ;;  %v11614_v26 = vmul.f32 %v25402_v60, %v25402_v60 }
 0x879   : > { %v11543_v19 = vpop.f32.mrf.mxu0 }
 0x87a   : > { %27947 = vst [vmem:[#allocation70_spill] sm:$0xff] %v25405_v35  ;;  %v25412_v51 = vadd.f32 %v11543_v19, %v27948_v50  ;;  %v11657_v29 = vadd.f32 %v11614_v26, %v11613_v4  ;;  %v11615_v9 = vmul.f32 %v25405_v35, %v25405_v35 }
 0x87c   : > { %27949 = vst [vmem:[#allocation71_spill] sm:$0xff] %v25412_v51  ;;  %11658 = vadd.xlane.f32.xlu0 %v11657_v29  ;;  %v11616_v24 = vmul.f32 %v25412_v51, %v25412_v51 }
 0x87e   : > { %v11660_v7 = vadd.f32 %v11616_v24, %v11615_v9 }
 0x880   : > { %11661 = vadd.xlane.f32.xlu1 %v11660_v7 }
 0x881   : > { %v11547_v43 = vpop.f32.mrf.mxu0 }
 0x882   : > { %v25419_v38 = vadd.f32 %v11547_v43, %v27950_v25 }
 0x883   : > { %v11549_v47 = vpop.f32.mrf.mxu0 }
 0x884   : > { %27951 = vst [vmem:[#allocation72_spill] sm:$0xff] %v25419_v38  ;;  %v25422_v56 = vadd.f32 %v11549_v47, %v27952_v48  ;;  %v11617_v39 = vmul.f32 %v25419_v38, %v25419_v38  ;;  %v11588_v47 = vld [vmem:[%s27958_s20] sm:$0x3] }
 0x885   : > { %v11551_v27 = vpop.f32.mrf.mxu0 }
 0x886   : > { %27953 = vst [vmem:[#allocation73_spill] sm:$0xff] %v25422_v56  ;;  %v25425_v62 = vadd.f32 %v11551_v27, %v27954_v53  ;;  %v11618_v3 = vmul.f32 %v25422_v56, %v25422_v56 }
 0x887   : > { %v11553_v5 = vpop.f32.mrf.mxu0 }
 0x888   : > { %27955 = vst [vmem:[#allocation74_spill] sm:$0xff] %v25425_v62  ;;  %v25432_v46 = vadd.f32 %v11553_v5, %v27956_v2  ;;  %v11663_v15 = vadd.f32 %v11618_v3, %v11617_v39  ;;  %v11619_v31 = vmul.f32 %v25425_v62, %v25425_v62  ;;  %v27959_v3 = vld [vmem:[#allocation65_spill] sm:$0xff] }
 0x889   : > { %v27960_v5 = vsub.s32 1, %v27959_v3 }
 0x88a   : > { %27957 = vst [vmem:[#allocation75_spill] sm:$0xff] %v25432_v46  ;;  %11664 = vadd.xlane.f32.xlu0 %v11663_v15  ;;  %v11620_v63 = vmul.f32 %v25432_v46, %v25432_v46 }
 0x88b   : > { %v25444_v2 = vrot.slane %v11588_v47, %v27960_v5 }
 0x88c   : > { %v11666_v45 = vadd.f32 %v11620_v63, %v11619_v31  ;;  %v27961_v31 = vsub.s32 0, %v27959_v3 }
 0x88e   : > { %11667 = vadd.xlane.f32.xlu1 %v11666_v45  ;;  %v25449_v63 = vrot.slane %v11588_v47, %v27961_v31  ;;  %v11850_v31 = vld [vmem:[#allocation12 + $0x150] sm:$0xff] }
 0x8bb   : > { %v11623_v16 = vpop.xlane.xlu0 %11622 }
 0x8bc   : > { %v11669_v36 = vmul.f32 0.00390625, %v11623_v16 }
 0x8be   : > { %v11685_v1 = vadd.f32 1e-06, %v11669_v36 }
 0x8bf   : > { %v11626_v13 = vpop.xlane.xlu0 %11625 }
 0x8c0   : > { %17794 = vrsqrt.f32 %v11685_v1  ;;  %v11670_v4 = vmul.f32 0.00390625, %v11626_v13 }
 0x8c2   : > { %v11686_v26 = vadd.f32 1e-06, %v11670_v4 }
 0x8c3   : > { %v11629_v19 = vpop.xlane.xlu1 %11628 }
 0x8c4   : > { %17796 = vrsqrt.f32 %v11686_v26  ;;  %v11671_v50 = vmul.f32 0.00390625, %v11629_v19 }
 0x8c6   : > { %v11687_v29 = vadd.f32 1e-06, %v11671_v50  ;;  %v11858_v50 = vld [vmem:[#allocation12 + $0x190] sm:$0xff] }
 0x8c7   : > { %v11632_v9 = vpop.xlane.xlu1 %11631 }
 0x8c8   : > { %17798 = vrsqrt.f32 %v11687_v29  ;;  %v11672_v24 = vmul.f32 0.00390625, %v11632_v9 }
 0x8ca   : > { %v11688_v7 = vadd.f32 1e-06, %v11672_v24 }
 0x8cb   : > { %v11635_v43 = vpop.xlane.xlu0 %11634 }
 0x8cc   : > { %17800 = vrsqrt.f32 %v11688_v7  ;;  %v11673_v25 = vmul.f32 0.00390625, %v11635_v43  ;;  %v11862_v7 = vld [vmem:[#allocation12 + $0x1b0] sm:$0xff]  ;;  %v11859_v43 = vld [vmem:[#allocation12 + $0x198] sm:$0xff] }
 0x8cd   : > { %v17795_v48 = vpop.eup %17794 }
 0x8ce   : > { %v11689_v27 = vadd.f32 1e-06, %v11673_v25  ;;  %v11718_v39 = vmul.f32 %v17795_v48, %v25266_v12  ;;  %v11717_v15 = vmul.f32 %v17795_v48, %v25263_v57  ;;  %v11863_v25 = vld [vmem:[#allocation12 + $0x1b8] sm:$0xff] }
 0x8cf   : > { %v11638_v53 = vpop.xlane.xlu1 %11637  ;;  %v15123_v5 = vcombine.high %v11859_v43, %v11863_v25 }
 0x8d0   : > { %17802 = vrsqrt.f32 %v11689_v27  ;;  %v11674_v45 = vmul.f32 0.00390625, %v11638_v53  ;;  %v11761_v26 = vmul.f32 %v25444_v2, %v11718_v39  ;;  %v11760_v19 = vmul.f32 %v25449_v63, %v11717_v15 }
 0x8d1   : > { %v17797_v16 = vpop.eup %17796  ;;  %v15121_v39 = vcombine.high %v11858_v50, %v11862_v7 }
 0x8d2   : > { %v11690_v36 = vadd.f32 1e-06, %v11674_v45  ;;  %v11720_v1 = vmul.f32 %v17797_v16, %v25276_v54  ;;  %v11719_v13 = vmul.f32 %v17797_v16, %v25269_v11  ;;  %v11854_v16 = vld [vmem:[#allocation12 + $0x170] sm:$0xff] }
 0x8d3   : > { %v11641_v4 = vpop.xlane.xlu0 %11640 }
 0x8d4   : > { %17804 = vrsqrt.f32 %v11690_v36  ;;  %v11675_v29 = vmul.f32 0.00390625, %v11641_v4  ;;  %v11763_v9 = vmul.f32 %v25444_v2, %v11720_v1  ;;  %v11762_v24 = vmul.f32 %v25449_v63, %v11719_v13  ;;  %v11851_v1 = vld [vmem:[#allocation12 + $0x158] sm:$0xff] }
 0x8d5   : > { %v17799_v47 = vpop.eup %17798  ;;  %v11855_v13 = vld [vmem:[#allocation12 + $0x178] sm:$0xff] }
 0x8d6   : > { %v11691_v48 = vadd.f32 1e-06, %v11675_v29  ;;  %v25457_v27 = vpack.c.bf16 %v11763_v9, %v11761_v26  ;;  %v25459_v53 = vpack.c.bf16 %v11762_v24, %v11760_v19  ;;  %v11722_v15 = vmul.f32 %v17799_v47, %v25286_v58 }
 0x8d7   : > { %v11644_v3 = vpop.xlane.xlu1 %11643  ;;  %v11721_v36 = vmul.f32 %v17799_v47, %v25279_v30  ;;  %v15120_v26 = vcombine.low %v11858_v50, %v11862_v7  ;;  %v15122_v29 = vcombine.low %v11859_v43, %v11863_v25  ;;  %v15115_v50 = vcombine.high %v11851_v1, %v11855_v13  ;;  %v11842_v7 = vld [vmem:[#allocation12 + $0x110] sm:$0xff] }
 0x8d8   : > { %17806 = vrsqrt.f32 %v11691_v48  ;;  %v11676_v45 = vmul.f32 0.00390625, %v11644_v3  ;;  %12608 = vmatprep.mubr.bf16.mxu1 %v25457_v27  ;;  %12721 = vmatprep.mubr.bf16.mxu0 %v25457_v27  ;;  %v11765_v47 = vmul.f32 %v25444_v2, %v11722_v15  ;;  %v15113_v48 = vcombine.high %v11850_v31, %v11854_v16 }
 0x8d9   : > { %v17801_v4 = vpop.eup %17800  ;;  %12609 = vmatmul.mubr.bf16.vlgmr.msra.gmra.mxu1 %v25459_v53  ;;  %12722 = vmatmul.mubr.bf16.vlgmr.msra.gmra.mxu0 %v25459_v53  ;;  %v11764_v40 = vmul.f32 %v25449_v63, %v11721_v36  ;;  %v15112_v25 = vcombine.low %v11850_v31, %v11854_v16  ;;  %v15105_v15 = vcombine.high %v11842_v7, %v11846_v6  ;;  %v11835_v16 = vld [vmem:[#allocation12 + $0xd8] sm:$0xff] }
 0x8da   : > { %v11692_v19 = vadd.f32 1e-06, %v11676_v45  ;;  %12803 = vmatpush1.bf16.msra.mxu1 %v15128_v10  ;;  %12916 = vmatpush1.bf16.msra.mxu0 %v15130_v34  ;;  %v11724_v9 = vmul.f32 %v17801_v4, %v25296_v33  ;;  %v11723_v24 = vmul.f32 %v17801_v4, %v25289_v14  ;;  %v11847_v34 = vld [vmem:[#allocation12 + $0x138] sm:$0xff]  ;;  %v11834_v4 = vld [vmem:[#allocation12 + $0xd0] sm:$0xff] }
 0x8db   : > { %12804 = vmatprep.subr.bf16.mxu1 %v15121_v39  ;;  %12917 = vmatprep.subr.bf16.mxu0 %v15123_v5  ;;  %v15114_v5 = vcombine.low %v11851_v1, %v11855_v13  ;;  %v15107_v45 = vcombine.high %v11843_v17, %v11847_v34  ;;  %v15104_v1 = vcombine.low %v11842_v7, %v11846_v6  ;;  %v11827_v6 = vld [vmem:[#allocation12 + $0x98] sm:$0xff] }
 0x8dc   : > { %17808 = vrsqrt.f32 %v11692_v19  ;;  %v11767_v21 = vmul.f32 %v25444_v2, %v11724_v9  ;;  %v11766_v10 = vmul.f32 %v25449_v63, %v11723_v24  ;;  %v11838_v19 = vld [vmem:[#allocation12 + $0xf0] sm:$0xff]  ;;  %v15106_v13 = vcombine.low %v11843_v17, %v11847_v34  ;;  %v11831_v17 = vld [vmem:[#allocation12 + $0xb8] sm:$0xff] }
 0x8dd   : > { %v17803_v43 = vpop.eup %17802 }
 0x8de   : > { %12805 = vmatpush1.bf16.msra.mxu1 %v15120_v26  ;;  %12918 = vmatpush1.bf16.msra.mxu0 %v15122_v29  ;;  %v25479_v3 = vpack.c.bf16 %v11767_v21, %v11765_v47  ;;  %v25481_v39 = vpack.c.bf16 %v11766_v10, %v11764_v40  ;;  %v11726_v36 = vmul.f32 %v17803_v43, %v25306_v55  ;;  %v11839_v26 = vld [vmem:[#allocation12 + $0xf8] sm:$0xff]  ;;  %v11830_v21 = vld [vmem:[#allocation12 + $0xb0] sm:$0xff] }
 0x8df   : > { %12806 = vmatprep.subr.bf16.mxu1 %v15113_v48  ;;  %12919 = vmatprep.subr.bf16.mxu0 %v15115_v50  ;;  %v11725_v31 = vmul.f32 %v17803_v43, %v25299_v44  ;;  %v15097_v47 = vcombine.high %v11834_v4, %v11838_v19  ;;  %v15099_v48 = vcombine.high %v11835_v16, %v11839_v26  ;;  %v11826_v50 = vld [vmem:[#allocation12 + $0x90] sm:$0xff] }
 0x8e0   : > { %12618 = vmatprep.mubr.bf16.mxu1 %v25479_v3  ;;  %12731 = vmatprep.mubr.bf16.mxu0 %v25479_v3  ;;  %v11769_v40 = vmul.f32 %v25444_v2, %v11726_v36  ;;  %v15091_v36 = vcombine.high %v11827_v6, %v11831_v17 }
 0x8e1   : > { %v17805_v29 = vpop.eup %17804  ;;  %12619 = vmatmul.mubr.bf16.gmra.mxu1 %v25481_v39  ;;  %12732 = vmatmul.mubr.bf16.gmra.mxu0 %v25481_v39  ;;  %v11768_v43 = vmul.f32 %v25449_v63, %v11725_v31 }
 0x8e2   : > { %12807 = vmatpush1.bf16.msra.mxu1 %v15112_v25  ;;  %12920 = vmatpush1.bf16.msra.mxu0 %v15114_v5  ;;  %v11728_v9 = vmul.f32 %v17805_v29, %v25316_v42  ;;  %v11727_v24 = vmul.f32 %v17805_v29, %v25309_v61  ;;  %v15096_v25 = vcombine.low %v11834_v4, %v11838_v19  ;;  %v11819_v4 = vld [vmem:[#allocation12 + $0x58] sm:$0xff] }
 0x8e3   : > { %12808 = vmatprep.subr.bf16.mxu1 %v15105_v15  ;;  %12921 = vmatprep.subr.bf16.mxu0 %v15107_v45  ;;  %v15098_v5 = vcombine.low %v11835_v16, %v11839_v26  ;;  %v15089_v29 = vcombine.high %v11826_v50, %v11830_v21  ;;  %v11823_v19 = vld [vmem:[#allocation12 + $0x78] sm:$0xff]  ;;  %v15088_v26 = vcombine.low %v11826_v50, %v11830_v21 }
 0x8e4   : > { %v11771_v10 = vmul.f32 %v25444_v2, %v11728_v9  ;;  %v11770_v7 = vmul.f32 %v25449_v63, %v11727_v24  ;;  %v11818_v9 = vld [vmem:[#allocation12 + $0x50] sm:$0xff] }
 0x8e5   : > { %v17807_v34 = vpop.eup %17806  ;;  %v11822_v24 = vld [vmem:[#allocation12 + $0x70] sm:$0xff] }
 0x8e6   : > { %12809 = vmatpush1.bf16.msra.mxu1 %v15104_v1  ;;  %12922 = vmatpush1.bf16.msra.mxu0 %v15106_v13  ;;  %v25495_v15 = vpack.c.bf16 %v11771_v10, %v11769_v40  ;;  %v25497_v45 = vpack.c.bf16 %v11770_v7, %v11768_v43  ;;  %v11730_v31 = vmul.f32 %v17807_v34, %v25326_v23 }
 0x8e7   : > { %v11647_v42 = vpop.xlane.xlu0 %11646  ;;  %12810 = vmatprep.subr.bf16.mxu1 %v15097_v47  ;;  %12923 = vmatprep.subr.bf16.mxu0 %v15099_v48  ;;  %v11729_v61 = vmul.f32 %v17807_v34, %v25321_v28  ;;  %v15090_v1 = vcombine.low %v11827_v6, %v11831_v17  ;;  %v15081_v48 = vcombine.high %v11818_v9, %v11822_v24  ;;  %v11810_v34 = vld [vmem:[#allocation12 + $0x10] sm:$0xff]  ;;  %v11811_v17 = vld [vmem:[#allocation12 + $0x18] sm:$0xff] }
 0x8e8   : > { %v11677_v55 = vmul.f32 0.00390625, %v11647_v42  ;;  %12628 = vmatprep.mubr.bf16.mxu1 %v25495_v15  ;;  %12741 = vmatprep.mubr.bf16.mxu0 %v25495_v15  ;;  %v11773_v10 = vmul.f32 %v25444_v2, %v11730_v31  ;;  %v15083_v7 = vcombine.high %v11819_v4, %v11823_v19  ;;  %v11814_v6 = vld [vmem:[#allocation12 + $0x30] sm:$0xff] }
 0x8e9   : > { %v17809_v16 = vpop.eup %17808  ;;  %12629 = vmatmul.mubr.bf16.gmra.mxu1 %v25497_v45  ;;  %12742 = vmatmul.mubr.bf16.gmra.mxu0 %v25497_v45  ;;  %v11772_v43 = vmul.f32 %v25449_v63, %v11729_v61  ;;  %v15082_v61 = vcombine.low %v11819_v4, %v11823_v19  ;;  %v15073_v31 = vcombine.high %v11810_v34, %v11814_v6 }
 0x8ea   : > { %v11693_v13 = vadd.f32 1e-06, %v11677_v55  ;;  %12811 = vmatpush1.bf16.msra.mxu1 %v15096_v25  ;;  %12924 = vmatpush1.bf16.msra.mxu0 %v15098_v5  ;;  %v11732_v47 = vmul.f32 %v17809_v16, %v25336_v8  ;;  %v11731_v42 = vmul.f32 %v17809_v16, %v25331_v41  ;;  %v11815_v25 = vld [vmem:[#allocation12 + $0x38] sm:$0xff]  ;;  %v15080_v5 = vcombine.low %v11818_v9, %v11822_v24 }
 0x8eb   : > { %v11650_v40 = vpop.xlane.xlu1 %11649  ;;  %12812 = vmatprep.subr.bf16.mxu1 %v15089_v29  ;;  %12925 = vmatprep.subr.bf16.mxu0 %v15091_v36  ;;  %v11931_v9 = vld [vmem:[#allocation12 + $0x3d8] sm:$0xff]  ;;  %v15072_v4 = vcombine.low %v11810_v34, %v11814_v6  ;;  %v15074_v19 = vcombine.low %v11811_v17, %v11815_v25  ;;  %v11914_v6 = vld [vmem:[#allocation12 + $0x350] sm:$0xff] }
 0x8ec   : > { %17810 = vrsqrt.f32 %v11693_v13  ;;  %v11678_v50 = vmul.f32 0.00390625, %v11650_v40  ;;  %v11775_v55 = vmul.f32 %v25444_v2, %v11732_v47  ;;  %v11774_v21 = vmul.f32 %v25449_v63, %v11731_v42  ;;  %v11930_v40 = vld [vmem:[#allocation12 + $0x3d0] sm:$0xff]  ;;  %v11935_v24 = vld [vmem:[#allocation12 + $0x3f8] sm:$0xff] }
 0x8ed   : > { %v15075_v13 = vcombine.high %v11811_v17, %v11815_v25  ;;  %v11934_v47 = vld [vmem:[#allocation12 + $0x3f0] sm:$0xff]  ;;  %v11911_v41 = vld [vmem:[#allocation12 + $0x338] sm:$0xff] }
 0x8ee   : > { %v11694_v16 = vadd.f32 1e-06, %v11678_v50  ;;  %12813 = vmatpush1.bf16.msra.mxu1 %v15088_v26  ;;  %12926 = vmatpush1.bf16.msra.mxu0 %v15090_v1  ;;  %v25511_v29 = vpack.c.bf16 %v11775_v55, %v11773_v10  ;;  %v25513_v36 = vpack.c.bf16 %v11774_v21, %v11772_v43  ;;  %v15193_v26 = vcombine.high %v11930_v40, %v11934_v47  ;;  %v11926_v10 = vld [vmem:[#allocation12 + $0x3b0] sm:$0xff]  ;;  %v11923_v43 = vld [vmem:[#allocation12 + $0x398] sm:$0xff] }
 0x8ef   : > { %12814 = vmatprep.subr.bf16.mxu1 %v15081_v48  ;;  %12927 = vmatprep.subr.bf16.mxu0 %v15083_v7  ;;  %v15195_v1 = vcombine.high %v11931_v9, %v11935_v24  ;;  %v11922_v48 = vld [vmem:[#allocation12 + $0x390] sm:$0xff]  ;;  %v11927_v7 = vld [vmem:[#allocation12 + $0x3b8] sm:$0xff]  ;;  %v15192_v55 = vcombine.low %v11930_v40, %v11934_v47  ;;  %v15194_v21 = vcombine.low %v11931_v9, %v11935_v24 }
 0x8f0   : > { %17812 = vrsqrt.f32 %v11694_v16  ;;  %12638 = vmatprep.mubr.bf16.mxu1 %v25511_v29  ;;  %12751 = vmatprep.mubr.bf16.mxu0 %v25511_v29  ;;  %v15187_v34 = vcombine.high %v11923_v43, %v11927_v7  ;;  %v11918_v25 = vld [vmem:[#allocation12 + $0x370] sm:$0xff] }
 0x8f1   : > { %12639 = vmatmul.mubr.bf16.gmra.mxu1 %v25513_v36  ;;  %12752 = vmatmul.mubr.bf16.gmra.mxu0 %v25513_v36  ;;  %v15177_v40 = vcombine.high %v11914_v6, %v11918_v25  ;;  %v11906_v9 = vld [vmem:[#allocation12 + $0x310] sm:$0xff] }
 0x8f2   : > { %12815 = vmatpush1.bf16.msra.mxu1 %v15080_v5  ;;  %12928 = vmatpush1.bf16.msra.mxu0 %v15082_v61  ;;  %v15185_v5 = vcombine.high %v11922_v48, %v11926_v10  ;;  %v11915_v61 = vld [vmem:[#allocation12 + $0x358] sm:$0xff] }
 0x8f3   : > { %12816 = vmatprep.subr.bf16.mxu1 %v15073_v31  ;;  %12929 = vmatprep.subr.bf16.mxu0 %v15075_v13  ;;  %v11919_v31 = vld [vmem:[#allocation12 + $0x378] sm:$0xff] }
 0x8f4   : > { %v11653_v42 = vpop.xlane.xlu0 %11652  ;;  %v15179_v47 = vcombine.high %v11915_v61, %v11919_v31 }
 0x8f5   : > { %v11679_v50 = vmul.f32 0.00390625, %v11653_v42  ;;  %v15184_v42 = vcombine.low %v11922_v48, %v11926_v10 }
 0x8f6   : > { %12817 = vmatpush1.bf16.msra.mxu1 %v15072_v4  ;;  %12930 = vmatpush1.bf16.msra.mxu0 %v15074_v19  ;;  %v15186_v4 = vcombine.low %v11923_v43, %v11927_v7  ;;  %v11898_v7 = vld [vmem:[#allocation12 + $0x2d0] sm:$0xff] }
 0x8f7   : > { %v11695_v16 = vadd.f32 1e-06, %v11679_v50  ;;  %12818 = vmatprep.subr.bf16.mxu1 %v15193_v26  ;;  %12931 = vmatprep.subr.bf16.mxu0 %v15195_v1  ;;  %v11910_v1 = vld [vmem:[#allocation12 + $0x330] sm:$0xff]  ;;  %v11907_v50 = vld [vmem:[#allocation12 + $0x318] sm:$0xff] }
 0x8f8   : > { %v11656_v17 = vpop.xlane.xlu1 %11655  ;;  %v15169_v10 = vcombine.high %v11906_v9, %v11910_v1  ;;  %v15171_v43 = vcombine.high %v11907_v50, %v11911_v41 }
 0x8f9   : > { %v17811_v13 = vpop.eup %17810  ;;  %17814 = vrsqrt.f32 %v11695_v16  ;;  %v11680_v8 = vmul.f32 0.00390625, %v11656_v17  ;;  %v15176_v16 = vcombine.low %v11914_v6, %v11918_v25  ;;  %v11902_v17 = vld [vmem:[#allocation12 + $0x2f0] sm:$0xff]  ;;  %v11899_v25 = vld [vmem:[#allocation12 + $0x2d8] sm:$0xff] }
 0x8fa   : > { %12819 = vmatpush2.bf16.msra.mxu1 %v15192_v55  ;;  %12932 = vmatpush2.bf16.msra.mxu0 %v15194_v21  ;;  %v11734_v24 = vmul.f32 %v17811_v13, %v25346_v49  ;;  %v11733_v26 = vmul.f32 %v17811_v13, %v25343_v18  ;;  %v11903_v13 = vld [vmem:[#allocation12 + $0x2f8] sm:$0xff] }
 0x8fb   : > { %v11696_v19 = vadd.f32 1e-06, %v11680_v8  ;;  %12820 = vmatprep.subr.bf16.mxu1 %v15185_v5  ;;  %12933 = vmatprep.subr.bf16.mxu0 %v15187_v34  ;;  %v15178_v8 = vcombine.low %v11915_v61, %v11919_v31  ;;  %v15170_v31 = vcombine.low %v11907_v50, %v11911_v41  ;;  %v15160_v41 = vcombine.low %v11898_v7, %v11902_v17 }
 0x8fc   : > { %v11777_v21 = vmul.f32 %v25444_v2, %v11734_v24  ;;  %v11776_v34 = vmul.f32 %v25449_v63, %v11733_v26  ;;  %v11891_v24 = vld [vmem:[#allocation12 + $0x298] sm:$0xff]  ;;  %v15162_v50 = vcombine.low %v11899_v25, %v11903_v13 }
 0x8fd   : > { %v17813_v23 = vpop.eup %17812  ;;  %17816 = vrsqrt.f32 %v11696_v19  ;;  %v15163_v19 = vcombine.high %v11899_v25, %v11903_v13  ;;  %v11895_v26 = vld [vmem:[#allocation12 + $0x2b8] sm:$0xff] }
 0x8fe   : > { %v11736_v55 = vmul.f32 %v17813_v23, %v25356_v20  ;;  %v11735_v48 = vmul.f32 %v17813_v23, %v25351_v22  ;;  %12821 = vmatpush2.bf16.msra.mxu1 %v15184_v42  ;;  %12934 = vmatpush2.bf16.msra.mxu0 %v15186_v4  ;;  %v15168_v23 = vcombine.low %v11906_v9, %v11910_v1 }
 0x8ff   : > { %12822 = vmatprep.subr.bf16.mxu1 %v15177_v40  ;;  %12935 = vmatprep.subr.bf16.mxu0 %v15179_v47  ;;  %v15161_v4 = vcombine.high %v11898_v7, %v11902_v17  ;;  %v11890_v40 = vld [vmem:[#allocation12 + $0x290] sm:$0xff]  ;;  %v15154_v7 = vcombine.low %v11891_v24, %v11895_v26 }
 0x900   : > { %v11779_v5 = vmul.f32 %v25444_v2, %v11736_v55  ;;  %v11778_v6 = vmul.f32 %v25449_v63, %v11735_v48  ;;  %v11894_v47 = vld [vmem:[#allocation12 + $0x2b0] sm:$0xff]  ;;  %v15155_v48 = vcombine.high %v11891_v24, %v11895_v26  ;;  %v11875_v24 = vld [vmem:[#allocation12 + $0x218] sm:$0xff] }
 0x901   : > { %v15153_v55 = vcombine.high %v11890_v40, %v11894_v47  ;;  %v15152_v22 = vcombine.low %v11890_v40, %v11894_v47  ;;  %v11879_v26 = vld [vmem:[#allocation12 + $0x238] sm:$0xff] }
 0x902   : > { %v25527_v42 = vpack.c.bf16 %v11779_v5, %v11777_v21  ;;  %v25529_v61 = vpack.c.bf16 %v11778_v6, %v11776_v34  ;;  %12823 = vmatpush2.bf16.msra.mxu1 %v15176_v16  ;;  %12936 = vmatpush2.bf16.msra.mxu0 %v15178_v8  ;;  %v11882_v8 = vld [vmem:[#allocation12 + $0x250] sm:$0xff]  ;;  %v11883_v21 = vld [vmem:[#allocation12 + $0x258] sm:$0xff] }
 0x903   : > { %12824 = vmatprep.subr.bf16.mxu1 %v15169_v10  ;;  %12937 = vmatprep.subr.bf16.mxu0 %v15171_v43  ;;  %v11886_v10 = vld [vmem:[#allocation12 + $0x270] sm:$0xff]  ;;  %v11887_v5 = vld [vmem:[#allocation12 + $0x278] sm:$0xff] }
 0x904   : > { %12648 = vmatprep.mubr.bf16.mxu1 %v25527_v42  ;;  %12761 = vmatprep.mubr.bf16.mxu0 %v25527_v42  ;;  %v15145_v17 = vcombine.high %v11882_v8, %v11886_v10 }
 0x905   : > { %v11659_v9 = vpop.xlane.xlu0 %11658  ;;  %12649 = vmatmul.mubr.bf16.gmra.mxu1 %v25529_v61  ;;  %12762 = vmatmul.mubr.bf16.gmra.mxu0 %v25529_v61 }
 0x906   : > { %v17815_v1 = vpop.eup %17814  ;;  %v11681_v16 = vmul.f32 0.00390625, %v11659_v9  ;;  %12825 = vmatpush2.bf16.msra.mxu1 %v15168_v23  ;;  %12938 = vmatpush2.bf16.msra.mxu0 %v15170_v31  ;;  %v15147_v31 = vcombine.high %v11883_v21, %v11887_v5 }
 0x907   : > { %12826 = vmatprep.subr.bf16.mxu1 %v15161_v4  ;;  %12939 = vmatprep.subr.bf16.mxu0 %v15163_v19  ;;  %v11738_v6 = vmul.f32 %v17815_v1, %v25382_v37  ;;  %v11737_v20 = vmul.f32 %v17815_v1, %v25379_v52  ;;  %v11874_v19 = vld [vmem:[#allocation12 + $0x210] sm:$0xff] }
 0x908   : > { %v11697_v43 = vadd.f32 1e-06, %v11681_v16 }
 0x909   : > { %v11662_v34 = vpop.xlane.xlu1 %11661  ;;  %v11781_v16 = vmul.f32 %v25444_v2, %v11738_v6  ;;  %v11780_v47 = vmul.f32 %v25449_v63, %v11737_v20  ;;  %v15139_v6 = vcombine.high %v11875_v24, %v11879_v26 }
 0x90a   : > { %v17817_v9 = vpop.eup %17816  ;;  %17818 = vrsqrt.f32 %v11697_v43  ;;  %v11682_v23 = vmul.f32 0.00390625, %v11662_v34  ;;  %12827 = vmatpush2.bf16.msra.mxu1 %v15160_v41  ;;  %12940 = vmatpush2.bf16.msra.mxu0 %v15162_v50  ;;  %v11878_v41 = vld [vmem:[#allocation12 + $0x230] sm:$0xff]  ;;  %v15144_v50 = vcombine.low %v11882_v8, %v11886_v10  ;;  %v15146_v43 = vcombine.low %v11883_v21, %v11887_v5 }
 0x90b   : > { %v11740_v25 = vmul.f32 %v17817_v9, %v25392_v59  ;;  %v11739_v13 = vmul.f32 %v17817_v9, %v25385_v0  ;;  %12828 = vmatprep.subr.bf16.mxu1 %v15153_v55  ;;  %12941 = vmatprep.subr.bf16.mxu0 %v15155_v48  ;;  %v15137_v34 = vcombine.high %v11874_v19, %v11878_v41 }
 0x90c   : > { %v11698_v4 = vadd.f32 1e-06, %v11682_v23  ;;  %v15136_v20 = vcombine.low %v11874_v19, %v11878_v41  ;;  %v15138_v8 = vcombine.low %v11875_v24, %v11879_v26 }
 0x90d   : > { %v11783_v40 = vmul.f32 %v25444_v2, %v11740_v25  ;;  %v11782_v1 = vmul.f32 %v25449_v63, %v11739_v13 }
 0x90e   : > { %17820 = vrsqrt.f32 %v11698_v4  ;;  %12829 = vmatpush2.bf16.msra.mxu1 %v15152_v22  ;;  %12942 = vmatpush2.bf16.msra.mxu0 %v15154_v7 }
 0x90f   : > { %v25543_v55 = vpack.c.bf16 %v11783_v40, %v11781_v16  ;;  %v25545_v48 = vpack.c.bf16 %v11782_v1, %v11780_v47  ;;  %12830 = vmatprep.subr.bf16.mxu1 %v15145_v17  ;;  %12943 = vmatprep.subr.bf16.mxu0 %v15147_v31 }
 0x911   : > { %12658 = vmatprep.mubr.bf16.mxu1 %v25543_v55  ;;  %12771 = vmatprep.mubr.bf16.mxu0 %v25543_v55 }
 0x912   : > { %12659 = vmatmul.mubr.bf16.gmra.mxu1 %v25545_v48  ;;  %12772 = vmatmul.mubr.bf16.gmra.mxu0 %v25545_v48 }
 0x913   : > { %v11665_v22 = vpop.xlane.xlu0 %11664  ;;  %12831 = vmatpush2.bf16.msra.mxu1 %v15144_v50  ;;  %12944 = vmatpush2.bf16.msra.mxu0 %v15146_v43 }
 0x914   : > { %v11683_v10 = vmul.f32 0.00390625, %v11665_v22  ;;  %12832 = vmatprep.subr.bf16.mxu1 %v15137_v34  ;;  %12945 = vmatprep.subr.bf16.mxu0 %v15139_v6 }
 0x916   : > { %v11699_v21 = vadd.f32 1e-06, %v11683_v10 }
 0x917   : > { %v17819_v5 = vpop.eup %17818  ;;  %v11668_v9 = vpop.xlane.xlu1 %11667  ;;  %12833 = vmatpush2.bf16.msra.mxu1 %v15136_v20  ;;  %12946 = vmatpush2.bf16.msra.mxu0 %v15138_v8 }
 0x918   : > { %17822 = vrsqrt.f32 %v11699_v21  ;;  %v11684_v23 = vmul.f32 0.00390625, %v11668_v9  ;;  %v11742_v17 = vmul.f32 %v17819_v5, %v25402_v60  ;;  %v11741_v25 = vmul.f32 %v17819_v5, %v25399_v32  ;;  %v17637_v9 = vld [vmem:[#allocation13 + $0x170] ss:$8 sps:$4 sm:$0xff]  }
 0x91a   : > { %v11700_v7 = vadd.f32 1e-06, %v11684_v23  ;;  %v11785_v19 = vmul.f32 %v25444_v2, %v11742_v17  ;;  %v11784_v40 = vmul.f32 %v25449_v63, %v11741_v25  ;;  %v17640_v23 = vld [vmem:[#allocation13 + $0x60] ss:$8 sps:$4 sm:$0xff]   ;;  %v17646_v17 = vld [vmem:[#allocation13 + $0x50] ss:$8 sps:$4 sm:$0xff]  }
 0x91b   : > { %v17821_v13 = vpop.eup %17820  ;;  %v17649_v25 = vld [vmem:[#allocation13 + $0x150] ss:$8 sps:$4 sm:$0xff]  }
 0x91c   : > { %17824 = vrsqrt.f32 %v11700_v7  ;;  %v11744_v31 = vmul.f32 %v17821_v13, %v25412_v51  ;;  %v11743_v4 = vmul.f32 %v17821_v13, %v25405_v35  ;;  %v17643_v7 = vld [vmem:[#allocation13 + $0x160] ss:$8 sps:$4 sm:$0xff]   ;;  %v17654_v13 = vld [vmem:[#allocation13 + $0x44] ss:$8 sps:$4 sm:$0xff]  }
 0x91e   : > { %v11787_v16 = vmul.f32 %v25444_v2, %v11744_v31  ;;  %v11786_v47 = vmul.f32 %v25449_v63, %v11743_v4  ;;  %v17657_v31 = vld [vmem:[#allocation13 + $0x144] ss:$8 sps:$4 sm:$0xff]   ;;  %v17652_v4 = vld [vmem:[#allocation13 + $0x40] ss:$8 sps:$4 sm:$0xff]  }
 0x920   : > { %v25559_v1 = vpack.c.bf16 %v11787_v16, %v11785_v19  ;;  %v25561_v41 = vpack.c.bf16 %v11786_v47, %v11784_v40  ;;  %v17663_v19 = vld [vmem:[#allocation13 + $0x134] ss:$8 sps:$4 sm:$0xff]   ;;  %v17658_v16 = vld [vmem:[#allocation13 + $0x30] ss:$8 sps:$4 sm:$0xff]   ;;  %v17666_v47 = vld [vmem:[#allocation13 + $0x24] ss:$8 sps:$4 sm:$0xff]  }
 0x921   : > { %v17661_v40 = vld [vmem:[#allocation13 + $0x130] ss:$8 sps:$4 sm:$0xff]  }
 0x922   : > { %12668 = vmatprep.mubr.bf16.mxu1 %v25559_v1  ;;  %12781 = vmatprep.mubr.bf16.mxu0 %v25559_v1 }
 0x923   : > { %12669 = vmatmul.mubr.bf16.gmra.mxu1 %v25561_v41  ;;  %12782 = vmatmul.mubr.bf16.gmra.mxu0 %v25561_v41 }
 0x925   : > { %v17823_v24 = vpop.eup %17822 }
 0x926   : > { %v11746_v26 = vmul.f32 %v17823_v24, %v25422_v56  ;;  %v11745_v50 = vmul.f32 %v17823_v24, %v25419_v38  ;;  %v17664_v24 = vld [vmem:[#allocation13 + $0x20] ss:$8 sps:$4 sm:$0xff]  }
 0x928   : > { %v11789_v22 = vmul.f32 %v25444_v2, %v11746_v26  ;;  %v11788_v8 = vmul.f32 %v25449_v63, %v11745_v50  ;;  %v17669_v26 = vld [vmem:[#allocation13 + $0x124] ss:$8 sps:$4 sm:$0xff]   ;;  %v17675_v50 = vld [vmem:[#allocation13 + $0x114] ss:$8 sps:$4 sm:$0xff]  }
 0x929   : > { %v17825_v43 = vpop.eup %17824 }
 0x92a   : > { %v11748_v34 = vmul.f32 %v17825_v43, %v25432_v46  ;;  %v11747_v6 = vmul.f32 %v17825_v43, %v25425_v62  ;;  %v17670_v43 = vld [vmem:[#allocation13 + $0x10] ss:$8 sps:$4 sm:$0xff]  }
 0x92c   : > { %v11791_v20 = vmul.f32 %v25444_v2, %v11748_v34  ;;  %v11790_v10 = vmul.f32 %v25449_v63, %v11747_v6  ;;  %v17636_v2 = vld [vmem:[#allocation13 + $0x74] ss:$8 sps:$4 sm:$0xff]   ;;  %v17673_v34 = vld [vmem:[#allocation13 + $0x110] ss:$8 sps:$4 sm:$0xff]   ;;  %v17678_v6 = vld [vmem:[#allocation13 + $0x4] ss:$8 sps:$4 sm:$0xff]  }
 0x92d   : > { %v25593_v63 = vld [vmem:[#allocation13 + $0x174] ss:$8 sps:$4 sm:$0xff]   ;;  %13892 = vmatprep.subr.bf16.mxu1 %v17636_v2  ;;  %v17685_v2 = vld [vmem:[#allocation13 + $0x1f0] ss:$8 sps:$4 sm:$0xff]  }
 0x92e   : > { %v25575_v21 = vpack.c.bf16 %v11791_v20, %v11789_v22  ;;  %v25577_v5 = vpack.c.bf16 %v11790_v10, %v11788_v8  ;;  %14005 = vmatprep.subr.bf16.mxu0 %v25593_v63  ;;  %v17681_v22 = vld [vmem:[#allocation13 + $0x104] ss:$8 sps:$4 sm:$0xff]   ;;  %v17684_v20 = vld [vmem:[#allocation13 + $0xf4] ss:$8 sps:$4 sm:$0xff]   ;;  %v17682_v10 = vld [vmem:[#allocation13 + $0xf0] ss:$8 sps:$4 sm:$0xff]  }
 0x92f   : > { %v17687_v8 = vld [vmem:[#allocation13 + $0x1f4] ss:$8 sps:$4 sm:$0xff]  }
 0x930   : > { %12678 = vmatprep.mubr.bf16.mxu1 %v25575_v21  ;;  %12791 = vmatprep.mubr.bf16.mxu0 %v25575_v21 }
 0x931   : > { %12679 = vmatmul.mubr.bf16.gmra.mxu1 %v25577_v5  ;;  %12792 = vmatmul.mubr.bf16.gmra.mxu0 %v25577_v5 }
 0x932   : > { %12834 = vmatprep.mubr.bf16.mxu1 %v25457_v27  ;;  %12947 = vmatprep.mubr.bf16.mxu0 %v25457_v27  ;;  %v17634_v27 = vld [vmem:[#allocation13 + $0x70] ss:$8 sps:$4 sm:$0xff]  }
 0x939   : > { %12835 = vmatmul.mubr.bf16.vlgmr.msra.gmra.mxu1 %v25459_v53  ;;  %12948 = vmatmul.mubr.bf16.vlgmr.msra.gmra.mxu0 %v25459_v53  ;;  %v17642_v53 = vld [vmem:[#allocation13 + $0x64] ss:$8 sps:$4 sm:$0xff]  }
 0x93a   : > { %12844 = vmatprep.mubr.bf16.mxu1 %v25479_v3  ;;  %12957 = vmatprep.mubr.bf16.mxu0 %v25479_v3  ;;  %v17645_v3 = vld [vmem:[#allocation13 + $0x164] ss:$8 sps:$4 sm:$0xff]  }
 0x93b   : > { %13893 = vmatpush1.bf16.msra.mxu1 %v17634_v27  ;;  %14006 = vmatpush1.bf16.msra.mxu0 %v17637_v9  ;;  %v17690_v27 = vld [vmem:[#allocation13 + $0xe4] ss:$8 sps:$4 sm:$0xff]   ;;  %v17691_v9 = vld [vmem:[#allocation13 + $0x1e0] ss:$8 sps:$4 sm:$0xff]  }
 0x93c   : > { %13894 = vmatprep.subr.bf16.mxu1 %v17642_v53  ;;  %14007 = vmatprep.subr.bf16.mxu0 %v17645_v3  ;;  %v17696_v53 = vld [vmem:[#allocation13 + $0xd4] ss:$8 sps:$4 sm:$0xff]  }
 0x93d   : > { %v17699_v3 = vld [vmem:[#allocation13 + $0x1d4] ss:$8 sps:$4 sm:$0xff]  }
 0x93f   : > { %13895 = vmatpush1.bf16.msra.mxu1 %v17640_v23  ;;  %14008 = vmatpush1.bf16.msra.mxu0 %v17643_v7  ;;  %v17694_v23 = vld [vmem:[#allocation13 + $0xd0] ss:$8 sps:$4 sm:$0xff]  }
 0x940   : > { %v17697_v7 = vld [vmem:[#allocation13 + $0x1d0] ss:$8 sps:$4 sm:$0xff]  }
 0x941   : > { %12845 = vmatmul.mubr.bf16.gmra.mxu1 %v25481_v39  ;;  %12958 = vmatmul.mubr.bf16.gmra.mxu0 %v25481_v39  ;;  %v17648_v39 = vld [vmem:[#allocation13 + $0x54] ss:$8 sps:$4 sm:$0xff]  }
 0x942   : > { %12854 = vmatprep.mubr.bf16.mxu1 %v25495_v15  ;;  %12967 = vmatprep.mubr.bf16.mxu0 %v25495_v15  ;;  %v17651_v15 = vld [vmem:[#allocation13 + $0x154] ss:$8 sps:$4 sm:$0xff]  }
 0x943   : > { %13896 = vmatprep.subr.bf16.mxu1 %v17648_v39  ;;  %14009 = vmatprep.subr.bf16.mxu0 %v17651_v15  ;;  %v17700_v39 = vld [vmem:[#allocation13 + $0xc0] ss:$8 sps:$4 sm:$0xff]  }
 0x944   : > { %13897 = vmatpush1.bf16.msra.mxu1 %v17646_v17  ;;  %14010 = vmatpush1.bf16.msra.mxu0 %v17649_v25  ;;  %v17703_v15 = vld [vmem:[#allocation13 + $0x1c0] ss:$8 sps:$4 sm:$0xff]   ;;  %v17711_v17 = vld [vmem:[#allocation13 + $0x1b4] ss:$8 sps:$4 sm:$0xff]   ;;  %v17706_v25 = vld [vmem:[#allocation13 + $0xb0] ss:$8 sps:$4 sm:$0xff]  }
 0x945   : > { %13898 = vmatprep.subr.bf16.mxu1 %v17654_v13  ;;  %14011 = vmatprep.subr.bf16.mxu0 %v17657_v31  ;;  %v17709_v13 = vld [vmem:[#allocation13 + $0x1b0] ss:$8 sps:$4 sm:$0xff]   ;;  %v17714_v31 = vld [vmem:[#allocation13 + $0xa4] ss:$8 sps:$4 sm:$0xff]  }
 0x948   : > { %13899 = vmatpush1.bf16.msra.mxu1 %v17652_v4  ;;  %v17717_v4 = vld [vmem:[#allocation13 + $0x1a4] ss:$8 sps:$4 sm:$0xff]  }
 0x949   : > { %12855 = vmatmul.mubr.bf16.gmra.mxu1 %v25497_v45  ;;  %12968 = vmatmul.mubr.bf16.gmra.mxu0 %v25497_v45  ;;  %v17655_v45 = vld [vmem:[#allocation13 + $0x140] ss:$8 sps:$4 sm:$0xff]  }
 0x94a   : > { %12864 = vmatprep.mubr.bf16.mxu1 %v25511_v29  ;;  %12977 = vmatprep.mubr.bf16.mxu0 %v25511_v29  ;;  %v17660_v29 = vld [vmem:[#allocation13 + $0x34] ss:$8 sps:$4 sm:$0xff]  }
 0x94b   : > { %14012 = vmatpush1.bf16.msra.mxu0 %v17655_v45  ;;  %13900 = vmatprep.subr.bf16.mxu1 %v17660_v29  ;;  %v17712_v45 = vld [vmem:[#allocation13 + $0xa0] ss:$8 sps:$4 sm:$0xff]  }
 0x94c   : > { %14013 = vmatprep.subr.bf16.mxu0 %v17663_v19  ;;  %13901 = vmatpush1.bf16.msra.mxu1 %v17658_v16  ;;  %v17715_v29 = vld [vmem:[#allocation13 + $0x1a0] ss:$8 sps:$4 sm:$0xff]   ;;  %v17720_v19 = vld [vmem:[#allocation13 + $0x94] ss:$8 sps:$4 sm:$0xff]  }
 0x94d   : > { %13902 = vmatprep.subr.bf16.mxu1 %v17666_v47  ;;  %v17723_v16 = vld [vmem:[#allocation13 + $0x194] ss:$8 sps:$4 sm:$0xff]   ;;  %v17721_v47 = vld [vmem:[#allocation13 + $0x190] ss:$8 sps:$4 sm:$0xff]  }
 0x94f   : > { %14014 = vmatpush1.bf16.msra.mxu0 %v17661_v40  ;;  %v17718_v40 = vld [vmem:[#allocation13 + $0x90] ss:$8 sps:$4 sm:$0xff]  }
 0x950   : > { %14015 = vmatprep.subr.bf16.mxu0 %v17669_v26  ;;  %13903 = vmatpush1.bf16.msra.mxu1 %v17664_v24  ;;  %v17726_v24 = vld [vmem:[#allocation13 + $0x84] ss:$8 sps:$4 sm:$0xff]  }
 0x951   : > { %12865 = vmatmul.mubr.bf16.gmra.mxu1 %v25513_v36  ;;  %12978 = vmatmul.mubr.bf16.gmra.mxu0 %v25513_v36  ;;  %v17667_v36 = vld [vmem:[#allocation13 + $0x120] ss:$8 sps:$4 sm:$0xff]   ;;  %v17729_v26 = vld [vmem:[#allocation13 + $0x184] ss:$8 sps:$4 sm:$0xff]  }
 0x952   : > { %12874 = vmatprep.mubr.bf16.mxu1 %v25527_v42  ;;  %12987 = vmatprep.mubr.bf16.mxu0 %v25527_v42  ;;  %v17672_v42 = vld [vmem:[#allocation13 + $0x14] ss:$8 sps:$4 sm:$0xff]  }
 0x953   : > { %14016 = vmatpush1.bf16.msra.mxu0 %v17667_v36  ;;  %13904 = vmatprep.subr.bf16.mxu1 %v17672_v42  ;;  %v17724_v36 = vld [vmem:[#allocation13 + $0x80] ss:$8 sps:$4 sm:$0xff]  }
 0x954   : > { %14017 = vmatprep.subr.bf16.mxu0 %v17675_v50  ;;  %13905 = vmatpush1.bf16.msra.mxu1 %v17670_v43  ;;  %v17727_v42 = vld [vmem:[#allocation13 + $0x180] ss:$8 sps:$4 sm:$0xff]  }
 0x955   : > { %13906 = vmatprep.subr.bf16.mxu1 %v17678_v6 }
 0x957   : > { %14018 = vmatpush1.bf16.msra.mxu0 %v17673_v34 }
 0x958   : > { %14019 = vmatprep.subr.bf16.mxu0 %v17681_v22 }
 0x959   : > { %12875 = vmatmul.mubr.bf16.gmra.mxu1 %v25529_v61  ;;  %12988 = vmatmul.mubr.bf16.gmra.mxu0 %v25529_v61  ;;  %v17676_v61 = vld [vmem:[#allocation13] ss:$8 sps:$4 sm:$0xff]  }
 0x95a   : > { %12884 = vmatprep.mubr.bf16.mxu1 %v25543_v55  ;;  %12997 = vmatprep.mubr.bf16.mxu0 %v25543_v55  ;;  %v17679_v55 = vld [vmem:[#allocation13 + $0x100] ss:$8 sps:$4 sm:$0xff]  }
 0x95b   : > { %13907 = vmatpush1.bf16.msra.mxu1 %v17676_v61  ;;  %14020 = vmatpush1.bf16.msra.mxu0 %v17679_v55 }
 0x95c   : > { %13908 = vmatprep.subr.bf16.mxu1 %v17684_v20  ;;  %14021 = vmatprep.subr.bf16.mxu0 %v17687_v8 }
 0x95f   : > { %13909 = vmatpush2.bf16.msra.mxu1 %v17682_v10  ;;  %14022 = vmatpush2.bf16.msra.mxu0 %v17685_v2 }
 0x960   : > { %13910 = vmatprep.subr.bf16.mxu1 %v17690_v27 }
 0x961   : > { %12885 = vmatmul.mubr.bf16.gmra.mxu1 %v25545_v48  ;;  %12998 = vmatmul.mubr.bf16.gmra.mxu0 %v25545_v48  ;;  %v17688_v48 = vld [vmem:[#allocation13 + $0xe0] ss:$8 sps:$4 sm:$0xff]  }
 0x962   : > { %12894 = vmatprep.mubr.bf16.mxu1 %v25559_v1  ;;  %13007 = vmatprep.mubr.bf16.mxu0 %v25559_v1  ;;  %v17693_v1 = vld [vmem:[#allocation13 + $0x1e4] ss:$8 sps:$4 sm:$0xff]  }
 0x963   : > { %13911 = vmatpush2.bf16.msra.mxu1 %v17688_v48  ;;  %14023 = vmatprep.subr.bf16.mxu0 %v17693_v1 }
 0x964   : > { %14024 = vmatpush2.bf16.msra.mxu0 %v17691_v9  ;;  %13912 = vmatprep.subr.bf16.mxu1 %v17696_v53 }
 0x965   : > { %14025 = vmatprep.subr.bf16.mxu0 %v17699_v3 }
 0x967   : > { %13913 = vmatpush2.bf16.msra.mxu1 %v17694_v23 }
 0x968   : > { %14026 = vmatpush2.bf16.msra.mxu0 %v17697_v7 }
 0x969   : > { %12895 = vmatmul.mubr.bf16.gmra.mxu1 %v25561_v41  ;;  %13008 = vmatmul.mubr.bf16.gmra.mxu0 %v25561_v41  ;;  %v17702_v41 = vld [vmem:[#allocation13 + $0xc4] ss:$8 sps:$4 sm:$0xff]  }
 0x96a   : > { %12904 = vmatprep.mubr.bf16.mxu1 %v25575_v21  ;;  %13017 = vmatprep.mubr.bf16.mxu0 %v25575_v21  ;;  %v17705_v21 = vld [vmem:[#allocation13 + $0x1c4] ss:$8 sps:$4 sm:$0xff]  }
 0x96b   : > { %13914 = vmatprep.subr.bf16.mxu1 %v17702_v41  ;;  %14027 = vmatprep.subr.bf16.mxu0 %v17705_v21 }
 0x96c   : > { %13915 = vmatpush2.bf16.msra.mxu1 %v17700_v39  ;;  %14028 = vmatpush2.bf16.msra.mxu0 %v17703_v15 }
 0x96d   : > { %14029 = vmatprep.subr.bf16.mxu0 %v17711_v17 }
 0x970   : > { %14030 = vmatpush2.bf16.msra.mxu0 %v17709_v13 }
 0x971   : > { %12905 = vmatmul.mubr.bf16.gmra.mxu1 %v25577_v5  ;;  %13018 = vmatmul.mubr.bf16.gmra.mxu0 %v25577_v5  ;;  %v17708_v5 = vld [vmem:[#allocation13 + $0xb4] ss:$8 sps:$4 sm:$0xff]  }
 0x972   : > { %13916 = vmatprep.subr.bf16.mxu1 %v17708_v5  ;;  %14031 = vmatprep.subr.bf16.mxu0 %v17717_v4 }
 0x973   : > { %13917 = vmatpush2.bf16.msra.mxu1 %v17706_v25 }
 0x974   : > { %13918 = vmatprep.subr.bf16.mxu1 %v17714_v31  ;;  %14032 = vmatpush2.bf16.msra.mxu0 %v17715_v29 }
 0x975   : > { %14033 = vmatprep.subr.bf16.mxu0 %v17723_v16 }
 0x977   : > { %13919 = vmatpush2.bf16.msra.mxu1 %v17712_v45 }
 0x978   : > { %13920 = vmatprep.subr.bf16.mxu1 %v17720_v19  ;;  %14034 = vmatpush2.bf16.msra.mxu0 %v17721_v47 }
 0x979   : > { %14035 = vmatprep.subr.bf16.mxu0 %v17729_v26 }
 0x97b   : > { %13921 = vmatpush2.bf16.msra.mxu1 %v17718_v40 }
 0x97c   : > { %13922 = vmatprep.subr.bf16.mxu1 %v17726_v24  ;;  %14036 = vmatpush2.bf16.msra.mxu0 %v17727_v42 }
 0x97f   : > { %13923 = vmatpush2.bf16.msra.mxu1 %v17724_v36 }
 0x980   : > { %15753 = vmatprep.subr.bf16.mxu1 %v25593_v63 }
 0x999   : > { %v25619_v50 = vpop.f32.mrf.mxu1  ;;  %v25621_v43 = vpop.f32.mrf.mxu0 }
 0x99a   : > { %v13028_v34 = vsub.f32 0.0, %v25619_v50  ;;  %v13030_v6 = vsub.f32 0.0, %v25621_v43 }
 0x99b   : > { %v25625_v22 = vpop.f32.mrf.mxu1  ;;  %v25627_v61 = vpop.f32.mrf.mxu0 }
 0x99c   : > { %v13092_v55 = vmul.f32 1.442695, %v13028_v34  ;;  %v13096_v20 = vmul.f32 1.442695, %v13030_v6  ;;  %v13029_v8 = vsub.f32 0.0, %v25625_v22  ;;  %v13031_v10 = vsub.f32 0.0, %v25627_v61 }
 0x99d   : > { %v25631_v2 = vpop.f32.mrf.mxu1  ;;  %v25633_v63 = vpop.f32.mrf.mxu0 }
 0x99e   : > { %17826 = vpow2.f32 %v13092_v55  ;;  %v13094_v27 = vmul.f32 1.442695, %v13029_v8  ;;  %v13098_v48 = vmul.f32 1.442695, %v13031_v10  ;;  %v13032_v1 = vsub.f32 0.0, %v25631_v2 }
 0x99f   : > { %17828 = vpow2.f32 %v13096_v20  ;;  %v13034_v9 = vsub.f32 0.0, %v25633_v63  ;;  %v25637_v53 = vpop.f32.mrf.mxu1  ;;  %v25639_v3 = vpop.f32.mrf.mxu0 }
 0x9a0   : > { %17830 = vpow2.f32 %v13094_v27  ;;  %v13100_v23 = vmul.f32 1.442695, %v13032_v1  ;;  %v13033_v7 = vsub.f32 0.0, %v25637_v53  ;;  %v13035_v41 = vsub.f32 0.0, %v25639_v3 }
 0x9a1   : > { %17832 = vpow2.f32 %v13098_v48  ;;  %v13104_v21 = vmul.f32 1.442695, %v13034_v9  ;;  %v25643_v39 = vpop.f32.mrf.mxu1  ;;  %v25645_v15 = vpop.f32.mrf.mxu0 }
 0x9a2   : > { %17834 = vpow2.f32 %v13100_v23  ;;  %v13102_v5 = vmul.f32 1.442695, %v13033_v7  ;;  %v13106_v17 = vmul.f32 1.442695, %v13035_v41  ;;  %v13036_v25 = vsub.f32 0.0, %v25643_v39 }
 0x9a3   : > { %17836 = vpow2.f32 %v13104_v21  ;;  %v13038_v13 = vsub.f32 0.0, %v25645_v15  ;;  %v25649_v31 = vpop.f32.mrf.mxu1  ;;  %v25651_v4 = vpop.f32.mrf.mxu0 }
 0x9a4   : > { %17838 = vpow2.f32 %v13102_v5  ;;  %v13108_v45 = vmul.f32 1.442695, %v13036_v25  ;;  %v13037_v29 = vsub.f32 0.0, %v25649_v31  ;;  %v13039_v19 = vsub.f32 0.0, %v25651_v4 }
 0x9a5   : > { %17840 = vpow2.f32 %v13106_v17  ;;  %v13112_v16 = vmul.f32 1.442695, %v13038_v13  ;;  %v25655_v40 = vpop.f32.mrf.mxu1  ;;  %v25657_v47 = vpop.f32.mrf.mxu0 }
 0x9a6   : > { %17842 = vpow2.f32 %v13108_v45  ;;  %v13110_v24 = vmul.f32 1.442695, %v13037_v29  ;;  %v13114_v26 = vmul.f32 1.442695, %v13039_v19  ;;  %v13040_v36 = vsub.f32 0.0, %v25655_v40 }
 0x9a7   : > { %17844 = vpow2.f32 %v13112_v16  ;;  %v13042_v42 = vsub.f32 0.0, %v25657_v47  ;;  %v25661_v34 = vpop.f32.mrf.mxu1  ;;  %v25663_v6 = vpop.f32.mrf.mxu0 }
 0x9a8   : > { %17846 = vpow2.f32 %v13110_v24  ;;  %v13116_v55 = vmul.f32 1.442695, %v13040_v36  ;;  %v13041_v20 = vsub.f32 0.0, %v25661_v34  ;;  %v13043_v8 = vsub.f32 0.0, %v25663_v6 }
 0x9a9   : > { %17848 = vpow2.f32 %v13114_v26  ;;  %v25667_v10 = vpop.f32.mrf.mxu1  ;;  %v25669_v27 = vpop.f32.mrf.mxu0  ;;  %v13120_v48 = vmul.f32 1.442695, %v13042_v42 }
 0x9aa   : > { %17850 = vpow2.f32 %v13116_v55  ;;  %v13118_v9 = vmul.f32 1.442695, %v13041_v20  ;;  %v13122_v21 = vmul.f32 1.442695, %v13043_v8  ;;  %v13044_v56 = vsub.f32 0.0, %v25667_v10 }
 0x9ab   : > { %v17827_v1 = vpop.eup %17826  ;;  %v25671_v23 = vpop.f32.mrf.mxu1  ;;  %17852 = vpow2.f32 %v13120_v48 }
 0x9ac   : > { %v25673_v7 = vpop.f32.mrf.mxu0  ;;  %v17829_v41 = vpop.eup %17828  ;;  %v13220_v17 = vadd.f32 1.0, %v17827_v1  ;;  %17854 = vpow2.f32 %v13118_v9 }
 0x9ad   : > { %27962 = vst [vmem:[#allocation76_spill] sm:$0xff] %v25673_v7  ;;  %v17831_v5 = vpop.eup %17830  ;;  %v25675_v25 = vpop.f32.mrf.mxu1  ;;  %v13222_v29 = vadd.f32 1.0, %v17829_v41  ;;  %17856 = vpow2.f32 %v13122_v21 }
 0x9ae   : > { %27963 = vst [vmem:[#allocation77_spill] sm:$0xff] %v25675_v25  ;;  %v25677_v13 = vpop.f32.mrf.mxu0  ;;  %v17833_v45 = vpop.eup %17832  ;;  %v13221_v16 = vadd.f32 1.0, %v17831_v5  ;;  %17858 = vrcp.f32 %v13220_v17 }
 0x9af   : > { %27964 = vst [vmem:[#allocation78_spill] sm:$0xff] %v25677_v13  ;;  %v17835_v19 = vpop.eup %17834  ;;  %v13223_v26 = vadd.f32 1.0, %v17833_v45  ;;  %v25679_v55 = vpop.f32.mrf.mxu1  ;;  %17860 = vrcp.f32 %v13222_v29 }
 0x9b0   : > { %v17837_v24 = vpop.eup %17836  ;;  %v13224_v42 = vadd.f32 1.0, %v17835_v19  ;;  %27965 = vst [vmem:[#allocation79_spill] sm:$0xff] %v25679_v55  ;;  %v25681_v20 = vpop.f32.mrf.mxu0  ;;  %17862 = vrcp.f32 %v13221_v16  ;;  %v13046_v16 = vsub.f32 0.0, %v25669_v27 }
 0x9b1   : > { %v17839_v36 = vpop.eup %17838  ;;  %27966 = vst [vmem:[#allocation80_spill] sm:$0xff] %v25681_v20  ;;  %v13226_v1 = vadd.f32 1.0, %v17837_v24  ;;  %17864 = vrcp.f32 %v13223_v26  ;;  %v25683_v21 = vpop.f32.mrf.mxu1  ;;  %v13051_v60 = vsub.f32 0.0, %v25681_v20 }
 0x9b2   : > { %v17841_v8 = vpop.eup %17840  ;;  %v13225_v41 = vadd.f32 1.0, %v17839_v36  ;;  %17866 = vrcp.f32 %v13224_v42  ;;  %27967 = vst [vmem:[#allocation81_spill] sm:$0xff] %v25683_v21  ;;  %v25685_v17 = vpop.f32.mrf.mxu0  ;;  %v13045_v36 = vsub.f32 0.0, %v25671_v23  ;;  %v13047_v42 = vsub.f32 0.0, %v25673_v7 }
 0x9b3   : > { %v17843_v46 = vpop.eup %17842  ;;  %v13227_v5 = vadd.f32 1.0, %v17841_v8  ;;  %27968 = vst [vmem:[#allocation85_spill] sm:$0xff] %v25685_v17  ;;  %17868 = vrcp.f32 %v13226_v1  ;;  %v25691_v8 = vpop.f32.mrf.mxu1  ;;  %v13124_v1 = vmul.f32 1.442695, %v13044_v56  ;;  %v13138_v52 = vmul.f32 1.442695, %v13051_v60 }
 0x9b4   : > { %v17845_v48 = vpop.eup %17844  ;;  %v13228_v45 = vadd.f32 1.0, %v17843_v46  ;;  %17870 = vrcp.f32 %v13225_v41  ;;  %27969 = vst [vmem:[#allocation90_spill] sm:$0xff] %v25691_v8  ;;  %v25693_v38 = vpop.f32.mrf.mxu0  ;;  %v13126_v51 = vmul.f32 1.442695, %v13045_v36  ;;  %v13130_v35 = vmul.f32 1.442695, %v13047_v42 }
 0x9b5   : > { %v17847_v9 = vpop.eup %17846  ;;  %v13230_v62 = vadd.f32 1.0, %v17845_v48  ;;  %17872 = vrcp.f32 %v13227_v5  ;;  %27970 = vst [vmem:[#allocation91_spill] sm:$0xff] %v25693_v38  ;;  %v13048_v48 = vsub.f32 0.0, %v25675_v25  ;;  %v13050_v5 = vsub.f32 0.0, %v25677_v13  ;;  %v25699_v32 = vpop.f32.mrf.mxu1 }
 0x9b6   : > { %v17849_v19 = vpop.eup %17848  ;;  %v13229_v24 = vadd.f32 1.0, %v17847_v9  ;;  %17874 = vrcp.f32 %v13228_v45  ;;  %v13128_v9 = vmul.f32 1.442695, %v13046_v16  ;;  %v13049_v45 = vsub.f32 0.0, %v25679_v55  ;;  %27971 = vst [vmem:[#allocation111_spill] sm:$0xff] %v25699_v32  ;;  %v25701_v56 = vpop.f32.mrf.mxu0 }
 0x9b7   : > { %v17851_v29 = vpop.eup %17850  ;;  %v13231_v26 = vadd.f32 1.0, %v17849_v19  ;;  %17876 = vrcp.f32 %v13230_v62  ;;  %27972 = vst [vmem:[#allocation112_spill] sm:$0xff] %v25701_v56  ;;  %v13052_v16 = vsub.f32 0.0, %v25683_v21  ;;  %v13054_v36 = vsub.f32 0.0, %v25685_v17 }
 0x9b8   : > { %v13232_v46 = vadd.f32 1.0, %v17851_v29  ;;  %v17853_v41 = vpop.eup %17852  ;;  %17878 = vrcp.f32 %v13229_v24  ;;  %v13132_v24 = vmul.f32 1.442695, %v13048_v48  ;;  %v13134_v42 = vmul.f32 1.442695, %v13049_v45  ;;  %v25715_v48 = vpop.f32.mrf.mxu1 }
 0x9b9   : > { %v17855_v19 = vpop.eup %17854  ;;  %17880 = vrcp.f32 %v13231_v26  ;;  %v13136_v26 = vmul.f32 1.442695, %v13050_v5  ;;  %v13053_v0 = vsub.f32 0.0, %v25691_v8  ;;  %27973 = vst [vmem:[#allocation114_spill] sm:$0xff] %v25715_v48  ;;  %v25717_v49 = vpop.f32.mrf.mxu0  ;;  %v13140_v5 = vmul.f32 1.442695, %v13052_v16 }
 0x9ba   : > { %v17857_v29 = vpop.eup %17856  ;;  %17882 = vrcp.f32 %v13232_v46  ;;  %27974 = vst [vmem:[#allocation116_spill] sm:$0xff] %v25717_v49  ;;  %v13056_v18 = vsub.f32 0.0, %v25699_v32  ;;  %v13144_v45 = vmul.f32 1.442695, %v13054_v36  ;;  %v13058_v58 = vsub.f32 0.0, %v25701_v56 }
 0x9bb   : > { %v25703_v62 = vpop.eup %17858  ;;  %17884 = vpow2.f32 %v13124_v1  ;;  %v13055_v1 = vsub.f32 0.0, %v25693_v38  ;;  %v13142_v60 = vmul.f32 1.442695, %v13053_v0  ;;  %v13234_v36 = vadd.f32 1.0, %v17853_v41 }
 0x9bc   : > { %v25706_v59 = vpop.eup %17860  ;;  %17886 = vpow2.f32 %v13128_v9  ;;  %v13148_v16 = vmul.f32 1.442695, %v13056_v18  ;;  %v13057_v0 = vsub.f32 0.0, %v25715_v48  ;;  %v13233_v30 = vadd.f32 1.0, %v17855_v19 }
 0x9bd   : > { %v25709_v46 = vpop.eup %17862  ;;  %17888 = vpow2.f32 %v13126_v51  ;;  %v13146_v44 = vmul.f32 1.442695, %v13055_v1  ;;  %v13059_v54 = vsub.f32 0.0, %v25717_v49  ;;  %v13235_v18 = vadd.f32 1.0, %v17857_v29 }
 0x9be   : > { %v25712_v37 = vpop.eup %17864  ;;  %17890 = vpow2.f32 %v13130_v35  ;;  %v13152_v41 = vmul.f32 1.442695, %v13058_v58  ;;  %v13150_v12 = vmul.f32 1.442695, %v13057_v0 }
 0x9bf   : > { %v25719_v9 = vpop.eup %17866  ;;  %17892 = vpow2.f32 %v13132_v24  ;;  %v13154_v19 = vmul.f32 1.442695, %v13059_v54 }
 0x9c0   : > { %v25722_v51 = vpop.eup %17868  ;;  %17894 = vpow2.f32 %v13136_v26 }
 0x9c1   : > { %v25724_v28 = vpop.eup %17870  ;;  %17896 = vpow2.f32 %v13134_v42 }
 0x9c2   : > { %v25726_v35 = vpop.eup %17872  ;;  %17898 = vpow2.f32 %v13138_v52 }
 0x9c3   : > { %v25732_v24 = vpop.eup %17874  ;;  %17900 = vpow2.f32 %v13140_v5 }
 0x9c4   : > { %v25735_v26 = vpop.eup %17876  ;;  %17902 = vpow2.f32 %v13144_v45 }
 0x9c5   : > { %v25728_v33 = vpop.f32.mrf.mxu1  ;;  %v25730_v14 = vpop.f32.mrf.mxu0  ;;  %17904 = vpow2.f32 %v13142_v60 }
 0x9c6   : > { %27975 = vst [vmem:[#allocation117_spill] sm:$0xff] %v25728_v33  ;;  %27976 = vst [vmem:[#allocation118_spill] sm:$0xff] %v25730_v14  ;;  %v25742_v1 = vpop.eup %17878  ;;  %17906 = vpow2.f32 %v13146_v44 }
 0x9c7   : > { %v25738_v42 = vpop.f32.mrf.mxu1  ;;  %v25740_v52 = vpop.f32.mrf.mxu0  ;;  %17908 = vpow2.f32 %v13148_v16 }
 0x9c8   : > { %27977 = vst [vmem:[#allocation119_spill] sm:$0xff] %v25738_v42  ;;  %27978 = vst [vmem:[#allocation122_spill] sm:$0xff] %v25740_v52  ;;  %v25745_v5 = vpop.eup %17880  ;;  %17910 = vrcp.f32 %v13234_v36 }
 0x9c9   : > { %v25747_v11 = vpop.eup %17882  ;;  %v25749_v57 = vpop.f32.mrf.mxu1  ;;  %17912 = vrcp.f32 %v13233_v30 }
 0x9ca   : > { %v17885_v45 = vpop.eup %17884  ;;  %27979 = vst [vmem:[#allocation123_spill] sm:$0xff] %v25749_v57  ;;  %v25751_v48 = vpop.f32.mrf.mxu0  ;;  %17914 = vrcp.f32 %v13235_v18 }
 0x9cb   : > { %27980 = vst [vmem:[#allocation124_spill] sm:$0xff] %v25751_v48  ;;  %v17887_v38 = vpop.eup %17886  ;;  %v13236_v49 = vadd.f32 1.0, %v17885_v45  ;;  %17916 = vpow2.f32 %v13152_v41  ;;  %v25753_v58 = vpop.f32.mrf.mxu1 }
 0x9cc   : > { %v17889_v60 = vpop.eup %17888  ;;  %v13238_v29 = vadd.f32 1.0, %v17887_v38  ;;  %17918 = vpow2.f32 %v13150_v12  ;;  %27981 = vst [vmem:[#allocation125_spill] sm:$0xff] %v25753_v58  ;;  %v25755_v16 = vpop.f32.mrf.mxu0 }
 0x9cd   : > { %v17891_v8 = vpop.eup %17890  ;;  %v13237_v56 = vadd.f32 1.0, %v17889_v60  ;;  %27982 = vst [vmem:[#allocation128_spill] sm:$0xff] %v25755_v16  ;;  %17920 = vpow2.f32 %v13154_v19 }
 0x9ce   : > { %v17893_v44 = vpop.eup %17892  ;;  %v13239_v0 = vadd.f32 1.0, %v17891_v8  ;;  %17922 = vrcp.f32 %v13236_v49 }
 0x9cf   : > { %v17895_v36 = vpop.eup %17894  ;;  %v13240_v30 = vadd.f32 1.0, %v17893_v44  ;;  %17924 = vrcp.f32 %v13238_v29  ;;  %v13060_v44 = vsub.f32 0.0, %v25728_v33 }
 0x9d0   : > { %v17897_v32 = vpop.eup %17896  ;;  %v13242_v18 = vadd.f32 1.0, %v17895_v36  ;;  %17926 = vrcp.f32 %v13237_v56 }
 0x9d1   : > { %v17899_v54 = vpop.eup %17898  ;;  %v13241_v38 = vadd.f32 1.0, %v17897_v32  ;;  %17928 = vrcp.f32 %v13239_v0  ;;  %v13062_v32 = vsub.f32 0.0, %v25730_v14 }
 0x9d2   : > { %v17901_v45 = vpop.eup %17900  ;;  %v25757_v41 = vpop.f32.mrf.mxu1  ;;  %v13243_v17 = vadd.f32 1.0, %v17899_v54  ;;  %17930 = vrcp.f32 %v13240_v30  ;;  %v13061_v30 = vsub.f32 0.0, %v25738_v42 }
 0x9d3   : > { %27983 = vst [vmem:[#allocation129_spill] sm:$0xff] %v25757_v41  ;;  %v25759_v60 = vpop.f32.mrf.mxu0  ;;  %v17903_v12 = vpop.eup %17902  ;;  %v13244_v8 = vadd.f32 1.0, %v17901_v45  ;;  %17932 = vrcp.f32 %v13242_v18  ;;  %v13063_v45 = vsub.f32 0.0, %v25740_v52  ;;  %v13160_v33 = vmul.f32 1.442695, %v13062_v32 }
 0x9d4   : > { %27984 = vst [vmem:[#allocation130_spill] sm:$0xff] %v25759_v60  ;;  %v17905_v21 = vpop.eup %17904  ;;  %v13246_v49 = vadd.f32 1.0, %v17903_v12  ;;  %17934 = vrcp.f32 %v13241_v38  ;;  %v25763_v56 = vpop.f32.mrf.mxu1  ;;  %v13064_v12 = vsub.f32 0.0, %v25749_v57  ;;  %v13068_v32 = vsub.f32 0.0, %v25757_v41 }
 0x9d5   : > { %v17907_v19 = vpop.eup %17906  ;;  %v13245_v36 = vadd.f32 1.0, %v17905_v21  ;;  %27985 = vst [vmem:[#allocation133_spill] sm:$0xff] %v25763_v56  ;;  %v25765_v20 = vpop.f32.mrf.mxu0  ;;  %17936 = vrcp.f32 %v13243_v17  ;;  %v13156_v21 = vmul.f32 1.442695, %v13060_v44  ;;  %v13066_v17 = vsub.f32 0.0, %v25751_v48 }
 0x9d6   : > { %v17909_v29 = vpop.eup %17908  ;;  %27986 = vst [vmem:[#allocation134_spill] sm:$0xff] %v25765_v20  ;;  %v13247_v0 = vadd.f32 1.0, %v17907_v19  ;;  %17938 = vrcp.f32 %v13244_v8  ;;  %v25777_v19 = vpop.f32.mrf.mxu1  ;;  %v13158_v8 = vmul.f32 1.442695, %v13061_v30  ;;  %v13067_v44 = vsub.f32 0.0, %v25755_v16 }
 0x9d7   : > { %v25767_v55 = vpop.eup %17910  ;;  %v13248_v18 = vadd.f32 1.0, %v17909_v29  ;;  %17940 = vrcp.f32 %v13246_v49  ;;  %27987 = vst [vmem:[#allocation135_spill] sm:$0xff] %v25777_v19  ;;  %v25779_v42 = vpop.f32.mrf.mxu0  ;;  %v13065_v29 = vsub.f32 0.0, %v25753_v58  ;;  %v13162_v49 = vmul.f32 1.442695, %v13063_v45 }
 0x9d8   : > { %v25770_v54 = vpop.eup %17912  ;;  %17942 = vrcp.f32 %v13245_v36  ;;  %27988 = vst [vmem:[#allocation136_spill] sm:$0xff] %v25779_v42  ;;  %v13164_v36 = vmul.f32 1.442695, %v13064_v12  ;;  %v13168_v25 = vmul.f32 1.442695, %v13066_v17  ;;  %v25789_v30 = vpop.f32.mrf.mxu1  ;;  %v13069_v16 = vsub.f32 0.0, %v25763_v56 }
 0x9d9   : > { %v25773_v38 = vpop.eup %17914  ;;  %17944 = vrcp.f32 %v13247_v0  ;;  %v13070_v0 = vsub.f32 0.0, %v25759_v60  ;;  %27989 = vst [vmem:[#allocation137_spill] sm:$0xff] %v25789_v30  ;;  %v25791_v58 = vpop.f32.mrf.mxu0  ;;  %v13166_v45 = vmul.f32 1.442695, %v13065_v29  ;;  %v13170_v12 = vmul.f32 1.442695, %v13067_v44 }
 0x9da   : > { %v17917_v14 = vpop.eup %17916  ;;  %17946 = vrcp.f32 %v13248_v18  ;;  %27990 = vst [vmem:[#allocation138_spill] sm:$0xff] %v25791_v58  ;;  %v13071_v41 = vsub.f32 0.0, %v25765_v20  ;;  %v13172_v17 = vmul.f32 1.442695, %v13068_v32  ;;  %v13072_v60 = vsub.f32 0.0, %v25777_v19 }
 0x9db   : > { %v17919_v13 = vpop.eup %17918  ;;  %17948 = vpow2.f32 %v13156_v21 }
 0x9dc   : > { %v17921_v52 = vpop.eup %17920  ;;  %17950 = vpow2.f32 %v13160_v33  ;;  %v13178_v20 = vmul.f32 1.442695, %v13071_v41  ;;  %v13075_v41 = vsub.f32 0.0, %v25791_v58  ;;  %v25835_v58 = vmul.f32 %v25703_v62, %v25619_v50 }
 0x9dd   : > { %v25783_v57 = vpop.eup %17922  ;;  %17952 = vpow2.f32 %v13158_v8 }
 0x9de   : > { %v25786_v48 = vpop.eup %17924  ;;  %17954 = vpow2.f32 %v13162_v49  ;;  %v13174_v49 = vmul.f32 1.442695, %v13069_v16  ;;  %v13073_v16 = vsub.f32 0.0, %v25789_v30 }
 0x9df   : > { %v25793_v18 = vpop.eup %17926  ;;  %17956 = vpow2.f32 %v13164_v36 }
 0x9e0   : > { %27991 = vst [vmem:[#allocation140_spill] sm:$0xff] %v25793_v18  ;;  %v25796_v21 = vpop.eup %17928  ;;  %17958 = vpow2.f32 %v13168_v25  ;;  %v13176_v18 = vmul.f32 1.442695, %v13070_v0  ;;  %v13180_v25 = vmul.f32 1.442695, %v13072_v60  ;;  %v13074_v0 = vsub.f32 0.0, %v25779_v42 }
 0x9e1   : > { %v25799_v33 = vpop.eup %17930  ;;  %17960 = vpow2.f32 %v13166_v45  ;;  %v13182_v30 = vmul.f32 1.442695, %v13073_v16  ;;  %v25851_v16 = vmul.f32 %v25712_v37, %v25627_v61  ;;  %v25867_v37 = vmul.f32 %v25726_v35, %v25639_v3 }
 0x9e2   : > { %27992 = vst [vmem:[#allocation141_spill] sm:$0xff] %v25799_v33  ;;  %v25802_v7 = vpop.eup %17932  ;;  %17962 = vpow2.f32 %v13170_v12  ;;  %v13250_v33 = vadd.f32 1.0, %v17917_v14  ;;  %v13249_v12 = vadd.f32 1.0, %v17919_v13  ;;  %v13184_v14 = vmul.f32 1.442695, %v13074_v0 }
 0x9e3   : > { %27993 = vst [vmem:[#allocation142_spill] sm:$0xff] %v25802_v7  ;;  %v25804_v8 = vpop.f32.mrf.mxu1  ;;  %v25806_v29 = vpop.f32.mrf.mxu0  ;;  %17964 = vpow2.f32 %v13172_v17  ;;  %v13186_v13 = vmul.f32 1.442695, %v13075_v41  ;;  %v25847_v0 = vmul.f32 %v25709_v46, %v25625_v22  ;;  %v25863_v22 = vmul.f32 %v25724_v28, %v25637_v53 }
 0x9e4   : > { %v25808_v56 = vpop.eup %17934  ;;  %17966 = vpow2.f32 %v13176_v18  ;;  %v25883_v3 = vmul.f32 %v25742_v1, %v25649_v31  ;;  %v25887_v35 = vmul.f32 %v25745_v5, %v25651_v4  ;;  %v25903_v4 = vmul.f32 %v25770_v54, %v25661_v34 }
 0x9e5   : > { %27994 = vst [vmem:[#allocation143_spill] sm:$0xff] %v25808_v56  ;;  %v25810_v44 = vpop.eup %17936  ;;  %v25812_v36 = vpop.f32.mrf.mxu1  ;;  %17968 = vpow2.f32 %v13174_v49  ;;  %v13251_v56 = vadd.f32 1.0, %v17921_v52  ;;  %v25907_v5 = vmul.f32 %v25773_v38, %v25663_v6  ;;  %v13078_v41 = vsub.f32 0.0, %v25806_v29 }
 0x9e6   : > { %27995 = vst [vmem:[#allocation146_spill] sm:$0xff] %v25810_v44  ;;  %27996 = vst [vmem:[#allocation147_spill] sm:$0xff] %v25812_v36  ;;  %v25814_v32 = vpop.f32.mrf.mxu0  ;;  %v25816_v19 = vpop.eup %17938  ;;  %17970 = vpow2.f32 %v13178_v20  ;;  %v25839_v20 = vmul.f32 %v25706_v59, %v25621_v43  ;;  %v25855_v59 = vmul.f32 %v25719_v9, %v25631_v2  ;;  %v25859_v43 = vmul.f32 %v25722_v51, %v25633_v63 }
 0x9e7   : > { %27997 = vst [vmem:[#allocation148_spill] sm:$0xff] %v25814_v32  ;;  %v25819_v7 = vpop.eup %17940  ;;  %v25827_v17 = vpop.f32.mrf.mxu1  ;;  %17972 = vpow2.f32 %v13180_v25  ;;  %v25871_v2 = vmul.f32 %v25732_v24, %v25643_v39  ;;  %v25875_v63 = vmul.f32 %v25735_v26, %v25645_v15  ;;  %v25891_v15 = vmul.f32 %v25747_v11, %v25655_v40 }
 0x9e8   : > { %v25822_v45 = vpop.eup %17942  ;;  %28000 = vst [vmem:[#allocation149_spill] sm:$0xff] %v25827_v17  ;;  %v25829_v60 = vpop.f32.mrf.mxu0  ;;  %17974 = vrcp.f32 %v13250_v33  ;;  %v25895_v26 = vmul.f32 %v25767_v55, %v25657_v47  ;;  %v13076_v55 = vsub.f32 0.0, %v25804_v8  ;;  %v13077_v54 = vsub.f32 0.0, %v25812_v36 }
 0x9e9   : > { %27998 = vst [vmem:[#allocation150_spill] sm:$0xff] %v25822_v45  ;;  %v25825_v44 = vpop.eup %17944  ;;  %28001 = vst [vmem:[#allocation95_spill] sm:$0xff] %v25829_v60  ;;  %17976 = vrcp.f32 %v13249_v12  ;;  %v13079_v6 = vsub.f32 0.0, %v25814_v32 }
 0x9ea   : > { %27999 = vst [vmem:[#allocation151_spill] sm:$0xff] %v25825_v44  ;;  %v25831_v42 = vpop.eup %17946  ;;  %17978 = vrcp.f32 %v13251_v56  ;;  %v25841_v44 = vpop.f32.mrf.mxu1 }
 0x9eb   : > { %v17949_v18 = vpop.eup %17948  ;;  %28002 = vst [vmem:[#allocation82_spill] sm:$0xff] %v25841_v44  ;;  %v25843_v25 = vpop.f32.mrf.mxu0  ;;  %17980 = vpow2.f32 %v13184_v14  ;;  %v13194_v32 = vmul.f32 1.442695, %v13079_v6 }
 0x9ec   : > { %v17951_v45 = vpop.eup %17950  ;;  %v13252_v52 = vadd.f32 1.0, %v17949_v18  ;;  %28003 = vst [vmem:[#allocation83_spill] sm:$0xff] %v25843_v25  ;;  %17982 = vpow2.f32 %v13182_v30 }
 0x9ed   : > { %v17953_v49 = vpop.eup %17952  ;;  %v13254_v50 = vadd.f32 1.0, %v17951_v45  ;;  %17984 = vpow2.f32 %v13186_v13 }
 0x9ee   : > { %v17955_v33 = vpop.eup %17954  ;;  %v13253_v56 = vadd.f32 1.0, %v17953_v49  ;;  %17986 = vrcp.f32 %v13252_v52  ;;  %v13080_v52 = vsub.f32 0.0, %v25827_v17 }
 0x9ef   : > { %v17957_v62 = vpop.eup %17956  ;;  %v13255_v61 = vadd.f32 1.0, %v17955_v33  ;;  %17988 = vrcp.f32 %v13254_v50  ;;  %v13082_v33 = vsub.f32 0.0, %v25829_v60 }
 0x9f0   : > { %v17959_v12 = vpop.eup %17958  ;;  %v13256_v9 = vadd.f32 1.0, %v17957_v62  ;;  %17990 = vrcp.f32 %v13253_v56  ;;  %v13196_v36 = vmul.f32 1.442695, %v13080_v52 }
 0x9f1   : > { %v17961_v46 = vpop.eup %17960  ;;  %v25877_v51 = vpop.f32.mrf.mxu1  ;;  %v13258_v39 = vadd.f32 1.0, %v17959_v12  ;;  %17992 = vrcp.f32 %v13255_v61  ;;  %v25927_v12 = vmul.f32 %v25783_v57, %v25667_v10  ;;  %v25931_v61 = vmul.f32 %v25786_v48, %v25669_v27 }
 0x9f2   : > { %28004 = vst [vmem:[#allocation139_spill] sm:$0xff] %v25877_v51  ;;  %v25879_v28 = vpop.f32.mrf.mxu0  ;;  %v17963_v53 = vpop.eup %17962  ;;  %v13257_v30 = vadd.f32 1.0, %v17961_v46  ;;  %17994 = vrcp.f32 %v13256_v9  ;;  %v13188_v27 = vmul.f32 1.442695, %v13076_v55  ;;  %v13192_v48 = vmul.f32 1.442695, %v13078_v41 }
 0x9f3   : > { %28005 = vst [vmem:[#allocation131_spill] sm:$0xff] %v25879_v28  ;;  %v17965_v24 = vpop.eup %17964  ;;  %v25897_v45 = vpop.f32.mrf.mxu1  ;;  %v13259_v11 = vadd.f32 1.0, %v17963_v53  ;;  %17996 = vrcp.f32 %v13258_v39  ;;  %v28008_v53 = vld [vmem:[#allocation140_spill] sm:$0xff]  ;;  %v13086_v55 = vsub.f32 0.0, %v25879_v28 }
 0x9f4   : > { %28006 = vst [vmem:[#allocation132_spill] sm:$0xff] %v25897_v45  ;;  %v25899_v31 = vpop.f32.mrf.mxu0  ;;  %v17967_v1 = vpop.eup %17966  ;;  %v13260_v47 = vadd.f32 1.0, %v17965_v24  ;;  %17998 = vrcp.f32 %v13257_v30  ;;  %v25937_v39 = vmul.f32 %v28008_v53, %v25671_v23  ;;  %v28009_v24 = vld [vmem:[#allocation76_spill] sm:$0xff]  ;;  %v13200_v23 = vmul.f32 1.442695, %v13082_v33 }
 0x9f5   : > { %28007 = vst [vmem:[#allocation127_spill] sm:$0xff] %v25899_v31  ;;  %v17969_v40 = vpop.eup %17968  ;;  %v25911_v14 = vpop.f32.mrf.mxu1  ;;  %v13262_v34 = vadd.f32 1.0, %v17967_v1  ;;  %18000 = vrcp.f32 %v13259_v11  ;;  %v25941_v30 = vmul.f32 %v25796_v21, %v28009_v24  ;;  %v13190_v11 = vmul.f32 1.442695, %v13077_v54 }
 0x9f6   : > { %v25913_v18 = vpop.f32.mrf.mxu0  ;;  %v17971_v13 = vpop.eup %17970  ;;  %v13261_v49 = vadd.f32 1.0, %v17969_v40  ;;  %18002 = vrcp.f32 %v13260_v47  ;;  %v13081_v21 = vsub.f32 0.0, %v25841_v44  ;;  %v13083_v47 = vsub.f32 0.0, %v25843_v25 }
 0x9f7   : > { %v17973_v38 = vpop.eup %17972  ;;  %v25919_v50 = vpop.f32.mrf.mxu1  ;;  %v13263_v46 = vadd.f32 1.0, %v17971_v13  ;;  %18004 = vrcp.f32 %v13262_v34  ;;  %v13085_v41 = vsub.f32 0.0, %v25897_v45  ;;  %v13087_v45 = vsub.f32 0.0, %v25899_v31 }
 0x9f8   : > { %v25921_v62 = vpop.f32.mrf.mxu0  ;;  %v25923_v56 = vpop.eup %17974  ;;  %v13264_v1 = vadd.f32 1.0, %v17973_v38  ;;  %18006 = vrcp.f32 %v13261_v49  ;;  %v13084_v38 = vsub.f32 0.0, %v25877_v51 }
 0x9f9   : > { %v25933_v9 = vpop.eup %17976  ;;  %v12836_v57 = vpop.f32.mrf.mxu1  ;;  %18008 = vrcp.f32 %v13263_v46 }
 0x9fa   : > { %v12949_v10 = vpop.f32.mrf.mxu0  ;;  %v25943_v40 = vpop.eup %17978  ;;  %18010 = vrcp.f32 %v13264_v1  ;;  %v13412_v34 = vmul.f32 %v25835_v58, %v12836_v57  ;;  %v13204_v31 = vmul.f32 1.442695, %v13084_v38 }
 0x9fb   : > { %v17981_v13 = vpop.eup %17980  ;;  %v12838_v53 = vpop.f32.mrf.mxu1  ;;  %18012 = vpow2.f32 %v13188_v27  ;;  %v13414_v52 = vmul.f32 %v25839_v20, %v12949_v10 }
 0x9fc   : > { %v12951_v60 = vpop.f32.mrf.mxu0  ;;  %v17983_v17 = vpop.eup %17982  ;;  %v13266_v1 = vadd.f32 1.0, %v17981_v13  ;;  %18014 = vpow2.f32 %v13192_v48  ;;  %v13413_v27 = vmul.f32 %v25847_v0, %v12838_v53  ;;  %v13088_v53 = vsub.f32 0.0, %v25911_v14 }
 0x9fd   : > { %v17985_v24 = vpop.eup %17984  ;;  %v12840_v54 = vpop.f32.mrf.mxu1  ;;  %v13265_v25 = vadd.f32 1.0, %v17983_v17  ;;  %18016 = vpow2.f32 %v13190_v11  ;;  %v13202_v11 = vmul.f32 1.442695, %v13083_v47  ;;  %v13210_v47 = vmul.f32 1.442695, %v13087_v45 }
 0x9fe   : > { %v12953_v6 = vpop.f32.mrf.mxu0  ;;  %v25951_v49 = vpop.eup %17986  ;;  %v13416_v33 = vmul.f32 %v25855_v59, %v12840_v54  ;;  %18018 = vpow2.f32 %v13194_v32  ;;  %v13415_v59 = vmul.f32 %v25851_v16, %v12951_v60  ;;  %v13089_v45 = vsub.f32 0.0, %v25919_v50 }
 0x9ff   : > { %v13418_v46 = vmul.f32 %v25859_v43, %v12953_v6  ;;  %v25956_v51 = vpop.eup %17988  ;;  %v12842_v28 = vpop.f32.mrf.mxu1  ;;  %18020 = vpow2.f32 %v13196_v36  ;;  %v13198_v6 = vmul.f32 1.442695, %v13081_v21  ;;  %v13267_v21 = vadd.f32 1.0, %v17985_v24 }
 0xa00   : > { %v12955_v58 = vpop.f32.mrf.mxu0  ;;  %v25959_v57 = vpop.eup %17990  ;;  %v13476_v44 = vpack.c.bf16 %v13416_v33, %v13412_v34  ;;  %v13417_v43 = vmul.f32 %v25863_v22, %v12842_v28  ;;  %18022 = vpow2.f32 %v13200_v23  ;;  %v13206_v28 = vmul.f32 1.442695, %v13085_v41 }
 0xa01   : > { %v13478_v20 = vpack.c.bf16 %v13418_v46, %v13414_v52  ;;  %v25962_v10 = vpop.eup %17992  ;;  %v13419_v17 = vmul.f32 %v25867_v37, %v12955_v58  ;;  %v12846_v48 = vpop.f32.mrf.mxu1  ;;  %18024 = vrcp.f32 %v13266_v1  ;;  %v13208_v37 = vmul.f32 1.442695, %v13086_v55  ;;  %v18082_v58 = vld [vmem:[#allocation13 + $0x170] ss:$8 sps:$4 sm:$0xff]  }
 0xa02   : > { %v12959_v13 = vpop.f32.mrf.mxu0  ;;  %v25967_v54 = vpop.eup %17994  ;;  %v13477_v32 = vpack.c.bf16 %v13417_v43, %v13413_v27  ;;  %v13090_v52 = vsub.f32 0.0, %v25913_v18  ;;  %18026 = vrcp.f32 %v13265_v25  ;;  %v25978_v23 = vmul.f32 %v25871_v2, %v12846_v48 }
 0xa03   : > { %v25969_v0 = vpop.eup %17996  ;;  %v13479_v34 = vpack.c.bf16 %v13419_v17, %v13415_v59  ;;  %v12848_v60 = vpop.f32.mrf.mxu1  ;;  %18028 = vpow2.f32 %v13198_v6  ;;  %v25983_v55 = vmul.f32 %v25875_v63, %v12959_v13  ;;  %v13212_v2 = vmul.f32 1.442695, %v13088_v53  ;;  %v28011_v53 = vld [vmem:[#allocation141_spill] sm:$0xff] }
 0xa04   : > { %v12961_v16 = vpop.f32.mrf.mxu0  ;;  %v25972_v22 = vpop.eup %17998  ;;  %13924 = vmatprep.mubr.bf16.mxu1 %v13477_v32  ;;  %18030 = vpow2.f32 %v13202_v11  ;;  %v13091_v24 = vsub.f32 0.0, %v25921_v62 }
 0xa05   : > { %v25975_v36 = vpop.eup %18000  ;;  %14037 = vmatprep.mubr.bf16.mxu0 %v13479_v34  ;;  %v12850_v38 = vpop.f32.mrf.mxu1  ;;  %13925 = vmatmul.mubr.bf16.vlgmr.msra.gmra.mxu1 %v13476_v44  ;;  %18032 = vpow2.f32 %v13204_v31  ;;  %v13423_v17 = vmul.f32 %v25887_v35, %v12961_v16  ;;  %v28012_v34 = vld [vmem:[#allocation78_spill] sm:$0xff] }
 0xa06   : > { %v12963_v33 = vpop.f32.mrf.mxu0  ;;  %v25980_v46 = vpop.eup %18002  ;;  %v13424_v41 = vmul.f32 %v25891_v15, %v12850_v38  ;;  %14038 = vmatmul.mubr.bf16.vlgmr.msra.gmra.mxu0 %v13478_v20  ;;  %15769 = vmatpush1.bf16.msra.mxu1 %v18082_v58  ;;  %v13421_v15 = vmul.f32 %v25883_v3, %v12848_v60  ;;  %v18083_v20 = vld [vmem:[#allocation13 + $0x164] ss:$8 sps:$4 sm:$0xff]   ;;  %18034 = vpow2.f32 %v13208_v37  ;;  %v13216_v38 = vmul.f32 1.442695, %v13090_v52  ;;  %v28015_v58 = vld [vmem:[#allocation143_spill] sm:$0xff] }
 0xa07   : > { %v13426_v1 = vmul.f32 %v25895_v26, %v12963_v33  ;;  %v25987_v25 = vpop.eup %18004  ;;  %v12852_v27 = vpop.f32.mrf.mxu1  ;;  %15754 = vmatprep.subr.bf16.mxu1 %v18083_v20  ;;  %v28010_v3 = vld [vmem:[#allocation77_spill] sm:$0xff]  ;;  %v28013_v60 = vld [vmem:[#allocation142_spill] sm:$0xff]  ;;  %18036 = vrcp.f32 %v13267_v21  ;;  %v13214_v37 = vmul.f32 1.442695, %v13089_v45  ;;  %v18085_v21 = vld [vmem:[#allocation13 + $0x154] ss:$8 sps:$4 sm:$0xff]  }
 0xa08   : > { %v12965_v59 = vpop.f32.mrf.mxu0  ;;  %v25991_v63 = vpop.eup %18006  ;;  %v13480_v44 = vpack.c.bf16 %v13424_v41, %v25978_v23  ;;  %v13425_v48 = vmul.f32 %v25903_v4, %v12852_v27  ;;  %v13368_v32 = vmul.f32 %v28011_v53, %v28010_v3  ;;  %v13370_v23 = vmul.f32 %v28013_v60, %v28012_v34  ;;  %v18084_v4 = vld [vmem:[#allocation13 + $0x160] ss:$8 sps:$4 sm:$0xff]  }
 0xa09   : > { %v13482_v26 = vpack.c.bf16 %v13426_v1, %v25983_v55  ;;  %v25996_v43 = vpop.eup %18008  ;;  %v13427_v13 = vmul.f32 %v25907_v5, %v12965_v59  ;;  %v12856_v6 = vpop.f32.mrf.mxu1  ;;  %18038 = vpow2.f32 %v13206_v28  ;;  %v28014_v1 = vld [vmem:[#allocation79_spill] sm:$0xff]  ;;  %v28016_v59 = vld [vmem:[#allocation80_spill] sm:$0xff]  ;;  %v28017_v20 = vld [vmem:[#allocation146_spill] sm:$0xff]  ;;  %v13218_v53 = vmul.f32 1.442695, %v13091_v24 }
 0xa0a   : > { %v12969_v11 = vpop.f32.mrf.mxu0  ;;  %v26001_v31 = vpop.eup %18010  ;;  %v13481_v35 = vpack.c.bf16 %v13425_v48, %v13421_v15  ;;  %15770 = vmatpush1.bf16.msra.mxu1 %v18084_v4  ;;  %v13369_v27 = vmul.f32 %v28015_v58, %v28014_v1  ;;  %v13371_v3 = vmul.f32 %v28017_v20, %v28016_v59  ;;  %18040 = vpow2.f32 %v13210_v47 }
 0xa0b   : > { %v18013_v33 = vpop.eup %18012  ;;  %v13483_v16 = vpack.c.bf16 %v13427_v13, %v13423_v17  ;;  %v12858_v5 = vpop.f32.mrf.mxu1  ;;  %15755 = vmatprep.subr.bf16.mxu1 %v18085_v21  ;;  %18042 = vpow2.f32 %v13212_v2  ;;  %v26012_v45 = vmul.f32 %v25927_v12, %v12856_v6  ;;  %v26015_v15 = vmul.f32 %v25931_v61, %v12969_v11  ;;  %v18086_v61 = vld [vmem:[#allocation13 + $0x150] ss:$8 sps:$4 sm:$0xff]  }
 0xa0c   : > { %v12971_v55 = vpop.f32.mrf.mxu0  ;;  %v18015_v41 = vpop.eup %18014  ;;  %v13268_v28 = vadd.f32 1.0, %v18013_v33  ;;  %13934 = vmatprep.mubr.bf16.mxu1 %v13481_v35  ;;  %18044 = vpow2.f32 %v13216_v38  ;;  %v13429_v12 = vmul.f32 %v25937_v39, %v12858_v5 }
 0xa0d   : > { %v18017_v52 = vpop.eup %18016  ;;  %14047 = vmatprep.mubr.bf16.mxu0 %v13483_v16  ;;  %v12860_v17 = vpop.f32.mrf.mxu1  ;;  %v13270_v34 = vadd.f32 1.0, %v18015_v41  ;;  %13935 = vmatmul.mubr.bf16.gmra.mxu1 %v13480_v44  ;;  %18046 = vpow2.f32 %v13214_v37  ;;  %v13431_v2 = vmul.f32 %v25941_v30, %v12971_v55  ;;  %v18087_v44 = vld [vmem:[#allocation13 + $0x144] ss:$8 sps:$4 sm:$0xff]  }
 0xa0e   : > { %v12973_v48 = vpop.f32.mrf.mxu0  ;;  %v18019_v13 = vpop.eup %18018  ;;  %v13432_v47 = vmul.f32 %v13368_v32, %v12860_v17  ;;  %14048 = vmatmul.mubr.bf16.gmra.mxu0 %v13482_v26  ;;  %v13269_v33 = vadd.f32 1.0, %v18017_v52  ;;  %15771 = vmatpush1.bf16.msra.mxu1 %v18086_v61  ;;  %18048 = vpow2.f32 %v13218_v53  ;;  %v28018_v55 = vld [vmem:[#allocation81_spill] sm:$0xff]  ;;  %v28021_v17 = vld [vmem:[#allocation112_spill] sm:$0xff] }
 0xa0f   : > { %v13434_v24 = vmul.f32 %v13370_v23, %v12973_v48  ;;  %v18021_v60 = vpop.eup %18020  ;;  %v12862_v6 = vpop.f32.mrf.mxu1  ;;  %v13271_v16 = vadd.f32 1.0, %v18019_v13  ;;  %15756 = vmatprep.subr.bf16.mxu1 %v18087_v44  ;;  %18050 = vrcp.f32 %v13268_v28  ;;  %v13372_v41 = vmul.f32 %v25816_v19, %v28018_v55  ;;  %v18088_v53 = vld [vmem:[#allocation13 + $0x140] ss:$8 sps:$4 sm:$0xff]   ;;  %v18089_v48 = vld [vmem:[#allocation13 + $0x134] ss:$8 sps:$4 sm:$0xff]  }
 0xa10   : > { %v12975_v11 = vpop.f32.mrf.mxu0  ;;  %v18023_v35 = vpop.eup %18022  ;;  %v13484_v38 = vpack.c.bf16 %v13432_v47, %v26012_v45  ;;  %v13272_v23 = vadd.f32 1.0, %v18021_v60  ;;  %v13433_v39 = vmul.f32 %v13369_v27, %v12862_v6  ;;  %18052 = vrcp.f32 %v13270_v34  ;;  %v28019_v27 = vld [vmem:[#allocation85_spill] sm:$0xff]  ;;  %v28020_v45 = vld [vmem:[#allocation111_spill] sm:$0xff]  ;;  %v28022_v34 = vld [vmem:[#allocation90_spill] sm:$0xff] }
 0xa11   : > { %v13486_v32 = vpack.c.bf16 %v13434_v24, %v26015_v15  ;;  %v26021_v26 = vpop.eup %18024  ;;  %v13435_v37 = vmul.f32 %v13371_v3, %v12975_v11  ;;  %v12866_v30 = vpop.f32.mrf.mxu1  ;;  %18054 = vrcp.f32 %v13269_v33  ;;  %v13274_v58 = vadd.f32 1.0, %v18023_v35  ;;  %v28023_v47 = vld [vmem:[#allocation150_spill] sm:$0xff]  ;;  %v28024_v60 = vld [vmem:[#allocation91_spill] sm:$0xff] }
 0xa12   : > { %v12979_v4 = vpop.f32.mrf.mxu0  ;;  %v26023_v5 = vpop.eup %18026  ;;  %v13485_v59 = vpack.c.bf16 %v13433_v39, %v13429_v12  ;;  %15772 = vmatpush1.bf16.msra.mxu1 %v18088_v53  ;;  %v13374_v3 = vmul.f32 %v25819_v7, %v28019_v27  ;;  %v13376_v15 = vmul.f32 %v25831_v42, %v28020_v45  ;;  %v13378_v19 = vmul.f32 %v25923_v56, %v28021_v17  ;;  %v28025_v33 = vld [vmem:[#allocation151_spill] sm:$0xff]  ;;  %v28026_v44 = vld [vmem:[#allocation114_spill] sm:$0xff]  ;;  %v28028_v17 = vld [vmem:[#allocation117_spill] sm:$0xff] }
 0xa13   : > { %v18029_v1 = vpop.eup %18028  ;;  %v13487_v20 = vpack.c.bf16 %v13435_v37, %v13431_v2  ;;  %v12868_v21 = vpop.f32.mrf.mxu1  ;;  %18056 = vrcp.f32 %v13271_v16  ;;  %15757 = vmatprep.subr.bf16.mxu1 %v18089_v48  ;;  %v13373_v24 = vmul.f32 %v28023_v47, %v28022_v34  ;;  %v13375_v12 = vmul.f32 %v28025_v33, %v28024_v60  ;;  %v18090_v55 = vld [vmem:[#allocation13 + $0x130] ss:$8 sps:$4 sm:$0xff]   ;;  %v18091_v53 = vld [vmem:[#allocation13 + $0x124] ss:$8 sps:$4 sm:$0xff]   ;;  %v18092_v33 = vld [vmem:[#allocation13 + $0x120] ss:$8 sps:$4 sm:$0xff]  }
 0xa14   : > { %v12981_v52 = vpop.f32.mrf.mxu0  ;;  %v18031_v28 = vpop.eup %18030  ;;  %18058 = vrcp.f32 %v13272_v23  ;;  %v26037_v2 = vmul.f32 %v13372_v41, %v12866_v30  ;;  %13944 = vmatprep.mubr.bf16.mxu1 %v13485_v59  ;;  %v13273_v6 = vadd.f32 1.0, %v18029_v1  ;;  %v26039_v56 = vmul.f32 %v13374_v3, %v12979_v4  ;;  %v28027_v23 = vld [vmem:[#allocation116_spill] sm:$0xff]  ;;  %v28029_v48 = vld [vmem:[#allocation118_spill] sm:$0xff] }
 0xa15   : > { %v18033_v13 = vpop.eup %18032  ;;  %14057 = vmatprep.mubr.bf16.mxu0 %v13487_v20  ;;  %v12870_v7 = vpop.f32.mrf.mxu1  ;;  %13945 = vmatmul.mubr.bf16.gmra.mxu1 %v13484_v38  ;;  %v13377_v39 = vmul.f32 %v25933_v9, %v28026_v44  ;;  %v13379_v37 = vmul.f32 %v25943_v40, %v28027_v23  ;;  %18060 = vrcp.f32 %v13274_v58  ;;  %v13275_v30 = vadd.f32 1.0, %v18031_v28 }
 0xa16   : > { %v12983_v42 = vpop.f32.mrf.mxu0  ;;  %v18035_v61 = vpop.eup %18034  ;;  %v13440_v11 = vmul.f32 %v13376_v15, %v12870_v7  ;;  %14058 = vmatmul.mubr.bf16.gmra.mxu0 %v13486_v32  ;;  %15773 = vmatpush1.bf16.msra.mxu1 %v18090_v55  ;;  %v13276_v59 = vadd.f32 1.0, %v18033_v13  ;;  %v13437_v20 = vmul.f32 %v13373_v24, %v12868_v21  ;;  %v13439_v3 = vmul.f32 %v13375_v12, %v12981_v52  ;;  %v28030_v13 = vld [vmem:[#allocation119_spill] sm:$0xff] }
 0xa17   : > { %v13442_v35 = vmul.f32 %v13378_v19, %v12983_v42  ;;  %v26041_v16 = vpop.eup %18036  ;;  %v12872_v41 = vpop.f32.mrf.mxu1  ;;  %15758 = vmatprep.subr.bf16.mxu1 %v18091_v53  ;;  %v13278_v9 = vadd.f32 1.0, %v18035_v61  ;;  %v13380_v19 = vmul.f32 %v25951_v49, %v28028_v17  ;;  %v13382_v21 = vmul.f32 %v25956_v51, %v28029_v48  ;;  %v28031_v42 = vld [vmem:[#allocation122_spill] sm:$0xff]  ;;  %v28032_v61 = vld [vmem:[#allocation123_spill] sm:$0xff] }
 0xa18   : > { %v12985_v1 = vpop.f32.mrf.mxu0  ;;  %v18039_v4 = vpop.eup %18038  ;;  %v13488_v38 = vpack.c.bf16 %v13440_v11, %v26037_v2  ;;  %v13441_v45 = vmul.f32 %v13377_v39, %v12872_v41  ;;  %v13381_v34 = vmul.f32 %v25959_v57, %v28030_v13  ;;  %18062 = vrcp.f32 %v13273_v6  ;;  %v18093_v6 = vld [vmem:[#allocation13 + $0x114] ss:$8 sps:$4 sm:$0xff]   ;;  %v18094_v53 = vld [vmem:[#allocation13 + $0x110] ss:$8 sps:$4 sm:$0xff]  }
 0xa19   : > { %v13490_v32 = vpack.c.bf16 %v13442_v35, %v26039_v56  ;;  %v18041_v27 = vpop.eup %18040  ;;  %v13443_v40 = vmul.f32 %v13379_v37, %v12985_v1  ;;  %v12876_v58 = vpop.f32.mrf.mxu1  ;;  %18064 = vrcp.f32 %v13275_v30  ;;  %v13277_v24 = vadd.f32 1.0, %v18039_v4  ;;  %v28033_v56 = vld [vmem:[#allocation124_spill] sm:$0xff]  ;;  %v28034_v35 = vld [vmem:[#allocation125_spill] sm:$0xff] }
 0xa1a   : > { %v12989_v28 = vpop.f32.mrf.mxu0  ;;  %v18043_v15 = vpop.eup %18042  ;;  %v13489_v60 = vpack.c.bf16 %v13441_v45, %v13437_v20  ;;  %15774 = vmatpush1.bf16.msra.mxu1 %v18092_v33  ;;  %v13383_v49 = vmul.f32 %v25962_v10, %v28031_v42  ;;  %v13384_v51 = vmul.f32 %v25967_v54, %v28032_v61  ;;  %v13386_v57 = vmul.f32 %v25969_v0, %v28033_v56  ;;  %v28038_v42 = vld [vmem:[#allocation135_spill] sm:$0xff]  ;;  %v28039_v61 = vld [vmem:[#allocation136_spill] sm:$0xff]  ;;  %v28040_v56 = vld [vmem:[#allocation133_spill] sm:$0xff] }
 0xa1b   : > { %v18045_v47 = vpop.eup %18044  ;;  %v13491_v52 = vpack.c.bf16 %v13443_v40, %v13439_v3  ;;  %v12878_v12 = vpop.f32.mrf.mxu1  ;;  %18066 = vrcp.f32 %v13276_v59  ;;  %15759 = vmatprep.subr.bf16.mxu1 %v18093_v6  ;;  %v13385_v44 = vmul.f32 %v25972_v22, %v28034_v35  ;;  %v13279_v39 = vadd.f32 1.0, %v18041_v27  ;;  %v28035_v22 = vld [vmem:[#allocation128_spill] sm:$0xff]  ;;  %v28041_v6 = vld [vmem:[#allocation137_spill] sm:$0xff] }
 0xa1c   : > { %v12991_v2 = vpop.f32.mrf.mxu0  ;;  %v18047_v7 = vpop.eup %18046  ;;  %18068 = vrcp.f32 %v13278_v9  ;;  %v13444_v23 = vmul.f32 %v13380_v19, %v12876_v58  ;;  %13954 = vmatprep.mubr.bf16.mxu1 %v13489_v60  ;;  %v13280_v54 = vadd.f32 1.0, %v18043_v15  ;;  %v26065_v55 = vmul.f32 %v13382_v21, %v12989_v28  ;;  %v18095_v58 = vld [vmem:[#allocation13 + $0x104] ss:$8 sps:$4 sm:$0xff]   ;;  %v18096_v60 = vld [vmem:[#allocation13 + $0x100] ss:$8 sps:$4 sm:$0xff]  }
 0xa1d   : > { %v18049_v11 = vpop.eup %18048  ;;  %14067 = vmatprep.mubr.bf16.mxu0 %v13491_v52  ;;  %v12880_v37 = vpop.f32.mrf.mxu1  ;;  %13955 = vmatmul.mubr.bf16.gmra.mxu1 %v13488_v38  ;;  %v13387_v4 = vmul.f32 %v25975_v36, %v28035_v22  ;;  %18070 = vrcp.f32 %v13277_v24  ;;  %v13282_v59 = vadd.f32 1.0, %v18045_v47  ;;  %v13281_v20 = vadd.f32 1.0, %v18047_v7 }
 0xa1e   : > { %v12993_v10 = vpop.f32.mrf.mxu0  ;;  %v26063_v30 = vpop.eup %18050  ;;  %v13448_v0 = vmul.f32 %v13384_v51, %v12880_v37  ;;  %14068 = vmatmul.mubr.bf16.gmra.mxu0 %v13490_v32  ;;  %15775 = vmatpush1.bf16.msra.mxu1 %v18094_v53  ;;  %v13445_v45 = vmul.f32 %v13381_v34, %v12878_v12  ;;  %18072 = vrcp.f32 %v13279_v39  ;;  %v13283_v36 = vadd.f32 1.0, %v18049_v11  ;;  %v28036_v34 = vld [vmem:[#allocation129_spill] sm:$0xff]  ;;  %v28042_v37 = vld [vmem:[#allocation134_spill] sm:$0xff] }
 0xa1f   : > { %v26067_v41 = vmul.f32 %v13386_v57, %v12993_v10  ;;  %v26069_v1 = vpop.eup %18052  ;;  %v12882_v27 = vpop.f32.mrf.mxu1  ;;  %15760 = vmatprep.subr.bf16.mxu1 %v18095_v58  ;;  %v26079_v15 = vmul.f32 %v13383_v49, %v12991_v2  ;;  %18074 = vrcp.f32 %v13280_v54  ;;  %v13388_v47 = vmul.f32 %v25980_v46, %v28036_v34  ;;  %v28037_v2 = vld [vmem:[#allocation130_spill] sm:$0xff]  ;;  %v18097_v46 = vld [vmem:[#allocation13 + $0x1f4] ss:$8 sps:$4 sm:$0xff]  }
 0xa20   : > { %v12995_v9 = vpop.f32.mrf.mxu0  ;;  %v26073_v3 = vpop.eup %18054  ;;  %v13492_v40 = vpack.c.bf16 %v13448_v0, %v13444_v23  ;;  %v13449_v32 = vmul.f32 %v13385_v44, %v12882_v27  ;;  %18076 = vrcp.f32 %v13282_v59  ;;  %v13390_v7 = vmul.f32 %v25987_v25, %v28037_v2  ;;  %v28043_v54 = vld [vmem:[#allocation138_spill] sm:$0xff]  ;;  %v18098_v0 = vld [vmem:[#allocation13 + $0x1f0] ss:$8 sps:$4 sm:$0xff]  }
 0xa21   : > { %v13494_v38 = vpack.c.bf16 %v26067_v41, %v26065_v55  ;;  %v26077_v28 = vpop.eup %18056  ;;  %v26081_v17 = vmul.f32 %v13387_v4, %v12995_v9  ;;  %v12886_v19 = vpop.f32.mrf.mxu1  ;;  %v13392_v49 = vmul.f32 %v26001_v31, %v28038_v42  ;;  %v13394_v51 = vmul.f32 %v26021_v26, %v28039_v61  ;;  %v18099_v9 = vld [vmem:[#allocation13 + $0x1e4] ss:$8 sps:$4 sm:$0xff]   ;;  %v28046_v61 = vld [vmem:[#allocation147_spill] sm:$0xff] }
 0xa22   : > { %v12999_v48 = vpop.f32.mrf.mxu0  ;;  %v18059_v21 = vpop.eup %18058  ;;  %v13493_v13 = vpack.c.bf16 %v13449_v32, %v13445_v45  ;;  %15776 = vmatpush1.bf16.msra.mxu1 %v18096_v60  ;;  %18078 = vrcp.f32 %v13281_v20  ;;  %v13389_v57 = vmul.f32 %v25991_v63, %v28040_v56  ;;  %v13393_v11 = vmul.f32 %v26023_v5, %v28041_v6 }
 0xa23   : > { %v13495_v24 = vpack.c.bf16 %v26081_v17, %v26079_v15  ;;  %v12888_v52 = vpop.f32.mrf.mxu1  ;;  %v18061_v12 = vpop.eup %18060  ;;  %15761 = vmatprep.subr.bf16.mxu1 %v18097_v46  ;;  %18080 = vrcp.f32 %v13283_v36  ;;  %v13452_v25 = vmul.f32 %v13388_v47, %v12886_v19  ;;  %v26097_v39 = vmul.f32 %v13390_v7, %v12999_v48  ;;  %v28045_v7 = vld [vmem:[#allocation95_spill] sm:$0xff]  ;;  %v28048_v46 = vld [vmem:[#allocation82_spill] sm:$0xff] }
 0xa24   : > { %v13001_v33 = vpop.f32.mrf.mxu0  ;;  %13964 = vmatprep.mubr.bf16.mxu1 %v13493_v13  ;;  %v13391_v10 = vmul.f32 %v25996_v43, %v28042_v37  ;;  %v13395_v63 = vmul.f32 %v26041_v16, %v28043_v54  ;;  %v13453_v59 = vmul.f32 %v13389_v57, %v12888_v52  ;;  %v13396_v19 = vmul.f32 %v26063_v30, %v25804_v8  ;;  %v18100_v13 = vld [vmem:[#allocation13 + $0x1e0] ss:$8 sps:$4 sm:$0xff]   ;;  %v28047_v30 = vld [vmem:[#allocation148_spill] sm:$0xff]  ;;  %v28049_v57 = vld [vmem:[#allocation83_spill] sm:$0xff] }
 0xa25   : > { %v12890_v35 = vpop.f32.mrf.mxu1  ;;  %13965 = vmatmul.mubr.bf16.gmra.mxu1 %v13492_v40  ;;  %v18063_v26 = vpop.eup %18062  ;;  %v13398_v52 = vmul.f32 %v26069_v1, %v25806_v29  ;;  %v13402_v42 = vmul.f32 %v18061_v12, %v28045_v7  ;;  %v13397_v8 = vmul.f32 %v26073_v3, %v28046_v61  ;;  %v18102_v37 = vld [vmem:[#allocation13 + $0x1d0] ss:$8 sps:$4 sm:$0xff]   ;;  %v18105_v7 = vld [vmem:[#allocation13 + $0x1b4] ss:$8 sps:$4 sm:$0xff]  }
 0xa26   : > { %v13003_v44 = vpop.f32.mrf.mxu0  ;;  %v13456_v31 = vmul.f32 %v13392_v49, %v12890_v35  ;;  %15777 = vmatpush2.bf16.msra.mxu1 %v18098_v0  ;;  %v18065_v4 = vpop.eup %18064  ;;  %v26107_v40 = vmul.f32 %v13391_v10, %v13001_v33  ;;  %v28044_v33 = vld [vmem:[#allocation149_spill] sm:$0xff]  ;;  %v18101_v49 = vld [vmem:[#allocation13 + $0x1d4] ss:$8 sps:$4 sm:$0xff]   ;;  %v13401_v56 = vmul.f32 %v18063_v26, %v28048_v46 }
 0xa27   : > { %v26099_v23 = vmul.f32 %v13394_v51, %v13003_v44  ;;  %v12892_v5 = vpop.f32.mrf.mxu1  ;;  %15762 = vmatprep.subr.bf16.mxu1 %v18099_v9  ;;  %v13400_v2 = vmul.f32 %v18059_v21, %v28044_v33  ;;  %v13399_v51 = vmul.f32 %v26077_v28, %v28047_v30  ;;  %v13403_v6 = vmul.f32 %v18065_v4, %v28049_v57  ;;  %v28053_v61 = vld [vmem:[#allocation127_spill] sm:$0xff] }
 0xa28   : > { %v13005_v22 = vpop.f32.mrf.mxu0  ;;  %v13496_v20 = vpack.c.bf16 %v13456_v31, %v13452_v25  ;;  %v13457_v27 = vmul.f32 %v13393_v11, %v12892_v5  ;;  %v18067_v45 = vpop.eup %18066 }
 0xa29   : > { %v13498_v53 = vpack.c.bf16 %v26099_v23, %v26097_v39  ;;  %v26109_v43 = vmul.f32 %v13395_v63, %v13005_v22  ;;  %v12896_v32 = vpop.f32.mrf.mxu1  ;;  %v18069_v58 = vpop.eup %18068  ;;  %v18103_v22 = vld [vmem:[#allocation13 + $0x1c4] ss:$8 sps:$4 sm:$0xff]  }
 0xa2a   : > { %v13009_v16 = vpop.f32.mrf.mxu0  ;;  %v13497_v36 = vpack.c.bf16 %v13457_v27, %v13453_v59  ;;  %15778 = vmatpush2.bf16.msra.mxu1 %v18100_v13  ;;  %v18071_v60 = vpop.eup %18070  ;;  %v13460_v1 = vmul.f32 %v13396_v19, %v12896_v32  ;;  %v18104_v19 = vld [vmem:[#allocation13 + $0x1c0] ss:$8 sps:$4 sm:$0xff]  }
 0xa2b   : > { %v13499_v48 = vpack.c.bf16 %v26109_v43, %v26107_v40  ;;  %v12898_v34 = vpop.f32.mrf.mxu1  ;;  %15763 = vmatprep.subr.bf16.mxu1 %v18101_v49  ;;  %v18073_v29 = vpop.eup %18072  ;;  %v26125_v21 = vmul.f32 %v13398_v52, %v13009_v16  ;;  %v28050_v16 = vld [vmem:[#allocation139_spill] sm:$0xff]  ;;  %v28055_v23 = vld [vmem:[#allocation145_spill] sm:$0xff] }
 0xa2c   : > { %v13011_v47 = vpop.f32.mrf.mxu0  ;;  %13974 = vmatprep.mubr.bf16.mxu1 %v13497_v36  ;;  %v18075_v25 = vpop.eup %18074  ;;  %v13461_v31 = vmul.f32 %v13397_v8, %v12898_v34  ;;  %v13404_v36 = vmul.f32 %v18067_v45, %v28050_v16  ;;  %v13407_v8 = vmul.f32 %v18073_v29, %v28053_v61  ;;  %v28058_v16 = vld [vmem:[#allocation155_spill] sm:$0xff] }
 0xa2d   : > { %v12900_v11 = vpop.f32.mrf.mxu1  ;;  %13975 = vmatmul.mubr.bf16.gmra.mxu1 %v13496_v20  ;;  %v26129_v3 = vmul.f32 %v13399_v51, %v13011_v47  ;;  %v18077_v10 = vpop.eup %18076  ;;  %v28051_v47 = vld [vmem:[#allocation131_spill] sm:$0xff]  ;;  %v13408_v33 = vmul.f32 %v18075_v25, %v25911_v14 }
 0xa2e   : > { %v13013_v35 = vpop.f32.mrf.mxu0  ;;  %v13464_v12 = vmul.f32 %v13400_v2, %v12900_v11  ;;  %15779 = vmatpush2.bf16.msra.mxu1 %v18102_v37  ;;  %v13406_v52 = vmul.f32 %v18069_v58, %v28051_v47  ;;  %v13410_v2 = vmul.f32 %v18077_v10, %v25913_v18  ;;  %v18106_v11 = vld [vmem:[#allocation13 + $0x1b0] ss:$8 sps:$4 sm:$0xff]   ;;  %v18109_v37 = vld [vmem:[#allocation13 + $0x194] ss:$8 sps:$4 sm:$0xff]   ;;  %v18112_v10 = vld [vmem:[#allocation13 + $0x180] ss:$8 sps:$4 sm:$0xff]  }
 0xa2f   : > { %v26127_v44 = vmul.f32 %v13402_v42, %v13013_v35  ;;  %v12902_v28 = vpop.f32.mrf.mxu1  ;;  %15764 = vmatprep.subr.bf16.mxu1 %v18103_v22  ;;  %v18079_v4 = vpop.eup %18078  ;;  %v28052_v42 = vld [vmem:[#allocation132_spill] sm:$0xff]  ;;  %v28059_v47 = vld [vmem:[#allocation87_spill] sm:$0xff] }
 0xa30   : > { %v13015_v26 = vpop.f32.mrf.mxu0  ;;  %v13500_v54 = vpack.c.bf16 %v13464_v12, %v13460_v1  ;;  %v13465_v0 = vmul.f32 %v13401_v56, %v12902_v28  ;;  %v18081_v27 = vpop.eup %18080  ;;  %v13405_v49 = vmul.f32 %v18071_v60, %v28052_v42  ;;  %v13409_v30 = vmul.f32 %v18079_v4, %v25919_v50  ;;  %v18107_v50 = vld [vmem:[#allocation13 + $0x1a4] ss:$8 sps:$4 sm:$0xff]   ;;  %v18110_v28 = vld [vmem:[#allocation13 + $0x190] ss:$8 sps:$4 sm:$0xff]  }
 0xa31   : > { %v13502_v63 = vpack.c.bf16 %v26127_v44, %v26125_v21  ;;  %v13467_v5 = vmul.f32 %v13403_v6, %v13015_v26  ;;  %v12906_v59 = vpop.f32.mrf.mxu1  ;;  %v13411_v45 = vmul.f32 %v18081_v27, %v25921_v62  ;;  %v18111_v26 = vld [vmem:[#allocation13 + $0x184] ss:$8 sps:$4 sm:$0xff]  }
 0xa32   : > { %v13019_v20 = vpop.f32.mrf.mxu0  ;;  %v13501_v9 = vpack.c.bf16 %v13465_v0, %v13461_v31  ;;  %15780 = vmatpush2.bf16.msra.mxu1 %v18104_v19  ;;  %v13468_v56 = vmul.f32 %v13404_v36, %v12906_v59  ;;  %v28057_v59 = vld [vmem:[#allocation154_spill] sm:$0xff] }
 0xa33   : > { %v13503_v32 = vpack.c.bf16 %v13467_v5, %v26129_v3  ;;  %v12908_v13 = vpop.f32.mrf.mxu1  ;;  %15765 = vmatprep.subr.bf16.mxu1 %v18105_v7  ;;  %v13470_v57 = vmul.f32 %v13406_v52, %v13019_v20  ;;  %v18108_v3 = vld [vmem:[#allocation13 + $0x1a0] ss:$8 sps:$4 sm:$0xff]  }
 0xa34   : > { %v13021_v34 = vpop.f32.mrf.mxu0  ;;  %13984 = vmatprep.mubr.bf16.mxu1 %v13501_v9  ;;  %v13469_v14 = vmul.f32 %v13405_v49, %v12908_v13  ;;  %v28060_v42 = vld [vmem:[#allocation86_spill] sm:$0xff] }
 0xa35   : > { %v12910_v51 = vpop.f32.mrf.mxu1  ;;  %13985 = vmatmul.mubr.bf16.gmra.mxu1 %v13500_v54  ;;  %v13471_v18 = vmul.f32 %v13407_v8, %v13021_v34 }
 0xa36   : > { %v13023_v46 = vpop.f32.mrf.mxu0  ;;  %v13472_v58 = vmul.f32 %v13408_v33, %v12910_v51  ;;  %15781 = vmatpush2.bf16.msra.mxu1 %v18106_v11 }
 0xa37   : > { %v13474_v6 = vmul.f32 %v13410_v2, %v13023_v46  ;;  %v12912_v35 = vpop.f32.mrf.mxu1  ;;  %15766 = vmatprep.subr.bf16.mxu1 %v18107_v50 }
 0xa38   : > { %v13025_v1 = vpop.f32.mrf.mxu0  ;;  %v13504_v60 = vpack.c.bf16 %v13472_v58, %v13468_v56  ;;  %v13473_v29 = vmul.f32 %v13409_v30, %v12912_v35  ;;  %v28062_v58 = vld [vmem:[#allocation89_spill] sm:$0xff]  ;;  %v28063_v35 = vld [vmem:[#allocation88_spill] sm:$0xff] }
 0xa39   : > { %v13506_v12 = vpack.c.bf16 %v13474_v6, %v13470_v57  ;;  %v13475_v25 = vmul.f32 %v13411_v45, %v13025_v1  ;;  %v28061_v45 = vld [vmem:[#allocation92_spill] sm:$0xff] }
 0xa3a   : > { %v13505_v62 = vpack.c.bf16 %v13473_v29, %v13469_v14  ;;  %15782 = vmatpush2.bf16.msra.mxu1 %v18108_v3 }
 0xa3b   : > { %v13507_v31 = vpack.c.bf16 %v13475_v25, %v13471_v18  ;;  %15767 = vmatprep.subr.bf16.mxu1 %v18109_v37  ;;  %v28064_v25 = vld [vmem:[#allocation94_spill] sm:$0xff]  ;;  %v28065_v37 = vld [vmem:[#allocation93_spill] sm:$0xff] }
 0xa3c   : > { %13994 = vmatprep.mubr.bf16.mxu1 %v13505_v62 }
 0xa3d   : > { %13995 = vmatmul.mubr.bf16.gmra.mxu1 %v13504_v60 }
 0xa3e   : > { %15783 = vmatpush2.bf16.msra.mxu1 %v18110_v28  ;;  %14077 = vmatprep.mubr.bf16.mxu1 %v13495_v24  ;;  %v28054_v24 = vld [vmem:[#allocation84_spill] sm:$0xff] }
 0xa3f   : > { %15768 = vmatprep.subr.bf16.mxu1 %v18111_v26 }
 0xa42   : > { %15784 = vmatpush2.bf16.msra.mxu1 %v18112_v10 }
 0xa45   : > { %14078 = vmatmul.mubr.bf16.vlgmr.msra.gmra.mxu1 %v13494_v38 }
 0xa46   : > { %14087 = vmatprep.mubr.bf16.mxu1 %v13499_v48 }
 0xa4d   : > { %14088 = vmatmul.mubr.bf16.gmra.mxu1 %v13498_v53 }
 0xa4e   : > { %14097 = vmatprep.mubr.bf16.mxu1 %v13503_v32 }
 0xa55   : > { %14098 = vmatmul.mubr.bf16.gmra.mxu1 %v13502_v63  ;;  %v28056_v63 = vld [vmem:[#allocation144_spill] sm:$0xff] }
 0xa56   : > { %14107 = vmatprep.mubr.bf16.mxu1 %v13507_v31 }
 0xa5d   : > { %14108 = vmatmul.mubr.bf16.gmra.mxu1 %v13506_v12 }
 0xac5   : > { %v13926_v15 = vpop.f32.mrf.mxu1 }
 0xac6   : > { %v14039_v55 = vpop.f32.mrf.mxu0 }
 0xac7   : > { %v14040_v41 = vadd.f32 %v14039_v55, %v13926_v15  ;;  %v13928_v38 = vpop.f32.mrf.mxu1  ;;  %v28066_v55 = vld [vmem:[#allocation99_spill] sm:$0xff] }
 0xac8   : > { %v14041_v17 = vpop.f32.mrf.mxu0 }
 0xac9   : > { %v14118_v40 = vadd.f32 %v14040_v41, %v28054_v24  ;;  %v14042_v43 = vadd.f32 %v14041_v17, %v13928_v38  ;;  %v13930_v48 = vpop.f32.mrf.mxu1 }
 0xaca   : > { %v14043_v39 = vpop.f32.mrf.mxu0 }
 0xacb   : > { %14150 = vst [vmem:[%s22589_s29] sm:$0xff] %v14118_v40  ;;  %v14119_v53 = vadd.f32 %v14042_v43, %v28055_v23  ;;  %v14044_v21 = vadd.f32 %v14043_v39, %v13930_v48  ;;  %v13932_v44 = vpop.f32.mrf.mxu1  ;;  %v28067_v40 = vld [vmem:[#allocation98_spill] sm:$0xff] }
 0xacc   : > { %v14045_v54 = vpop.f32.mrf.mxu0 }
 0xacd   : > { %14151 = vst [vmem:[%s22589_s29 + $0x8] sm:$0xff] %v14119_v53  ;;  %v14120_v0 = vadd.f32 %v14044_v21, %v28056_v63  ;;  %v14046_v5 = vadd.f32 %v14045_v54, %v13932_v44  ;;  %v13936_v22 = vpop.f32.mrf.mxu1  ;;  %v28068_v53 = vld [vmem:[#allocation104_spill] sm:$0xff]  ;;  %v28069_v63 = vld [vmem:[#allocation97_spill] sm:$0xff] }
 0xace   : > { %v14049_v4 = vpop.f32.mrf.mxu0 }
 0xacf   : > { %14152 = vst [vmem:[%s22589_s29 + $0x10] sm:$0xff] %v14120_v0  ;;  %v14121_v20 = vadd.f32 %v14046_v5, %v28057_v59  ;;  %v14050_v27 = vadd.f32 %v14049_v4, %v13936_v22  ;;  %v13938_v9 = vpop.f32.mrf.mxu1 }
 0xad0   : > { %v14051_v32 = vpop.f32.mrf.mxu0 }
 0xad1   : > { %14153 = vst [vmem:[%s22589_s29 + $0x18] sm:$0xff] %v14121_v20  ;;  %v14122_v36 = vadd.f32 %v14050_v27, %v28058_v16  ;;  %v14052_v19 = vadd.f32 %v14051_v32, %v13938_v9  ;;  %v13940_v13 = vpop.f32.mrf.mxu1 }
 0xad2   : > { %v14053_v34 = vpop.f32.mrf.mxu0 }
 0xad3   : > { %14154 = vst [vmem:[%s22589_s29 + $0x20] sm:$0xff] %v14122_v36  ;;  %v14123_v52 = vadd.f32 %v14052_v19, %v28059_v47  ;;  %v14054_v33 = vadd.f32 %v14053_v34, %v13940_v13  ;;  %v13942_v2 = vpop.f32.mrf.mxu1 }
 0xad4   : > { %v14055_v7 = vpop.f32.mrf.mxu0 }
 0xad5   : > { %14155 = vst [vmem:[%s22589_s29 + $0x28] sm:$0xff] %v14123_v52  ;;  %v14124_v49 = vadd.f32 %v14054_v33, %v28060_v42  ;;  %v14056_v61 = vadd.f32 %v14055_v7, %v13942_v2  ;;  %v13946_v8 = vpop.f32.mrf.mxu1  ;;  %v28070_v42 = vld [vmem:[#allocation105_spill] sm:$0xff] }
 0xad6   : > { %v14059_v30 = vpop.f32.mrf.mxu0 }
 0xad7   : > { %14156 = vst [vmem:[%s22589_s29 + $0x30] sm:$0xff] %v14124_v49  ;;  %v14125_v51 = vadd.f32 %v14056_v61, %v28061_v45  ;;  %v14060_v46 = vadd.f32 %v14059_v30, %v13946_v8  ;;  %v13948_v56 = vpop.f32.mrf.mxu1  ;;  %v28071_v30 = vld [vmem:[#allocation102_spill] sm:$0xff] }
 0xad8   : > { %v14061_v57 = vpop.f32.mrf.mxu0 }
 0xad9   : > { %14157 = vst [vmem:[%s22589_s29 + $0x38] sm:$0xff] %v14125_v51  ;;  %v14126_v6 = vadd.f32 %v14060_v46, %v28062_v58  ;;  %v14062_v14 = vadd.f32 %v14061_v57, %v13948_v56  ;;  %v13950_v18 = vpop.f32.mrf.mxu1  ;;  %v28072_v56 = vld [vmem:[#allocation106_spill] sm:$0xff] }
 0xada   : > { %v14063_v11 = vpop.f32.mrf.mxu0 }
 0xadb   : > { %14158 = vst [vmem:[%s22589_s29 + $0x40] sm:$0xff] %v14126_v6  ;;  %v14127_v1 = vadd.f32 %v14062_v14, %v28063_v35  ;;  %v14064_v60 = vadd.f32 %v14063_v11, %v13950_v18  ;;  %v13952_v12 = vpop.f32.mrf.mxu1  ;;  %v28073_v14 = vld [vmem:[#allocation100_spill] sm:$0xff] }
 0xadc   : > { %v14065_v29 = vpop.f32.mrf.mxu0 }
 0xadd   : > { %14159 = vst [vmem:[%s22589_s29 + $0x48] sm:$0xff] %v14127_v1  ;;  %v14128_v50 = vadd.f32 %v14064_v60, %v28064_v25  ;;  %v14066_v62 = vadd.f32 %v14065_v29, %v13952_v12  ;;  %v13956_v31 = vpop.f32.mrf.mxu1  ;;  %v28074_v1 = vld [vmem:[#allocation108_spill] sm:$0xff]  ;;  %v28075_v25 = vld [vmem:[#allocation110_spill] sm:$0xff] }
 0xade   : > { %v14069_v3 = vpop.f32.mrf.mxu0 }
 0xadf   : > { %14160 = vst [vmem:[%s22589_s29 + $0x50] sm:$0xff] %v14128_v50  ;;  %v14129_v28 = vadd.f32 %v14066_v62, %v28065_v37  ;;  %v14070_v26 = vadd.f32 %v14069_v3, %v13956_v31  ;;  %v13958_v10 = vpop.f32.mrf.mxu1  ;;  %v28076_v3 = vld [vmem:[#allocation66_spill] sm:$0xff] }
 0xae0   : > { %v14071_v15 = vpop.f32.mrf.mxu0 }
 0xae1   : > { %14161 = vst [vmem:[%s22589_s29 + $0x58] sm:$0xff] %v14129_v28  ;;  %v14130_v41 = vadd.f32 %v14070_v26, %v28066_v55  ;;  %v14072_v38 = vadd.f32 %v14071_v15, %v13958_v10  ;;  %v13960_v17 = vpop.f32.mrf.mxu1  ;;  %v28077_v10 = vld [vmem:[#allocation67_spill] sm:$0xff] }
 0xae2   : > { %v14073_v24 = vpop.f32.mrf.mxu0 }
 0xae3   : > { %14162 = vst [vmem:[%s22589_s29 + $0x60] sm:$0xff] %v14130_v41  ;;  %v14131_v43 = vadd.f32 %v14072_v38, %v28067_v40  ;;  %v14074_v48 = vadd.f32 %v14073_v24, %v13960_v17  ;;  %v13962_v39 = vpop.f32.mrf.mxu1  ;;  %v28080_v38 = vld [vmem:[#allocation68_spill] sm:$0xff] }
 0xae4   : > { %v14075_v23 = vpop.f32.mrf.mxu0 }
 0xae5   : > { %14163 = vst [vmem:[%s22589_s29 + $0x68] sm:$0xff] %v14131_v43  ;;  %v14132_v21 = vadd.f32 %v14074_v48, %v28068_v53  ;;  %v14076_v44 = vadd.f32 %v14075_v23, %v13962_v39  ;;  %v13966_v54 = vpop.f32.mrf.mxu1  ;;  %v28081_v43 = vld [vmem:[#allocation69_spill] sm:$0xff]  ;;  %v28082_v53 = vld [vmem:[#allocation70_spill] sm:$0xff] }
 0xae7   : > { %14164 = vst [vmem:[%s22589_s29 + $0x70] sm:$0xff] %v14132_v21  ;;  %v14133_v0 = vadd.f32 %v14076_v44, %v28069_v63  ;;  %v13968_v5 = vpop.f32.mrf.mxu1  ;;  %v28083_v63 = vld [vmem:[#allocation71_spill] sm:$0xff] }
 0xae9   : > { %14165 = vst [vmem:[%s22589_s29 + $0x78] sm:$0xff] %v14133_v0  ;;  %v13970_v22 = vpop.f32.mrf.mxu1 }
 0xaeb   : > { %v13972_v4 = vpop.f32.mrf.mxu1 }
 0xaed   : > { %v13976_v59 = vpop.f32.mrf.mxu1 }
 0xaef   : > { %v13978_v20 = vpop.f32.mrf.mxu1 }
 0xaf1   : > { %v13980_v27 = vpop.f32.mrf.mxu1 }
 0xaf3   : > { %v13982_v9 = vpop.f32.mrf.mxu1 }
 0xaf5   : > { %v13986_v32 = vpop.f32.mrf.mxu1 }
 0xaf7   : > { %v13988_v16 = vpop.f32.mrf.mxu1 }
 0xaf9   : > { %v13990_v36 = vpop.f32.mrf.mxu1 }
 0xafb   : > { %v13992_v19 = vpop.f32.mrf.mxu1 }
 0xafd   : > { %v13996_v13 = vpop.f32.mrf.mxu1 }
 0xaff   : > { %v13998_v34 = vpop.f32.mrf.mxu1 }
 0xb01   : > { %v14000_v47 = vpop.f32.mrf.mxu1 }
 0xb03   : > { %v26189_v52 = vpop.f32.mrf.mxu1 }
 0xb05   : > { %v14079_v33 = vpop.f32.mrf.mxu1 }
 0xb06   : > { %v14080_v2 = vadd.f32 %v14079_v33, %v13966_v54 }
 0xb07   : > { %v14081_v7 = vpop.f32.mrf.mxu1 }
 0xb08   : > { %v14134_v49 = vadd.f32 %v14080_v2, %v28070_v42  ;;  %v14082_v61 = vadd.f32 %v14081_v7, %v13968_v5 }
 0xb09   : > { %v14083_v8 = vpop.f32.mrf.mxu1 }
 0xb0a   : > { %14166 = vst [vmem:[%s22589_s29 + $0x80] sm:$0xff] %v14134_v49  ;;  %v14135_v45 = vadd.f32 %v14082_v61, %v28071_v30  ;;  %v14084_v51 = vadd.f32 %v14083_v8, %v13970_v22 }
 0xb0b   : > { %v14085_v46 = vpop.f32.mrf.mxu1 }
 0xb0c   : > { %14167 = vst [vmem:[%s22589_s29 + $0x88] sm:$0xff] %v14135_v45  ;;  %v14136_v57 = vadd.f32 %v14084_v51, %v28072_v56  ;;  %v14086_v58 = vadd.f32 %v14085_v46, %v13972_v4  ;;  %v28084_v4 = vld [vmem:[#allocation72_spill] sm:$0xff] }
 0xb0d   : > { %v14089_v6 = vpop.f32.mrf.mxu1 }
 0xb0e   : > { %14168 = vst [vmem:[%s22589_s29 + $0x90] sm:$0xff] %v14136_v57  ;;  %v14137_v18 = vadd.f32 %v14086_v58, %v28073_v14  ;;  %v14090_v11 = vadd.f32 %v14089_v6, %v13976_v59 }
 0xb0f   : > { %v14091_v35 = vpop.f32.mrf.mxu1 }
 0xb10   : > { %14169 = vst [vmem:[%s22589_s29 + $0x98] sm:$0xff] %v14137_v18  ;;  %v14138_v60 = vadd.f32 %v14090_v11, %v28074_v1  ;;  %v14092_v12 = vadd.f32 %v14091_v35, %v13978_v20 }
 0xb11   : > { %v14093_v29 = vpop.f32.mrf.mxu1 }
 0xb12   : > { %14170 = vst [vmem:[%s22589_s29 + $0xa0] sm:$0xff] %v14138_v60  ;;  %v14139_v50 = vadd.f32 %v14092_v12, %v28075_v25  ;;  %v14094_v62 = vadd.f32 %v14093_v29, %v13980_v27 }
 0xb13   : > { %v14095_v31 = vpop.f32.mrf.mxu1 }
 0xb14   : > { %14171 = vst [vmem:[%s22589_s29 + $0xa8] sm:$0xff] %v14139_v50  ;;  %v14140_v37 = vadd.f32 %v14094_v62, %v28076_v3  ;;  %v14096_v28 = vadd.f32 %v14095_v31, %v13982_v9  ;;  %v28086_v9 = vld [vmem:[#allocation73_spill] sm:$0xff] }
 0xb15   : > { %v14099_v26 = vpop.f32.mrf.mxu1 }
 0xb16   : > { %14172 = vst [vmem:[%s22589_s29 + $0xb0] sm:$0xff] %v14140_v37  ;;  %v14141_v15 = vadd.f32 %v14096_v28, %v28077_v10  ;;  %v14100_v55 = vadd.f32 %v14099_v26, %v13986_v32 }
 0xb17   : > { %v14101_v41 = vpop.f32.mrf.mxu1 }
 0xb18   : > { %14173 = vst [vmem:[%s22589_s29 + $0xb8] sm:$0xff] %v14141_v15  ;;  %v14142_v17 = vadd.f32 %v14100_v55, %v28080_v38  ;;  %v14102_v24 = vadd.f32 %v14101_v41, %v13988_v16 }
 0xb19   : > { %v14103_v40 = vpop.f32.mrf.mxu1 }
 0xb1a   : > { %14174 = vst [vmem:[%s22589_s29 + $0xc0] sm:$0xff] %v14142_v17  ;;  %v14143_v48 = vadd.f32 %v14102_v24, %v28081_v43  ;;  %v14104_v39 = vadd.f32 %v14103_v40, %v13990_v36 }
 0xb1b   : > { %v14105_v23 = vpop.f32.mrf.mxu1 }
 0xb1c   : > { %14175 = vst [vmem:[%s22589_s29 + $0xc8] sm:$0xff] %v14143_v48  ;;  %v14144_v21 = vadd.f32 %v14104_v39, %v28082_v53  ;;  %v14106_v44 = vadd.f32 %v14105_v23, %v13992_v19  ;;  %v28088_v19 = vld [vmem:[#allocation74_spill] sm:$0xff] }
 0xb1d   : > { %v14109_v54 = vpop.f32.mrf.mxu1 }
 0xb1e   : > { %14176 = vst [vmem:[%s22589_s29 + $0xd0] sm:$0xff] %v14144_v21  ;;  %v14145_v0 = vadd.f32 %v14106_v44, %v28083_v63  ;;  %v14110_v5 = vadd.f32 %v14109_v54, %v13996_v13 }
 0xb1f   : > { %v14111_v22 = vpop.f32.mrf.mxu1 }
 0xb20   : > { %14177 = vst [vmem:[%s22589_s29 + $0xd8] sm:$0xff] %v14145_v0  ;;  %v14146_v59 = vadd.f32 %v14110_v5, %v28084_v4  ;;  %v14112_v20 = vadd.f32 %v14111_v22, %v13998_v34  ;;  %v28089_v34 = vld [vmem:[#allocation75_spill] sm:$0xff] }
 0xb21   : > { %v14113_v27 = vpop.f32.mrf.mxu1 }
 0xb22   : > { %14178 = vst [vmem:[%s22589_s29 + $0xe0] sm:$0xff] %v14146_v59  ;;  %v14147_v32 = vadd.f32 %v14112_v20, %v28086_v9  ;;  %v14114_v16 = vadd.f32 %v14113_v27, %v14000_v47 }
 0xb23   : > { %v14115_v36 = vpop.f32.mrf.mxu1 }
 0xb24   : > { %14179 = vst [vmem:[%s22589_s29 + $0xe8] sm:$0xff] %v14147_v32  ;;  %v14148_v13 = vadd.f32 %v14114_v16, %v28088_v19  ;;  %v14116_v33 = vadd.f32 %v14115_v36, %v26189_v52 }
 0xb26   : > { %14180 = vst [vmem:[%s22589_s29 + $0xf0] sm:$0xff] %v14148_v13  ;;  %v14149_v2 = vadd.f32 %v14116_v33, %v28089_v34 }
 0xb28   : > { %14181 = vst [vmem:[%s22589_s29 + $0xf8] sm:$0xff] %v14149_v2 }
 0xb29   : > { %18340 = shalt.err (!%p18337_p9)
}
 0xb2a   : > { %s18341_s22 = scalar_lea.hbm %s26231_s1, 4096  ;;  %s18345_s15 = scalar_lea.hbm %s28090_s26, 16384 }
 0xb2b   : > { %p18342_p4 = scmp.ne.s32.totalorder %s26231_s1, %s18341_s22  ;;  %p18346_p12 = scmp.lt.s32.totalorder %s26231_s1, %s28090_s26 }
 0xb2c   : > { %p18347_p3 = scmp.lt.s32.totalorder %s18345_s15, %s18341_s22 }
 0xb2d   : > { %p18343_p10 = pnand %p18342_p4, %p28091_p11 }
 0xb2e   : > { %p18348_p8 = por %p18347_p3, %p18346_p12 }
 0xb2f   : > { %p18344_p1 = pneg %p18343_p10 }
 0xb31   : > { %p18349_p6 = pnand %p18348_p8, %p18344_p1 }
 0xb33   : > { %18352 = shalt.err (!%p18349_p6)
}
 0xb34   : > { %s19774_s6 = smov 256   ;;  %s19775_s24 = smov 16  }
 0xb35   : > { %15811 = dma.vmem_to_hbm [thread:$0]  (%p28091_p11), %s26224_s4, 4096, %s26231_s1, %s26236_s30, %s19774_s6, %s19774_s6, %s19775_s24  }
 0xb36 PF: > { %s28092_s13 = sld [smem:[#allocation24_spill]]  ;;  %p15854_p13 = scmp.ge.s32.totalorder %s19107_s19, 2 }
 0xb37   : > { %p28093_p0 = scmp.ne.s32.totalorder %s26663_s12, 0 }
 0xb39   : > { %p15840_p7 = pnand %p15854_p13, %p28093_p0 }
 0xb3b   : > { %p15841_p2 = pneg %p15840_p7 }
 0xb3c   : > { %s14214_s25 = sand.u32 1, %s28092_s13  }
 0xb3d   : > { %s14215_s23 = scalar_lea.sflag [#allocation6], %s14214_s25 }
 0xb3e   : > { %19062 = dma.done.wait (%p15841_p2), %s14215_s23, 4096  }
 0xb3f   : > { %19064 = vsyncadd (%p15841_p2), %s14215_s23, 4294963200  ;;  %s28_s19 = sadd.s32 1, %s19107_s19   ;;  %s28094_s12 = sld [smem:[#allocation25_spill]] }
 0xb40   : > { %p25_p5 = scmp.ge.s32.totalorder %s28_s19, 6   ;;  %s28095_s3 = sld [smem:[#allocation32_spill]] }
 0xb41   : > { %s28096_s4 = sld [smem:[#allocation28_spill]]  ;;  %s28098_s30 = smov %s19071_s10 }
 0xb42   : > { %s28097_s1 = sld [smem:[#allocation29_spill]]  ;;  %s28099_s10 = smov %s19075_s11 }
 0xb43   : > { %s28100_s11 = smov %s20001_s21  ;;  %s28101_s13 = smov %s19087_s14 }
 0xb44   : > { %s28103_s15 = smov %s19099_s17  ;;  %s28104_s16 = smov %s19103_s18 }
 0xb45   :  { %27 = sbr.rel (!%p25_p5) target bundleno = 21 (0x15), region = 165 }
 0xb46   : > { %s28102_s14 = smov %s28095_s3 }
 0xb47   : > { %s28105_s17 = smov %s28096_s4 }
 0xb48   : > { %s28106_s18 = smov %s28097_s1 }
 0xb4a   :  { %14220 = vsyncpa [#allocation5], 1 }
 0xb4b   :  { %14222 = vsyncpa [#allocation5 + $0x1], 1 }
 0xb4c   :  { %14223 = vsyncpa [#allocation8], 1 }
 0xb4d   :  { %14224 = vsyncpa [#allocation11], 1 }
 0xb4e   :  { %14225 = vsyncpa [#allocation14], 1 }
 0xb4f   :  { %14226 = vsyncpa [#allocation6], 1 }
 0xb50   :  { %14228 = vsyncpa [#allocation6 + $0x1], 1 }

</bundles_post_ra>
